<compile_context>
chip_gen: v6e
topology: v6e:2x2x1
jax: 0.10.0
libtpu: 0.0.40
codegen_flags: <defaults>
</compile_context>

<pallas_src>
import jax
import jax.numpy as jnp
from jax.experimental import pallas as pl
from jax.experimental.pallas import tpu as pltpu

CHAN = 62                    # EEG channels
BAND = 5                     # frequency bands (feature_dim)
LAYERS = 2                   # HGCN layers
HID2 = 64                    # hidden_2
NCLS = 3                     # num_of_class
CCH = (LAYERS + 1) * BAND    # 15 channels entering CBAM
FLAT_IN = BAND * CHAN        # 310 lanes for the encoder input
FLAT_G = CCH * CHAN          # 930 lanes for the CBAM/fc1 activations
KNN = 7                      # top-k neighbours in get_target_labels
EPS_LOG = 1e-5

VMEM = pltpu.MemorySpace.VMEM
SMEM = pltpu.MemorySpace.SMEM


def _vspec():
    return pl.BlockSpec(memory_space=VMEM)


def _sspec():
    return pl.BlockSpec(memory_space=SMEM)


def _elu(x):
    return jnp.where(x > 0, x, jnp.exp(jnp.minimum(x, 0.0)) - 1.0)


def _sigmoid(x):
    return 1.0 / (1.0 + jnp.exp(-x))


def _softmax(x):
    m = jnp.max(x, axis=-1, keepdims=True)
    e = jnp.exp(x - m)
    return e / jnp.sum(e, axis=-1, keepdims=True)


# ---------------------------------------------------------------- GATENet ----
def gatenet_kernel(a_ref, w1t_ref, w2t_ref, out_ref):
    # Linear(3844->30, no bias) -> ELU -> Linear(30->3844, no bias) -> Tanh -> ReLU
    h = jnp.dot(a_ref[...], w1t_ref[...], preferred_element_type=jnp.float32)
    h = _elu(h)
    y = jnp.dot(h, w2t_ref[...], preferred_element_type=jnp.float32)
    out_ref[...] = jnp.maximum(jnp.tanh(y), 0.0)


def run_gatenet(params):
    # Runs exactly once per forward (adjacency depends only on params).
    return pl.pallas_call(
        gatenet_kernel,
        out_shape=jax.ShapeDtypeStruct((1, CHAN * CHAN), jnp.float32),
        in_specs=[_vspec()] * 3,
        out_specs=_vspec(),
    )(params["A"], params["gate_w1t"], params["gate_w2t"])


# -------------------------------------------------------- fused forward ------
def fused_forward_kernel(
        x_ref,        # (Btot, 310)   lane-flat activations, source rows first
        lblk_ref,     # (310, 310)    block-diagonal normalized adjacency
        convw_ref,    # (8, 310)      per-lane depthwise conv weights (BN folded)
        se1_ref,      # (15, 3)
        se2_ref,      # (3, 15)
        sap_ref,      # SMEM (7,)     spatial-attention taps + bias
        expp_ref,     # (15, 930)     channel  -> lane-flat one-hot expansion
        tilep_ref,    # (62, 930)     spatial  -> lane-flat one-hot tiling
        fc1w_ref, fc1b_ref, fc2w_ref, fc2b_ref,
        clsw_ref, clsb_ref,
        srcidx_ref,   # SMEM (Bs,) int32
        fbank_ref,    # (S, 64)  aliased in-place
        sbank_ref,    # (S, 3)   aliased in-place
        # outputs
        feat_ref,     # (Btot, 64)
        logit_ref,    # (Btot, 3)
        ca_ref,       # (Btot, 15)
        sa_ref,       # (Btot, 62)
        tlabel_ref,   # (Bt, 3)
        fbank_out_ref,   # (S, 64)
        sbank_out_ref):  # (S, 3)
    Btot = x_ref.shape[0]
    Bs = srcidx_ref.shape[0]
    Bt = tlabel_ref.shape[0]
    S = fbank_ref.shape[0]

    x = x_ref[...]                                     # (Btot, 310)
    lblk = lblk_ref[...]                               # (310, 310)
    convw = convw_ref[...]                             # (8, 310)

    # ----- HGCN layer, activations kept lane-flat (B, 5*62) -----
    def hgcn(inp, row0):
        # resGCN: depthwise Conv2d(1,3) + BN + ELU + depthwise Conv2d(1,1) pad 1
        # + BN, all folded into masked per-lane weight rows, then graph conv.
        w_t0 = convw[row0 + 0:row0 + 1, :]
        w_t1 = convw[row0 + 1:row0 + 2, :]
        w_t2 = convw[row0 + 2:row0 + 3, :]
        w_g2 = convw[row0 + 3:row0 + 4, :]
        zc = jnp.zeros_like(inp[:, 0:1])
        xp = jnp.concatenate([zc, inp, zc], axis=-1)            # (B, 312)
        pre = (w_t0 * xp[:, 0:FLAT_IN] + w_t1 * xp[:, 1:FLAT_IN + 1]
               + w_t2 * xp[:, 2:FLAT_IN + 2])
        c2 = w_g2 * _elu(pre)                                   # (B, 310)
        # einsum('bijk,kp->bijp', conv_out, L) == one matmul with block-diag L
        y = jnp.dot(c2, lblk, preferred_element_type=jnp.float32)
        return _elu(y + inp)                                    # residual + ELU

    h1 = hgcn(x, 0)
    h2 = hgcn(h1, 4)
    g = jnp.concatenate([x, h1, h2], axis=-1)                   # (B, 930)

    # ----- CBAM channel attention -----
    blocks = [g[:, c * CHAN:(c + 1) * CHAN] for c in range(CCH)]
    mx = jnp.concatenate(
        [jnp.max(blk, axis=-1, keepdims=True) for blk in blocks], axis=-1)
    av = jax.lax.dot_general(g, expp_ref[...], (((1,), (1,)), ((), ())),
                             preferred_element_type=jnp.float32) * (1.0 / CHAN)

    def se(v):
        hh = jnp.maximum(
            jnp.dot(v, se1_ref[...], preferred_element_type=jnp.float32), 0.0)
        return jnp.dot(hh, se2_ref[...], preferred_element_type=jnp.float32)

    ca = _sigmoid(se(mx) + se(av))                              # (B, 15)
    ca_ref[...] = ca
    ca_full = jnp.dot(ca, expp_ref[...], preferred_element_type=jnp.float32)
    gc = g * ca_full                                            # (B, 930)

    # ----- CBAM spatial attention (3x3 conv, H==1 -> only the middle row) -----
    smax = blocks[0] * ca[:, 0:1]
    for c in range(1, CCH):
        smax = jnp.maximum(smax, blocks[c] * ca[:, c:c + 1])    # (B, 62)
    smean = jax.lax.dot_general(gc, tilep_ref[...], (((1,), (1,)), ((), ())),
                                preferred_element_type=jnp.float32) * (1.0 / CCH)
    zc = jnp.zeros_like(smax[:, 0:1])
    mp = jnp.concatenate([zc, smax, zc], axis=-1)               # (B, 64)
    ap = jnp.concatenate([zc, smean, zc], axis=-1)
    conv = (sap_ref[0] * mp[:, 0:CHAN] + sap_ref[1] * mp[:, 1:CHAN + 1]
            + sap_ref[2] * mp[:, 2:CHAN + 2]
            + sap_ref[3] * ap[:, 0:CHAN] + sap_ref[4] * ap[:, 1:CHAN + 1]
            + sap_ref[5] * ap[:, 2:CHAN + 2] + sap_ref[6])
    sa = _sigmoid(conv)                                         # (B, 62)
    sa_ref[...] = sa
    sa_full = jnp.dot(sa, tilep_ref[...], preferred_element_type=jnp.float32)
    out = gc * sa_full + g                                      # CBAM residual

    # ----- fc1 (930->64) / fc2 -----  (dropouts are identity in eval mode)
    h = jnp.maximum(
        jnp.dot(out, fc1w_ref[...], preferred_element_type=jnp.float32)
        + fc1b_ref[...], 0.0)
    feat = jnp.maximum(
        jnp.dot(h, fc2w_ref[...], preferred_element_type=jnp.float32)
        + fc2b_ref[...], 0.0)
    feat_ref[...] = feat

    # ----- classifier + softmax -----
    logits = (jnp.dot(feat, clsw_ref[...], preferred_element_type=jnp.float32)
              + clsb_ref[...])
    logit_ref[...] = logits
    probs = _softmax(logits)

    # ----- get_target_labels -----
    def l2n(v):
        n = jnp.sqrt(jnp.sum(v * v, axis=-1, keepdims=True))
        return v / jnp.maximum(n, 1e-12)

    src_fn = l2n(feat[0:Bs, :])                                 # (Bs, 64)
    tar_fn = l2n(feat[Bs:Btot, :])                              # (Bt, 64)
    src_prob = probs[0:Bs, :]                                   # (Bs, 3)

    # in-kernel bank scatter update (rows selected via mask; last write wins)
    fb = fbank_ref[...]
    sb = sbank_ref[...]
    row_id = jax.lax.broadcasted_iota(jnp.int32, (S, 1), 0)
    for i in range(Bs):
        m = row_id == srcidx_ref[i]
        fb = jnp.where(m, src_fn[i:i + 1, :], fb)
        sb = jnp.where(m, src_prob[i:i + 1, :], sb)
    fbank_out_ref[...] = fb
    sbank_out_ref[...] = sb

    # distance = tar_fn @ f_bank.T -- bank kept in native (S, 64) layout
    dist = jax.lax.dot_general(tar_fn, fb, (((1,), (1,)), ((), ())),
                               preferred_element_type=jnp.float32)   # (Bt, S)

    # iterative top-KNN (first-index tie break) + one-hot gather of the score
    # bank, fused with the entropy weighting of get_weight().
    lane = jax.lax.broadcasted_iota(jnp.int32, (Bt, S), 1).astype(jnp.float32)
    d = dist
    s_list, g_list = [], []
    for _ in range(KNN):
        mval = jnp.max(d, axis=-1, keepdims=True)               # (Bt, 1)
        cand = jnp.where(d >= mval, lane, jnp.float32(S))
        sel = jnp.min(cand, axis=-1, keepdims=True)             # first argmax lane
        pick = lane == sel                                      # exact one-hot
        onehot = pick.astype(jnp.float32)                       # (Bt, S)
        sk = jnp.dot(onehot, sb, preferred_element_type=jnp.float32)  # (Bt, 3)
        ent_k = -(1.0 / KNN) * jnp.sum(sk * jnp.log(sk + EPS_LOG),
                                       axis=-1, keepdims=True)
        s_list.append(sk)
        g_list.append(1.0 - ent_k)
        d = jnp.where(pick, jnp.float32(-1e30), d)              # mask neighbour

    gsum = g_list[0]
    for gk in g_list[1:]:
        gsum = gsum + gk
    z = jnp.zeros((Bt, NCLS), jnp.float32)
    for sk, gk in zip(s_list, g_list):
        z = z + sk * (gk / gsum)                                # einsum('ijk,ij->ik')
    tlabel_ref[...] = _softmax(z)


def run_fused_forward(params, banks, x_all, l_blk, source_index):
    Btot = x_all.shape[0]
    Bs = source_index.shape[0]
    Bt = Btot - Bs
    S = banks["f"].shape[0]

    in_specs = [
        _vspec(),                                  # x_all
        _vspec(),                                  # l_blk
        _vspec(),                                  # convw
        _vspec(), _vspec(),                        # se1 se2
        _sspec(),                                  # sa_p
        _vspec(), _vspec(),                        # expP tileP
        _vspec(), _vspec(), _vspec(), _vspec(),    # fc1w fc1b fc2w fc2b
        _vspec(), _vspec(),                        # cls_w cls_b
        _sspec(),                                  # source_index
        _vspec(), _vspec(),                        # f_bank s_bank
    ]
    out_shape = (
        jax.ShapeDtypeStruct((Btot, HID2), jnp.float32),    # feat
        jax.ShapeDtypeStruct((Btot, NCLS), jnp.float32),    # logits
        jax.ShapeDtypeStruct((Btot, CCH), jnp.float32),     # ca
        jax.ShapeDtypeStruct((Btot, CHAN), jnp.float32),    # sa
        jax.ShapeDtypeStruct((Bt, NCLS), jnp.float32),      # target_label
        jax.ShapeDtypeStruct((S, HID2), jnp.float32),       # f_bank (aliased)
        jax.ShapeDtypeStruct((S, NCLS), jnp.float32),       # s_bank (aliased)
    )
    return pl.pallas_call(
        fused_forward_kernel,
        out_shape=out_shape,
        in_specs=in_specs,
        out_specs=tuple(_vspec() for _ in range(7)),
        input_output_aliases={15: 5, 16: 6},   # f_bank, s_bank updated in place
    )(x_all, l_blk, params["convw"], params["se1"], params["se2"],
      params["sa_p"], params["expP"], params["tileP"],
      params["fc1w"], params["fc1b"], params["fc2w"], params["fc2b"],
      params["cls_w"], params["cls_b"],
      source_index, banks["f"], banks["s"])


# ---------------------------------------------------------------- forward ----
def domain_adaption_forward(params, banks, source, target, source_label,
                            source_index):
    del source_label  # unused by the PyTorch forward as well
    Bs, Bt = source.shape[0], target.shape[0]

    # GATENet once; trivial host glue builds the normalized block-diagonal L.
    a_ds = run_gatenet(params).reshape(CHAN, CHAN)
    # L = A_ds @ diag(1 / column_sum(A_ds)); block-diag over 5 bands so the
    # band graph conv is a single (B, 310) @ (310, 310) matmul in the kernel.
    l_norm = a_ds / jnp.sum(a_ds, axis=0, keepdims=True)
    l_blk = jnp.kron(jnp.eye(BAND, dtype=jnp.float32), l_norm)      # (310, 310)

    # Batch source + target through one encoder/classifier pass.
    x_all = jnp.concatenate([source.reshape(Bs, FLAT_IN),
                             target.reshape(Bt, FLAT_IN)], axis=0)

    (feat, logits, ca, sa, target_label, f_bank, s_bank) = run_fused_forward(
        params, banks, x_all, l_blk, source_index.astype(jnp.int32))

    src_f, tar_f = feat[:Bs], feat[Bs:]
    src_logits, tar_logits = logits[:Bs], logits[Bs:]
    # match PyTorch attention shapes: ca (B,15,1,1), sa (B,1,1,62)
    src_att = [a_ds, ca[:Bs].reshape(Bs, CCH, 1, 1),
               sa[:Bs].reshape(Bs, 1, 1, CHAN)]
    tar_att = [a_ds, ca[Bs:].reshape(Bt, CCH, 1, 1),
               sa[Bs:].reshape(Bt, 1, 1, CHAN)]
    new_banks = {"f": f_bank, "s": s_bank}
    return (src_logits, src_f, tar_logits, tar_f, src_att, tar_att,
            target_label, new_banks)


# ------------------------------------------------------------------ params ---
def init_params(key):
    ks = jax.random.split(key, 13)
    inc = CHAN * CHAN                 # 3844
    red = inc // 128                  # 30
    std = 0.05
    bn_scale = 1.0 / jnp.sqrt(jnp.float32(1.0 + 1e-5))   # eval-mode BN fold
    p = {}
    p["A"] = jax.random.uniform(ks[0], (1, inc), jnp.float32)          # torch.rand
    p["gate_w1t"] = std * jax.random.normal(ks[1], (inc, red), jnp.float32)
    p["gate_w2t"] = std * jax.random.normal(ks[2], (red, inc), jnp.float32)

    # Depthwise graph-conv weights (2 layers), BN folded, laid out as lane-flat
    # (1, 310) rows: rows 0-2 = layer-1 GConv1 taps, row 3 = layer-1 GConv2;
    # rows 4-7 = layer 2.  Lanes j==0 / j==61 of each band (GConv2 zero
    # padding) are masked to 0.
    jpos = jnp.arange(CHAN)
    jmask = ((jpos >= 1) & (jpos <= CHAN - 2)).astype(jnp.float32)     # (62,)
    rows = []
    for layer in range(LAYERS):
        w1 = std * jax.random.normal(ks[3 + 2 * layer], (BAND, 3),
                                     jnp.float32) * bn_scale
        w2 = std * jax.random.normal(ks[4 + 2 * layer], (BAND, 1),
                                     jnp.float32) * bn_scale
        for t in range(3):
            rows.append((w1[:, t:t + 1] * jmask[None, :]).reshape(FLAT_IN))
        rows.append((w2 * jmask[None, :]).reshape(FLAT_IN))
    p["convw"] = jnp.stack(rows, axis=0)                               # (8, 310)

    p["se1"] = std * jax.random.normal(ks[7], (CCH, CCH // 4), jnp.float32)
    p["se2"] = std * jax.random.normal(ks[8], (CCH // 4, CCH), jnp.float32)
    # spatial conv (1,2,3,3): only the kh==1 row contributes (H==1, pad 1)
    # -> 6 taps + bias
    p["sa_p"] = std * jax.random.normal(ks[9], (7,), jnp.float32)

    # constant one-hot expansion matrices used by the fused kernel
    p["expP"] = jnp.kron(jnp.eye(CCH, dtype=jnp.float32),
                         jnp.ones((1, CHAN), jnp.float32))             # (15, 930)
    p["tileP"] = jnp.kron(jnp.ones((1, CCH), jnp.float32),
                          jnp.eye(CHAN, dtype=jnp.float32))            # (62, 930)

    # fc1 weight stored lane-flat: rows ordered channel*62 + chan (torch order)
    p["fc1w"] = std * jax.random.normal(ks[10], (FLAT_G, HID2), jnp.float32)
    p["fc1b"] = jnp.zeros((1, HID2), jnp.float32)
    p["fc2w"] = std * jax.random.normal(ks[11], (HID2, HID2), jnp.float32)
    p["fc2b"] = jnp.zeros((1, HID2), jnp.float32)
    p["cls_w"] = std * jax.random.normal(ks[12], (HID2, NCLS), jnp.float32)
    p["cls_b"] = jnp.zeros((1, NCLS), jnp.float32)
    return p


def init_banks(key, source_num):
    kf, ks = jax.random.split(key)
    return {"f": jax.random.normal(kf, (source_num, HID2), jnp.float32),
            "s": jax.random.normal(ks, (source_num, NCLS), jnp.float32)}


if __name__ == "__main__":
    key = jax.random.PRNGKey(0)
    kp, kb, ksrc, ktar, kidx = jax.random.split(key, 5)

    params = init_params(kp)
    source_num = 64
    banks = init_banks(kb, source_num)

    Bs, Bt = 4, 4
    source = jax.random.normal(ksrc, (Bs, BAND * CHAN), jnp.float32)   # (4, 310)
    target = jax.random.normal(ktar, (Bt, BAND * CHAN), jnp.float32)   # (4, 310)
    source_label = jnp.zeros((Bs,), jnp.int32)                         # unused
    source_index = jax.random.permutation(kidx, source_num)[:Bs].astype(jnp.int32)

    # donate the banks so the aliased in-kernel scatter update is truly in place
    fwd = jax.jit(domain_adaption_forward, donate_argnums=(1,))
    out = fwd(params, banks, source, target, source_label, source_index)
    out = jax.block_until_ready(out)

    (src_logits, src_f, tar_logits, tar_f, src_att, tar_att,
     target_label, new_banks) = out
    assert src_logits.shape == (Bs, NCLS)
    assert src_f.shape == (Bs, HID2)
    assert tar_logits.shape == (Bt, NCLS)
    assert tar_f.shape == (Bt, HID2)
    assert src_att[0].shape == (CHAN, CHAN)
    assert src_att[1].shape == (Bs, CCH, 1, 1)
    assert src_att[2].shape == (Bs, 1, 1, CHAN)
    assert target_label.shape == (Bt, NCLS)
    assert new_banks["f"].shape == (source_num, HID2)
    assert new_banks["s"].shape == (source_num, NCLS)
    print("KERNEL_OK")
</pallas_src>

<mosaic_0001>
module attributes {stable_mosaic.version = 11 : i64} {
  func.func @gatenet_kernel(%arg0: memref<1x3844xf32, #tpu.memory_space<vmem>>, %arg1: memref<3844x30xf32, #tpu.memory_space<vmem>>, %arg2: memref<30x3844xf32, #tpu.memory_space<vmem>>, %arg3: memref<1x3844xf32, #tpu.memory_space<vmem>>) attributes {dimension_semantics = [], scalar_prefetch = 0 : i64, scratch_operands = 0 : i64, tpu.core_type = #tpu.core_type<tc>} {
    %c0 = arith.constant 0 : index
    %c0_0 = arith.constant 0 : index
    %0 = vector.load %arg0[%c0, %c0_0] : memref<1x3844xf32, #tpu.memory_space<vmem>>, vector<1x3844xf32>
    %c0_1 = arith.constant 0 : index
    %c0_2 = arith.constant 0 : index
    %1 = vector.load %arg1[%c0_1, %c0_2] : memref<3844x30xf32, #tpu.memory_space<vmem>>, vector<3844x30xf32>
    %cst = arith.constant dense<0.000000e+00> : vector<1x30xf32>
    %2 = tpu.matmul %0, %1, %cst {dimension_numbers = #tpu.dot_dimension_numbers<[1], [0], [0], [1], [0, 0, 1, 1], [], []>} : vector<1x3844xf32>, vector<3844x30xf32>, vector<1x30xf32> -> vector<1x30xf32>
    %cst_3 = arith.constant 0.000000e+00 : f32
    %3 = vector.broadcast %cst_3 : f32 to vector<1x30xf32>
    %4 = arith.cmpf ogt, %2, %3 : vector<1x30xf32>
    %cst_4 = arith.constant 0.000000e+00 : f32
    %5 = vector.broadcast %cst_4 : f32 to vector<1x30xf32>
    %6 = arith.minimumf %2, %5 : vector<1x30xf32>
    %7 = math.exp %6 : vector<1x30xf32>
    %cst_5 = arith.constant 1.000000e+00 : f32
    %8 = vector.broadcast %cst_5 : f32 to vector<1x30xf32>
    %9 = arith.subf %7, %8 : vector<1x30xf32>
    %10 = arith.select %4, %2, %9 : vector<1x30xi1>, vector<1x30xf32>
    %c0_6 = arith.constant 0 : index
    %c0_7 = arith.constant 0 : index
    %11 = vector.load %arg2[%c0_6, %c0_7] : memref<30x3844xf32, #tpu.memory_space<vmem>>, vector<30x3844xf32>
    %cst_8 = arith.constant dense<0.000000e+00> : vector<1x3844xf32>
    %12 = tpu.matmul %10, %11, %cst_8 {dimension_numbers = #tpu.dot_dimension_numbers<[1], [0], [0], [1], [0, 0, 1, 1], [], []>} : vector<1x30xf32>, vector<30x3844xf32>, vector<1x3844xf32> -> vector<1x3844xf32>
    %13 = math.tanh %12 : vector<1x3844xf32>
    %cst_9 = arith.constant 0.000000e+00 : f32
    %14 = vector.broadcast %cst_9 : f32 to vector<1x3844xf32>
    %15 = arith.maximumf %13, %14 : vector<1x3844xf32>
    %c0_10 = arith.constant 0 : index
    %c0_11 = arith.constant 0 : index
    %16 = vector.load %arg3[%c0_10, %c0_11] : memref<1x3844xf32, #tpu.memory_space<vmem>>, vector<1x3844xf32>
    tpu.vector_store %arg3[%c0_10, %c0_11], %15 {strides = array<i32>} : memref<1x3844xf32, #tpu.memory_space<vmem>>, vector<1x3844xf32>,
    return
  }
}

module attributes {stable_mosaic.version = 11 : i64} {
  func.func @fused_forward_kernel(%arg0: memref<8x310xf32, #tpu.memory_space<vmem>>, %arg1: memref<310x310xf32, #tpu.memory_space<vmem>>, %arg2: memref<8x310xf32, #tpu.memory_space<vmem>>, %arg3: memref<15x3xf32, #tpu.memory_space<vmem>>, %arg4: memref<3x15xf32, #tpu.memory_space<vmem>>, %arg5: memref<7xf32, #tpu.memory_space<smem>>, %arg6: memref<15x930xf32, #tpu.memory_space<vmem>>, %arg7: memref<62x930xf32, #tpu.memory_space<vmem>>, %arg8: memref<930x64xf32, #tpu.memory_space<vmem>>, %arg9: memref<1x64xf32, #tpu.memory_space<vmem>>, %arg10: memref<64x64xf32, #tpu.memory_space<vmem>>, %arg11: memref<1x64xf32, #tpu.memory_space<vmem>>, %arg12: memref<64x3xf32, #tpu.memory_space<vmem>>, %arg13: memref<1x3xf32, #tpu.memory_space<vmem>>, %arg14: memref<4xi32, #tpu.memory_space<smem>>, %arg15: memref<64x64xf32, #tpu.memory_space<vmem>>, %arg16: memref<64x3xf32, #tpu.memory_space<vmem>>, %arg17: memref<8x64xf32, #tpu.memory_space<vmem>>, %arg18: memref<8x3xf32, #tpu.memory_space<vmem>>, %arg19: memref<8x15xf32, #tpu.memory_space<vmem>>, %arg20: memref<8x62xf32, #tpu.memory_space<vmem>>, %arg21: memref<4x3xf32, #tpu.memory_space<vmem>>, %arg22: memref<64x64xf32, #tpu.memory_space<vmem>>, %arg23: memref<64x3xf32, #tpu.memory_space<vmem>>) attributes {dimension_semantics = [], scalar_prefetch = 0 : i64, scratch_operands = 0 : i64, tpu.core_type = #tpu.core_type<tc>} {
    %c0 = arith.constant 0 : index
    %c0_0 = arith.constant 0 : index
    %0 = vector.load %arg0[%c0, %c0_0] : memref<8x310xf32, #tpu.memory_space<vmem>>, vector<8x310xf32>
    %c0_1 = arith.constant 0 : index
    %c0_2 = arith.constant 0 : index
    %1 = vector.load %arg1[%c0_1, %c0_2] : memref<310x310xf32, #tpu.memory_space<vmem>>, vector<310x310xf32>
    %c0_3 = arith.constant 0 : index
    %c0_4 = arith.constant 0 : index
    %2 = vector.load %arg2[%c0_3, %c0_4] : memref<8x310xf32, #tpu.memory_space<vmem>>, vector<8x310xf32>
    %3 = vector.extract_strided_slice %2 {offsets = [0, 0], sizes = [1, 310], strides = [1, 1]} : vector<8x310xf32> to vector<1x310xf32>
    %4 = vector.extract_strided_slice %2 {offsets = [1, 0], sizes = [1, 310], strides = [1, 1]} : vector<8x310xf32> to vector<1x310xf32>
    %5 = vector.extract_strided_slice %2 {offsets = [2, 0], sizes = [1, 310], strides = [1, 1]} : vector<8x310xf32> to vector<1x310xf32>
    %6 = vector.extract_strided_slice %2 {offsets = [3, 0], sizes = [1, 310], strides = [1, 1]} : vector<8x310xf32> to vector<1x310xf32>
    %cst = arith.constant 0.000000e+00 : f32
    %7 = vector.broadcast %cst : f32 to vector<8x1xf32>
    %8 = tpu.concatenate %7, %0, %7 in 1 : vector<8x1xf32>, vector<8x310xf32>, vector<8x1xf32> -> vector<8x312xf32>
    %9 = vector.extract_strided_slice %8 {offsets = [0, 0], sizes = [8, 310], strides = [1, 1]} : vector<8x312xf32> to vector<8x310xf32>
    %10 = vector.broadcast %3 : vector<1x310xf32> to vector<8x310xf32>
    %11 = arith.mulf %10, %9 : vector<8x310xf32>
    %12 = vector.extract_strided_slice %8 {offsets = [0, 1], sizes = [8, 310], strides = [1, 1]} : vector<8x312xf32> to vector<8x310xf32>
    %13 = vector.broadcast %4 : vector<1x310xf32> to vector<8x310xf32>
    %14 = arith.mulf %13, %12 : vector<8x310xf32>
    %15 = arith.addf %11, %14 : vector<8x310xf32>
    %16 = vector.extract_strided_slice %8 {offsets = [0, 2], sizes = [8, 310], strides = [1, 1]} : vector<8x312xf32> to vector<8x310xf32>
    %17 = vector.broadcast %5 : vector<1x310xf32> to vector<8x310xf32>
    %18 = arith.mulf %17, %16 : vector<8x310xf32>
    %19 = arith.addf %15, %18 : vector<8x310xf32>
    %cst_5 = arith.constant 0.000000e+00 : f32
    %20 = vector.broadcast %cst_5 : f32 to vector<8x310xf32>
    %21 = arith.cmpf ogt, %19, %20 : vector<8x310xf32>
    %cst_6 = arith.constant 0.000000e+00 : f32
    %22 = vector.broadcast %cst_6 : f32 to vector<8x310xf32>
    %23 = arith.minimumf %19, %22 : vector<8x310xf32>
    %24 = math.exp %23 : vector<8x310xf32>
    %cst_7 = arith.constant 1.000000e+00 : f32
    %25 = vector.broadcast %cst_7 : f32 to vector<8x310xf32>
    %26 = arith.subf %24, %25 : vector<8x310xf32>
    %27 = arith.select %21, %19, %26 : vector<8x310xi1>, vector<8x310xf32>
    %28 = vector.broadcast %6 : vector<1x310xf32> to vector<8x310xf32>
    %29 = arith.mulf %28, %27 : vector<8x310xf32>
    %cst_8 = arith.constant dense<0.000000e+00> : vector<8x310xf32>
    %30 = tpu.matmul %29, %1, %cst_8 {dimension_numbers = #tpu.dot_dimension_numbers<[1], [0], [0], [1], [0, 0, 1, 1], [], []>} : vector<8x310xf32>, vector<310x310xf32>, vector<8x310xf32> -> vector<8x310xf32>
    %31 = arith.addf %30, %0 : vector<8x310xf32>
    %cst_9 = arith.constant 0.000000e+00 : f32
    %32 = vector.broadcast %cst_9 : f32 to vector<8x310xf32>
    %33 = arith.cmpf ogt, %31, %32 : vector<8x310xf32>
    %cst_10 = arith.constant 0.000000e+00 : f32
    %34 = vector.broadcast %cst_10 : f32 to vector<8x310xf32>
    %35 = arith.minimumf %31, %34 : vector<8x310xf32>
    %36 = math.exp %35 : vector<8x310xf32>
    %cst_11 = arith.constant 1.000000e+00 : f32
    %37 = vector.broadcast %cst_11 : f32 to vector<8x310xf32>
    %38 = arith.subf %36, %37 : vector<8x310xf32>
    %39 = arith.select %33, %31, %38 : vector<8x310xi1>, vector<8x310xf32>
    %40 = vector.extract_strided_slice %2 {offsets = [4, 0], sizes = [1, 310], strides = [1, 1]} : vector<8x310xf32> to vector<1x310xf32>
    %41 = vector.extract_strided_slice %2 {offsets = [5, 0], sizes = [1, 310], strides = [1, 1]} : vector<8x310xf32> to vector<1x310xf32>
    %42 = vector.extract_strided_slice %2 {offsets = [6, 0], sizes = [1, 310], strides = [1, 1]} : vector<8x310xf32> to vector<1x310xf32>
    %43 = vector.extract_strided_slice %2 {offsets = [7, 0], sizes = [1, 310], strides = [1, 1]} : vector<8x310xf32> to vector<1x310xf32>
    %cst_12 = arith.constant 0.000000e+00 : f32
    %44 = vector.broadcast %cst_12 : f32 to vector<8x1xf32>
    %45 = tpu.concatenate %44, %39, %44 in 1 : vector<8x1xf32>, vector<8x310xf32>, vector<8x1xf32> -> vector<8x312xf32>
    %46 = vector.extract_strided_slice %45 {offsets = [0, 0], sizes = [8, 310], strides = [1, 1]} : vector<8x312xf32> to vector<8x310xf32>
    %47 = vector.broadcast %40 : vector<1x310xf32> to vector<8x310xf32>
    %48 = arith.mulf %47, %46 : vector<8x310xf32>
    %49 = vector.extract_strided_slice %45 {offsets = [0, 1], sizes = [8, 310], strides = [1, 1]} : vector<8x312xf32> to vector<8x310xf32>
    %50 = vector.broadcast %41 : vector<1x310xf32> to vector<8x310xf32>
    %51 = arith.mulf %50, %49 : vector<8x310xf32>
    %52 = arith.addf %48, %51 : vector<8x310xf32>
    %53 = vector.extract_strided_slice %45 {offsets = [0, 2], sizes = [8, 310], strides = [1, 1]} : vector<8x312xf32> to vector<8x310xf32>
    %54 = vector.broadcast %42 : vector<1x310xf32> to vector<8x310xf32>
    %55 = arith.mulf %54, %53 : vector<8x310xf32>
    %56 = arith.addf %52, %55 : vector<8x310xf32>
    %cst_13 = arith.constant 0.000000e+00 : f32
    %57 = vector.broadcast %cst_13 : f32 to vector<8x310xf32>
    %58 = arith.cmpf ogt, %56, %57 : vector<8x310xf32>
    %cst_14 = arith.constant 0.000000e+00 : f32
    %59 = vector.broadcast %cst_14 : f32 to vector<8x310xf32>
    %60 = arith.minimumf %56, %59 : vector<8x310xf32>
    %61 = math.exp %60 : vector<8x310xf32>
    %cst_15 = arith.constant 1.000000e+00 : f32
    %62 = vector.broadcast %cst_15 : f32 to vector<8x310xf32>
    %63 = arith.subf %61, %62 : vector<8x310xf32>
    %64 = arith.select %58, %56, %63 : vector<8x310xi1>, vector<8x310xf32>
    %65 = vector.broadcast %43 : vector<1x310xf32> to vector<8x310xf32>
    %66 = arith.mulf %65, %64 : vector<8x310xf32>
    %cst_16 = arith.constant dense<0.000000e+00> : vector<8x310xf32>
    %67 = tpu.matmul %66, %1, %cst_16 {dimension_numbers = #tpu.dot_dimension_numbers<[1], [0], [0], [1], [0, 0, 1, 1], [], []>} : vector<8x310xf32>, vector<310x310xf32>, vector<8x310xf32> -> vector<8x310xf32>
    %68 = arith.addf %67, %39 : vector<8x310xf32>
    %cst_17 = arith.constant 0.000000e+00 : f32
    %69 = vector.broadcast %cst_17 : f32 to vector<8x310xf32>
    %70 = arith.cmpf ogt, %68, %69 : vector<8x310xf32>
    %cst_18 = arith.constant 0.000000e+00 : f32
    %71 = vector.broadcast %cst_18 : f32 to vector<8x310xf32>
    %72 = arith.minimumf %68, %71 : vector<8x310xf32>
    %73 = math.exp %72 : vector<8x310xf32>
    %cst_19 = arith.constant 1.000000e+00 : f32
    %74 = vector.broadcast %cst_19 : f32 to vector<8x310xf32>
    %75 = arith.subf %73, %74 : vector<8x310xf32>
    %76 = arith.select %70, %68, %75 : vector<8x310xi1>, vector<8x310xf32>
    %77 = tpu.concatenate %0, %39, %76 in 1 : vector<8x310xf32>, vector<8x310xf32>, vector<8x310xf32> -> vector<8x930xf32>
    %78 = vector.extract_strided_slice %77 {offsets = [0, 0], sizes = [8, 62], strides = [1, 1]} : vector<8x930xf32> to vector<8x62xf32>
    %79 = vector.extract_strided_slice %77 {offsets = [0, 62], sizes = [8, 62], strides = [1, 1]} : vector<8x930xf32> to vector<8x62xf32>
    %80 = vector.extract_strided_slice %77 {offsets = [0, 124], sizes = [8, 62], strides = [1, 1]} : vector<8x930xf32> to vector<8x62xf32>
    %81 = vector.extract_strided_slice %77 {offsets = [0, 186], sizes = [8, 62], strides = [1, 1]} : vector<8x930xf32> to vector<8x62xf32>
    %82 = vector.extract_strided_slice %77 {offsets = [0, 248], sizes = [8, 62], strides = [1, 1]} : vector<8x930xf32> to vector<8x62xf32>
    %83 = vector.extract_strided_slice %77 {offsets = [0, 310], sizes = [8, 62], strides = [1, 1]} : vector<8x930xf32> to vector<8x62xf32>
    %84 = vector.extract_strided_slice %77 {offsets = [0, 372], sizes = [8, 62], strides = [1, 1]} : vector<8x930xf32> to vector<8x62xf32>
    %85 = vector.extract_strided_slice %77 {offsets = [0, 434], sizes = [8, 62], strides = [1, 1]} : vector<8x930xf32> to vector<8x62xf32>
    %86 = vector.extract_strided_slice %77 {offsets = [0, 496], sizes = [8, 62], strides = [1, 1]} : vector<8x930xf32> to vector<8x62xf32>
    %87 = vector.extract_strided_slice %77 {offsets = [0, 558], sizes = [8, 62], strides = [1, 1]} : vector<8x930xf32> to vector<8x62xf32>
    %88 = vector.extract_strided_slice %77 {offsets = [0, 620], sizes = [8, 62], strides = [1, 1]} : vector<8x930xf32> to vector<8x62xf32>
    %89 = vector.extract_strided_slice %77 {offsets = [0, 682], sizes = [8, 62], strides = [1, 1]} : vector<8x930xf32> to vector<8x62xf32>
    %90 = vector.extract_strided_slice %77 {offsets = [0, 744], sizes = [8, 62], strides = [1, 1]} : vector<8x930xf32> to vector<8x62xf32>
    %91 = vector.extract_strided_slice %77 {offsets = [0, 806], sizes = [8, 62], strides = [1, 1]} : vector<8x930xf32> to vector<8x62xf32>
    %92 = vector.extract_strided_slice %77 {offsets = [0, 868], sizes = [8, 62], strides = [1, 1]} : vector<8x930xf32> to vector<8x62xf32>
    %cst_20 = arith.constant dense<0xFF800000> : vector<8xf32>
    %93 = vector.multi_reduction <maximumf>, %78, %cst_20 [1] : vector<8x62xf32> to vector<8xf32>
    %94 = vector.shape_cast %93 : vector<8xf32> to vector<8x1xf32>
    %cst_21 = arith.constant dense<0xFF800000> : vector<8xf32>
    %95 = vector.multi_reduction <maximumf>, %79, %cst_21 [1] : vector<8x62xf32> to vector<8xf32>
    %96 = vector.shape_cast %95 : vector<8xf32> to vector<8x1xf32>
    %cst_22 = arith.constant dense<0xFF800000> : vector<8xf32>
    %97 = vector.multi_reduction <maximumf>, %80, %cst_22 [1] : vector<8x62xf32> to vector<8xf32>
    %98 = vector.shape_cast %97 : vector<8xf32> to vector<8x1xf32>
    %cst_23 = arith.constant dense<0xFF800000> : vector<8xf32>
    %99 = vector.multi_reduction <maximumf>, %81, %cst_23 [1] : vector<8x62xf32> to vector<8xf32>
    %100 = vector.shape_cast %99 : vector<8xf32> to vector<8x1xf32>
    %cst_24 = arith.constant dense<0xFF800000> : vector<8xf32>
    %101 = vector.multi_reduction <maximumf>, %82, %cst_24 [1] : vector<8x62xf32> to vector<8xf32>
    %102 = vector.shape_cast %101 : vector<8xf32> to vector<8x1xf32>
    %cst_25 = arith.constant dense<0xFF800000> : vector<8xf32>
    %103 = vector.multi_reduction <maximumf>, %83, %cst_25 [1] : vector<8x62xf32> to vector<8xf32>
    %104 = vector.shape_cast %103 : vector<8xf32> to vector<8x1xf32>
    %cst_26 = arith.constant dense<0xFF800000> : vector<8xf32>
    %105 = vector.multi_reduction <maximumf>, %84, %cst_26 [1] : vector<8x62xf32> to vector<8xf32>
    %106 = vector.shape_cast %105 : vector<8xf32> to vector<8x1xf32>
    %cst_27 = arith.constant dense<0xFF800000> : vector<8xf32>
    %107 = vector.multi_reduction <maximumf>, %85, %cst_27 [1] : vector<8x62xf32> to vector<8xf32>
    %108 = vector.shape_cast %107 : vector<8xf32> to vector<8x1xf32>
    %cst_28 = arith.constant dense<0xFF800000> : vector<8xf32>
    %109 = vector.multi_reduction <maximumf>, %86, %cst_28 [1] : vector<8x62xf32> to vector<8xf32>
    %110 = vector.shape_cast %109 : vector<8xf32> to vector<8x1xf32>
    %cst_29 = arith.constant dense<0xFF800000> : vector<8xf32>
    %111 = vector.multi_reduction <maximumf>, %87, %cst_29 [1] : vector<8x62xf32> to vector<8xf32>
    %112 = vector.shape_cast %111 : vector<8xf32> to vector<8x1xf32>
    %cst_30 = arith.constant dense<0xFF800000> : vector<8xf32>
    %113 = vector.multi_reduction <maximumf>, %88, %cst_30 [1] : vector<8x62xf32> to vector<8xf32>
    %114 = vector.shape_cast %113 : vector<8xf32> to vector<8x1xf32>
    %cst_31 = arith.constant dense<0xFF800000> : vector<8xf32>
    %115 = vector.multi_reduction <maximumf>, %89, %cst_31 [1] : vector<8x62xf32> to vector<8xf32>
    %116 = vector.shape_cast %115 : vector<8xf32> to vector<8x1xf32>
    %cst_32 = arith.constant dense<0xFF800000> : vector<8xf32>
    %117 = vector.multi_reduction <maximumf>, %90, %cst_32 [1] : vector<8x62xf32> to vector<8xf32>
    %118 = vector.shape_cast %117 : vector<8xf32> to vector<8x1xf32>
    %cst_33 = arith.constant dense<0xFF800000> : vector<8xf32>
    %119 = vector.multi_reduction <maximumf>, %91, %cst_33 [1] : vector<8x62xf32> to vector<8xf32>
    %120 = vector.shape_cast %119 : vector<8xf32> to vector<8x1xf32>
    %cst_34 = arith.constant dense<0xFF800000> : vector<8xf32>
    %121 = vector.multi_reduction <maximumf>, %92, %cst_34 [1] : vector<8x62xf32> to vector<8xf32>
    %122 = vector.shape_cast %121 : vector<8xf32> to vector<8x1xf32>
    %123 = tpu.concatenate %94, %96, %98, %100, %102, %104, %106, %108, %110, %112, %114, %116, %118, %120, %122 in 1 : vector<8x1xf32>, vector<8x1xf32>, vector<8x1xf32>, vector<8x1xf32>, vector<8x1xf32>, vector<8x1xf32>, vector<8x1xf32>, vector<8x1xf32>, vector<8x1xf32>, vector<8x1xf32>, vector<8x1xf32>, vector<8x1xf32>, vector<8x1xf32>, vector<8x1xf32>, vector<8x1xf32> -> vector<8x15xf32>
    %c0_35 = arith.constant 0 : index
    %c0_36 = arith.constant 0 : index
    %124 = vector.load %arg6[%c0_35, %c0_36] : memref<15x930xf32, #tpu.memory_space<vmem>>, vector<15x930xf32>
    %cst_37 = arith.constant dense<0.000000e+00> : vector<8x15xf32>
    %125 = tpu.matmul %77, %124, %cst_37 {dimension_numbers = #tpu.dot_dimension_numbers<[1], [1], [0], [0], [0, 0, 1, 0], [], []>} : vector<8x930xf32>, vector<15x930xf32>, vector<8x15xf32> -> vector<8x15xf32>
    %cst_38 = arith.constant 0.0161290318 : f32
    %126 = vector.broadcast %cst_38 : f32 to vector<8x15xf32>
    %127 = arith.mulf %125, %126 : vector<8x15xf32>
    %c0_39 = arith.constant 0 : index
    %c0_40 = arith.constant 0 : index
    %128 = vector.load %arg3[%c0_39, %c0_40] : memref<15x3xf32, #tpu.memory_space<vmem>>, vector<15x3xf32>
    %cst_41 = arith.constant dense<0.000000e+00> : vector<8x3xf32>
    %129 = tpu.matmul %123, %128, %cst_41 {dimension_numbers = #tpu.dot_dimension_numbers<[1], [0], [0], [1], [0, 0, 1, 1], [], []>} : vector<8x15xf32>, vector<15x3xf32>, vector<8x3xf32> -> vector<8x3xf32>
    %cst_42 = arith.constant 0.000000e+00 : f32
    %130 = vector.broadcast %cst_42 : f32 to vector<8x3xf32>
    %131 = arith.maximumf %129, %130 : vector<8x3xf32>
    %c0_43 = arith.constant 0 : index
    %c0_44 = arith.constant 0 : index
    %132 = vector.load %arg4[%c0_43, %c0_44] : memref<3x15xf32, #tpu.memory_space<vmem>>, vector<3x15xf32>
    %cst_45 = arith.constant dense<0.000000e+00> : vector<8x15xf32>
    %133 = tpu.matmul %131, %132, %cst_45 {dimension_numbers = #tpu.dot_dimension_numbers<[1], [0], [0], [1], [0, 0, 1, 1], [], []>} : vector<8x3xf32>, vector<3x15xf32>, vector<8x15xf32> -> vector<8x15xf32>
    %c0_46 = arith.constant 0 : index
    %c0_47 = arith.constant 0 : index
    %134 = vector.load %arg3[%c0_46, %c0_47] : memref<15x3xf32, #tpu.memory_space<vmem>>, vector<15x3xf32>
    %cst_48 = arith.constant dense<0.000000e+00> : vector<8x3xf32>
    %135 = tpu.matmul %127, %134, %cst_48 {dimension_numbers = #tpu.dot_dimension_numbers<[1], [0], [0], [1], [0, 0, 1, 1], [], []>} : vector<8x15xf32>, vector<15x3xf32>, vector<8x3xf32> -> vector<8x3xf32>
    %cst_49 = arith.constant 0.000000e+00 : f32
    %136 = vector.broadcast %cst_49 : f32 to vector<8x3xf32>
    %137 = arith.maximumf %135, %136 : vector<8x3xf32>
    %c0_50 = arith.constant 0 : index
    %c0_51 = arith.constant 0 : index
    %138 = vector.load %arg4[%c0_50, %c0_51] : memref<3x15xf32, #tpu.memory_space<vmem>>, vector<3x15xf32>
    %cst_52 = arith.constant dense<0.000000e+00> : vector<8x15xf32>
    %139 = tpu.matmul %137, %138, %cst_52 {dimension_numbers = #tpu.dot_dimension_numbers<[1], [0], [0], [1], [0, 0, 1, 1], [], []>} : vector<8x3xf32>, vector<3x15xf32>, vector<8x15xf32> -> vector<8x15xf32>
    %140 = arith.addf %133, %139 : vector<8x15xf32>
    %cst_53 = arith.constant 0.000000e+00 : f32
    %141 = vector.broadcast %cst_53 : f32 to vector<8x15xf32>
    %142 = arith.subf %141, %140 : vector<8x15xf32>
    %143 = math.exp %142 : vector<8x15xf32>
    %cst_54 = arith.constant 1.000000e+00 : f32
    %144 = vector.broadcast %cst_54 : f32 to vector<8x15xf32>
    %145 = arith.addf %144, %143 : vector<8x15xf32>
    %cst_55 = arith.constant 1.000000e+00 : f32
    %146 = vector.broadcast %cst_55 : f32 to vector<8x15xf32>
    %147 = arith.divf %146, %145 : vector<8x15xf32>
    %c0_56 = arith.constant 0 : index
    %c0_57 = arith.constant 0 : index
    %148 = vector.load %arg19[%c0_56, %c0_57] : memref<8x15xf32, #tpu.memory_space<vmem>>, vector<8x15xf32>
    tpu.vector_store %arg19[%c0_56, %c0_57], %147 {strides = array<i32>} : memref<8x15xf32, #tpu.memory_space<vmem>>, vector<8x15xf32>,
    %c0_58 = arith.constant 0 : index
    %c0_59 = arith.constant 0 : index
    %149 = vector.load %arg6[%c0_58, %c0_59] : memref<15x930xf32, #tpu.memory_space<vmem>>, vector<15x930xf32>
    %cst_60 = arith.constant dense<0.000000e+00> : vector<8x930xf32>
    %150 = tpu.matmul %147, %149, %cst_60 {dimension_numbers = #tpu.dot_dimension_numbers<[1], [0], [0], [1], [0, 0, 1, 1], [], []>} : vector<8x15xf32>, vector<15x930xf32>, vector<8x930xf32> -> vector<8x930xf32>
    %151 = arith.mulf %77, %150 : vector<8x930xf32>
    %152 = vector.extract_strided_slice %147 {offsets = [0, 0], sizes = [8, 1], strides = [1, 1]} : vector<8x15xf32> to vector<8x1xf32>
    %153 = vector.broadcast %152 : vector<8x1xf32> to vector<8x62xf32>
    %154 = arith.mulf %78, %153 : vector<8x62xf32>
    %155 = vector.extract_strided_slice %147 {offsets = [0, 1], sizes = [8, 1], strides = [1, 1]} : vector<8x15xf32> to vector<8x1xf32>
    %156 = vector.broadcast %155 : vector<8x1xf32> to vector<8x62xf32>
    %157 = arith.mulf %79, %156 : vector<8x62xf32>
    %158 = arith.maximumf %154, %157 : vector<8x62xf32>
    %159 = vector.extract_strided_slice %147 {offsets = [0, 2], sizes = [8, 1], strides = [1, 1]} : vector<8x15xf32> to vector<8x1xf32>
    %160 = vector.broadcast %159 : vector<8x1xf32> to vector<8x62xf32>
    %161 = arith.mulf %80, %160 : vector<8x62xf32>
    %162 = arith.maximumf %158, %161 : vector<8x62xf32>
    %163 = vector.extract_strided_slice %147 {offsets = [0, 3], sizes = [8, 1], strides = [1, 1]} : vector<8x15xf32> to vector<8x1xf32>
    %164 = vector.broadcast %163 : vector<8x1xf32> to vector<8x62xf32>
    %165 = arith.mulf %81, %164 : vector<8x62xf32>
    %166 = arith.maximumf %162, %165 : vector<8x62xf32>
    %167 = vector.extract_strided_slice %147 {offsets = [0, 4], sizes = [8, 1], strides = [1, 1]} : vector<8x15xf32> to vector<8x1xf32>
    %168 = vector.broadcast %167 : vector<8x1xf32> to vector<8x62xf32>
    %169 = arith.mulf %82, %168 : vector<8x62xf32>
    %170 = arith.maximumf %166, %169 : vector<8x62xf32>
    %171 = vector.extract_strided_slice %147 {offsets = [0, 5], sizes = [8, 1], strides = [1, 1]} : vector<8x15xf32> to vector<8x1xf32>
    %172 = vector.broadcast %171 : vector<8x1xf32> to vector<8x62xf32>
    %173 = arith.mulf %83, %172 : vector<8x62xf32>
    %174 = arith.maximumf %170, %173 : vector<8x62xf32>
    %175 = vector.extract_strided_slice %147 {offsets = [0, 6], sizes = [8, 1], strides = [1, 1]} : vector<8x15xf32> to vector<8x1xf32>
    %176 = vector.broadcast %175 : vector<8x1xf32> to vector<8x62xf32>
    %177 = arith.mulf %84, %176 : vector<8x62xf32>
    %178 = arith.maximumf %174, %177 : vector<8x62xf32>
    %179 = vector.extract_strided_slice %147 {offsets = [0, 7], sizes = [8, 1], strides = [1, 1]} : vector<8x15xf32> to vector<8x1xf32>
    %180 = vector.broadcast %179 : vector<8x1xf32> to vector<8x62xf32>
    %181 = arith.mulf %85, %180 : vector<8x62xf32>
    %182 = arith.maximumf %178, %181 : vector<8x62xf32>
    %183 = vector.extract_strided_slice %147 {offsets = [0, 8], sizes = [8, 1], strides = [1, 1]} : vector<8x15xf32> to vector<8x1xf32>
    %184 = vector.broadcast %183 : vector<8x1xf32> to vector<8x62xf32>
    %185 = arith.mulf %86, %184 : vector<8x62xf32>
    %186 = arith.maximumf %182, %185 : vector<8x62xf32>
    %187 = vector.extract_strided_slice %147 {offsets = [0, 9], sizes = [8, 1], strides = [1, 1]} : vector<8x15xf32> to vector<8x1xf32>
    %188 = vector.broadcast %187 : vector<8x1xf32> to vector<8x62xf32>
    %189 = arith.mulf %87, %188 : vector<8x62xf32>
    %190 = arith.maximumf %186, %189 : vector<8x62xf32>
    %191 = vector.extract_strided_slice %147 {offsets = [0, 10], sizes = [8, 1], strides = [1, 1]} : vector<8x15xf32> to vector<8x1xf32>
    %192 = vector.broadcast %191 : vector<8x1xf32> to vector<8x62xf32>
    %193 = arith.mulf %88, %192 : vector<8x62xf32>
    %194 = arith.maximumf %190, %193 : vector<8x62xf32>
    %195 = vector.extract_strided_slice %147 {offsets = [0, 11], sizes = [8, 1], strides = [1, 1]} : vector<8x15xf32> to vector<8x1xf32>
    %196 = vector.broadcast %195 : vector<8x1xf32> to vector<8x62xf32>
    %197 = arith.mulf %89, %196 : vector<8x62xf32>
    %198 = arith.maximumf %194, %197 : vector<8x62xf32>
    %199 = vector.extract_strided_slice %147 {offsets = [0, 12], sizes = [8, 1], strides = [1, 1]} : vector<8x15xf32> to vector<8x1xf32>
    %200 = vector.broadcast %199 : vector<8x1xf32> to vector<8x62xf32>
    %201 = arith.mulf %90, %200 : vector<8x62xf32>
    %202 = arith.maximumf %198, %201 : vector<8x62xf32>
    %203 = vector.extract_strided_slice %147 {offsets = [0, 13], sizes = [8, 1], strides = [1, 1]} : vector<8x15xf32> to vector<8x1xf32>
    %204 = vector.broadcast %203 : vector<8x1xf32> to vector<8x62xf32>
    %205 = arith.mulf %91, %204 : vector<8x62xf32>
    %206 = arith.maximumf %202, %205 : vector<8x62xf32>
    %207 = vector.extract_strided_slice %147 {offsets = [0, 14], sizes = [8, 1], strides = [1, 1]} : vector<8x15xf32> to vector<8x1xf32>
    %208 = vector.broadcast %207 : vector<8x1xf32> to vector<8x62xf32>
    %209 = arith.mulf %92, %208 : vector<8x62xf32>
    %210 = arith.maximumf %206, %209 : vector<8x62xf32>
    %c0_61 = arith.constant 0 : index
    %c0_62 = arith.constant 0 : index
    %211 = vector.load %arg7[%c0_61, %c0_62] : memref<62x930xf32, #tpu.memory_space<vmem>>, vector<62x930xf32>
    %cst_63 = arith.constant dense<0.000000e+00> : vector<8x62xf32>
    %212 = tpu.matmul %151, %211, %cst_63 {dimension_numbers = #tpu.dot_dimension_numbers<[1], [1], [0], [0], [0, 0, 1, 0], [], []>} : vector<8x930xf32>, vector<62x930xf32>, vector<8x62xf32> -> vector<8x62xf32>
    %cst_64 = arith.constant 0.0666666701 : f32
    %213 = vector.broadcast %cst_64 : f32 to vector<8x62xf32>
    %214 = arith.mulf %212, %213 : vector<8x62xf32>
    %cst_65 = arith.constant 0.000000e+00 : f32
    %215 = vector.broadcast %cst_65 : f32 to vector<8x1xf32>
    %216 = tpu.concatenate %215, %210, %215 in 1 : vector<8x1xf32>, vector<8x62xf32>, vector<8x1xf32> -> vector<8x64xf32>
    %217 = tpu.concatenate %215, %214, %215 in 1 : vector<8x1xf32>, vector<8x62xf32>, vector<8x1xf32> -> vector<8x64xf32>
    %c0_66 = arith.constant 0 : index
    %218 = memref.load %arg5[%c0_66] : memref<7xf32, #tpu.memory_space<smem>>
    %219 = vector.extract_strided_slice %216 {offsets = [0, 0], sizes = [8, 62], strides = [1, 1]} : vector<8x64xf32> to vector<8x62xf32>
    %220 = vector.broadcast %218 : f32 to vector<8x62xf32>
    %221 = arith.mulf %220, %219 : vector<8x62xf32>
    %c1 = arith.constant 1 : index
    %222 = memref.load %arg5[%c1] : memref<7xf32, #tpu.memory_space<smem>>
    %223 = vector.extract_strided_slice %216 {offsets = [0, 1], sizes = [8, 62], strides = [1, 1]} : vector<8x64xf32> to vector<8x62xf32>
    %224 = vector.broadcast %222 : f32 to vector<8x62xf32>
    %225 = arith.mulf %224, %223 : vector<8x62xf32>
    %226 = arith.addf %221, %225 : vector<8x62xf32>
    %c2 = arith.constant 2 : index
    %227 = memref.load %arg5[%c2] : memref<7xf32, #tpu.memory_space<smem>>
    %228 = vector.extract_strided_slice %216 {offsets = [0, 2], sizes = [8, 62], strides = [1, 1]} : vector<8x64xf32> to vector<8x62xf32>
    %229 = vector.broadcast %227 : f32 to vector<8x62xf32>
    %230 = arith.mulf %229, %228 : vector<8x62xf32>
    %231 = arith.addf %226, %230 : vector<8x62xf32>
    %c3 = arith.constant 3 : index
    %232 = memref.load %arg5[%c3] : memref<7xf32, #tpu.memory_space<smem>>
    %233 = vector.extract_strided_slice %217 {offsets = [0, 0], sizes = [8, 62], strides = [1, 1]} : vector<8x64xf32> to vector<8x62xf32>
    %234 = vector.broadcast %232 : f32 to vector<8x62xf32>
    %235 = arith.mulf %234, %233 : vector<8x62xf32>
    %236 = arith.addf %231, %235 : vector<8x62xf32>
    %c4 = arith.constant 4 : index
    %237 = memref.load %arg5[%c4] : memref<7xf32, #tpu.memory_space<smem>>
    %238 = vector.extract_strided_slice %217 {offsets = [0, 1], sizes = [8, 62], strides = [1, 1]} : vector<8x64xf32> to vector<8x62xf32>
    %239 = vector.broadcast %237 : f32 to vector<8x62xf32>
    %240 = arith.mulf %239, %238 : vector<8x62xf32>
    %241 = arith.addf %236, %240 : vector<8x62xf32>
    %c5 = arith.constant 5 : index
    %242 = memref.load %arg5[%c5] : memref<7xf32, #tpu.memory_space<smem>>
    %243 = vector.extract_strided_slice %217 {offsets = [0, 2], sizes = [8, 62], strides = [1, 1]} : vector<8x64xf32> to vector<8x62xf32>
    %244 = vector.broadcast %242 : f32 to vector<8x62xf32>
    %245 = arith.mulf %244, %243 : vector<8x62xf32>
    %246 = arith.addf %241, %245 : vector<8x62xf32>
    %c6 = arith.constant 6 : index
    %247 = memref.load %arg5[%c6] : memref<7xf32, #tpu.memory_space<smem>>
    %248 = vector.broadcast %247 : f32 to vector<8x62xf32>
    %249 = arith.addf %246, %248 : vector<8x62xf32>
    %cst_67 = arith.constant 0.000000e+00 : f32
    %250 = vector.broadcast %cst_67 : f32 to vector<8x62xf32>
    %251 = arith.subf %250, %249 : vector<8x62xf32>
    %252 = math.exp %251 : vector<8x62xf32>
    %cst_68 = arith.constant 1.000000e+00 : f32
    %253 = vector.broadcast %cst_68 : f32 to vector<8x62xf32>
    %254 = arith.addf %253, %252 : vector<8x62xf32>
    %cst_69 = arith.constant 1.000000e+00 : f32
    %255 = vector.broadcast %cst_69 : f32 to vector<8x62xf32>
    %256 = arith.divf %255, %254 : vector<8x62xf32>
    %c0_70 = arith.constant 0 : index
    %c0_71 = arith.constant 0 : index
    %257 = vector.load %arg20[%c0_70, %c0_71] : memref<8x62xf32, #tpu.memory_space<vmem>>, vector<8x62xf32>
    tpu.vector_store %arg20[%c0_70, %c0_71], %256 {strides = array<i32>} : memref<8x62xf32, #tpu.memory_space<vmem>>, vector<8x62xf32>,
    %c0_72 = arith.constant 0 : index
    %c0_73 = arith.constant 0 : index
    %258 = vector.load %arg7[%c0_72, %c0_73] : memref<62x930xf32, #tpu.memory_space<vmem>>, vector<62x930xf32>
    %cst_74 = arith.constant dense<0.000000e+00> : vector<8x930xf32>
    %259 = tpu.matmul %256, %258, %cst_74 {dimension_numbers = #tpu.dot_dimension_numbers<[1], [0], [0], [1], [0, 0, 1, 1], [], []>} : vector<8x62xf32>, vector<62x930xf32>, vector<8x930xf32> -> vector<8x930xf32>
    %260 = arith.mulf %151, %259 : vector<8x930xf32>
    %261 = arith.addf %260, %77 : vector<8x930xf32>
    %c0_75 = arith.constant 0 : index
    %c0_76 = arith.constant 0 : index
    %262 = vector.load %arg8[%c0_75, %c0_76] : memref<930x64xf32, #tpu.memory_space<vmem>>, vector<930x64xf32>
    %cst_77 = arith.constant dense<0.000000e+00> : vector<8x64xf32>
    %263 = tpu.matmul %261, %262, %cst_77 {dimension_numbers = #tpu.dot_dimension_numbers<[1], [0], [0], [1], [0, 0, 1, 1], [], []>} : vector<8x930xf32>, vector<930x64xf32>, vector<8x64xf32> -> vector<8x64xf32>
    %c0_78 = arith.constant 0 : index
    %c0_79 = arith.constant 0 : index
    %264 = vector.load %arg9[%c0_78, %c0_79] : memref<1x64xf32, #tpu.memory_space<vmem>>, vector<1x64xf32>
    %265 = vector.broadcast %264 : vector<1x64xf32> to vector<8x64xf32>
    %266 = arith.addf %263, %265 : vector<8x64xf32>
    %cst_80 = arith.constant 0.000000e+00 : f32
    %267 = vector.broadcast %cst_80 : f32 to vector<8x64xf32>
    %268 = arith.maximumf %266, %267 : vector<8x64xf32>
    %c0_81 = arith.constant 0 : index
    %c0_82 = arith.constant 0 : index
    %269 = vector.load %arg10[%c0_81, %c0_82] : memref<64x64xf32, #tpu.memory_space<vmem>>, vector<64x64xf32>
    %cst_83 = arith.constant dense<0.000000e+00> : vector<8x64xf32>
    %270 = tpu.matmul %268, %269, %cst_83 {dimension_numbers = #tpu.dot_dimension_numbers<[1], [0], [0], [1], [0, 0, 1, 1], [], []>} : vector<8x64xf32>, vector<64x64xf32>, vector<8x64xf32> -> vector<8x64xf32>
    %c0_84 = arith.constant 0 : index
    %c0_85 = arith.constant 0 : index
    %271 = vector.load %arg11[%c0_84, %c0_85] : memref<1x64xf32, #tpu.memory_space<vmem>>, vector<1x64xf32>
    %272 = vector.broadcast %271 : vector<1x64xf32> to vector<8x64xf32>
    %273 = arith.addf %270, %272 : vector<8x64xf32>
    %cst_86 = arith.constant 0.000000e+00 : f32
    %274 = vector.broadcast %cst_86 : f32 to vector<8x64xf32>
    %275 = arith.maximumf %273, %274 : vector<8x64xf32>
    %c0_87 = arith.constant 0 : index
    %c0_88 = arith.constant 0 : index
    %276 = vector.load %arg17[%c0_87, %c0_88] : memref<8x64xf32, #tpu.memory_space<vmem>>, vector<8x64xf32>
    tpu.vector_store %arg17[%c0_87, %c0_88], %275 {strides = array<i32>} : memref<8x64xf32, #tpu.memory_space<vmem>>, vector<8x64xf32>,
    %c0_89 = arith.constant 0 : index
    %c0_90 = arith.constant 0 : index
    %277 = vector.load %arg12[%c0_89, %c0_90] : memref<64x3xf32, #tpu.memory_space<vmem>>, vector<64x3xf32>
    %cst_91 = arith.constant dense<0.000000e+00> : vector<8x3xf32>
    %278 = tpu.matmul %275, %277, %cst_91 {dimension_numbers = #tpu.dot_dimension_numbers<[1], [0], [0], [1], [0, 0, 1, 1], [], []>} : vector<8x64xf32>, vector<64x3xf32>, vector<8x3xf32> -> vector<8x3xf32>
    %c0_92 = arith.constant 0 : index
    %c0_93 = arith.constant 0 : index
    %279 = vector.load %arg13[%c0_92, %c0_93] : memref<1x3xf32, #tpu.memory_space<vmem>>, vector<1x3xf32>
    %280 = vector.broadcast %279 : vector<1x3xf32> to vector<8x3xf32>
    %281 = arith.addf %278, %280 : vector<8x3xf32>
    %c0_94 = arith.constant 0 : index
    %c0_95 = arith.constant 0 : index
    %282 = vector.load %arg18[%c0_94, %c0_95] : memref<8x3xf32, #tpu.memory_space<vmem>>, vector<8x3xf32>
    tpu.vector_store %arg18[%c0_94, %c0_95], %281 {strides = array<i32>} : memref<8x3xf32, #tpu.memory_space<vmem>>, vector<8x3xf32>,
    %cst_96 = arith.constant dense<0xFF800000> : vector<8xf32>
    %283 = vector.multi_reduction <maximumf>, %281, %cst_96 [1] : vector<8x3xf32> to vector<8xf32>
    %284 = vector.shape_cast %283 : vector<8xf32> to vector<8x1xf32>
    %285 = vector.broadcast %284 : vector<8x1xf32> to vector<8x3xf32>
    %286 = arith.subf %281, %285 : vector<8x3xf32>
    %287 = math.exp %286 : vector<8x3xf32>
    %cst_97 = arith.constant dense<0.000000e+00> : vector<8xf32>
    %288 = vector.multi_reduction <add>, %287, %cst_97 [1] : vector<8x3xf32> to vector<8xf32>
    %289 = vector.shape_cast %288 : vector<8xf32> to vector<8x1xf32>
    %290 = vector.broadcast %289 : vector<8x1xf32> to vector<8x3xf32>
    %291 = arith.divf %287, %290 : vector<8x3xf32>
    %292 = vector.extract_strided_slice %275 {offsets = [0, 0], sizes = [4, 64], strides = [1, 1]} : vector<8x64xf32> to vector<4x64xf32>
    %293 = arith.mulf %292, %292 : vector<4x64xf32>
    %cst_98 = arith.constant dense<0.000000e+00> : vector<4xf32>
    %294 = vector.multi_reduction <add>, %293, %cst_98 [1] : vector<4x64xf32> to vector<4xf32>
    %295 = vector.shape_cast %294 : vector<4xf32> to vector<4x1xf32>
    %296 = math.sqrt %295 : vector<4x1xf32>
    %cst_99 = arith.constant 9.99999996E-13 : f32
    %297 = vector.broadcast %cst_99 : f32 to vector<4x1xf32>
    %298 = arith.maximumf %296, %297 : vector<4x1xf32>
    %299 = vector.broadcast %298 : vector<4x1xf32> to vector<4x64xf32>
    %300 = arith.divf %292, %299 : vector<4x64xf32>
    %301 = vector.extract_strided_slice %275 {offsets = [4, 0], sizes = [4, 64], strides = [1, 1]} : vector<8x64xf32> to vector<4x64xf32>
    %302 = arith.mulf %301, %301 : vector<4x64xf32>
    %cst_100 = arith.constant dense<0.000000e+00> : vector<4xf32>
    %303 = vector.multi_reduction <add>, %302, %cst_100 [1] : vector<4x64xf32> to vector<4xf32>
    %304 = vector.shape_cast %303 : vector<4xf32> to vector<4x1xf32>
    %305 = math.sqrt %304 : vector<4x1xf32>
    %cst_101 = arith.constant 9.99999996E-13 : f32
    %306 = vector.broadcast %cst_101 : f32 to vector<4x1xf32>
    %307 = arith.maximumf %305, %306 : vector<4x1xf32>
    %308 = vector.broadcast %307 : vector<4x1xf32> to vector<4x64xf32>
    %309 = arith.divf %301, %308 : vector<4x64xf32>
    %310 = vector.extract_strided_slice %291 {offsets = [0, 0], sizes = [4, 3], strides = [1, 1]} : vector<8x3xf32> to vector<4x3xf32>
    %c0_102 = arith.constant 0 : index
    %c0_103 = arith.constant 0 : index
    %311 = vector.load %arg15[%c0_102, %c0_103] : memref<64x64xf32, #tpu.memory_space<vmem>>, vector<64x64xf32>
    %c0_104 = arith.constant 0 : index
    %c0_105 = arith.constant 0 : index
    %312 = vector.load %arg16[%c0_104, %c0_105] : memref<64x3xf32, #tpu.memory_space<vmem>>, vector<64x3xf32>
    %313 = tpu.iota {dimensions = array<i32: 0>} : vector<64x1xi32>
    %c0_106 = arith.constant 0 : index
    %314 = memref.load %arg14[%c0_106] : memref<4xi32, #tpu.memory_space<smem>>
    %315 = vector.broadcast %314 : i32 to vector<64x1xi32>
    %316 = arith.cmpi eq, %313, %315 : vector<64x1xi32>
    %317 = vector.extract_strided_slice %300 {offsets = [0, 0], sizes = [1, 64], strides = [1, 1]} : vector<4x64xf32> to vector<1x64xf32>
    %318 = vector.shape_cast %316 : vector<64x1xi1> to vector<64x1xi1>
    %319 = vector.broadcast %318 : vector<64x1xi1> to vector<64x64xi1>
    %320 = vector.shape_cast %317 : vector<1x64xf32> to vector<1x64xf32>
    %321 = vector.broadcast %320 : vector<1x64xf32> to vector<64x64xf32>
    %322 = arith.select %319, %321, %311 : vector<64x64xi1>, vector<64x64xf32>
    %323 = vector.extract_strided_slice %310 {offsets = [0, 0], sizes = [1, 3], strides = [1, 1]} : vector<4x3xf32> to vector<1x3xf32>
    %324 = vector.shape_cast %316 : vector<64x1xi1> to vector<64x1xi1>
    %325 = vector.broadcast %324 : vector<64x1xi1> to vector<64x3xi1>
    %326 = vector.shape_cast %323 : vector<1x3xf32> to vector<1x3xf32>
    %327 = vector.broadcast %326 : vector<1x3xf32> to vector<64x3xf32>
    %328 = arith.select %325, %327, %312 : vector<64x3xi1>, vector<64x3xf32>
    %c1_107 = arith.constant 1 : index
    %329 = memref.load %arg14[%c1_107] : memref<4xi32, #tpu.memory_space<smem>>
    %330 = vector.broadcast %329 : i32 to vector<64x1xi32>
    %331 = arith.cmpi eq, %313, %330 : vector<64x1xi32>
    %332 = vector.extract_strided_slice %300 {offsets = [1, 0], sizes = [1, 64], strides = [1, 1]} : vector<4x64xf32> to vector<1x64xf32>
    %333 = vector.shape_cast %331 : vector<64x1xi1> to vector<64x1xi1>
    %334 = vector.broadcast %333 : vector<64x1xi1> to vector<64x64xi1>
    %335 = vector.shape_cast %332 : vector<1x64xf32> to vector<1x64xf32>
    %336 = vector.broadcast %335 : vector<1x64xf32> to vector<64x64xf32>
    %337 = arith.select %334, %336, %322 : vector<64x64xi1>, vector<64x64xf32>
    %338 = vector.extract_strided_slice %310 {offsets = [1, 0], sizes = [1, 3], strides = [1, 1]} : vector<4x3xf32> to vector<1x3xf32>
    %339 = vector.shape_cast %331 : vector<64x1xi1> to vector<64x1xi1>
    %340 = vector.broadcast %339 : vector<64x1xi1> to vector<64x3xi1>
    %341 = vector.shape_cast %338 : vector<1x3xf32> to vector<1x3xf32>
    %342 = vector.broadcast %341 : vector<1x3xf32> to vector<64x3xf32>
    %343 = arith.select %340, %342, %328 : vector<64x3xi1>, vector<64x3xf32>
    %c2_108 = arith.constant 2 : index
    %344 = memref.load %arg14[%c2_108] : memref<4xi32, #tpu.memory_space<smem>>
    %345 = vector.broadcast %344 : i32 to vector<64x1xi32>
    %346 = arith.cmpi eq, %313, %345 : vector<64x1xi32>
    %347 = vector.extract_strided_slice %300 {offsets = [2, 0], sizes = [1, 64], strides = [1, 1]} : vector<4x64xf32> to vector<1x64xf32>
    %348 = vector.shape_cast %346 : vector<64x1xi1> to vector<64x1xi1>
    %349 = vector.broadcast %348 : vector<64x1xi1> to vector<64x64xi1>
    %350 = vector.shape_cast %347 : vector<1x64xf32> to vector<1x64xf32>
    %351 = vector.broadcast %350 : vector<1x64xf32> to vector<64x64xf32>
    %352 = arith.select %349, %351, %337 : vector<64x64xi1>, vector<64x64xf32>
    %353 = vector.extract_strided_slice %310 {offsets = [2, 0], sizes = [1, 3], strides = [1, 1]} : vector<4x3xf32> to vector<1x3xf32>
    %354 = vector.shape_cast %346 : vector<64x1xi1> to vector<64x1xi1>
    %355 = vector.broadcast %354 : vector<64x1xi1> to vector<64x3xi1>
    %356 = vector.shape_cast %353 : vector<1x3xf32> to vector<1x3xf32>
    %357 = vector.broadcast %356 : vector<1x3xf32> to vector<64x3xf32>
    %358 = arith.select %355, %357, %343 : vector<64x3xi1>, vector<64x3xf32>
    %c3_109 = arith.constant 3 : index
    %359 = memref.load %arg14[%c3_109] : memref<4xi32, #tpu.memory_space<smem>>
    %360 = vector.broadcast %359 : i32 to vector<64x1xi32>
    %361 = arith.cmpi eq, %313, %360 : vector<64x1xi32>
    %362 = vector.extract_strided_slice %300 {offsets = [3, 0], sizes = [1, 64], strides = [1, 1]} : vector<4x64xf32> to vector<1x64xf32>
    %363 = vector.shape_cast %361 : vector<64x1xi1> to vector<64x1xi1>
    %364 = vector.broadcast %363 : vector<64x1xi1> to vector<64x64xi1>
    %365 = vector.shape_cast %362 : vector<1x64xf32> to vector<1x64xf32>
    %366 = vector.broadcast %365 : vector<1x64xf32> to vector<64x64xf32>
    %367 = arith.select %364, %366, %352 : vector<64x64xi1>, vector<64x64xf32>
    %368 = vector.extract_strided_slice %310 {offsets = [3, 0], sizes = [1, 3], strides = [1, 1]} : vector<4x3xf32> to vector<1x3xf32>
    %369 = vector.shape_cast %361 : vector<64x1xi1> to vector<64x1xi1>
    %370 = vector.broadcast %369 : vector<64x1xi1> to vector<64x3xi1>
    %371 = vector.shape_cast %368 : vector<1x3xf32> to vector<1x3xf32>
    %372 = vector.broadcast %371 : vector<1x3xf32> to vector<64x3xf32>
    %373 = arith.select %370, %372, %358 : vector<64x3xi1>, vector<64x3xf32>
    %c0_110 = arith.constant 0 : index
    %c0_111 = arith.constant 0 : index
    %374 = vector.load %arg22[%c0_110, %c0_111] : memref<64x64xf32, #tpu.memory_space<vmem>>, vector<64x64xf32>
    tpu.vector_store %arg22[%c0_110, %c0_111], %367 {strides = array<i32>} : memref<64x64xf32, #tpu.memory_space<vmem>>, vector<64x64xf32>,
    %c0_112 = arith.constant 0 : index
    %c0_113 = arith.constant 0 : index
    %375 = vector.load %arg23[%c0_112, %c0_113] : memref<64x3xf32, #tpu.memory_space<vmem>>, vector<64x3xf32>
    tpu.vector_store %arg23[%c0_112, %c0_113], %373 {strides = array<i32>} : memref<64x3xf32, #tpu.memory_space<vmem>>, vector<64x3xf32>,
    %cst_114 = arith.constant dense<0.000000e+00> : vector<4x64xf32>
    %376 = tpu.matmul %309, %367, %cst_114 {dimension_numbers = #tpu.dot_dimension_numbers<[1], [1], [0], [0], [0, 0, 1, 0], [], []>} : vector<4x64xf32>, vector<64x64xf32>, vector<4x64xf32> -> vector<4x64xf32>
    %377 = tpu.iota {dimensions = array<i32: 1>} : vector<4x64xi32>
    %378 = arith.sitofp %377 : vector<4x64xi32> to vector<4x64xf32>
    %cst_115 = arith.constant dense<0xFF800000> : vector<4xf32>
    %379 = vector.multi_reduction <maximumf>, %376, %cst_115 [1] : vector<4x64xf32> to vector<4xf32>
    %380 = vector.shape_cast %379 : vector<4xf32> to vector<4x1xf32>
    %381 = vector.broadcast %380 : vector<4x1xf32> to vector<4x64xf32>
    %382 = arith.cmpf oge, %376, %381 : vector<4x64xf32>
    %cst_116 = arith.constant 6.400000e+01 : f32
    %383 = vector.broadcast %cst_116 : f32 to vector<4x64xf32>
    %384 = arith.select %382, %378, %383 : vector<4x64xi1>, vector<4x64xf32>
    %cst_117 = arith.constant dense<0x7F800000> : vector<4xf32>
    %385 = vector.multi_reduction <minimumf>, %384, %cst_117 [1] : vector<4x64xf32> to vector<4xf32>
    %386 = vector.shape_cast %385 : vector<4xf32> to vector<4x1xf32>
    %387 = vector.broadcast %386 : vector<4x1xf32> to vector<4x64xf32>
    %388 = arith.cmpf oeq, %378, %387 : vector<4x64xf32>
    %389 = arith.extui %388 : vector<4x64xi1> to vector<4x64xi32>
    %390 = arith.sitofp %389 : vector<4x64xi32> to vector<4x64xf32>
    %cst_118 = arith.constant dense<0.000000e+00> : vector<4x3xf32>
    %391 = tpu.matmul %390, %373, %cst_118 {dimension_numbers = #tpu.dot_dimension_numbers<[1], [0], [0], [1], [0, 0, 1, 1], [], []>} : vector<4x64xf32>, vector<64x3xf32>, vector<4x3xf32> -> vector<4x3xf32>
    %cst_119 = arith.constant 9.99999974E-6 : f32
    %392 = vector.broadcast %cst_119 : f32 to vector<4x3xf32>
    %393 = arith.addf %391, %392 : vector<4x3xf32>
    %394 = math.log %393 : vector<4x3xf32>
    %395 = arith.mulf %391, %394 : vector<4x3xf32>
    %cst_120 = arith.constant dense<0.000000e+00> : vector<4xf32>
    %396 = vector.multi_reduction <add>, %395, %cst_120 [1] : vector<4x3xf32> to vector<4xf32>
    %397 = vector.shape_cast %396 : vector<4xf32> to vector<4x1xf32>
    %cst_121 = arith.constant -0.142857149 : f32
    %398 = vector.broadcast %cst_121 : f32 to vector<4x1xf32>
    %399 = arith.mulf %398, %397 : vector<4x1xf32>
    %cst_122 = arith.constant 1.000000e+00 : f32
    %400 = vector.broadcast %cst_122 : f32 to vector<4x1xf32>
    %401 = arith.subf %400, %399 : vector<4x1xf32>
    %cst_123 = arith.constant -1.000000e+30 : f32
    %402 = vector.broadcast %cst_123 : f32 to vector<4x64xf32>
    %403 = arith.select %388, %402, %376 : vector<4x64xi1>, vector<4x64xf32>
    %cst_124 = arith.constant dense<0xFF800000> : vector<4xf32>
    %404 = vector.multi_reduction <maximumf>, %403, %cst_124 [1] : vector<4x64xf32> to vector<4xf32>
    %405 = vector.shape_cast %404 : vector<4xf32> to vector<4x1xf32>
    %406 = vector.broadcast %405 : vector<4x1xf32> to vector<4x64xf32>
    %407 = arith.cmpf oge, %403, %406 : vector<4x64xf32>
    %cst_125 = arith.constant 6.400000e+01 : f32
    %408 = vector.broadcast %cst_125 : f32 to vector<4x64xf32>
    %409 = arith.select %407, %378, %408 : vector<4x64xi1>, vector<4x64xf32>
    %cst_126 = arith.constant dense<0x7F800000> : vector<4xf32>
    %410 = vector.multi_reduction <minimumf>, %409, %cst_126 [1] : vector<4x64xf32> to vector<4xf32>
    %411 = vector.shape_cast %410 : vector<4xf32> to vector<4x1xf32>
    %412 = vector.broadcast %411 : vector<4x1xf32> to vector<4x64xf32>
    %413 = arith.cmpf oeq, %378, %412 : vector<4x64xf32>
    %414 = arith.extui %413 : vector<4x64xi1> to vector<4x64xi32>
    %415 = arith.sitofp %414 : vector<4x64xi32> to vector<4x64xf32>
    %cst_127 = arith.constant dense<0.000000e+00> : vector<4x3xf32>
    %416 = tpu.matmul %415, %373, %cst_127 {dimension_numbers = #tpu.dot_dimension_numbers<[1], [0], [0], [1], [0, 0, 1, 1], [], []>} : vector<4x64xf32>, vector<64x3xf32>, vector<4x3xf32> -> vector<4x3xf32>
    %cst_128 = arith.constant 9.99999974E-6 : f32
    %417 = vector.broadcast %cst_128 : f32 to vector<4x3xf32>
    %418 = arith.addf %416, %417 : vector<4x3xf32>
    %419 = math.log %418 : vector<4x3xf32>
    %420 = arith.mulf %416, %419 : vector<4x3xf32>
    %cst_129 = arith.constant dense<0.000000e+00> : vector<4xf32>
    %421 = vector.multi_reduction <add>, %420, %cst_129 [1] : vector<4x3xf32> to vector<4xf32>
    %422 = vector.shape_cast %421 : vector<4xf32> to vector<4x1xf32>
    %cst_130 = arith.constant -0.142857149 : f32
    %423 = vector.broadcast %cst_130 : f32 to vector<4x1xf32>
    %424 = arith.mulf %423, %422 : vector<4x1xf32>
    %cst_131 = arith.constant 1.000000e+00 : f32
    %425 = vector.broadcast %cst_131 : f32 to vector<4x1xf32>
    %426 = arith.subf %425, %424 : vector<4x1xf32>
    %cst_132 = arith.constant -1.000000e+30 : f32
    %427 = vector.broadcast %cst_132 : f32 to vector<4x64xf32>
    %428 = arith.select %413, %427, %403 : vector<4x64xi1>, vector<4x64xf32>
    %cst_133 = arith.constant dense<0xFF800000> : vector<4xf32>
    %429 = vector.multi_reduction <maximumf>, %428, %cst_133 [1] : vector<4x64xf32> to vector<4xf32>
    %430 = vector.shape_cast %429 : vector<4xf32> to vector<4x1xf32>
    %431 = vector.broadcast %430 : vector<4x1xf32> to vector<4x64xf32>
    %432 = arith.cmpf oge, %428, %431 : vector<4x64xf32>
    %cst_134 = arith.constant 6.400000e+01 : f32
    %433 = vector.broadcast %cst_134 : f32 to vector<4x64xf32>
    %434 = arith.select %432, %378, %433 : vector<4x64xi1>, vector<4x64xf32>
    %cst_135 = arith.constant dense<0x7F800000> : vector<4xf32>
    %435 = vector.multi_reduction <minimumf>, %434, %cst_135 [1] : vector<4x64xf32> to vector<4xf32>
    %436 = vector.shape_cast %435 : vector<4xf32> to vector<4x1xf32>
    %437 = vector.broadcast %436 : vector<4x1xf32> to vector<4x64xf32>
    %438 = arith.cmpf oeq, %378, %437 : vector<4x64xf32>
    %439 = arith.extui %438 : vector<4x64xi1> to vector<4x64xi32>
    %440 = arith.sitofp %439 : vector<4x64xi32> to vector<4x64xf32>
    %cst_136 = arith.constant dense<0.000000e+00> : vector<4x3xf32>
    %441 = tpu.matmul %440, %373, %cst_136 {dimension_numbers = #tpu.dot_dimension_numbers<[1], [0], [0], [1], [0, 0, 1, 1], [], []>} : vector<4x64xf32>, vector<64x3xf32>, vector<4x3xf32> -> vector<4x3xf32>
    %cst_137 = arith.constant 9.99999974E-6 : f32
    %442 = vector.broadcast %cst_137 : f32 to vector<4x3xf32>
    %443 = arith.addf %441, %442 : vector<4x3xf32>
    %444 = math.log %443 : vector<4x3xf32>
    %445 = arith.mulf %441, %444 : vector<4x3xf32>
    %cst_138 = arith.constant dense<0.000000e+00> : vector<4xf32>
    %446 = vector.multi_reduction <add>, %445, %cst_138 [1] : vector<4x3xf32> to vector<4xf32>
    %447 = vector.shape_cast %446 : vector<4xf32> to vector<4x1xf32>
    %cst_139 = arith.constant -0.142857149 : f32
    %448 = vector.broadcast %cst_139 : f32 to vector<4x1xf32>
    %449 = arith.mulf %448, %447 : vector<4x1xf32>
    %cst_140 = arith.constant 1.000000e+00 : f32
    %450 = vector.broadcast %cst_140 : f32 to vector<4x1xf32>
    %451 = arith.subf %450, %449 : vector<4x1xf32>
    %cst_141 = arith.constant -1.000000e+30 : f32
    %452 = vector.broadcast %cst_141 : f32 to vector<4x64xf32>
    %453 = arith.select %438, %452, %428 : vector<4x64xi1>, vector<4x64xf32>
    %cst_142 = arith.constant dense<0xFF800000> : vector<4xf32>
    %454 = vector.multi_reduction <maximumf>, %453, %cst_142 [1] : vector<4x64xf32> to vector<4xf32>
    %455 = vector.shape_cast %454 : vector<4xf32> to vector<4x1xf32>
    %456 = vector.broadcast %455 : vector<4x1xf32> to vector<4x64xf32>
    %457 = arith.cmpf oge, %453, %456 : vector<4x64xf32>
    %cst_143 = arith.constant 6.400000e+01 : f32
    %458 = vector.broadcast %cst_143 : f32 to vector<4x64xf32>
    %459 = arith.select %457, %378, %458 : vector<4x64xi1>, vector<4x64xf32>
    %cst_144 = arith.constant dense<0x7F800000> : vector<4xf32>
    %460 = vector.multi_reduction <minimumf>, %459, %cst_144 [1] : vector<4x64xf32> to vector<4xf32>
    %461 = vector.shape_cast %460 : vector<4xf32> to vector<4x1xf32>
    %462 = vector.broadcast %461 : vector<4x1xf32> to vector<4x64xf32>
    %463 = arith.cmpf oeq, %378, %462 : vector<4x64xf32>
    %464 = arith.extui %463 : vector<4x64xi1> to vector<4x64xi32>
    %465 = arith.sitofp %464 : vector<4x64xi32> to vector<4x64xf32>
    %cst_145 = arith.constant dense<0.000000e+00> : vector<4x3xf32>
    %466 = tpu.matmul %465, %373, %cst_145 {dimension_numbers = #tpu.dot_dimension_numbers<[1], [0], [0], [1], [0, 0, 1, 1], [], []>} : vector<4x64xf32>, vector<64x3xf32>, vector<4x3xf32> -> vector<4x3xf32>
    %cst_146 = arith.constant 9.99999974E-6 : f32
    %467 = vector.broadcast %cst_146 : f32 to vector<4x3xf32>
    %468 = arith.addf %466, %467 : vector<4x3xf32>
    %469 = math.log %468 : vector<4x3xf32>
    %470 = arith.mulf %466, %469 : vector<4x3xf32>
    %cst_147 = arith.constant dense<0.000000e+00> : vector<4xf32>
    %471 = vector.multi_reduction <add>, %470, %cst_147 [1] : vector<4x3xf32> to vector<4xf32>
    %472 = vector.shape_cast %471 : vector<4xf32> to vector<4x1xf32>
    %cst_148 = arith.constant -0.142857149 : f32
    %473 = vector.broadcast %cst_148 : f32 to vector<4x1xf32>
    %474 = arith.mulf %473, %472 : vector<4x1xf32>
    %cst_149 = arith.constant 1.000000e+00 : f32
    %475 = vector.broadcast %cst_149 : f32 to vector<4x1xf32>
    %476 = arith.subf %475, %474 : vector<4x1xf32>
    %cst_150 = arith.constant -1.000000e+30 : f32
    %477 = vector.broadcast %cst_150 : f32 to vector<4x64xf32>
    %478 = arith.select %463, %477, %453 : vector<4x64xi1>, vector<4x64xf32>
    %cst_151 = arith.constant dense<0xFF800000> : vector<4xf32>
    %479 = vector.multi_reduction <maximumf>, %478, %cst_151 [1] : vector<4x64xf32> to vector<4xf32>
    %480 = vector.shape_cast %479 : vector<4xf32> to vector<4x1xf32>
    %481 = vector.broadcast %480 : vector<4x1xf32> to vector<4x64xf32>
    %482 = arith.cmpf oge, %478, %481 : vector<4x64xf32>
    %cst_152 = arith.constant 6.400000e+01 : f32
    %483 = vector.broadcast %cst_152 : f32 to vector<4x64xf32>
    %484 = arith.select %482, %378, %483 : vector<4x64xi1>, vector<4x64xf32>
    %cst_153 = arith.constant dense<0x7F800000> : vector<4xf32>
    %485 = vector.multi_reduction <minimumf>, %484, %cst_153 [1] : vector<4x64xf32> to vector<4xf32>
    %486 = vector.shape_cast %485 : vector<4xf32> to vector<4x1xf32>
    %487 = vector.broadcast %486 : vector<4x1xf32> to vector<4x64xf32>
    %488 = arith.cmpf oeq, %378, %487 : vector<4x64xf32>
    %489 = arith.extui %488 : vector<4x64xi1> to vector<4x64xi32>
    %490 = arith.sitofp %489 : vector<4x64xi32> to vector<4x64xf32>
    %cst_154 = arith.constant dense<0.000000e+00> : vector<4x3xf32>
    %491 = tpu.matmul %490, %373, %cst_154 {dimension_numbers = #tpu.dot_dimension_numbers<[1], [0], [0], [1], [0, 0, 1, 1], [], []>} : vector<4x64xf32>, vector<64x3xf32>, vector<4x3xf32> -> vector<4x3xf32>
    %cst_155 = arith.constant 9.99999974E-6 : f32
    %492 = vector.broadcast %cst_155 : f32 to vector<4x3xf32>
    %493 = arith.addf %491, %492 : vector<4x3xf32>
    %494 = math.log %493 : vector<4x3xf32>
    %495 = arith.mulf %491, %494 : vector<4x3xf32>
    %cst_156 = arith.constant dense<0.000000e+00> : vector<4xf32>
    %496 = vector.multi_reduction <add>, %495, %cst_156 [1] : vector<4x3xf32> to vector<4xf32>
    %497 = vector.shape_cast %496 : vector<4xf32> to vector<4x1xf32>
    %cst_157 = arith.constant -0.142857149 : f32
    %498 = vector.broadcast %cst_157 : f32 to vector<4x1xf32>
    %499 = arith.mulf %498, %497 : vector<4x1xf32>
    %cst_158 = arith.constant 1.000000e+00 : f32
    %500 = vector.broadcast %cst_158 : f32 to vector<4x1xf32>
    %501 = arith.subf %500, %499 : vector<4x1xf32>
    %cst_159 = arith.constant -1.000000e+30 : f32
    %502 = vector.broadcast %cst_159 : f32 to vector<4x64xf32>
    %503 = arith.select %488, %502, %478 : vector<4x64xi1>, vector<4x64xf32>
    %cst_160 = arith.constant dense<0xFF800000> : vector<4xf32>
    %504 = vector.multi_reduction <maximumf>, %503, %cst_160 [1] : vector<4x64xf32> to vector<4xf32>
    %505 = vector.shape_cast %504 : vector<4xf32> to vector<4x1xf32>
    %506 = vector.broadcast %505 : vector<4x1xf32> to vector<4x64xf32>
    %507 = arith.cmpf oge, %503, %506 : vector<4x64xf32>
    %cst_161 = arith.constant 6.400000e+01 : f32
    %508 = vector.broadcast %cst_161 : f32 to vector<4x64xf32>
    %509 = arith.select %507, %378, %508 : vector<4x64xi1>, vector<4x64xf32>
    %cst_162 = arith.constant dense<0x7F800000> : vector<4xf32>
    %510 = vector.multi_reduction <minimumf>, %509, %cst_162 [1] : vector<4x64xf32> to vector<4xf32>
    %511 = vector.shape_cast %510 : vector<4xf32> to vector<4x1xf32>
    %512 = vector.broadcast %511 : vector<4x1xf32> to vector<4x64xf32>
    %513 = arith.cmpf oeq, %378, %512 : vector<4x64xf32>
    %514 = arith.extui %513 : vector<4x64xi1> to vector<4x64xi32>
    %515 = arith.sitofp %514 : vector<4x64xi32> to vector<4x64xf32>
    %cst_163 = arith.constant dense<0.000000e+00> : vector<4x3xf32>
    %516 = tpu.matmul %515, %373, %cst_163 {dimension_numbers = #tpu.dot_dimension_numbers<[1], [0], [0], [1], [0, 0, 1, 1], [], []>} : vector<4x64xf32>, vector<64x3xf32>, vector<4x3xf32> -> vector<4x3xf32>
    %cst_164 = arith.constant 9.99999974E-6 : f32
    %517 = vector.broadcast %cst_164 : f32 to vector<4x3xf32>
    %518 = arith.addf %516, %517 : vector<4x3xf32>
    %519 = math.log %518 : vector<4x3xf32>
    %520 = arith.mulf %516, %519 : vector<4x3xf32>
    %cst_165 = arith.constant dense<0.000000e+00> : vector<4xf32>
    %521 = vector.multi_reduction <add>, %520, %cst_165 [1] : vector<4x3xf32> to vector<4xf32>
    %522 = vector.shape_cast %521 : vector<4xf32> to vector<4x1xf32>
    %cst_166 = arith.constant -0.142857149 : f32
    %523 = vector.broadcast %cst_166 : f32 to vector<4x1xf32>
    %524 = arith.mulf %523, %522 : vector<4x1xf32>
    %cst_167 = arith.constant 1.000000e+00 : f32
    %525 = vector.broadcast %cst_167 : f32 to vector<4x1xf32>
    %526 = arith.subf %525, %524 : vector<4x1xf32>
    %cst_168 = arith.constant -1.000000e+30 : f32
    %527 = vector.broadcast %cst_168 : f32 to vector<4x64xf32>
    %528 = arith.select %513, %527, %503 : vector<4x64xi1>, vector<4x64xf32>
    %cst_169 = arith.constant dense<0xFF800000> : vector<4xf32>
    %529 = vector.multi_reduction <maximumf>, %528, %cst_169 [1] : vector<4x64xf32> to vector<4xf32>
    %530 = vector.shape_cast %529 : vector<4xf32> to vector<4x1xf32>
    %531 = vector.broadcast %530 : vector<4x1xf32> to vector<4x64xf32>
    %532 = arith.cmpf oge, %528, %531 : vector<4x64xf32>
    %cst_170 = arith.constant 6.400000e+01 : f32
    %533 = vector.broadcast %cst_170 : f32 to vector<4x64xf32>
    %534 = arith.select %532, %378, %533 : vector<4x64xi1>, vector<4x64xf32>
    %cst_171 = arith.constant dense<0x7F800000> : vector<4xf32>
    %535 = vector.multi_reduction <minimumf>, %534, %cst_171 [1] : vector<4x64xf32> to vector<4xf32>
    %536 = vector.shape_cast %535 : vector<4xf32> to vector<4x1xf32>
    %537 = vector.broadcast %536 : vector<4x1xf32> to vector<4x64xf32>
    %538 = arith.cmpf oeq, %378, %537 : vector<4x64xf32>
    %539 = arith.extui %538 : vector<4x64xi1> to vector<4x64xi32>
    %540 = arith.sitofp %539 : vector<4x64xi32> to vector<4x64xf32>
    %cst_172 = arith.constant dense<0.000000e+00> : vector<4x3xf32>
    %541 = tpu.matmul %540, %373, %cst_172 {dimension_numbers = #tpu.dot_dimension_numbers<[1], [0], [0], [1], [0, 0, 1, 1], [], []>} : vector<4x64xf32>, vector<64x3xf32>, vector<4x3xf32> -> vector<4x3xf32>
    %cst_173 = arith.constant 9.99999974E-6 : f32
    %542 = vector.broadcast %cst_173 : f32 to vector<4x3xf32>
    %543 = arith.addf %541, %542 : vector<4x3xf32>
    %544 = math.log %543 : vector<4x3xf32>
    %545 = arith.mulf %541, %544 : vector<4x3xf32>
    %cst_174 = arith.constant dense<0.000000e+00> : vector<4xf32>
    %546 = vector.multi_reduction <add>, %545, %cst_174 [1] : vector<4x3xf32> to vector<4xf32>
    %547 = vector.shape_cast %546 : vector<4xf32> to vector<4x1xf32>
    %cst_175 = arith.constant -0.142857149 : f32
    %548 = vector.broadcast %cst_175 : f32 to vector<4x1xf32>
    %549 = arith.mulf %548, %547 : vector<4x1xf32>
    %cst_176 = arith.constant 1.000000e+00 : f32
    %550 = vector.broadcast %cst_176 : f32 to vector<4x1xf32>
    %551 = arith.subf %550, %549 : vector<4x1xf32>
    %552 = arith.addf %401, %426 : vector<4x1xf32>
    %553 = arith.addf %552, %451 : vector<4x1xf32>
    %554 = arith.addf %553, %476 : vector<4x1xf32>
    %555 = arith.addf %554, %501 : vector<4x1xf32>
    %556 = arith.addf %555, %526 : vector<4x1xf32>
    %557 = arith.addf %556, %551 : vector<4x1xf32>
    %cst_177 = arith.constant 0.000000e+00 : f32
    %558 = vector.broadcast %cst_177 : f32 to vector<4x3xf32>
    %559 = arith.divf %401, %557 : vector<4x1xf32>
    %560 = vector.broadcast %559 : vector<4x1xf32> to vector<4x3xf32>
    %561 = arith.mulf %391, %560 : vector<4x3xf32>
    %562 = arith.addf %558, %561 : vector<4x3xf32>
    %563 = arith.divf %426, %557 : vector<4x1xf32>
    %564 = vector.broadcast %563 : vector<4x1xf32> to vector<4x3xf32>
    %565 = arith.mulf %416, %564 : vector<4x3xf32>
    %566 = arith.addf %562, %565 : vector<4x3xf32>
    %567 = arith.divf %451, %557 : vector<4x1xf32>
    %568 = vector.broadcast %567 : vector<4x1xf32> to vector<4x3xf32>
    %569 = arith.mulf %441, %568 : vector<4x3xf32>
    %570 = arith.addf %566, %569 : vector<4x3xf32>
    %571 = arith.divf %476, %557 : vector<4x1xf32>
    %572 = vector.broadcast %571 : vector<4x1xf32> to vector<4x3xf32>
    %573 = arith.mulf %466, %572 : vector<4x3xf32>
    %574 = arith.addf %570, %573 : vector<4x3xf32>
    %575 = arith.divf %501, %557 : vector<4x1xf32>
    %576 = vector.broadcast %575 : vector<4x1xf32> to vector<4x3xf32>
    %577 = arith.mulf %491, %576 : vector<4x3xf32>
    %578 = arith.addf %574, %577 : vector<4x3xf32>
    %579 = arith.divf %526, %557 : vector<4x1xf32>
    %580 = vector.broadcast %579 : vector<4x1xf32> to vector<4x3xf32>
    %581 = arith.mulf %516, %580 : vector<4x3xf32>
    %582 = arith.addf %578, %581 : vector<4x3xf32>
    %583 = arith.divf %551, %557 : vector<4x1xf32>
    %584 = vector.broadcast %583 : vector<4x1xf32> to vector<4x3xf32>
    %585 = arith.mulf %541, %584 : vector<4x3xf32>
    %586 = arith.addf %582, %585 : vector<4x3xf32>
    %cst_178 = arith.constant dense<0xFF800000> : vector<4xf32>
    %587 = vector.multi_reduction <maximumf>, %586, %cst_178 [1] : vector<4x3xf32> to vector<4xf32>
    %588 = vector.shape_cast %587 : vector<4xf32> to vector<4x1xf32>
    %589 = vector.broadcast %588 : vector<4x1xf32> to vector<4x3xf32>
    %590 = arith.subf %586, %589 : vector<4x3xf32>
    %591 = math.exp %590 : vector<4x3xf32>
    %cst_179 = arith.constant dense<0.000000e+00> : vector<4xf32>
    %592 = vector.multi_reduction <add>, %591, %cst_179 [1] : vector<4x3xf32> to vector<4xf32>
    %593 = vector.shape_cast %592 : vector<4xf32> to vector<4x1xf32>
    %594 = vector.broadcast %593 : vector<4x1xf32> to vector<4x3xf32>
    %595 = arith.divf %591, %594 : vector<4x3xf32>
    %c0_180 = arith.constant 0 : index
    %c0_181 = arith.constant 0 : index
    %596 = vector.load %arg21[%c0_180, %c0_181] : memref<4x3xf32, #tpu.memory_space<vmem>>, vector<4x3xf32>
    tpu.vector_store %arg21[%c0_180, %c0_181], %595 {strides = array<i32>} : memref<4x3xf32, #tpu.memory_space<vmem>>, vector<4x3xf32>,
    return
  }
}

</mosaic_0001>

<bundles_post_ra>
// kernel: domain_adaption_forward.2
= control target key start
LH: loop header
LB: loop body
LE: loop exit
PB: predicated region body
PF: predicated region fallthrough
CT: control target
= control target key end

     0   :  { %v503_v38 = vlaneseq  ;;  %vm660_vm0 = vcmask 1043456   ;;  %vm657_vm1 = vcmask 31744   ;;  %vm4117_vm2 = vmmov 0   ;;  %s6192_s1 = inlined_call_operand.vmem [shape: f32[3844,30], index: 1, kind: input, shape index: {}]   ;;  %s6193_s0 = inlined_call_operand.vmem [shape: f32[1,3844], index: 0, kind: input, shape index: {}]   ;;  %s6194_s2 = inlined_call_operand.vmem [shape: f32[30,3844], index: 2, kind: input, shape index: {}]   ;;  %s6195_s3 = inlined_call_operand.vmem [shape: f32[1,3844], index: 3, kind: output, shape index: {}]  }
   0x1   :  { %v49_v0 = vld [vmem:[%s6192_s1 + $0xf8] sm:$0xff]  ;;  %v48_v4 = vld [vmem:[%s6192_s1 + $0xf0] sm:$0xff]  ;;  %v47_v8 = vld [vmem:[%s6192_s1 + $0xe8] sm:$0xff]  ;;  %vm1918_vm3 = vcmask 1045504   ;;  %vm1914_vm4 = vcmask 244736  }
   0x2   :  { %v81_v1 = vld [vmem:[%s6192_s1 + $0x1f8] sm:$0xff]  ;;  %3501 = vmatprep.subr.mxu0 %v49_v0  ;;  %v80_v5 = vld [vmem:[%s6192_s1 + $0x1f0] sm:$0xff]  ;;  %v79_v9 = vld [vmem:[%s6192_s1 + $0x1e8] sm:$0xff]  ;;  %v4278_v47 = vshrl.u32 %v503_v38, 7  ;;  %vm3444_vm6 = vcmp.lt.s32.totalorder %v503_v38, 772 }
   0x3   :  { %v33_v2 = vld [vmem:[%s6192_s1 + $0x78] sm:$0xff]  ;;  %3536 = vmatprep.subr.mxu1 %v81_v1  ;;  %v32_v6 = vld [vmem:[%s6192_s1 + $0x70] sm:$0xff]  ;;  %v31_v10 = vld [vmem:[%s6192_s1 + $0x68] sm:$0xff] }
   0x4   :  { %v65_v3 = vld [vmem:[%s6192_s1 + $0x178] sm:$0xff]  ;;  %3502 = vmatpush3.msra.mxu0 %v33_v2  ;;  %v64_v7 = vld [vmem:[%s6192_s1 + $0x170] sm:$0xff]  ;;  %v63_v11 = vld [vmem:[%s6192_s1 + $0x168] sm:$0xff]  ;;  %v4305_v56 = vsub.s32 1, %v4278_v47  ;;  %v4319_v60 = vsub.s32 3, %v4278_v47  ;;  %v4328_v63 = vsub.s32 0, %v4278_v47 }
   0x5   :  { %3537 = vmatpush3.msra.mxu1 %v65_v3  ;;  %3503 = vmatprep.subr.mxu0 %v48_v4  ;;  %v46_v12 = vld [vmem:[%s6192_s1 + $0xe0] sm:$0xff]  ;;  %v45_v16 = vld [vmem:[%s6192_s1 + $0xd8] sm:$0xff]  ;;  %v44_v20 = vld [vmem:[%s6192_s1 + $0xd0] sm:$0xff]  ;;  %v4331_v0 = vsub.s32 2, %v4278_v47 }
   0x6   :  { %3538 = vmatprep.subr.mxu1 %v80_v5  ;;  %3504 = vmatpush3.msra.mxu0 %v32_v6  ;;  %v78_v13 = vld [vmem:[%s6192_s1 + $0x1e0] sm:$0xff]  ;;  %v77_v17 = vld [vmem:[%s6192_s1 + $0x1d8] sm:$0xff]  ;;  %v76_v21 = vld [vmem:[%s6192_s1 + $0x1d0] sm:$0xff] }
   0x7   :  { %3539 = vmatpush3.msra.mxu1 %v64_v7  ;;  %3505 = vmatprep.subr.mxu0 %v47_v8  ;;  %v30_v14 = vld [vmem:[%s6192_s1 + $0x60] sm:$0xff]  ;;  %v29_v18 = vld [vmem:[%s6192_s1 + $0x58] sm:$0xff]  ;;  %v28_v22 = vld [vmem:[%s6192_s1 + $0x50] sm:$0xff] }
   0x8   :  { %3540 = vmatprep.subr.mxu1 %v79_v9  ;;  %v62_v15 = vld [vmem:[%s6192_s1 + $0x160] sm:$0xff]  ;;  %3506 = vmatpush3.msra.mxu0 %v31_v10  ;;  %v61_v19 = vld [vmem:[%s6192_s1 + $0x158] sm:$0xff]  ;;  %v60_v23 = vld [vmem:[%s6192_s1 + $0x150] sm:$0xff] }
   0x9   :  { %3541 = vmatpush3.msra.mxu1 %v63_v11  ;;  %3507 = vmatprep.subr.mxu0 %v46_v12  ;;  %v43_v24 = vld [vmem:[%s6192_s1 + $0xc8] sm:$0xff]  ;;  %v42_v28 = vld [vmem:[%s6192_s1 + $0xc0] sm:$0xff]  ;;  %v41_v32 = vld [vmem:[%s6192_s1 + $0xb8] sm:$0xff] }
   0xa   :  { %3542 = vmatprep.subr.mxu1 %v78_v13  ;;  %3508 = vmatpush3.msra.mxu0 %v30_v14  ;;  %v75_v25 = vld [vmem:[%s6192_s1 + $0x1c8] sm:$0xff]  ;;  %v74_v29 = vld [vmem:[%s6192_s1 + $0x1c0] sm:$0xff]  ;;  %v73_v33 = vld [vmem:[%s6192_s1 + $0x1b8] sm:$0xff] }
   0xb   :  { %3543 = vmatpush3.msra.mxu1 %v62_v15  ;;  %3509 = vmatprep.subr.mxu0 %v45_v16  ;;  %v27_v26 = vld [vmem:[%s6192_s1 + $0x48] sm:$0xff]  ;;  %v26_v30 = vld [vmem:[%s6192_s1 + $0x40] sm:$0xff]  ;;  %v25_v34 = vld [vmem:[%s6192_s1 + $0x38] sm:$0xff] }
   0xc   :  { %3544 = vmatprep.subr.mxu1 %v77_v17  ;;  %3510 = vmatpush3.msra.mxu0 %v29_v18  ;;  %v59_v27 = vld [vmem:[%s6192_s1 + $0x148] sm:$0xff]  ;;  %v58_v31 = vld [vmem:[%s6192_s1 + $0x140] sm:$0xff]  ;;  %v57_v35 = vld [vmem:[%s6192_s1 + $0x138] sm:$0xff] }
   0xd   :  { %3545 = vmatpush3.msra.mxu1 %v61_v19  ;;  %3511 = vmatprep.subr.mxu0 %v44_v20  ;;  %v40_v36 = vld [vmem:[%s6192_s1 + $0xb0] sm:$0xff]  ;;  %v39_v41 = vld [vmem:[%s6192_s1 + $0xa8] sm:$0xff]  ;;  %v38_v45 = vld [vmem:[%s6192_s1 + $0xa0] sm:$0xff] }
   0xe   :  { %3546 = vmatprep.subr.mxu1 %v76_v21  ;;  %3512 = vmatpush3.msra.mxu0 %v28_v22  ;;  %v72_v37 = vld [vmem:[%s6192_s1 + $0x1b0] sm:$0xff]  ;;  %v71_v42 = vld [vmem:[%s6192_s1 + $0x1a8] sm:$0xff]  ;;  %v70_v46 = vld [vmem:[%s6192_s1 + $0x1a0] sm:$0xff] }
   0xf   :  { %3547 = vmatpush3.msra.mxu1 %v60_v23  ;;  %3513 = vmatprep.subr.mxu0 %v43_v24  ;;  %v24_v39 = vld [vmem:[%s6192_s1 + $0x30] sm:$0xff]  ;;  %v23_v43 = vld [vmem:[%s6192_s1 + $0x28] sm:$0xff]  ;;  %v22_v48 = vld [vmem:[%s6192_s1 + $0x20] sm:$0xff] }
  0x10   :  { %3548 = vmatprep.subr.mxu1 %v75_v25  ;;  %3514 = vmatpush3.msra.mxu0 %v27_v26  ;;  %v56_v40 = vld [vmem:[%s6192_s1 + $0x130] sm:$0xff]  ;;  %v55_v44 = vld [vmem:[%s6192_s1 + $0x128] sm:$0xff]  ;;  %v54_v49 = vld [vmem:[%s6192_s1 + $0x120] sm:$0xff] }
  0x11   :  { %3549 = vmatpush3.msra.mxu1 %v59_v27  ;;  %3515 = vmatprep.subr.mxu0 %v42_v28  ;;  %v37_v50 = vld [vmem:[%s6192_s1 + $0x98] sm:$0xff]  ;;  %v36_v54 = vld [vmem:[%s6192_s1 + $0x90] sm:$0xff]  ;;  %v4316_v59 = vld [vmem:[%s6193_s0] sm:$0xff] }
  0x12   :  { %3550 = vmatprep.subr.mxu1 %v74_v29  ;;  %3516 = vmatpush3.msra.mxu0 %v26_v30  ;;  %v69_v51 = vld [vmem:[%s6192_s1 + $0x198] sm:$0xff]  ;;  %v68_v55 = vld [vmem:[%s6192_s1 + $0x190] sm:$0xff]  ;;  %v35_v61 = vld [vmem:[%s6192_s1 + $0x88] sm:$0xff]  ;;  %v510_v5 = vrot.slane %v4316_v59, %v4305_v56  ;;  %v518_v7 = vrot.slane %v4316_v59, %v4319_v60  ;;  %v506_v9 = vrot.slane %v4316_v59, %v4328_v63 }
  0x13   :  { %3551 = vmatpush3.msra.mxu1 %v58_v31  ;;  %3517 = vmatprep.subr.mxu0 %v41_v32  ;;  %v21_v52 = vld [vmem:[%s6192_s1 + $0x18] sm:$0xff]  ;;  %v20_v57 = vld [vmem:[%s6192_s1 + $0x10] sm:$0xff]  ;;  %v67_v62 = vld [vmem:[%s6192_s1 + $0x188] sm:$0xff]  ;;  %v514_v10 = vrot.slane %v4316_v59, %v4331_v0 }
  0x14   :  { %3552 = vmatprep.subr.mxu1 %v73_v33  ;;  %3518 = vmatpush3.msra.mxu0 %v25_v34  ;;  %v53_v53 = vld [vmem:[%s6192_s1 + $0x118] sm:$0xff]  ;;  %v52_v58 = vld [vmem:[%s6192_s1 + $0x110] sm:$0xff]  ;;  %v19_v1 = vld [vmem:[%s6192_s1 + $0x8] sm:$0xff] }
  0x15   :  { %3553 = vmatpush3.msra.mxu1 %v57_v35  ;;  %3519 = vmatprep.subr.mxu0 %v40_v36  ;;  %v51_v2 = vld [vmem:[%s6192_s1 + $0x108] sm:$0xff]  ;;  %v34_v3 = vld [vmem:[%s6192_s1 + $0x80] sm:$0xff]  ;;  %v113_v11 = vld [vmem:[%s6192_s1 + $0x2f8] sm:$0xff] }
  0x16   :  { %3554 = vmatprep.subr.mxu1 %v72_v37  ;;  %3520 = vmatpush3.msra.mxu0 %v24_v39  ;;  %v66_v4 = vld [vmem:[%s6192_s1 + $0x180] sm:$0xff]  ;;  %v145_v12 = vld [vmem:[%s6192_s1 + $0x3f8] sm:$0xff]  ;;  %v112_v15 = vld [vmem:[%s6192_s1 + $0x2f0] sm:$0xff] }
  0x17   :  { %3555 = vmatpush3.msra.mxu1 %v56_v40  ;;  %3521 = vmatprep.subr.mxu0 %v39_v41  ;;  %v18_v6 = vld [vmem:[%s6192_s1] sm:$0xff]  ;;  %v97_v13 = vld [vmem:[%s6192_s1 + $0x278] sm:$0xff]  ;;  %v144_v16 = vld [vmem:[%s6192_s1 + $0x3f0] sm:$0xff] }
  0x18   :  { %3556 = vmatprep.subr.mxu1 %v71_v42  ;;  %3522 = vmatpush3.msra.mxu0 %v23_v43  ;;  %v50_v8 = vld [vmem:[%s6192_s1 + $0x100] sm:$0xff]  ;;  %v129_v14 = vld [vmem:[%s6192_s1 + $0x378] sm:$0xff]  ;;  %v96_v17 = vld [vmem:[%s6192_s1 + $0x270] sm:$0xff] }
  0x19   :  { %3557 = vmatpush3.msra.mxu1 %v55_v44  ;;  %3523 = vmatprep.subr.mxu0 %v38_v45  ;;  %v128_v18 = vld [vmem:[%s6192_s1 + $0x370] sm:$0xff]  ;;  %v111_v19 = vld [vmem:[%s6192_s1 + $0x2e8] sm:$0xff]  ;;  %v110_v23 = vld [vmem:[%s6192_s1 + $0x2e0] sm:$0xff] }
  0x1a   :  { %3558 = vmatprep.subr.mxu1 %v70_v46  ;;  %3524 = vmatpush3.msra.mxu0 %v22_v48  ;;  %v143_v20 = vld [vmem:[%s6192_s1 + $0x3e8] sm:$0xff]  ;;  %v142_v24 = vld [vmem:[%s6192_s1 + $0x3e0] sm:$0xff]  ;;  %v109_v27 = vld [vmem:[%s6192_s1 + $0x2d8] sm:$0xff] }
  0x1b   :  { %3559 = vmatpush3.msra.mxu1 %v54_v49  ;;  %3525 = vmatprep.subr.mxu0 %v37_v50  ;;  %v95_v21 = vld [vmem:[%s6192_s1 + $0x268] sm:$0xff]  ;;  %v94_v25 = vld [vmem:[%s6192_s1 + $0x260] sm:$0xff]  ;;  %v141_v28 = vld [vmem:[%s6192_s1 + $0x3d8] sm:$0xff] }
  0x1c   :  { %3560 = vmatprep.subr.mxu1 %v69_v51  ;;  %3526 = vmatpush3.msra.mxu0 %v21_v52  ;;  %v127_v22 = vld [vmem:[%s6192_s1 + $0x368] sm:$0xff]  ;;  %v126_v26 = vld [vmem:[%s6192_s1 + $0x360] sm:$0xff]  ;;  %v93_v29 = vld [vmem:[%s6192_s1 + $0x258] sm:$0xff] }
  0x1d   :  { %3561 = vmatpush3.msra.mxu1 %v53_v53  ;;  %3527 = vmatprep.subr.mxu0 %v36_v54  ;;  %v125_v30 = vld [vmem:[%s6192_s1 + $0x358] sm:$0xff]  ;;  %v108_v31 = vld [vmem:[%s6192_s1 + $0x2d0] sm:$0xff]  ;;  %v107_v35 = vld [vmem:[%s6192_s1 + $0x2c8] sm:$0xff] }
  0x1e   :  { %3562 = vmatprep.subr.mxu1 %v68_v55  ;;  %3528 = vmatpush3.msra.mxu0 %v20_v57  ;;  %v140_v32 = vld [vmem:[%s6192_s1 + $0x3d0] sm:$0xff]  ;;  %v139_v36 = vld [vmem:[%s6192_s1 + $0x3c8] sm:$0xff]  ;;  %v106_v40 = vld [vmem:[%s6192_s1 + $0x2c0] sm:$0xff] }
  0x1f   :  { %3563 = vmatpush3.msra.mxu1 %v52_v58  ;;  %3529 = vmatprep.subr.mxu0 %v35_v61  ;;  %v92_v33 = vld [vmem:[%s6192_s1 + $0x250] sm:$0xff]  ;;  %v91_v37 = vld [vmem:[%s6192_s1 + $0x248] sm:$0xff]  ;;  %v138_v41 = vld [vmem:[%s6192_s1 + $0x3c0] sm:$0xff] }
  0x20   :  { %3564 = vmatprep.subr.mxu1 %v67_v62  ;;  %3530 = vmatpush3.msra.mxu0 %v19_v1  ;;  %v124_v34 = vld [vmem:[%s6192_s1 + $0x350] sm:$0xff]  ;;  %v123_v39 = vld [vmem:[%s6192_s1 + $0x348] sm:$0xff]  ;;  %v90_v42 = vld [vmem:[%s6192_s1 + $0x240] sm:$0xff] }
  0x21   :  { %3565 = vmatpush3.msra.mxu1 %v51_v2  ;;  %3531 = vmatprep.subr.mxu0 %v34_v3  ;;  %v122_v43 = vld [vmem:[%s6192_s1 + $0x340] sm:$0xff]  ;;  %v105_v44 = vld [vmem:[%s6192_s1 + $0x2b8] sm:$0xff]  ;;  %v104_v49 = vld [vmem:[%s6192_s1 + $0x2b0] sm:$0xff] }
  0x22   :  { %3566 = vmatprep.subr.mxu1 %v66_v4  ;;  %3532 = vmatpush3.msra.mxu0 %v18_v6  ;;  %v137_v45 = vld [vmem:[%s6192_s1 + $0x3b8] sm:$0xff]  ;;  %v136_v50 = vld [vmem:[%s6192_s1 + $0x3b0] sm:$0xff]  ;;  %v103_v53 = vld [vmem:[%s6192_s1 + $0x2a8] sm:$0xff]  ;;  %v4510_v4 = vsub.s32 5, %v4278_v47 }
  0x23   :  { %728 = vmatprep.mubr.f32.mxu0 %v510_v5  ;;  %3567 = vmatpush3.msra.mxu1 %v50_v8  ;;  %v89_v46 = vld [vmem:[%s6192_s1 + $0x238] sm:$0xff]  ;;  %v88_v51 = vld [vmem:[%s6192_s1 + $0x230] sm:$0xff]  ;;  %v135_v54 = vld [vmem:[%s6192_s1 + $0x3a8] sm:$0xff] }
  0x24   :  { %798 = vmatprep.mubr.f32.mxu1 %v518_v7  ;;  %729 = vmatmul.mubr.f32.vlgmr.msra.gmra.mxu0 %v506_v9  ;;  %v121_v48 = vld [vmem:[%s6192_s1 + $0x338] sm:$0xff]  ;;  %v120_v52 = vld [vmem:[%s6192_s1 + $0x330] sm:$0xff]  ;;  %v87_v55 = vld [vmem:[%s6192_s1 + $0x228] sm:$0xff] }
  0x25   :  { %799 = vmatmul.mubr.f32.vlgmr.msra.gmra.mxu1 %v514_v10  ;;  %3571 = vmatprep.subr.mxu0 %v113_v11  ;;  %v119_v57 = vld [vmem:[%s6192_s1 + $0x328] sm:$0xff]  ;;  %v102_v58 = vld [vmem:[%s6192_s1 + $0x2a0] sm:$0xff]  ;;  %v101_v2 = vld [vmem:[%s6192_s1 + $0x298] sm:$0xff]  ;;  %v4531_v11 = vsub.s32 4, %v4278_v47 }
  0x26   :  { %3606 = vmatprep.subr.mxu1 %v145_v12  ;;  %3572 = vmatpush3.msra.mxu0 %v97_v13  ;;  %v134_v61 = vld [vmem:[%s6192_s1 + $0x3a0] sm:$0xff]  ;;  %v133_v3 = vld [vmem:[%s6192_s1 + $0x398] sm:$0xff]  ;;  %v100_v7 = vld [vmem:[%s6192_s1 + $0x290] sm:$0xff] }
  0x27   :  { %3607 = vmatpush3.msra.mxu1 %v129_v14  ;;  %3573 = vmatprep.subr.mxu0 %v112_v15  ;;  %v86_v62 = vld [vmem:[%s6192_s1 + $0x220] sm:$0xff]  ;;  %v85_v5 = vld [vmem:[%s6192_s1 + $0x218] sm:$0xff]  ;;  %v132_v8 = vld [vmem:[%s6192_s1 + $0x390] sm:$0xff]  ;;  %v526_v14 = vrot.slane %v4316_v59, %v4510_v4  ;;  %v4542_v15 = vsub.s32 7, %v4278_v47 }
  0x28   :  { %3608 = vmatprep.subr.mxu1 %v144_v16  ;;  %3574 = vmatpush3.msra.mxu0 %v96_v17  ;;  %v118_v1 = vld [vmem:[%s6192_s1 + $0x320] sm:$0xff]  ;;  %v117_v6 = vld [vmem:[%s6192_s1 + $0x318] sm:$0xff]  ;;  %v84_v9 = vld [vmem:[%s6192_s1 + $0x210] sm:$0xff]  ;;  %v4548_v17 = vsub.s32 6, %v4278_v47 }
  0x29   :  { %3609 = vmatpush3.msra.mxu1 %v128_v18  ;;  %3575 = vmatprep.subr.mxu0 %v111_v19  ;;  %v116_v10 = vld [vmem:[%s6192_s1 + $0x310] sm:$0xff]  ;;  %v99_v12 = vld [vmem:[%s6192_s1 + $0x288] sm:$0xff]  ;;  %v98_v18 = vld [vmem:[%s6192_s1 + $0x280] sm:$0xff] }
  0x2a   :  { %3610 = vmatprep.subr.mxu1 %v143_v20  ;;  %3576 = vmatpush3.msra.mxu0 %v95_v21  ;;  %v131_v13 = vld [vmem:[%s6192_s1 + $0x388] sm:$0xff]  ;;  %v82_v20 = vld [vmem:[%s6192_s1 + $0x200] sm:$0xff]  ;;  %v522_v21 = vrot.slane %v4316_v59, %v4531_v11 }
  0x2b   :  { %3611 = vmatpush3.msra.mxu1 %v127_v22  ;;  %3577 = vmatprep.subr.mxu0 %v110_v23  ;;  %v83_v16 = vld [vmem:[%s6192_s1 + $0x208] sm:$0xff]  ;;  %v130_v22 = vld [vmem:[%s6192_s1 + $0x380] sm:$0xff]  ;;  %v177_v23 = vld [vmem:[%s6192_s1 + $0x4f8] sm:$0xff] }
  0x2c   :  { %3612 = vmatprep.subr.mxu1 %v142_v24  ;;  %3578 = vmatpush3.msra.mxu0 %v94_v25  ;;  %v115_v19 = vld [vmem:[%s6192_s1 + $0x308] sm:$0xff]  ;;  %v534_v24 = vrot.slane %v4316_v59, %v4542_v15  ;;  %v114_v25 = vld [vmem:[%s6192_s1 + $0x300] sm:$0xff] }
  0x2d   :  { %3613 = vmatpush3.msra.mxu1 %v126_v26  ;;  %3579 = vmatprep.subr.mxu0 %v109_v27  ;;  %v530_v26 = vrot.slane %v4316_v59, %v4548_v17  ;;  %v161_v27 = vld [vmem:[%s6192_s1 + $0x478] sm:$0xff]  ;;  %v160_v59 = vld [vmem:[%s6192_s1 + $0x470] sm:$0xff] }
  0x2e   :  { %3614 = vmatprep.subr.mxu1 %v141_v28  ;;  %3580 = vmatpush3.msra.mxu0 %v93_v29  ;;  %v176_v28 = vld [vmem:[%s6192_s1 + $0x4f0] sm:$0xff]  ;;  %v209_v29 = vld [vmem:[%s6192_s1 + $0x5f8] sm:$0xff] }
  0x2f   :  { %3615 = vmatpush3.msra.mxu1 %v125_v30  ;;  %3581 = vmatprep.subr.mxu0 %v108_v31  ;;  %v193_v30 = vld [vmem:[%s6192_s1 + $0x578] sm:$0xff]  ;;  %v175_v31 = vld [vmem:[%s6192_s1 + $0x4e8] sm:$0xff] }
  0x30   :  { %3616 = vmatprep.subr.mxu1 %v140_v32  ;;  %3582 = vmatpush3.msra.mxu0 %v92_v33  ;;  %v208_v32 = vld [vmem:[%s6192_s1 + $0x5f0] sm:$0xff]  ;;  %v159_v33 = vld [vmem:[%s6192_s1 + $0x468] sm:$0xff] }
  0x31   :  { %3617 = vmatpush3.msra.mxu1 %v124_v34  ;;  %3583 = vmatprep.subr.mxu0 %v107_v35  ;;  %v192_v34 = vld [vmem:[%s6192_s1 + $0x570] sm:$0xff]  ;;  %v174_v35 = vld [vmem:[%s6192_s1 + $0x4e0] sm:$0xff] }
  0x32   :  { %3618 = vmatprep.subr.mxu1 %v139_v36  ;;  %3584 = vmatpush3.msra.mxu0 %v91_v37  ;;  %v207_v36 = vld [vmem:[%s6192_s1 + $0x5e8] sm:$0xff]  ;;  %v158_v37 = vld [vmem:[%s6192_s1 + $0x460] sm:$0xff] }
  0x33   :  { %3619 = vmatpush3.msra.mxu1 %v123_v39  ;;  %3585 = vmatprep.subr.mxu0 %v106_v40  ;;  %v191_v39 = vld [vmem:[%s6192_s1 + $0x568] sm:$0xff]  ;;  %v173_v40 = vld [vmem:[%s6192_s1 + $0x4d8] sm:$0xff] }
  0x34   :  { %3620 = vmatprep.subr.mxu1 %v138_v41  ;;  %3586 = vmatpush3.msra.mxu0 %v90_v42  ;;  %v206_v41 = vld [vmem:[%s6192_s1 + $0x5e0] sm:$0xff]  ;;  %v157_v42 = vld [vmem:[%s6192_s1 + $0x458] sm:$0xff] }
  0x35   :  { %3621 = vmatpush3.msra.mxu1 %v122_v43  ;;  %3587 = vmatprep.subr.mxu0 %v105_v44  ;;  %v190_v43 = vld [vmem:[%s6192_s1 + $0x560] sm:$0xff]  ;;  %v172_v44 = vld [vmem:[%s6192_s1 + $0x4d0] sm:$0xff] }
  0x36   :  { %3622 = vmatprep.subr.mxu1 %v137_v45  ;;  %3588 = vmatpush3.msra.mxu0 %v89_v46  ;;  %v205_v45 = vld [vmem:[%s6192_s1 + $0x5d8] sm:$0xff]  ;;  %v156_v46 = vld [vmem:[%s6192_s1 + $0x450] sm:$0xff] }
  0x37   :  { %3623 = vmatpush3.msra.mxu1 %v121_v48  ;;  %3589 = vmatprep.subr.mxu0 %v104_v49  ;;  %v189_v48 = vld [vmem:[%s6192_s1 + $0x558] sm:$0xff]  ;;  %v171_v49 = vld [vmem:[%s6192_s1 + $0x4c8] sm:$0xff] }
  0x38   :  { %3624 = vmatprep.subr.mxu1 %v136_v50  ;;  %3590 = vmatpush3.msra.mxu0 %v88_v51  ;;  %v204_v50 = vld [vmem:[%s6192_s1 + $0x5d0] sm:$0xff]  ;;  %v155_v51 = vld [vmem:[%s6192_s1 + $0x448] sm:$0xff] }
  0x39   :  { %3625 = vmatpush3.msra.mxu1 %v120_v52  ;;  %3591 = vmatprep.subr.mxu0 %v103_v53  ;;  %v188_v52 = vld [vmem:[%s6192_s1 + $0x550] sm:$0xff]  ;;  %v170_v53 = vld [vmem:[%s6192_s1 + $0x4c0] sm:$0xff] }
  0x3a   :  { %3626 = vmatprep.subr.mxu1 %v135_v54  ;;  %3592 = vmatpush3.msra.mxu0 %v87_v55  ;;  %v203_v54 = vld [vmem:[%s6192_s1 + $0x5c8] sm:$0xff]  ;;  %v154_v55 = vld [vmem:[%s6192_s1 + $0x440] sm:$0xff] }
  0x3b   :  { %3627 = vmatpush3.msra.mxu1 %v119_v57  ;;  %3593 = vmatprep.subr.mxu0 %v102_v58  ;;  %v187_v57 = vld [vmem:[%s6192_s1 + $0x548] sm:$0xff]  ;;  %v169_v58 = vld [vmem:[%s6192_s1 + $0x4b8] sm:$0xff] }
  0x3c   :  { %3628 = vmatprep.subr.mxu1 %v134_v61  ;;  %3594 = vmatpush3.msra.mxu0 %v86_v62  ;;  %v202_v61 = vld [vmem:[%s6192_s1 + $0x5c0] sm:$0xff]  ;;  %v153_v62 = vld [vmem:[%s6192_s1 + $0x438] sm:$0xff] }
  0x3d   :  { %3629 = vmatpush3.msra.mxu1 %v118_v1  ;;  %3595 = vmatprep.subr.mxu0 %v101_v2  ;;  %v186_v1 = vld [vmem:[%s6192_s1 + $0x540] sm:$0xff]  ;;  %v168_v2 = vld [vmem:[%s6192_s1 + $0x4b0] sm:$0xff] }
  0x3e   :  { %3630 = vmatprep.subr.mxu1 %v133_v3  ;;  %3596 = vmatpush3.msra.mxu0 %v85_v5  ;;  %v201_v3 = vld [vmem:[%s6192_s1 + $0x5b8] sm:$0xff]  ;;  %v152_v5 = vld [vmem:[%s6192_s1 + $0x430] sm:$0xff] }
  0x3f   :  { %3631 = vmatpush3.msra.mxu1 %v117_v6  ;;  %3597 = vmatprep.subr.mxu0 %v100_v7  ;;  %v185_v6 = vld [vmem:[%s6192_s1 + $0x538] sm:$0xff]  ;;  %v167_v7 = vld [vmem:[%s6192_s1 + $0x4a8] sm:$0xff] }
  0x40   :  { %3632 = vmatprep.subr.mxu1 %v132_v8  ;;  %3598 = vmatpush3.msra.mxu0 %v84_v9  ;;  %v200_v8 = vld [vmem:[%s6192_s1 + $0x5b0] sm:$0xff]  ;;  %v151_v9 = vld [vmem:[%s6192_s1 + $0x428] sm:$0xff] }
  0x41   :  { %3633 = vmatpush3.msra.mxu1 %v116_v10  ;;  %3599 = vmatprep.subr.mxu0 %v99_v12  ;;  %v184_v10 = vld [vmem:[%s6192_s1 + $0x530] sm:$0xff]  ;;  %v166_v12 = vld [vmem:[%s6192_s1 + $0x4a0] sm:$0xff] }
  0x42   :  { %3634 = vmatprep.subr.mxu1 %v131_v13  ;;  %3600 = vmatpush3.msra.mxu0 %v83_v16  ;;  %v199_v13 = vld [vmem:[%s6192_s1 + $0x5a8] sm:$0xff] }
  0x43   :  { %868 = vmatprep.mubr.f32.mxu0 %v526_v14  ;;  %3601 = vmatprep.subr.mxu0 %v98_v18  ;;  %v150_v14 = vld [vmem:[%s6192_s1 + $0x420] sm:$0xff]  ;;  %v183_v16 = vld [vmem:[%s6192_s1 + $0x528] sm:$0xff]  ;;  %v165_v18 = vld [vmem:[%s6192_s1 + $0x498] sm:$0xff] }
  0x44   :  { %3635 = vmatpush3.msra.mxu1 %v115_v19  ;;  %3602 = vmatpush3.msra.mxu0 %v82_v20  ;;  %v198_v19 = vld [vmem:[%s6192_s1 + $0x5a0] sm:$0xff]  ;;  %v149_v20 = vld [vmem:[%s6192_s1 + $0x418] sm:$0xff] }
  0x45   :  { %3636 = vmatprep.subr.mxu1 %v130_v22  ;;  %869 = vmatmul.mubr.f32.vlgmr.msra.gmra.mxu0 %v522_v21  ;;  %v182_v21 = vld [vmem:[%s6192_s1 + $0x520] sm:$0xff]  ;;  %v164_v22 = vld [vmem:[%s6192_s1 + $0x490] sm:$0xff] }
  0x46   :  { %3641 = vmatprep.subr.mxu0 %v177_v23  ;;  %3637 = vmatpush3.msra.mxu1 %v114_v25  ;;  %v197_v23 = vld [vmem:[%s6192_s1 + $0x598] sm:$0xff] }
  0x47   :  { %938 = vmatprep.mubr.f32.mxu1 %v534_v24  ;;  %3642 = vmatpush3.msra.mxu0 %v161_v27  ;;  %v148_v24 = vld [vmem:[%s6192_s1 + $0x410] sm:$0xff]  ;;  %v181_v25 = vld [vmem:[%s6192_s1 + $0x518] sm:$0xff]  ;;  %v163_v27 = vld [vmem:[%s6192_s1 + $0x488] sm:$0xff] }
  0x48   :  { %939 = vmatmul.mubr.f32.vlgmr.msra.gmra.mxu1 %v530_v26  ;;  %3643 = vmatprep.subr.mxu0 %v176_v28  ;;  %v4736_v26 = vld [vmem:[%s6193_s0 + $0x8] sm:$0xff]  ;;  %v196_v28 = vld [vmem:[%s6192_s1 + $0x590] sm:$0xff] }
  0x49   :  { %3676 = vmatprep.subr.mxu1 %v209_v29  ;;  %3644 = vmatpush3.msra.mxu0 %v160_v59  ;;  %v147_v29 = vld [vmem:[%s6192_s1 + $0x408] sm:$0xff]  ;;  %v180_v59 = vld [vmem:[%s6192_s1 + $0x510] sm:$0xff] }
  0x4a   :  { %3677 = vmatpush3.msra.mxu1 %v193_v30  ;;  %3645 = vmatprep.subr.mxu0 %v175_v31  ;;  %v162_v30 = vld [vmem:[%s6192_s1 + $0x480] sm:$0xff]  ;;  %v195_v31 = vld [vmem:[%s6192_s1 + $0x588] sm:$0xff] }
  0x4b   :  { %3678 = vmatprep.subr.mxu1 %v208_v32  ;;  %3646 = vmatpush3.msra.mxu0 %v159_v33  ;;  %v542_v32 = vrot.slane %v4736_v26, %v4305_v56  ;;  %v146_v33 = vld [vmem:[%s6192_s1 + $0x400] sm:$0xff] }
  0x4c   :  { %3679 = vmatpush3.msra.mxu1 %v192_v34  ;;  %3647 = vmatprep.subr.mxu0 %v174_v35  ;;  %v538_v34 = vrot.slane %v4736_v26, %v4328_v63  ;;  %v179_v35 = vld [vmem:[%s6192_s1 + $0x508] sm:$0xff] }
  0x4d   :  { %3680 = vmatprep.subr.mxu1 %v207_v36  ;;  %3648 = vmatpush3.msra.mxu0 %v158_v37  ;;  %v194_v36 = vld [vmem:[%s6192_s1 + $0x580] sm:$0xff]  ;;  %v241_v37 = vld [vmem:[%s6192_s1 + $0x6f8] sm:$0xff] }
  0x4e   :  { %3681 = vmatpush3.msra.mxu1 %v191_v39  ;;  %3649 = vmatprep.subr.mxu0 %v173_v40  ;;  %v550_v39 = vrot.slane %v4736_v26, %v4319_v60  ;;  %v178_v40 = vld [vmem:[%s6192_s1 + $0x500] sm:$0xff] }
  0x4f   :  { %3682 = vmatprep.subr.mxu1 %v206_v41  ;;  %3650 = vmatpush3.msra.mxu0 %v157_v42  ;;  %v546_v41 = vrot.slane %v4736_v26, %v4331_v0  ;;  %v225_v42 = vld [vmem:[%s6192_s1 + $0x678] sm:$0xff] }
  0x50   :  { %3683 = vmatpush3.msra.mxu1 %v190_v43  ;;  %3651 = vmatprep.subr.mxu0 %v172_v44  ;;  %v240_v43 = vld [vmem:[%s6192_s1 + $0x6f0] sm:$0xff]  ;;  %v273_v44 = vld [vmem:[%s6192_s1 + $0x7f8] sm:$0xff] }
  0x51   :  { %3684 = vmatprep.subr.mxu1 %v205_v45  ;;  %3652 = vmatpush3.msra.mxu0 %v156_v46  ;;  %v224_v45 = vld [vmem:[%s6192_s1 + $0x670] sm:$0xff]  ;;  %v257_v46 = vld [vmem:[%s6192_s1 + $0x778] sm:$0xff] }
  0x52   :  { %3685 = vmatpush3.msra.mxu1 %v189_v48  ;;  %3653 = vmatprep.subr.mxu0 %v171_v49  ;;  %v239_v48 = vld [vmem:[%s6192_s1 + $0x6e8] sm:$0xff]  ;;  %v272_v49 = vld [vmem:[%s6192_s1 + $0x7f0] sm:$0xff] }
  0x53   :  { %3686 = vmatprep.subr.mxu1 %v204_v50  ;;  %3654 = vmatpush3.msra.mxu0 %v155_v51  ;;  %v223_v50 = vld [vmem:[%s6192_s1 + $0x668] sm:$0xff]  ;;  %v256_v51 = vld [vmem:[%s6192_s1 + $0x770] sm:$0xff] }
  0x54   :  { %3687 = vmatpush3.msra.mxu1 %v188_v52  ;;  %3655 = vmatprep.subr.mxu0 %v170_v53  ;;  %v238_v52 = vld [vmem:[%s6192_s1 + $0x6e0] sm:$0xff]  ;;  %v271_v53 = vld [vmem:[%s6192_s1 + $0x7e8] sm:$0xff] }
  0x55   :  { %3688 = vmatprep.subr.mxu1 %v203_v54  ;;  %3656 = vmatpush3.msra.mxu0 %v154_v55  ;;  %v222_v54 = vld [vmem:[%s6192_s1 + $0x660] sm:$0xff]  ;;  %v255_v55 = vld [vmem:[%s6192_s1 + $0x768] sm:$0xff] }
  0x56   :  { %3689 = vmatpush3.msra.mxu1 %v187_v57  ;;  %3657 = vmatprep.subr.mxu0 %v169_v58  ;;  %v237_v57 = vld [vmem:[%s6192_s1 + $0x6d8] sm:$0xff]  ;;  %v270_v58 = vld [vmem:[%s6192_s1 + $0x7e0] sm:$0xff] }
  0x57   :  { %3690 = vmatprep.subr.mxu1 %v202_v61  ;;  %3658 = vmatpush3.msra.mxu0 %v153_v62  ;;  %v221_v61 = vld [vmem:[%s6192_s1 + $0x658] sm:$0xff]  ;;  %v254_v62 = vld [vmem:[%s6192_s1 + $0x760] sm:$0xff] }
  0x58   :  { %3691 = vmatpush3.msra.mxu1 %v186_v1  ;;  %3659 = vmatprep.subr.mxu0 %v168_v2  ;;  %v236_v1 = vld [vmem:[%s6192_s1 + $0x6d0] sm:$0xff]  ;;  %v269_v2 = vld [vmem:[%s6192_s1 + $0x7d8] sm:$0xff] }
  0x59   :  { %3692 = vmatprep.subr.mxu1 %v201_v3  ;;  %3660 = vmatpush3.msra.mxu0 %v152_v5  ;;  %v220_v3 = vld [vmem:[%s6192_s1 + $0x650] sm:$0xff]  ;;  %v253_v5 = vld [vmem:[%s6192_s1 + $0x758] sm:$0xff] }
  0x5a   :  { %3693 = vmatpush3.msra.mxu1 %v185_v6  ;;  %3661 = vmatprep.subr.mxu0 %v167_v7  ;;  %v235_v6 = vld [vmem:[%s6192_s1 + $0x6c8] sm:$0xff]  ;;  %v268_v7 = vld [vmem:[%s6192_s1 + $0x7d0] sm:$0xff] }
  0x5b   :  { %3694 = vmatprep.subr.mxu1 %v200_v8  ;;  %3662 = vmatpush3.msra.mxu0 %v151_v9  ;;  %v219_v8 = vld [vmem:[%s6192_s1 + $0x648] sm:$0xff]  ;;  %v252_v9 = vld [vmem:[%s6192_s1 + $0x750] sm:$0xff] }
  0x5c   :  { %3695 = vmatpush3.msra.mxu1 %v184_v10  ;;  %3663 = vmatprep.subr.mxu0 %v166_v12  ;;  %v234_v10 = vld [vmem:[%s6192_s1 + $0x6c0] sm:$0xff]  ;;  %v267_v12 = vld [vmem:[%s6192_s1 + $0x7c8] sm:$0xff] }
  0x5d   :  { %3696 = vmatprep.subr.mxu1 %v199_v13  ;;  %3664 = vmatpush3.msra.mxu0 %v150_v14  ;;  %v218_v13 = vld [vmem:[%s6192_s1 + $0x640] sm:$0xff]  ;;  %v251_v14 = vld [vmem:[%s6192_s1 + $0x748] sm:$0xff] }
  0x5e   :  { %3697 = vmatpush3.msra.mxu1 %v183_v16  ;;  %3665 = vmatprep.subr.mxu0 %v165_v18  ;;  %v233_v16 = vld [vmem:[%s6192_s1 + $0x6b8] sm:$0xff]  ;;  %v266_v18 = vld [vmem:[%s6192_s1 + $0x7c0] sm:$0xff] }
  0x5f   :  { %3698 = vmatprep.subr.mxu1 %v198_v19  ;;  %3666 = vmatpush3.msra.mxu0 %v149_v20  ;;  %v217_v19 = vld [vmem:[%s6192_s1 + $0x638] sm:$0xff]  ;;  %v250_v20 = vld [vmem:[%s6192_s1 + $0x740] sm:$0xff] }
  0x60   :  { %3699 = vmatpush3.msra.mxu1 %v182_v21  ;;  %3667 = vmatprep.subr.mxu0 %v164_v22  ;;  %v232_v21 = vld [vmem:[%s6192_s1 + $0x6b0] sm:$0xff]  ;;  %v265_v22 = vld [vmem:[%s6192_s1 + $0x7b8] sm:$0xff] }
  0x61   :  { %3700 = vmatprep.subr.mxu1 %v197_v23  ;;  %3668 = vmatpush3.msra.mxu0 %v148_v24  ;;  %v216_v23 = vld [vmem:[%s6192_s1 + $0x630] sm:$0xff]  ;;  %v249_v24 = vld [vmem:[%s6192_s1 + $0x738] sm:$0xff] }
  0x62   :  { %3701 = vmatpush3.msra.mxu1 %v181_v25  ;;  %3669 = vmatprep.subr.mxu0 %v163_v27  ;;  %v231_v25 = vld [vmem:[%s6192_s1 + $0x6a8] sm:$0xff]  ;;  %v264_v27 = vld [vmem:[%s6192_s1 + $0x7b0] sm:$0xff] }
  0x63   :  { %3702 = vmatprep.subr.mxu1 %v196_v28  ;;  %3670 = vmatpush3.msra.mxu0 %v147_v29  ;;  %v215_v28 = vld [vmem:[%s6192_s1 + $0x628] sm:$0xff]  ;;  %v248_v29 = vld [vmem:[%s6192_s1 + $0x730] sm:$0xff] }
  0x64   :  { %3703 = vmatpush3.msra.mxu1 %v180_v59  ;;  %3671 = vmatprep.subr.mxu0 %v162_v30  ;;  %v230_v59 = vld [vmem:[%s6192_s1 + $0x6a0] sm:$0xff]  ;;  %v263_v30 = vld [vmem:[%s6192_s1 + $0x7a8] sm:$0xff] }
  0x65   :  { %3704 = vmatprep.subr.mxu1 %v195_v31  ;;  %3672 = vmatpush3.msra.mxu0 %v146_v33  ;;  %v214_v31 = vld [vmem:[%s6192_s1 + $0x620] sm:$0xff]  ;;  %v229_v33 = vld [vmem:[%s6192_s1 + $0x698] sm:$0xff] }
  0x66   :  { %1008 = vmatprep.mubr.f32.mxu0 %v542_v32  ;;  %3705 = vmatpush3.msra.mxu1 %v179_v35  ;;  %v247_v32 = vld [vmem:[%s6192_s1 + $0x728] sm:$0xff]  ;;  %v213_v35 = vld [vmem:[%s6192_s1 + $0x618] sm:$0xff] }
  0x67   :  { %1009 = vmatmul.mubr.f32.vlgmr.msra.gmra.mxu0 %v538_v34  ;;  %3706 = vmatprep.subr.mxu1 %v194_v36  ;;  %v262_v34 = vld [vmem:[%s6192_s1 + $0x7a0] sm:$0xff] }
  0x68   :  { %3711 = vmatprep.subr.mxu0 %v241_v37  ;;  %3707 = vmatpush3.msra.mxu1 %v178_v40  ;;  %v246_v36 = vld [vmem:[%s6192_s1 + $0x720] sm:$0xff]  ;;  %v228_v37 = vld [vmem:[%s6192_s1 + $0x690] sm:$0xff] }
  0x69   :  { %1078 = vmatprep.mubr.f32.mxu1 %v550_v39  ;;  %3712 = vmatpush3.msra.mxu0 %v225_v42  ;;  %v261_v39 = vld [vmem:[%s6192_s1 + $0x798] sm:$0xff]  ;;  %v212_v40 = vld [vmem:[%s6192_s1 + $0x610] sm:$0xff]  ;;  %v227_v42 = vld [vmem:[%s6192_s1 + $0x688] sm:$0xff] }
  0x6a   :  { %1079 = vmatmul.mubr.f32.vlgmr.msra.gmra.mxu1 %v546_v41  ;;  %3713 = vmatprep.subr.mxu0 %v240_v43  ;;  %v245_v41 = vld [vmem:[%s6192_s1 + $0x718] sm:$0xff]  ;;  %v260_v43 = vld [vmem:[%s6192_s1 + $0x790] sm:$0xff] }
  0x6b   :  { %3746 = vmatprep.subr.mxu1 %v273_v44  ;;  %3714 = vmatpush3.msra.mxu0 %v224_v45  ;;  %v211_v44 = vld [vmem:[%s6192_s1 + $0x608] sm:$0xff]  ;;  %v244_v45 = vld [vmem:[%s6192_s1 + $0x710] sm:$0xff] }
  0x6c   :  { %3747 = vmatpush3.msra.mxu1 %v257_v46  ;;  %3715 = vmatprep.subr.mxu0 %v239_v48  ;;  %v226_v46 = vld [vmem:[%s6192_s1 + $0x680] sm:$0xff]  ;;  %v259_v48 = vld [vmem:[%s6192_s1 + $0x788] sm:$0xff] }
  0x6d   :  { %3748 = vmatprep.subr.mxu1 %v272_v49  ;;  %3716 = vmatpush3.msra.mxu0 %v223_v50  ;;  %v558_v49 = vrot.slane %v4736_v26, %v4510_v4  ;;  %v210_v50 = vld [vmem:[%s6192_s1 + $0x600] sm:$0xff] }
  0x6e   :  { %3749 = vmatpush3.msra.mxu1 %v256_v51  ;;  %3717 = vmatprep.subr.mxu0 %v238_v52  ;;  %v554_v51 = vrot.slane %v4736_v26, %v4531_v11  ;;  %v243_v52 = vld [vmem:[%s6192_s1 + $0x708] sm:$0xff] }
  0x6f   :  { %3750 = vmatprep.subr.mxu1 %v271_v53  ;;  %3718 = vmatpush3.msra.mxu0 %v222_v54  ;;  %v258_v53 = vld [vmem:[%s6192_s1 + $0x780] sm:$0xff]  ;;  %v305_v54 = vld [vmem:[%s6192_s1 + $0x8f8] sm:$0xff] }
  0x70   :  { %3751 = vmatpush3.msra.mxu1 %v255_v55  ;;  %3719 = vmatprep.subr.mxu0 %v237_v57  ;;  %v566_v55 = vrot.slane %v4736_v26, %v4542_v15  ;;  %v242_v57 = vld [vmem:[%s6192_s1 + $0x700] sm:$0xff] }
  0x71   :  { %3752 = vmatprep.subr.mxu1 %v270_v58  ;;  %3720 = vmatpush3.msra.mxu0 %v221_v61  ;;  %v562_v58 = vrot.slane %v4736_v26, %v4548_v17  ;;  %v289_v61 = vld [vmem:[%s6192_s1 + $0x878] sm:$0xff]  ;;  %v288_v26 = vld [vmem:[%s6192_s1 + $0x870] sm:$0xff] }
  0x72   :  { %3753 = vmatpush3.msra.mxu1 %v254_v62  ;;  %3721 = vmatprep.subr.mxu0 %v236_v1  ;;  %v304_v62 = vld [vmem:[%s6192_s1 + $0x8f0] sm:$0xff]  ;;  %v337_v1 = vld [vmem:[%s6192_s1 + $0x9f8] sm:$0xff] }
  0x73   :  { %3754 = vmatprep.subr.mxu1 %v269_v2  ;;  %3722 = vmatpush3.msra.mxu0 %v220_v3  ;;  %v321_v2 = vld [vmem:[%s6192_s1 + $0x978] sm:$0xff]  ;;  %v303_v3 = vld [vmem:[%s6192_s1 + $0x8e8] sm:$0xff] }
  0x74   :  { %3755 = vmatpush3.msra.mxu1 %v253_v5  ;;  %3723 = vmatprep.subr.mxu0 %v235_v6  ;;  %v336_v5 = vld [vmem:[%s6192_s1 + $0x9f0] sm:$0xff]  ;;  %v287_v6 = vld [vmem:[%s6192_s1 + $0x868] sm:$0xff] }
  0x75   :  { %3756 = vmatprep.subr.mxu1 %v268_v7  ;;  %3724 = vmatpush3.msra.mxu0 %v219_v8  ;;  %v320_v7 = vld [vmem:[%s6192_s1 + $0x970] sm:$0xff]  ;;  %v302_v8 = vld [vmem:[%s6192_s1 + $0x8e0] sm:$0xff] }
  0x76   :  { %3757 = vmatpush3.msra.mxu1 %v252_v9  ;;  %3725 = vmatprep.subr.mxu0 %v234_v10  ;;  %v335_v9 = vld [vmem:[%s6192_s1 + $0x9e8] sm:$0xff]  ;;  %v286_v10 = vld [vmem:[%s6192_s1 + $0x860] sm:$0xff] }
  0x77   :  { %3758 = vmatprep.subr.mxu1 %v267_v12  ;;  %3726 = vmatpush3.msra.mxu0 %v218_v13  ;;  %v319_v12 = vld [vmem:[%s6192_s1 + $0x968] sm:$0xff]  ;;  %v301_v13 = vld [vmem:[%s6192_s1 + $0x8d8] sm:$0xff] }
  0x78   :  { %3759 = vmatpush3.msra.mxu1 %v251_v14  ;;  %3727 = vmatprep.subr.mxu0 %v233_v16  ;;  %v334_v14 = vld [vmem:[%s6192_s1 + $0x9e0] sm:$0xff]  ;;  %v285_v16 = vld [vmem:[%s6192_s1 + $0x858] sm:$0xff] }
  0x79   :  { %3760 = vmatprep.subr.mxu1 %v266_v18  ;;  %3728 = vmatpush3.msra.mxu0 %v217_v19  ;;  %v318_v18 = vld [vmem:[%s6192_s1 + $0x960] sm:$0xff]  ;;  %v300_v19 = vld [vmem:[%s6192_s1 + $0x8d0] sm:$0xff] }
  0x7a   :  { %3761 = vmatpush3.msra.mxu1 %v250_v20  ;;  %3729 = vmatprep.subr.mxu0 %v232_v21  ;;  %v333_v20 = vld [vmem:[%s6192_s1 + $0x9d8] sm:$0xff]  ;;  %v284_v21 = vld [vmem:[%s6192_s1 + $0x850] sm:$0xff] }
  0x7b   :  { %3762 = vmatprep.subr.mxu1 %v265_v22  ;;  %3730 = vmatpush3.msra.mxu0 %v216_v23  ;;  %v317_v22 = vld [vmem:[%s6192_s1 + $0x958] sm:$0xff]  ;;  %v299_v23 = vld [vmem:[%s6192_s1 + $0x8c8] sm:$0xff] }
  0x7c   :  { %3763 = vmatpush3.msra.mxu1 %v249_v24  ;;  %3731 = vmatprep.subr.mxu0 %v231_v25  ;;  %v332_v24 = vld [vmem:[%s6192_s1 + $0x9d0] sm:$0xff]  ;;  %v283_v25 = vld [vmem:[%s6192_s1 + $0x848] sm:$0xff] }
  0x7d   :  { %3764 = vmatprep.subr.mxu1 %v264_v27  ;;  %3732 = vmatpush3.msra.mxu0 %v215_v28  ;;  %v316_v27 = vld [vmem:[%s6192_s1 + $0x950] sm:$0xff]  ;;  %v298_v28 = vld [vmem:[%s6192_s1 + $0x8c0] sm:$0xff] }
  0x7e   :  { %3765 = vmatpush3.msra.mxu1 %v248_v29  ;;  %3733 = vmatprep.subr.mxu0 %v230_v59  ;;  %v331_v29 = vld [vmem:[%s6192_s1 + $0x9c8] sm:$0xff]  ;;  %v282_v59 = vld [vmem:[%s6192_s1 + $0x840] sm:$0xff] }
  0x7f   :  { %3766 = vmatprep.subr.mxu1 %v263_v30  ;;  %3734 = vmatpush3.msra.mxu0 %v214_v31  ;;  %v315_v30 = vld [vmem:[%s6192_s1 + $0x948] sm:$0xff]  ;;  %v297_v31 = vld [vmem:[%s6192_s1 + $0x8b8] sm:$0xff] }
  0x80   :  { %3767 = vmatpush3.msra.mxu1 %v247_v32  ;;  %3735 = vmatprep.subr.mxu0 %v229_v33  ;;  %v330_v32 = vld [vmem:[%s6192_s1 + $0x9c0] sm:$0xff]  ;;  %v281_v33 = vld [vmem:[%s6192_s1 + $0x838] sm:$0xff] }
  0x81   :  { %3768 = vmatprep.subr.mxu1 %v262_v34  ;;  %3736 = vmatpush3.msra.mxu0 %v213_v35  ;;  %v314_v34 = vld [vmem:[%s6192_s1 + $0x940] sm:$0xff]  ;;  %v296_v35 = vld [vmem:[%s6192_s1 + $0x8b0] sm:$0xff] }
  0x82   :  { %3769 = vmatpush3.msra.mxu1 %v246_v36  ;;  %3737 = vmatprep.subr.mxu0 %v228_v37  ;;  %v329_v36 = vld [vmem:[%s6192_s1 + $0x9b8] sm:$0xff]  ;;  %v280_v37 = vld [vmem:[%s6192_s1 + $0x830] sm:$0xff] }
  0x83   :  { %3770 = vmatprep.subr.mxu1 %v261_v39  ;;  %3738 = vmatpush3.msra.mxu0 %v212_v40  ;;  %v313_v39 = vld [vmem:[%s6192_s1 + $0x938] sm:$0xff]  ;;  %v295_v40 = vld [vmem:[%s6192_s1 + $0x8a8] sm:$0xff] }
  0x84   :  { %3771 = vmatpush3.msra.mxu1 %v245_v41  ;;  %3739 = vmatprep.subr.mxu0 %v227_v42  ;;  %v328_v41 = vld [vmem:[%s6192_s1 + $0x9b0] sm:$0xff]  ;;  %v279_v42 = vld [vmem:[%s6192_s1 + $0x828] sm:$0xff] }
  0x85   :  { %3772 = vmatprep.subr.mxu1 %v260_v43  ;;  %3740 = vmatpush3.msra.mxu0 %v211_v44  ;;  %v312_v43 = vld [vmem:[%s6192_s1 + $0x930] sm:$0xff]  ;;  %v294_v44 = vld [vmem:[%s6192_s1 + $0x8a0] sm:$0xff] }
  0x86   :  { %3773 = vmatpush3.msra.mxu1 %v244_v45  ;;  %3741 = vmatprep.subr.mxu0 %v226_v46  ;;  %v327_v45 = vld [vmem:[%s6192_s1 + $0x9a8] sm:$0xff]  ;;  %v278_v46 = vld [vmem:[%s6192_s1 + $0x820] sm:$0xff] }
  0x87   :  { %3774 = vmatprep.subr.mxu1 %v259_v48  ;;  %3742 = vmatpush3.msra.mxu0 %v210_v50  ;;  %v311_v48 = vld [vmem:[%s6192_s1 + $0x928] sm:$0xff]  ;;  %v326_v50 = vld [vmem:[%s6192_s1 + $0x9a0] sm:$0xff] }
  0x88   :  { %1148 = vmatprep.mubr.f32.mxu0 %v558_v49  ;;  %3775 = vmatpush3.msra.mxu1 %v243_v52  ;;  %v293_v49 = vld [vmem:[%s6192_s1 + $0x898] sm:$0xff]  ;;  %v310_v52 = vld [vmem:[%s6192_s1 + $0x920] sm:$0xff] }
  0x89   :  { %1149 = vmatmul.mubr.f32.vlgmr.msra.gmra.mxu0 %v554_v51  ;;  %3776 = vmatprep.subr.mxu1 %v258_v53  ;;  %v277_v51 = vld [vmem:[%s6192_s1 + $0x818] sm:$0xff]  ;;  %v292_v53 = vld [vmem:[%s6192_s1 + $0x890] sm:$0xff] }
  0x8a   :  { %3781 = vmatprep.subr.mxu0 %v305_v54  ;;  %3777 = vmatpush3.msra.mxu1 %v242_v57  ;;  %v325_v54 = vld [vmem:[%s6192_s1 + $0x998] sm:$0xff] }
  0x8b   :  { %1218 = vmatprep.mubr.f32.mxu1 %v566_v55  ;;  %3782 = vmatpush3.msra.mxu0 %v289_v61  ;;  %v276_v55 = vld [vmem:[%s6192_s1 + $0x810] sm:$0xff]  ;;  %v309_v57 = vld [vmem:[%s6192_s1 + $0x918] sm:$0xff]  ;;  %v291_v61 = vld [vmem:[%s6192_s1 + $0x888] sm:$0xff] }
  0x8c   :  { %1219 = vmatmul.mubr.f32.vlgmr.msra.gmra.mxu1 %v562_v58  ;;  %3783 = vmatprep.subr.mxu0 %v304_v62  ;;  %v5141_v58 = vld [vmem:[%s6193_s0 + $0x10] sm:$0xff] }
  0x8d   :  { %3816 = vmatprep.subr.mxu1 %v337_v1  ;;  %3784 = vmatpush3.msra.mxu0 %v288_v26  ;;  %v324_v62 = vld [vmem:[%s6192_s1 + $0x990] sm:$0xff]  ;;  %v275_v1 = vld [vmem:[%s6192_s1 + $0x808] sm:$0xff] }
  0x8e   :  { %3817 = vmatpush3.msra.mxu1 %v321_v2  ;;  %3785 = vmatprep.subr.mxu0 %v303_v3  ;;  %v308_v26 = vld [vmem:[%s6192_s1 + $0x910] sm:$0xff]  ;;  %v290_v2 = vld [vmem:[%s6192_s1 + $0x880] sm:$0xff]  ;;  %v323_v3 = vld [vmem:[%s6192_s1 + $0x988] sm:$0xff] }
  0x8f   :  { %3818 = vmatprep.subr.mxu1 %v336_v5  ;;  %3786 = vmatpush3.msra.mxu0 %v287_v6  ;;  %v574_v5 = vrot.slane %v5141_v58, %v4305_v56  ;;  %v274_v6 = vld [vmem:[%s6192_s1 + $0x800] sm:$0xff] }
  0x90   :  { %3819 = vmatpush3.msra.mxu1 %v320_v7  ;;  %3787 = vmatprep.subr.mxu0 %v302_v8  ;;  %v570_v7 = vrot.slane %v5141_v58, %v4328_v63  ;;  %v307_v8 = vld [vmem:[%s6192_s1 + $0x908] sm:$0xff] }
  0x91   :  { %3820 = vmatprep.subr.mxu1 %v335_v9  ;;  %3788 = vmatpush3.msra.mxu0 %v286_v10  ;;  %v322_v9 = vld [vmem:[%s6192_s1 + $0x980] sm:$0xff]  ;;  %v369_v10 = vld [vmem:[%s6192_s1 + $0xaf8] sm:$0xff] }
  0x92   :  { %3821 = vmatpush3.msra.mxu1 %v319_v12  ;;  %3789 = vmatprep.subr.mxu0 %v301_v13  ;;  %v582_v12 = vrot.slane %v5141_v58, %v4319_v60  ;;  %v306_v13 = vld [vmem:[%s6192_s1 + $0x900] sm:$0xff] }
  0x93   :  { %3822 = vmatprep.subr.mxu1 %v334_v14  ;;  %3790 = vmatpush3.msra.mxu0 %v285_v16  ;;  %v578_v14 = vrot.slane %v5141_v58, %v4331_v0  ;;  %v353_v16 = vld [vmem:[%s6192_s1 + $0xa78] sm:$0xff] }
  0x94   :  { %3823 = vmatpush3.msra.mxu1 %v318_v18  ;;  %3791 = vmatprep.subr.mxu0 %v300_v19  ;;  %v368_v18 = vld [vmem:[%s6192_s1 + $0xaf0] sm:$0xff]  ;;  %v401_v19 = vld [vmem:[%s6192_s1 + $0xbf8] sm:$0xff] }
  0x95   :  { %3824 = vmatprep.subr.mxu1 %v333_v20  ;;  %3792 = vmatpush3.msra.mxu0 %v284_v21  ;;  %v352_v20 = vld [vmem:[%s6192_s1 + $0xa70] sm:$0xff]  ;;  %v385_v21 = vld [vmem:[%s6192_s1 + $0xb78] sm:$0xff] }
  0x96   :  { %3825 = vmatpush3.msra.mxu1 %v317_v22  ;;  %3793 = vmatprep.subr.mxu0 %v299_v23  ;;  %v367_v22 = vld [vmem:[%s6192_s1 + $0xae8] sm:$0xff]  ;;  %v400_v23 = vld [vmem:[%s6192_s1 + $0xbf0] sm:$0xff] }
  0x97   :  { %3826 = vmatprep.subr.mxu1 %v332_v24  ;;  %3794 = vmatpush3.msra.mxu0 %v283_v25  ;;  %v351_v24 = vld [vmem:[%s6192_s1 + $0xa68] sm:$0xff]  ;;  %v384_v25 = vld [vmem:[%s6192_s1 + $0xb70] sm:$0xff] }
  0x98   :  { %3827 = vmatpush3.msra.mxu1 %v316_v27  ;;  %3795 = vmatprep.subr.mxu0 %v298_v28  ;;  %v366_v27 = vld [vmem:[%s6192_s1 + $0xae0] sm:$0xff]  ;;  %v399_v28 = vld [vmem:[%s6192_s1 + $0xbe8] sm:$0xff] }
  0x99   :  { %3828 = vmatprep.subr.mxu1 %v331_v29  ;;  %3796 = vmatpush3.msra.mxu0 %v282_v59  ;;  %v350_v29 = vld [vmem:[%s6192_s1 + $0xa60] sm:$0xff]  ;;  %v383_v59 = vld [vmem:[%s6192_s1 + $0xb68] sm:$0xff] }
  0x9a   :  { %3829 = vmatpush3.msra.mxu1 %v315_v30  ;;  %3797 = vmatprep.subr.mxu0 %v297_v31  ;;  %v365_v30 = vld [vmem:[%s6192_s1 + $0xad8] sm:$0xff]  ;;  %v398_v31 = vld [vmem:[%s6192_s1 + $0xbe0] sm:$0xff] }
  0x9b   :  { %3830 = vmatprep.subr.mxu1 %v330_v32  ;;  %3798 = vmatpush3.msra.mxu0 %v281_v33  ;;  %v349_v32 = vld [vmem:[%s6192_s1 + $0xa58] sm:$0xff]  ;;  %v382_v33 = vld [vmem:[%s6192_s1 + $0xb60] sm:$0xff] }
  0x9c   :  { %3831 = vmatpush3.msra.mxu1 %v314_v34  ;;  %3799 = vmatprep.subr.mxu0 %v296_v35  ;;  %v364_v34 = vld [vmem:[%s6192_s1 + $0xad0] sm:$0xff]  ;;  %v397_v35 = vld [vmem:[%s6192_s1 + $0xbd8] sm:$0xff] }
  0x9d   :  { %3832 = vmatprep.subr.mxu1 %v329_v36  ;;  %3800 = vmatpush3.msra.mxu0 %v280_v37  ;;  %v348_v36 = vld [vmem:[%s6192_s1 + $0xa50] sm:$0xff]  ;;  %v381_v37 = vld [vmem:[%s6192_s1 + $0xb58] sm:$0xff] }
  0x9e   :  { %3833 = vmatpush3.msra.mxu1 %v313_v39  ;;  %3801 = vmatprep.subr.mxu0 %v295_v40  ;;  %v363_v39 = vld [vmem:[%s6192_s1 + $0xac8] sm:$0xff]  ;;  %v396_v40 = vld [vmem:[%s6192_s1 + $0xbd0] sm:$0xff] }
  0x9f   :  { %3834 = vmatprep.subr.mxu1 %v328_v41  ;;  %3802 = vmatpush3.msra.mxu0 %v279_v42  ;;  %v347_v41 = vld [vmem:[%s6192_s1 + $0xa48] sm:$0xff]  ;;  %v380_v42 = vld [vmem:[%s6192_s1 + $0xb50] sm:$0xff] }
  0xa0   :  { %3835 = vmatpush3.msra.mxu1 %v312_v43  ;;  %3803 = vmatprep.subr.mxu0 %v294_v44  ;;  %v362_v43 = vld [vmem:[%s6192_s1 + $0xac0] sm:$0xff]  ;;  %v395_v44 = vld [vmem:[%s6192_s1 + $0xbc8] sm:$0xff] }
  0xa1   :  { %3836 = vmatprep.subr.mxu1 %v327_v45  ;;  %3804 = vmatpush3.msra.mxu0 %v278_v46  ;;  %v346_v45 = vld [vmem:[%s6192_s1 + $0xa40] sm:$0xff]  ;;  %v379_v46 = vld [vmem:[%s6192_s1 + $0xb48] sm:$0xff] }
  0xa2   :  { %3837 = vmatpush3.msra.mxu1 %v311_v48  ;;  %3805 = vmatprep.subr.mxu0 %v293_v49  ;;  %v361_v48 = vld [vmem:[%s6192_s1 + $0xab8] sm:$0xff]  ;;  %v394_v49 = vld [vmem:[%s6192_s1 + $0xbc0] sm:$0xff] }
  0xa3   :  { %3838 = vmatprep.subr.mxu1 %v326_v50  ;;  %3806 = vmatpush3.msra.mxu0 %v277_v51  ;;  %v345_v50 = vld [vmem:[%s6192_s1 + $0xa38] sm:$0xff]  ;;  %v378_v51 = vld [vmem:[%s6192_s1 + $0xb40] sm:$0xff] }
  0xa4   :  { %3839 = vmatpush3.msra.mxu1 %v310_v52  ;;  %3807 = vmatprep.subr.mxu0 %v292_v53  ;;  %v360_v52 = vld [vmem:[%s6192_s1 + $0xab0] sm:$0xff]  ;;  %v393_v53 = vld [vmem:[%s6192_s1 + $0xbb8] sm:$0xff] }
  0xa5   :  { %3840 = vmatprep.subr.mxu1 %v325_v54  ;;  %3808 = vmatpush3.msra.mxu0 %v276_v55  ;;  %v344_v54 = vld [vmem:[%s6192_s1 + $0xa30] sm:$0xff]  ;;  %v377_v55 = vld [vmem:[%s6192_s1 + $0xb38] sm:$0xff] }
  0xa6   :  { %3841 = vmatpush3.msra.mxu1 %v309_v57  ;;  %3809 = vmatprep.subr.mxu0 %v291_v61  ;;  %v359_v57 = vld [vmem:[%s6192_s1 + $0xaa8] sm:$0xff]  ;;  %v392_v61 = vld [vmem:[%s6192_s1 + $0xbb0] sm:$0xff] }
  0xa7   :  { %3842 = vmatprep.subr.mxu1 %v324_v62  ;;  %3810 = vmatpush3.msra.mxu0 %v275_v1  ;;  %v343_v62 = vld [vmem:[%s6192_s1 + $0xa28] sm:$0xff]  ;;  %v376_v1 = vld [vmem:[%s6192_s1 + $0xb30] sm:$0xff] }
  0xa8   :  { %3843 = vmatpush3.msra.mxu1 %v308_v26  ;;  %3811 = vmatprep.subr.mxu0 %v290_v2  ;;  %v358_v26 = vld [vmem:[%s6192_s1 + $0xaa0] sm:$0xff]  ;;  %v391_v2 = vld [vmem:[%s6192_s1 + $0xba8] sm:$0xff] }
  0xa9   :  { %3844 = vmatprep.subr.mxu1 %v323_v3  ;;  %3812 = vmatpush3.msra.mxu0 %v274_v6  ;;  %v342_v3 = vld [vmem:[%s6192_s1 + $0xa20] sm:$0xff]  ;;  %v357_v6 = vld [vmem:[%s6192_s1 + $0xa98] sm:$0xff] }
  0xaa   :  { %1288 = vmatprep.mubr.f32.mxu0 %v574_v5  ;;  %3845 = vmatpush3.msra.mxu1 %v307_v8  ;;  %v375_v5 = vld [vmem:[%s6192_s1 + $0xb28] sm:$0xff]  ;;  %v341_v8 = vld [vmem:[%s6192_s1 + $0xa18] sm:$0xff] }
  0xab   :  { %1289 = vmatmul.mubr.f32.vlgmr.msra.gmra.mxu0 %v570_v7  ;;  %3846 = vmatprep.subr.mxu1 %v322_v9  ;;  %v390_v7 = vld [vmem:[%s6192_s1 + $0xba0] sm:$0xff] }
  0xac   :  { %3851 = vmatprep.subr.mxu0 %v369_v10  ;;  %3847 = vmatpush3.msra.mxu1 %v306_v13  ;;  %v374_v9 = vld [vmem:[%s6192_s1 + $0xb20] sm:$0xff]  ;;  %v356_v10 = vld [vmem:[%s6192_s1 + $0xa90] sm:$0xff] }
  0xad   :  { %1358 = vmatprep.mubr.f32.mxu1 %v582_v12  ;;  %3852 = vmatpush3.msra.mxu0 %v353_v16  ;;  %v389_v12 = vld [vmem:[%s6192_s1 + $0xb98] sm:$0xff]  ;;  %v340_v13 = vld [vmem:[%s6192_s1 + $0xa10] sm:$0xff]  ;;  %v355_v16 = vld [vmem:[%s6192_s1 + $0xa88] sm:$0xff] }
  0xae   :  { %1359 = vmatmul.mubr.f32.vlgmr.msra.gmra.mxu1 %v578_v14  ;;  %3853 = vmatprep.subr.mxu0 %v368_v18  ;;  %v373_v14 = vld [vmem:[%s6192_s1 + $0xb18] sm:$0xff]  ;;  %v388_v18 = vld [vmem:[%s6192_s1 + $0xb90] sm:$0xff] }
  0xaf   :  { %3886 = vmatprep.subr.mxu1 %v401_v19  ;;  %3854 = vmatpush3.msra.mxu0 %v352_v20  ;;  %v339_v19 = vld [vmem:[%s6192_s1 + $0xa08] sm:$0xff]  ;;  %v372_v20 = vld [vmem:[%s6192_s1 + $0xb10] sm:$0xff] }
  0xb0   :  { %3887 = vmatpush3.msra.mxu1 %v385_v21  ;;  %3855 = vmatprep.subr.mxu0 %v367_v22  ;;  %v354_v21 = vld [vmem:[%s6192_s1 + $0xa80] sm:$0xff]  ;;  %v387_v22 = vld [vmem:[%s6192_s1 + $0xb88] sm:$0xff] }
  0xb1   :  { %3888 = vmatprep.subr.mxu1 %v400_v23  ;;  %3856 = vmatpush3.msra.mxu0 %v351_v24  ;;  %v590_v23 = vrot.slane %v5141_v58, %v4510_v4  ;;  %v338_v24 = vld [vmem:[%s6192_s1 + $0xa00] sm:$0xff] }
  0xb2   :  { %3889 = vmatpush3.msra.mxu1 %v384_v25  ;;  %3857 = vmatprep.subr.mxu0 %v366_v27  ;;  %v586_v25 = vrot.slane %v5141_v58, %v4531_v11  ;;  %v371_v27 = vld [vmem:[%s6192_s1 + $0xb08] sm:$0xff] }
  0xb3   :  { %3890 = vmatprep.subr.mxu1 %v399_v28  ;;  %3858 = vmatpush3.msra.mxu0 %v350_v29  ;;  %v386_v28 = vld [vmem:[%s6192_s1 + $0xb80] sm:$0xff]  ;;  %v433_v29 = vld [vmem:[%s6192_s1 + $0xcf8] sm:$0xff] }
  0xb4   :  { %3891 = vmatpush3.msra.mxu1 %v383_v59  ;;  %3859 = vmatprep.subr.mxu0 %v365_v30  ;;  %v598_v59 = vrot.slane %v5141_v58, %v4542_v15  ;;  %v370_v30 = vld [vmem:[%s6192_s1 + $0xb00] sm:$0xff]  ;;  %v432_v15 = vld [vmem:[%s6192_s1 + $0xcf0] sm:$0xff] }
  0xb5   :  { %3892 = vmatprep.subr.mxu1 %v398_v31  ;;  %3860 = vmatpush3.msra.mxu0 %v349_v32  ;;  %v594_v31 = vrot.slane %v5141_v58, %v4548_v17  ;;  %v417_v32 = vld [vmem:[%s6192_s1 + $0xc78] sm:$0xff]  ;;  %v416_v58 = vld [vmem:[%s6192_s1 + $0xc70] sm:$0xff] }
  0xb6   :  { %3893 = vmatpush3.msra.mxu1 %v382_v33  ;;  %3861 = vmatprep.subr.mxu0 %v364_v34  ;;  %v465_v33 = vld [vmem:[%s6192_s1 + $0xdf8] sm:$0xff] }
  0xb7   :  { %3894 = vmatprep.subr.mxu1 %v397_v35  ;;  %3862 = vmatpush3.msra.mxu0 %v348_v36  ;;  %v449_v34 = vld [vmem:[%s6192_s1 + $0xd78] sm:$0xff]  ;;  %v431_v35 = vld [vmem:[%s6192_s1 + $0xce8] sm:$0xff]  ;;  %v464_v36 = vld [vmem:[%s6192_s1 + $0xdf0] sm:$0xff] }
  0xb8   :  { %3895 = vmatpush3.msra.mxu1 %v381_v37  ;;  %3863 = vmatprep.subr.mxu0 %v363_v39  ;;  %v415_v37 = vld [vmem:[%s6192_s1 + $0xc68] sm:$0xff]  ;;  %v448_v39 = vld [vmem:[%s6192_s1 + $0xd70] sm:$0xff] }
  0xb9   :  { %3896 = vmatprep.subr.mxu1 %v396_v40  ;;  %3864 = vmatpush3.msra.mxu0 %v347_v41  ;;  %v430_v40 = vld [vmem:[%s6192_s1 + $0xce0] sm:$0xff]  ;;  %v463_v41 = vld [vmem:[%s6192_s1 + $0xde8] sm:$0xff] }
  0xba   :  { %3897 = vmatpush3.msra.mxu1 %v380_v42  ;;  %3865 = vmatprep.subr.mxu0 %v362_v43  ;;  %v414_v42 = vld [vmem:[%s6192_s1 + $0xc60] sm:$0xff]  ;;  %v447_v43 = vld [vmem:[%s6192_s1 + $0xd68] sm:$0xff] }
  0xbb   :  { %3898 = vmatprep.subr.mxu1 %v395_v44  ;;  %3866 = vmatpush3.msra.mxu0 %v346_v45  ;;  %v429_v44 = vld [vmem:[%s6192_s1 + $0xcd8] sm:$0xff]  ;;  %v462_v45 = vld [vmem:[%s6192_s1 + $0xde0] sm:$0xff] }
  0xbc   :  { %3899 = vmatpush3.msra.mxu1 %v379_v46  ;;  %3867 = vmatprep.subr.mxu0 %v361_v48  ;;  %v413_v46 = vld [vmem:[%s6192_s1 + $0xc58] sm:$0xff]  ;;  %v446_v48 = vld [vmem:[%s6192_s1 + $0xd60] sm:$0xff] }
  0xbd   :  { %3900 = vmatprep.subr.mxu1 %v394_v49  ;;  %3868 = vmatpush3.msra.mxu0 %v345_v50  ;;  %v428_v49 = vld [vmem:[%s6192_s1 + $0xcd0] sm:$0xff]  ;;  %v461_v50 = vld [vmem:[%s6192_s1 + $0xdd8] sm:$0xff] }
  0xbe   :  { %3901 = vmatpush3.msra.mxu1 %v378_v51  ;;  %3869 = vmatprep.subr.mxu0 %v360_v52  ;;  %v412_v51 = vld [vmem:[%s6192_s1 + $0xc50] sm:$0xff]  ;;  %v445_v52 = vld [vmem:[%s6192_s1 + $0xd58] sm:$0xff] }
  0xbf   :  { %3902 = vmatprep.subr.mxu1 %v393_v53  ;;  %3870 = vmatpush3.msra.mxu0 %v344_v54  ;;  %v427_v53 = vld [vmem:[%s6192_s1 + $0xcc8] sm:$0xff]  ;;  %v460_v54 = vld [vmem:[%s6192_s1 + $0xdd0] sm:$0xff] }
  0xc0   :  { %3903 = vmatpush3.msra.mxu1 %v377_v55  ;;  %3871 = vmatprep.subr.mxu0 %v359_v57  ;;  %v411_v55 = vld [vmem:[%s6192_s1 + $0xc48] sm:$0xff]  ;;  %v444_v57 = vld [vmem:[%s6192_s1 + $0xd50] sm:$0xff] }
  0xc1   :  { %3904 = vmatprep.subr.mxu1 %v392_v61  ;;  %3872 = vmatpush3.msra.mxu0 %v343_v62  ;;  %v426_v61 = vld [vmem:[%s6192_s1 + $0xcc0] sm:$0xff]  ;;  %v459_v62 = vld [vmem:[%s6192_s1 + $0xdc8] sm:$0xff] }
  0xc2   :  { %3905 = vmatpush3.msra.mxu1 %v376_v1  ;;  %3873 = vmatprep.subr.mxu0 %v358_v26  ;;  %v410_v1 = vld [vmem:[%s6192_s1 + $0xc40] sm:$0xff]  ;;  %v443_v26 = vld [vmem:[%s6192_s1 + $0xd48] sm:$0xff] }
  0xc3   :  { %3906 = vmatprep.subr.mxu1 %v391_v2  ;;  %3874 = vmatpush3.msra.mxu0 %v342_v3  ;;  %v425_v2 = vld [vmem:[%s6192_s1 + $0xcb8] sm:$0xff]  ;;  %v458_v3 = vld [vmem:[%s6192_s1 + $0xdc0] sm:$0xff] }
  0xc4   :  { %3907 = vmatpush3.msra.mxu1 %v375_v5  ;;  %3875 = vmatprep.subr.mxu0 %v357_v6  ;;  %v409_v5 = vld [vmem:[%s6192_s1 + $0xc38] sm:$0xff]  ;;  %v442_v6 = vld [vmem:[%s6192_s1 + $0xd40] sm:$0xff] }
  0xc5   :  { %3908 = vmatprep.subr.mxu1 %v390_v7  ;;  %3876 = vmatpush3.msra.mxu0 %v341_v8  ;;  %v424_v7 = vld [vmem:[%s6192_s1 + $0xcb0] sm:$0xff]  ;;  %v457_v8 = vld [vmem:[%s6192_s1 + $0xdb8] sm:$0xff] }
  0xc6   :  { %3909 = vmatpush3.msra.mxu1 %v374_v9  ;;  %3877 = vmatprep.subr.mxu0 %v356_v10  ;;  %v408_v9 = vld [vmem:[%s6192_s1 + $0xc30] sm:$0xff]  ;;  %v441_v10 = vld [vmem:[%s6192_s1 + $0xd38] sm:$0xff] }
  0xc7   :  { %3910 = vmatprep.subr.mxu1 %v389_v12  ;;  %3878 = vmatpush3.msra.mxu0 %v340_v13  ;;  %v423_v12 = vld [vmem:[%s6192_s1 + $0xca8] sm:$0xff]  ;;  %v456_v13 = vld [vmem:[%s6192_s1 + $0xdb0] sm:$0xff] }
  0xc8   :  { %3911 = vmatpush3.msra.mxu1 %v373_v14  ;;  %3879 = vmatprep.subr.mxu0 %v355_v16  ;;  %v407_v14 = vld [vmem:[%s6192_s1 + $0xc28] sm:$0xff]  ;;  %v440_v16 = vld [vmem:[%s6192_s1 + $0xd30] sm:$0xff] }
  0xc9   :  { %3912 = vmatprep.subr.mxu1 %v388_v18  ;;  %3880 = vmatpush3.msra.mxu0 %v339_v19  ;;  %v422_v18 = vld [vmem:[%s6192_s1 + $0xca0] sm:$0xff]  ;;  %v455_v19 = vld [vmem:[%s6192_s1 + $0xda8] sm:$0xff] }
  0xca   :  { %3913 = vmatpush3.msra.mxu1 %v372_v20  ;;  %3881 = vmatprep.subr.mxu0 %v354_v21  ;;  %v406_v20 = vld [vmem:[%s6192_s1 + $0xc20] sm:$0xff]  ;;  %v439_v21 = vld [vmem:[%s6192_s1 + $0xd28] sm:$0xff] }
  0xcb   :  { %3914 = vmatprep.subr.mxu1 %v387_v22  ;;  %3882 = vmatpush3.msra.mxu0 %v338_v24  ;;  %v421_v22 = vld [vmem:[%s6192_s1 + $0xc98] sm:$0xff] }
  0xcc   :  { %1428 = vmatprep.mubr.f32.mxu0 %v590_v23  ;;  %3915 = vmatpush3.msra.mxu1 %v371_v27  ;;  %v454_v23 = vld [vmem:[%s6192_s1 + $0xda0] sm:$0xff]  ;;  %v405_v24 = vld [vmem:[%s6192_s1 + $0xc18] sm:$0xff]  ;;  %v420_v27 = vld [vmem:[%s6192_s1 + $0xc90] sm:$0xff] }
  0xcd   :  { %1429 = vmatmul.mubr.f32.vlgmr.msra.gmra.mxu0 %v586_v25  ;;  %3916 = vmatprep.subr.mxu1 %v386_v28  ;;  %v438_v25 = vld [vmem:[%s6192_s1 + $0xd20] sm:$0xff]  ;;  %v453_v28 = vld [vmem:[%s6192_s1 + $0xd98] sm:$0xff] }
  0xce   :  { %3921 = vmatprep.subr.mxu0 %v433_v29  ;;  %3917 = vmatpush3.msra.mxu1 %v370_v30  ;;  %v404_v29 = vld [vmem:[%s6192_s1 + $0xc10] sm:$0xff]  ;;  %v5546_v30 = vld [vmem:[%s6193_s0 + $0x18] sm:$0x7f] }
  0xcf   :  { %1498 = vmatprep.mubr.f32.mxu1 %v598_v59  ;;  %3922 = vmatpush3.msra.mxu0 %v417_v32  ;;  %v437_v59 = vld [vmem:[%s6192_s1 + $0xd18] sm:$0xff]  ;;  %v452_v32 = vld [vmem:[%s6192_s1 + $0xd90] sm:$0xff] }
  0xd0   :  { %1499 = vmatmul.mubr.f32.vlgmr.msra.gmra.mxu1 %v594_v31  ;;  %3923 = vmatprep.subr.mxu0 %v432_v15  ;;  %v419_v31 = vld [vmem:[%s6192_s1 + $0xc88] sm:$0xff] }
  0xd1   :  { %3956 = vmatprep.subr.mxu1 %v465_v33  ;;  %3924 = vmatpush3.msra.mxu0 %v416_v58  ;;  %v403_v15 = vld [vmem:[%s6192_s1 + $0xc08] sm:$0xff]  ;;  %v436_v33 = vld [vmem:[%s6192_s1 + $0xd10] sm:$0xff]  ;;  %v418_v58 = vld [vmem:[%s6192_s1 + $0xc80] sm:$0xff] }
  0xd2   :  { %3957 = vmatpush3.msra.mxu1 %v449_v34  ;;  %3925 = vmatprep.subr.mxu0 %v431_v35  ;;  %v451_v34 = vld [vmem:[%s6192_s1 + $0xd88] sm:$0xff]  ;;  %v606_v35 = vrot.slane %v5546_v30, %v4305_v56  ;;  %v450_v56 = vld [vmem:[%s6192_s1 + $0xd80] sm:$0xff] }
  0xd3   :  { %3958 = vmatprep.subr.mxu1 %v464_v36  ;;  %3926 = vmatpush3.msra.mxu0 %v415_v37  ;;  %v402_v36 = vld [vmem:[%s6192_s1 + $0xc00] sm:$0xff]  ;;  %v602_v37 = vrot.slane %v5546_v30, %v4328_v63 }
  0xd4   :  { %3959 = vmatpush3.msra.mxu1 %v448_v39  ;;  %3927 = vmatprep.subr.mxu0 %v430_v40  ;;  %v435_v39 = vld [vmem:[%s6192_s1 + $0xd08] sm:$0xff]  ;;  %v497_v40 = vld [vmem:[%s6192_s1 + $0xef8] sm:$0xff]  ;;  %v434_v63 = vld [vmem:[%s6192_s1 + $0xd00] sm:$0xff] }
  0xd5   :  { %3960 = vmatprep.subr.mxu1 %v463_v41  ;;  %3928 = vmatpush3.msra.mxu0 %v414_v42  ;;  %v614_v41 = vrot.slane %v5546_v30, %v4319_v60  ;;  %v610_v42 = vrot.slane %v5546_v30, %v4331_v0  ;;  %v496_v60 = vld [vmem:[%s6192_s1 + $0xef0] sm:$0xff] }
  0xd6   :  { %3961 = vmatpush3.msra.mxu1 %v447_v43  ;;  %3929 = vmatprep.subr.mxu0 %v429_v44  ;;  %v481_v43 = vld [vmem:[%s6192_s1 + $0xe78] sm:$0xff]  ;;  %v622_v44 = vrot.slane %v5546_v30, %v4510_v4  ;;  %v480_v0 = vld [vmem:[%s6192_s1 + $0xe70] sm:$0xff]  ;;  %v498_v4 = vld [vmem:[%s6192_s1 + $0xf00] sm:$0xf] }
  0xd7   :  { %3962 = vmatprep.subr.mxu1 %v462_v45  ;;  %3930 = vmatpush3.msra.mxu0 %v413_v46  ;;  %v495_v45 = vld [vmem:[%s6192_s1 + $0xee8] sm:$0xff] }
  0xd8   :  { %3963 = vmatpush3.msra.mxu1 %v446_v48  ;;  %3931 = vmatprep.subr.mxu0 %v428_v49  ;;  %v479_v46 = vld [vmem:[%s6192_s1 + $0xe68] sm:$0xff]  ;;  %v626_v48 = vrot.slane %v5546_v30, %v4548_v17  ;;  %v494_v49 = vld [vmem:[%s6192_s1 + $0xee0] sm:$0xff]  ;;  %v493_v17 = vld [vmem:[%s6192_s1 + $0xed8] sm:$0xff] }
  0xd9   :  { %3964 = vmatprep.subr.mxu1 %v461_v50  ;;  %3932 = vmatpush3.msra.mxu0 %v412_v51  ;;  %v4116_v50 = vmov 0.0   ;;  %v478_v51 = vld [vmem:[%s6192_s1 + $0xe60] sm:$0xff] }
  0xda   :  { %3965 = vmatpush3.msra.mxu1 %v445_v52  ;;  %3933 = vmatprep.subr.mxu0 %v427_v53  ;;  %v477_v52 = vld [vmem:[%s6192_s1 + $0xe58] sm:$0xff]  ;;  %v492_v53 = vld [vmem:[%s6192_s1 + $0xed0] sm:$0xff] }
  0xdb   :  { %3966 = vmatprep.subr.mxu1 %v460_v54  ;;  %3934 = vmatpush3.msra.mxu0 %v411_v55  ;;  %v476_v54 = vld [vmem:[%s6192_s1 + $0xe50] sm:$0xff]  ;;  %v491_v55 = vld [vmem:[%s6192_s1 + $0xec8] sm:$0xff] }
  0xdc   :  { %3967 = vmatpush3.msra.mxu1 %v444_v57  ;;  %3935 = vmatprep.subr.mxu0 %v426_v61  ;;  %v475_v57 = vld [vmem:[%s6192_s1 + $0xe48] sm:$0xff]  ;;  %v490_v61 = vld [vmem:[%s6192_s1 + $0xec0] sm:$0xff] }
  0xdd   :  { %3968 = vmatprep.subr.mxu1 %v459_v62  ;;  %3936 = vmatpush3.msra.mxu0 %v410_v1  ;;  %v474_v62 = vld [vmem:[%s6192_s1 + $0xe40] sm:$0xff]  ;;  %v489_v1 = vld [vmem:[%s6192_s1 + $0xeb8] sm:$0xff] }
  0xde   :  { %3969 = vmatpush3.msra.mxu1 %v443_v26  ;;  %3937 = vmatprep.subr.mxu0 %v425_v2  ;;  %v473_v26 = vld [vmem:[%s6192_s1 + $0xe38] sm:$0xff]  ;;  %v488_v2 = vld [vmem:[%s6192_s1 + $0xeb0] sm:$0xff] }
  0xdf   :  { %3970 = vmatprep.subr.mxu1 %v458_v3  ;;  %3938 = vmatpush3.msra.mxu0 %v409_v5  ;;  %v472_v3 = vld [vmem:[%s6192_s1 + $0xe30] sm:$0xff]  ;;  %v487_v5 = vld [vmem:[%s6192_s1 + $0xea8] sm:$0xff] }
  0xe0   :  { %3971 = vmatpush3.msra.mxu1 %v442_v6  ;;  %3939 = vmatprep.subr.mxu0 %v424_v7  ;;  %v471_v6 = vld [vmem:[%s6192_s1 + $0xe28] sm:$0xff]  ;;  %v486_v7 = vld [vmem:[%s6192_s1 + $0xea0] sm:$0xff] }
  0xe1   :  { %3972 = vmatprep.subr.mxu1 %v457_v8  ;;  %3940 = vmatpush3.msra.mxu0 %v408_v9  ;;  %v470_v8 = vld [vmem:[%s6192_s1 + $0xe20] sm:$0xff]  ;;  %v485_v9 = vld [vmem:[%s6192_s1 + $0xe98] sm:$0xff] }
  0xe2   :  { %3973 = vmatpush3.msra.mxu1 %v441_v10  ;;  %3941 = vmatprep.subr.mxu0 %v423_v12  ;;  %v469_v10 = vld [vmem:[%s6192_s1 + $0xe18] sm:$0xff]  ;;  %v484_v12 = vld [vmem:[%s6192_s1 + $0xe90] sm:$0xff] }
  0xe3   :  { %3974 = vmatprep.subr.mxu1 %v456_v13  ;;  %3942 = vmatpush3.msra.mxu0 %v407_v14  ;;  %v468_v13 = vld [vmem:[%s6192_s1 + $0xe10] sm:$0xff]  ;;  %v483_v14 = vld [vmem:[%s6192_s1 + $0xe88] sm:$0xff] }
  0xe4   :  { %3975 = vmatpush3.msra.mxu1 %v440_v16  ;;  %3943 = vmatprep.subr.mxu0 %v422_v18  ;;  %v467_v16 = vld [vmem:[%s6192_s1 + $0xe08] sm:$0xff]  ;;  %v482_v18 = vld [vmem:[%s6192_s1 + $0xe80] sm:$0xff] }
  0xe5   :  { %3976 = vmatprep.subr.mxu1 %v455_v19  ;;  %3944 = vmatpush3.msra.mxu0 %v406_v20  ;;  %v466_v19 = vld [vmem:[%s6192_s1 + $0xe00] sm:$0xff]  ;;  %v618_v20 = vrot.slane %v5546_v30, %v4531_v11  ;;  %v1883_v11 = vld [vmem:[%s6194_s2 + $0x2e8] sm:$0x3f]  ;;  %v1821_v30 = vld [vmem:[%s6194_s2 + $0xf8] sm:$0xff] }
  0xe6   :  { %3977 = vmatpush3.msra.mxu1 %v439_v21  ;;  %3945 = vmatprep.subr.mxu0 %v421_v22  ;;  %v1884_v21 = vld [vmem:[%s6194_s2 + $0x2f0] sm:$0x3f] }
  0xe7   :  { %3978 = vmatprep.subr.mxu1 %v454_v23  ;;  %3946 = vmatpush3.msra.mxu0 %v405_v24  ;;  %v1892_v22 = vld [vmem:[%s6194_s2 + $0x330] sm:$0x3f]  ;;  %v1891_v23 = vld [vmem:[%s6194_s2 + $0x328] sm:$0x3f]  ;;  %v1853_v24 = vld [vmem:[%s6194_s2 + $0x1f8] sm:$0xff] }
  0xe8   :  { %3979 = vmatpush3.msra.mxu1 %v438_v25  ;;  %3947 = vmatprep.subr.mxu0 %v420_v27  ;;  %v1861_v25 = vld [vmem:[%s6194_s2 + $0x238] sm:$0xff]  ;;  %v1852_v27 = vld [vmem:[%s6194_s2 + $0x1f0] sm:$0xff] }
  0xe9   :  { %3980 = vmatprep.subr.mxu1 %v453_v28  ;;  %3948 = vmatpush3.msra.mxu0 %v404_v29  ;;  %v1860_v28 = vld [vmem:[%s6194_s2 + $0x230] sm:$0xff]  ;;  %v1822_v29 = vld [vmem:[%s6194_s2 + $0x100] sm:$0xff] }
  0xea   :  { %3981 = vmatpush3.msra.mxu1 %v437_v59  ;;  %3949 = vmatprep.subr.mxu0 %v419_v31  ;;  %v1830_v59 = vld [vmem:[%s6194_s2 + $0x140] sm:$0xff]  ;;  %v1829_v31 = vld [vmem:[%s6194_s2 + $0x138] sm:$0xff] }
  0xeb   :  { %3982 = vmatprep.subr.mxu1 %v452_v32  ;;  %3950 = vmatpush3.msra.mxu0 %v403_v15  ;;  %v1791_v32 = vld [vmem:[%s6194_s2 + $0x8] sm:$0xff] }
  0xec   :  { %3983 = vmatpush3.msra.mxu1 %v436_v33  ;;  %3951 = vmatprep.subr.mxu0 %v418_v58  ;;  %v1799_v15 = vld [vmem:[%s6194_s2 + $0x48] sm:$0xff]  ;;  %v1790_v33 = vld [vmem:[%s6194_s2] sm:$0xff] }
  0xed   :  { %3984 = vmatprep.subr.mxu1 %v451_v34  ;;  %3952 = vmatpush3.msra.mxu0 %v402_v36  ;;  %v1798_v58 = vld [vmem:[%s6194_s2 + $0x40] sm:$0xff]  ;;  %v3568_v36 = vpop.f32.mrf.mxu1 }
  0xee   :  { %1568 = vmatprep.mubr.f32.mxu0 %v606_v35  ;;  %3985 = vmatpush3.msra.mxu1 %v435_v39  ;;  %v1886_v34 = vld [vmem:[%s6194_s2 + $0x300] sm:$0x3f]  ;;  %v1896_v35 = vld [vmem:[%s6194_s2 + $0x350] sm:$0x3f] }
  0xef   :  { %1569 = vmatmul.mubr.f32.vlgmr.msra.gmra.mxu0 %v602_v37  ;;  %3986 = vmatprep.subr.mxu1 %v450_v56  ;;  %v3569_v37 = vpop.f32.mrf.mxu1 }
  0xf0   :  { %3991 = vmatprep.subr.mxu0 %v497_v40  ;;  %3987 = vmatpush3.msra.mxu1 %v434_v63 }
  0xf1   :  { %1638 = vmatprep.mubr.f32.mxu1 %v614_v41  ;;  %3992 = vmatpush3.msra.mxu0 %v481_v43 }
  0xf2   :  { %1639 = vmatmul.mubr.f32.vlgmr.msra.gmra.mxu1 %v610_v42  ;;  %3993 = vmatprep.subr.mxu0 %v496_v60  ;;  %v3533_v42 = vpop.f32.mrf.mxu0 }
  0xf3   :  { %1708 = vmatprep.mubr.f32.mxu0 %v622_v44  ;;  %3994 = vmatpush3.msra.mxu0 %v480_v0 }
  0xf4   :  { %4033 = vmatprep.subr.mxu1 %v4116_v50  ;;  %3995 = vmatprep.subr.mxu0 %v495_v45  ;;  %v3534_v44 = vpop.f32.mrf.mxu0 }
  0xf5   :  { %4034 = vmatpush3.msk.msra.mxu1 %vm660_vm0, %v498_v4  ;;  %3996 = vmatpush3.msra.mxu0 %v479_v46  ;;  %v3535_v46 = vadd.f32 %v3534_v44, %v3533_v42  ;;  %v1865_v44 = vld [vmem:[%s6194_s2 + $0x258] sm:$0xff] }
  0xf6   :  { %4035 = vmatprep.mubr.msk.f32.mxu1 %vm4117_vm2, %v4116_v50  ;;  %3997 = vmatprep.subr.mxu0 %v494_v49 }
  0xf7   :  { %4036 = vmatmul.mubr.msk.f32.vlgmr.msra.gmra.mxu1 %vm657_vm1, %v626_v48  ;;  %3998 = vmatpush3.msra.mxu0 %v478_v51  ;;  %v3570_v48 = vadd.f32 %v3569_v37, %v3568_v36 }
  0xf8   :  { %2076 = vmatprep.mubr.f32.mxu1 %v4116_v50  ;;  %3999 = vmatprep.subr.mxu0 %v493_v17 }
  0xf9   :  { %4000 = vmatpush3.msra.mxu0 %v477_v52  ;;  %3454 = vmatprep.subr.msk.mxu1 %vm1918_vm3, %v1884_v21  ;;  %v801_v52 = vadd.f32 %v3570_v48, %v3535_v46  ;;  %v1823_v46 = vld [vmem:[%s6194_s2 + $0x108] sm:$0xff]  ;;  %v1833_v48 = vld [vmem:[%s6194_s2 + $0x158] sm:$0xff] }
  0xfa   :  { %4001 = vmatprep.subr.mxu0 %v492_v53  ;;  %3455 = vmatpush1.msk.msra.mxu1 %vm1918_vm3, %v1883_v11 }
  0xfb   :  { %4002 = vmatpush3.msra.mxu0 %v476_v54  ;;  %2038 = vmatprep.subr.mxu1 %v1853_v24 }
  0xfc   :  { %4003 = vmatprep.subr.mxu0 %v491_v55  ;;  %2039 = vmatpush1.msra.mxu1 %v1852_v27 }
  0xfd   :  { %4004 = vmatpush3.msra.mxu0 %v475_v57  ;;  %2040 = vmatprep.subr.mxu1 %v1822_v29 }
  0xfe   :  { %4005 = vmatprep.subr.mxu0 %v490_v61  ;;  %2041 = vmatpush1.msra.mxu1 %v1821_v30 }
  0xff   :  { %4006 = vmatpush3.msra.mxu0 %v474_v62  ;;  %2042 = vmatprep.subr.mxu1 %v1791_v32 }
 0x100   :  { %4007 = vmatprep.subr.mxu0 %v489_v1  ;;  %2043 = vmatpush1.msra.mxu1 %v1790_v33 }
 0x101   :  { %4008 = vmatpush3.msra.mxu0 %v473_v26  ;;  %3457 = vmatprep.subr.msk.mxu1 %vm1918_vm3, %v1886_v34 }
 0x102   :  { %4009 = vmatprep.subr.mxu0 %v488_v2 }
 0x103   :  { %4010 = vmatpush3.msra.mxu0 %v472_v3 }
 0x104   :  { %4011 = vmatprep.subr.mxu0 %v487_v5 }
 0x105   :  { %4012 = vmatpush3.msra.mxu0 %v471_v6  ;;  %v3603_v0 = vpop.f32.mrf.mxu0 }
 0x106   :  { %4013 = vmatprep.subr.mxu0 %v486_v7 }
 0x107   :  { %4014 = vmatpush3.msra.mxu0 %v470_v8  ;;  %v3604_v4 = vpop.f32.mrf.mxu0 }
 0x108   :  { %4015 = vmatprep.subr.mxu0 %v485_v9  ;;  %v3638_v39 = vpop.f32.mrf.mxu1  ;;  %v3605_v17 = vadd.f32 %v3604_v4, %v3603_v0  ;;  %v1864_v0 = vld [vmem:[%s6194_s2 + $0x250] sm:$0xff]  ;;  %v1834_v4 = vld [vmem:[%s6194_s2 + $0x160] sm:$0xff] }
 0x109   :  { %4016 = vmatpush3.msra.mxu0 %v469_v10 }
 0x10a   :  { %4017 = vmatprep.subr.mxu0 %v484_v12  ;;  %v3639_v56 = vpop.f32.mrf.mxu1  ;;  %v871_v55 = vadd.f32 %v3605_v17, %v801_v52  ;;  %v1792_v17 = vld [vmem:[%s6194_s2 + $0x10] sm:$0xff]  ;;  %v1802_v52 = vld [vmem:[%s6194_s2 + $0x60] sm:$0xff] }
 0x10b   :  { %4018 = vmatpush3.msra.mxu0 %v468_v13  ;;  %v3640_v57 = vadd.f32 %v3639_v56, %v3638_v39 }
 0x10c   :  { %4019 = vmatprep.subr.mxu0 %v483_v14 }
 0x10d   :  { %4020 = vmatpush3.msra.mxu0 %v467_v16  ;;  %v941_v2 = vadd.f32 %v3640_v57, %v871_v55  ;;  %v1887_v55 = vld [vmem:[%s6194_s2 + $0x308] sm:$0x3f] }
 0x10e   :  { %4021 = vmatprep.subr.mxu0 %v482_v18  ;;  %v1899_v57 = vld [vmem:[%s6194_s2 + $0x368] sm:$0x3f] }
 0x10f   :  { %4022 = vmatpush3.msra.mxu0 %v466_v19 }
 0x110   :  { %1709 = vmatmul.mubr.f32.vlgmr.msra.gmra.mxu0 %v618_v20  ;;  %3466 = vmatprep.subr.msk.mxu0 %vm1918_vm3, %v1892_v22 }
 0x111   :  { %2360 = vmatprep.mubr.f32.mxu0 %v4116_v50  ;;  %3467 = vmatpush1.msk.msra.mxu0 %vm1918_vm3, %v1891_v23 }
 0x112   :  { %2322 = vmatprep.subr.mxu0 %v1861_v25 }
 0x113   :  { %2323 = vmatpush1.msra.mxu0 %v1860_v28 }
 0x114   :  { %2324 = vmatprep.subr.mxu0 %v1830_v59 }
 0x115   :  { %2325 = vmatpush1.msra.mxu0 %v1829_v31 }
 0x116   :  { %2326 = vmatprep.subr.mxu0 %v1799_v15 }
 0x117   :  { %2327 = vmatpush1.msra.mxu0 %v1798_v58 }
 0x118   :  { %3472 = vmatprep.subr.msk.mxu0 %vm1918_vm3, %v1896_v35 }
 0x127   :  { %v3673_v51 = vpop.f32.mrf.mxu0 }
 0x129   :  { %v3674_v54 = vpop.f32.mrf.mxu0 }
 0x12a   :  { %v3708_v40 = vpop.f32.mrf.mxu1  ;;  %v3675_v1 = vadd.f32 %v3674_v54, %v3673_v51  ;;  %v1803_v51 = vld [vmem:[%s6194_s2 + $0x68] sm:$0xff]  ;;  %v1900_v54 = vld [vmem:[%s6194_s2 + $0x370] sm:$0x3f] }
 0x12c   :  { %v3709_v41 = vpop.f32.mrf.mxu1  ;;  %v1011_v6 = vadd.f32 %v3675_v1, %v941_v2  ;;  %v1856_v1 = vld [vmem:[%s6194_s2 + $0x210] sm:$0xff]  ;;  %v1826_v2 = vld [vmem:[%s6194_s2 + $0x120] sm:$0xff] }
 0x12d   :  { %v3710_v7 = vadd.f32 %v3709_v41, %v3708_v40  ;;  %v1885_v41 = vld [vmem:[%s6194_s2 + $0x2f8] sm:$0x3f] }
 0x12f   :  { %v1081_v12 = vadd.f32 %v3710_v7, %v1011_v6  ;;  %v1837_v6 = vld [vmem:[%s6194_s2 + $0x178] sm:$0xff]  ;;  %v1795_v7 = vld [vmem:[%s6194_s2 + $0x28] sm:$0xff] }
 0x149   :  { %v3743_v62 = vpop.f32.mrf.mxu0 }
 0x14b   :  { %v3744_v3 = vpop.f32.mrf.mxu0 }
 0x14c   :  { %v3778_v63 = vpop.f32.mrf.mxu1  ;;  %v3745_v10 = vadd.f32 %v3744_v3, %v3743_v62  ;;  %v1869_v62 = vld [vmem:[%s6194_s2 + $0x278] sm:$0xff]  ;;  %v1838_v3 = vld [vmem:[%s6194_s2 + $0x180] sm:$0xff] }
 0x14e   :  { %v3779_v43 = vpop.f32.mrf.mxu1  ;;  %v1151_v14 = vadd.f32 %v3745_v10, %v1081_v12  ;;  %v1806_v10 = vld [vmem:[%s6194_s2 + $0x80] sm:$0xff] }
 0x14f   :  { %v3780_v16 = vadd.f32 %v3779_v43, %v3778_v63  ;;  %v1895_v63 = vld [vmem:[%s6194_s2 + $0x348] sm:$0x3f]  ;;  %v1890_v12 = vld [vmem:[%s6194_s2 + $0x320] sm:$0x3f] }
 0x150   :  { %v1855_v43 = vld [vmem:[%s6194_s2 + $0x208] sm:$0xff] }
 0x151   :  { %v1221_v20 = vadd.f32 %v3780_v16, %v1151_v14  ;;  %v1889_v14 = vld [vmem:[%s6194_s2 + $0x318] sm:$0x3f]  ;;  %v1903_v16 = vld [vmem:[%s6194_s2 + $0x388] sm:$0x3f] }
 0x16b   :  { %v3813_v8 = vpop.f32.mrf.mxu0 }
 0x16d   :  { %v3814_v13 = vpop.f32.mrf.mxu0 }
 0x16e   :  { %v3848_v60 = vpop.f32.mrf.mxu1  ;;  %v3815_v19 = vadd.f32 %v3814_v13, %v3813_v8  ;;  %v1807_v8 = vld [vmem:[%s6194_s2 + $0x88] sm:$0xff]  ;;  %v1904_v13 = vld [vmem:[%s6194_s2 + $0x390] sm:$0x3f] }
 0x170   :  { %v3849_v45 = vpop.f32.mrf.mxu1  ;;  %v1291_v22 = vadd.f32 %v3815_v19, %v1221_v20  ;;  %v1873_v19 = vld [vmem:[%s6194_s2 + $0x298] sm:$0xff]  ;;  %v1858_v20 = vld [vmem:[%s6194_s2 + $0x220] sm:$0xff] }
 0x171   :  { %v3850_v11 = vadd.f32 %v3849_v45, %v3848_v60  ;;  %v1854_v60 = vld [vmem:[%s6194_s2 + $0x200] sm:$0xff]  ;;  %v1824_v45 = vld [vmem:[%s6194_s2 + $0x110] sm:$0xff] }
 0x173   :  { %v1361_v25 = vadd.f32 %v3850_v11, %v1291_v22  ;;  %v1828_v22 = vld [vmem:[%s6194_s2 + $0x130] sm:$0xff]  ;;  %v1842_v11 = vld [vmem:[%s6194_s2 + $0x1a0] sm:$0xff] }
 0x18d   :  { %v3883_v18 = vpop.f32.mrf.mxu0 }
 0x18f   :  { %v3884_v21 = vpop.f32.mrf.mxu0 }
 0x190   :  { %v3918_v49 = vpop.f32.mrf.mxu1  ;;  %v3885_v24 = vadd.f32 %v3884_v21, %v3883_v18  ;;  %v1859_v18 = vld [vmem:[%s6194_s2 + $0x228] sm:$0xff]  ;;  %v1872_v21 = vld [vmem:[%s6194_s2 + $0x290] sm:$0xff] }
 0x192   :  { %v3919_v53 = vpop.f32.mrf.mxu1  ;;  %v1431_v28 = vadd.f32 %v3885_v24, %v1361_v25  ;;  %v1841_v24 = vld [vmem:[%s6194_s2 + $0x198] sm:$0xff] }
 0x193   :  { %v3920_v29 = vadd.f32 %v3919_v53, %v3918_v49  ;;  %v1793_v49 = vld [vmem:[%s6194_s2 + $0x18] sm:$0xff]  ;;  %v1888_v53 = vld [vmem:[%s6194_s2 + $0x310] sm:$0x3f] }
 0x194   :  { %v1797_v25 = vld [vmem:[%s6194_s2 + $0x38] sm:$0xff] }
 0x195   :  { %v1501_v30 = vadd.f32 %v3920_v29, %v1431_v28  ;;  %v1796_v28 = vld [vmem:[%s6194_s2 + $0x30] sm:$0xff]  ;;  %v1810_v29 = vld [vmem:[%s6194_s2 + $0xa0] sm:$0xff] }
 0x1af   :  { %v3953_v23 = vpop.f32.mrf.mxu0 }
 0x1b1   :  { %v3954_v27 = vpop.f32.mrf.mxu0 }
 0x1b2   :  { %v3988_v61 = vpop.f32.mrf.mxu1  ;;  %v3955_v59 = vadd.f32 %v3954_v27, %v3953_v23  ;;  %v1827_v23 = vld [vmem:[%s6194_s2 + $0x128] sm:$0xff] }
 0x1b3   :  { %v1811_v27 = vld [vmem:[%s6194_s2 + $0xa8] sm:$0xff] }
 0x1b4   :  { %v3989_v26 = vpop.f32.mrf.mxu1  ;;  %v1571_v31 = vadd.f32 %v3955_v59, %v1501_v30  ;;  %v1894_v59 = vld [vmem:[%s6194_s2 + $0x340] sm:$0x3f]  ;;  %v1908_v30 = vld [vmem:[%s6194_s2 + $0x3b0] sm:$0x3f] }
 0x1b5   :  { %v3990_v32 = vadd.f32 %v3989_v26, %v3988_v61  ;;  %v1857_v61 = vld [vmem:[%s6194_s2 + $0x218] sm:$0xff]  ;;  %v1868_v26 = vld [vmem:[%s6194_s2 + $0x270] sm:$0xff] }
 0x1b7   :  { %v1780_v5 = vpop.f32.mrf.mxu1  ;;  %v1641_v58 = vadd.f32 %v3990_v32, %v1571_v31  ;;  %v1893_v31 = vld [vmem:[%s6194_s2 + $0x338] sm:$0x3f]  ;;  %v1907_v32 = vld [vmem:[%s6194_s2 + $0x3a8] sm:$0x3f] }
 0x1b9   :  { %v4037_v9 = vpop.f32.mrf.mxu1 }
 0x1ba   :  { %v1794_v9 = vld [vmem:[%s6194_s2 + $0x20] sm:$0xff] }
 0x1d0   :  { %v4023_v15 = vpop.f32.mrf.mxu0 }
 0x1d2   :  { %v4024_v33 = vpop.f32.mrf.mxu0 }
 0x1d3   :  { %v4025_v34 = vadd.f32 %v4024_v33, %v4023_v15  ;;  %v1863_v15 = vld [vmem:[%s6194_s2 + $0x248] sm:$0xff]  ;;  %v1877_v33 = vld [vmem:[%s6194_s2 + $0x2b8] sm:$0xff] }
 0x1d5   :  { %v1711_v35 = vadd.f32 %v4025_v34, %v1641_v58  ;;  %v1862_v58 = vld [vmem:[%s6194_s2 + $0x240] sm:$0xff]  ;;  %v1876_v34 = vld [vmem:[%s6194_s2 + $0x2b0] sm:$0xff] }
 0x1d7   :  { %v1781_v36 = vadd.f32 %v1780_v5, %v1711_v35  ;;  %v1825_v5 = vld [vmem:[%s6194_s2 + $0x118] sm:$0xff]  ;;  %v1832_v35 = vld [vmem:[%s6194_s2 + $0x150] sm:$0xff] }
 0x1d9   :  { %v1785_v37 = vmin.f32 %v1781_v36, 0.0  ;;  %vm1784_vm5 = vcmp.gt.f32.partialorder %v1781_v36, 0.0 }
 0x1db   :  { %v1786_v39 = vmul.f32 1.442695, %v1785_v37  ;;  %v1831_v37 = vld [vmem:[%s6194_s2 + $0x148] sm:$0xff] }
 0x1dd   :  { %4052 = vpow2.f32 %v1786_v39  ;;  %v1845_v39 = vld [vmem:[%s6194_s2 + $0x1b8] sm:$0xff] }
 0x1ea   :  { %v4053_v56 = vpop.eup %4052 }
 0x1eb   :  { %v3453_v40 = vadd.f32 -1.0, %v4053_v56  ;;  %v1801_v56 = vld [vmem:[%s6194_s2 + $0x58] sm:$0xff] }
 0x1ed   :  { %v5762_v42 = vsel %vm1784_vm5, %v1781_v36, %v3453_v40  ;;  %v1846_v36 = vld [vmem:[%s6194_s2 + $0x1c0] sm:$0xff]  ;;  %v1815_v40 = vld [vmem:[%s6194_s2 + $0xc8] sm:$0xff] }
 0x1ee   :  { %3456 = vmatmul.mubr.msk.f32.vlgmr.msra.gmra.mxu1 %vm1914_vm4, %v5762_v42  ;;  %3468 = vmatmul.mubr.msk.f32.vlgmr.msra.gmra.mxu0 %vm1914_vm4, %v5762_v42 }
 0x1ef   :  { %3458 = vmatpush1.msk.msra.mxu1 %vm1918_vm3, %v1885_v41  ;;  %3473 = vmatpush1.msk.msra.mxu0 %vm1918_vm3, %v1895_v63  ;;  %v1800_v41 = vld [vmem:[%s6194_s2 + $0x50] sm:$0xff]  ;;  %v1814_v63 = vld [vmem:[%s6194_s2 + $0xc0] sm:$0xff] }
 0x1f0   :  { %2109 = vmatprep.subr.mxu1 %v1855_v43  ;;  %2464 = vmatprep.subr.mxu0 %v1865_v44  ;;  %v1898_v43 = vld [vmem:[%s6194_s2 + $0x360] sm:$0x3f]  ;;  %v1912_v44 = vld [vmem:[%s6194_s2 + $0x3d0] sm:$0x3f] }
 0x1f1   :  { %2110 = vmatpush1.msra.mxu1 %v1854_v60  ;;  %2465 = vmatpush1.msra.mxu0 %v1864_v0  ;;  %v1897_v60 = vld [vmem:[%s6194_s2 + $0x358] sm:$0x3f]  ;;  %v1911_v0 = vld [vmem:[%s6194_s2 + $0x3c8] sm:$0x3f] }
 0x1f2   :  { %2111 = vmatprep.subr.mxu1 %v1824_v45  ;;  %2466 = vmatprep.subr.mxu0 %v1834_v4  ;;  %v1867_v45 = vld [vmem:[%s6194_s2 + $0x268] sm:$0xff]  ;;  %v1881_v4 = vld [vmem:[%s6194_s2 + $0x2d8] sm:$0xff] }
 0x1f3   :  { %2112 = vmatpush1.msra.mxu1 %v1823_v46  ;;  %2467 = vmatpush1.msra.mxu0 %v1833_v48  ;;  %v1866_v46 = vld [vmem:[%s6194_s2 + $0x260] sm:$0xff]  ;;  %v1880_v48 = vld [vmem:[%s6194_s2 + $0x2d0] sm:$0xff] }
 0x1f4   :  { %2113 = vmatprep.subr.mxu1 %v1793_v49  ;;  %2468 = vmatprep.subr.mxu0 %v1803_v51  ;;  %v1836_v49 = vld [vmem:[%s6194_s2 + $0x170] sm:$0xff]  ;;  %v1850_v51 = vld [vmem:[%s6194_s2 + $0x1e0] sm:$0xff] }
 0x1f5   :  { %2114 = vmatpush1.msra.mxu1 %v1792_v17  ;;  %2147 = vmatprep.mubr.f32.mxu1 %v4116_v50  ;;  %v1835_v17 = vld [vmem:[%s6194_s2 + $0x168] sm:$0xff] }
 0x1f6   :  { %2469 = vmatpush1.msra.mxu0 %v1802_v52  ;;  %2502 = vmatprep.mubr.f32.mxu0 %v4116_v50  ;;  %v1849_v52 = vld [vmem:[%s6194_s2 + $0x1d8] sm:$0xff] }
 0x1f7   :  { %3459 = vmatmul.mubr.msk.f32.vlgmr.msra.gmra.mxu1 %vm1914_vm4, %v5762_v42  ;;  %3460 = vmatprep.subr.msk.mxu1 %vm1918_vm3, %v1888_v53  ;;  %v1805_v53 = vld [vmem:[%s6194_s2 + $0x78] sm:$0xff] }
 0x1f8   :  { %3474 = vmatmul.mubr.msk.f32.vlgmr.msra.gmra.mxu0 %vm1914_vm4, %v5762_v42  ;;  %3478 = vmatprep.subr.msk.mxu0 %vm1918_vm3, %v1900_v54  ;;  %v1819_v54 = vld [vmem:[%s6194_s2 + $0xe8] sm:$0xff] }
 0x1f9   :  { %3461 = vmatpush1.msk.msra.mxu1 %vm1918_vm3, %v1887_v55  ;;  %3479 = vmatpush1.msk.msra.mxu0 %vm1918_vm3, %v1899_v57  ;;  %v1804_v55 = vld [vmem:[%s6194_s2 + $0x70] sm:$0xff]  ;;  %v1818_v57 = vld [vmem:[%s6194_s2 + $0xe0] sm:$0xff] }
 0x1fa   :  { %2180 = vmatprep.subr.mxu1 %v1857_v61  ;;  %2606 = vmatprep.subr.mxu0 %v1869_v62  ;;  %v1902_v61 = vld [vmem:[%s6194_s2 + $0x380] sm:$0x3f]  ;;  %v1901_v62 = vld [vmem:[%s6194_s2 + $0x378] sm:$0x3f] }
 0x1fb   :  { %2181 = vmatpush1.msra.mxu1 %v1856_v1  ;;  %2607 = vmatpush1.msra.mxu0 %v1868_v26  ;;  %v1871_v1 = vld [vmem:[%s6194_s2 + $0x288] sm:$0xff]  ;;  %v1870_v26 = vld [vmem:[%s6194_s2 + $0x280] sm:$0xff] }
 0x1fc   :  { %2182 = vmatprep.subr.mxu1 %v1826_v2  ;;  %2608 = vmatprep.subr.mxu0 %v1838_v3  ;;  %v1840_v2 = vld [vmem:[%s6194_s2 + $0x190] sm:$0xff]  ;;  %v1839_v3 = vld [vmem:[%s6194_s2 + $0x188] sm:$0xff] }
 0x1fd   :  { %2183 = vmatpush1.msra.mxu1 %v1825_v5  ;;  %2609 = vmatpush1.msra.mxu0 %v1837_v6  ;;  %v1809_v5 = vld [vmem:[%s6194_s2 + $0x98] sm:$0xff]  ;;  %v1808_v6 = vld [vmem:[%s6194_s2 + $0x90] sm:$0xff] }
 0x1fe   :  { %2184 = vmatprep.subr.mxu1 %v1795_v7  ;;  %2610 = vmatprep.subr.mxu0 %v1807_v8  ;;  %v1906_v7 = vld [vmem:[%s6194_s2 + $0x3a0] sm:$0x3f]  ;;  %v1905_v8 = vld [vmem:[%s6194_s2 + $0x398] sm:$0x3f] }
 0x1ff   :  { %2185 = vmatpush1.msra.mxu1 %v1794_v9  ;;  %2218 = vmatprep.mubr.f32.mxu1 %v4116_v50  ;;  %v1875_v9 = vld [vmem:[%s6194_s2 + $0x2a8] sm:$0xff] }
 0x200   :  { %2611 = vmatpush1.msra.mxu0 %v1806_v10  ;;  %2644 = vmatprep.mubr.f32.mxu0 %v4116_v50  ;;  %v1874_v10 = vld [vmem:[%s6194_s2 + $0x2a0] sm:$0xff] }
 0x201   :  { %3462 = vmatmul.mubr.msk.f32.vlgmr.msra.gmra.mxu1 %vm1914_vm4, %v5762_v42  ;;  %3463 = vmatprep.subr.msk.mxu1 %vm1918_vm3, %v1890_v12  ;;  %v1844_v12 = vld [vmem:[%s6194_s2 + $0x1b0] sm:$0xff] }
 0x202   :  { %3480 = vmatmul.mubr.msk.f32.vlgmr.msra.gmra.mxu0 %vm1914_vm4, %v5762_v42  ;;  %3484 = vmatprep.subr.msk.mxu0 %vm1918_vm3, %v1904_v13  ;;  %v1843_v13 = vld [vmem:[%s6194_s2 + $0x1a8] sm:$0xff] }
 0x203   :  { %3464 = vmatpush1.msk.msra.mxu1 %vm1918_vm3, %v1889_v14  ;;  %3485 = vmatpush1.msk.msra.mxu0 %vm1918_vm3, %v1903_v16  ;;  %v1813_v14 = vld [vmem:[%s6194_s2 + $0xb8] sm:$0xff]  ;;  %v1812_v16 = vld [vmem:[%s6194_s2 + $0xb0] sm:$0xff] }
 0x204   :  { %2251 = vmatprep.subr.mxu1 %v1859_v18  ;;  %2748 = vmatprep.subr.mxu0 %v1873_v19  ;;  %v1910_v18 = vld [vmem:[%s6194_s2 + $0x3c0] sm:$0x3f]  ;;  %v1909_v19 = vld [vmem:[%s6194_s2 + $0x3b8] sm:$0x3f] }
 0x205   :  { %2252 = vmatpush1.msra.mxu1 %v1858_v20  ;;  %2749 = vmatpush1.msra.mxu0 %v1872_v21  ;;  %v1879_v20 = vld [vmem:[%s6194_s2 + $0x2c8] sm:$0xff]  ;;  %v1878_v21 = vld [vmem:[%s6194_s2 + $0x2c0] sm:$0xff] }
 0x206   :  { %2253 = vmatprep.subr.mxu1 %v1828_v22  ;;  %2750 = vmatprep.subr.mxu0 %v1842_v11  ;;  %v1848_v22 = vld [vmem:[%s6194_s2 + $0x1d0] sm:$0xff]  ;;  %v1847_v11 = vld [vmem:[%s6194_s2 + $0x1c8] sm:$0xff] }
 0x207   :  { %2254 = vmatpush1.msra.mxu1 %v1827_v23  ;;  %2751 = vmatpush1.msra.mxu0 %v1841_v24  ;;  %v1817_v23 = vld [vmem:[%s6194_s2 + $0xd8] sm:$0xff]  ;;  %v1816_v24 = vld [vmem:[%s6194_s2 + $0xd0] sm:$0xff] }
 0x208   :  { %2255 = vmatprep.subr.mxu1 %v1797_v25  ;;  %2752 = vmatprep.subr.mxu0 %v1811_v27  ;;  %v1913_v25 = vld [vmem:[%s6194_s2 + $0x3d8] sm:$0x3f]  ;;  %v1882_v27 = vld [vmem:[%s6194_s2 + $0x2e0] sm:$0xff] }
 0x209   :  { %2256 = vmatpush1.msra.mxu1 %v1796_v28  ;;  %2289 = vmatprep.mubr.f32.mxu1 %v4116_v50  ;;  %v1851_v28 = vld [vmem:[%s6194_s2 + $0x1e8] sm:$0xff] }
 0x20a   :  { %2753 = vmatpush1.msra.mxu0 %v1810_v29  ;;  %2786 = vmatprep.mubr.f32.mxu0 %v4116_v50  ;;  %v1820_v29 = vld [vmem:[%s6194_s2 + $0xf0] sm:$0xff] }
 0x20b   :  { %3465 = vmatmul.mubr.msk.f32.vlgmr.msra.gmra.mxu1 %vm1914_vm4, %v5762_v42  ;;  %3469 = vmatprep.subr.msk.mxu1 %vm1918_vm3, %v1894_v59 }
 0x20c   :  { %3486 = vmatmul.mubr.msk.f32.vlgmr.msra.gmra.mxu0 %vm1914_vm4, %v5762_v42  ;;  %3490 = vmatprep.subr.msk.mxu0 %vm1918_vm3, %v1908_v30 }
 0x20d   :  { %3470 = vmatpush1.msk.msra.mxu1 %vm1918_vm3, %v1893_v31  ;;  %3491 = vmatpush1.msk.msra.mxu0 %vm1918_vm3, %v1907_v32 }
 0x20e   :  { %2393 = vmatprep.subr.mxu1 %v1863_v15  ;;  %2890 = vmatprep.subr.mxu0 %v1877_v33 }
 0x20f   :  { %2394 = vmatpush1.msra.mxu1 %v1862_v58  ;;  %2891 = vmatpush1.msra.mxu0 %v1876_v34 }
 0x210   :  { %2395 = vmatprep.subr.mxu1 %v1832_v35  ;;  %2892 = vmatprep.subr.mxu0 %v1846_v36 }
 0x211   :  { %2396 = vmatpush1.msra.mxu1 %v1831_v37  ;;  %2893 = vmatpush1.msra.mxu0 %v1845_v39 }
 0x212   :  { %2397 = vmatprep.subr.mxu1 %v1801_v56  ;;  %2894 = vmatprep.subr.mxu0 %v1815_v40 }
 0x213   :  { %2398 = vmatpush1.msra.mxu1 %v1800_v41  ;;  %2431 = vmatprep.mubr.f32.mxu1 %v4116_v50 }
 0x214   :  { %2895 = vmatpush1.msra.mxu0 %v1814_v63  ;;  %2928 = vmatprep.mubr.f32.mxu0 %v4116_v50 }
 0x215   :  { %3471 = vmatmul.mubr.msk.f32.vlgmr.msra.gmra.mxu1 %vm1914_vm4, %v5762_v42  ;;  %3475 = vmatprep.subr.msk.mxu1 %vm1918_vm3, %v1898_v43 }
 0x216   :  { %3492 = vmatmul.mubr.msk.f32.vlgmr.msra.gmra.mxu0 %vm1914_vm4, %v5762_v42  ;;  %3496 = vmatprep.subr.msk.mxu0 %vm1918_vm3, %v1912_v44 }
 0x217   :  { %3476 = vmatpush1.msk.msra.mxu1 %vm1918_vm3, %v1897_v60  ;;  %3497 = vmatpush1.msk.msra.mxu0 %vm1918_vm3, %v1911_v0 }
 0x218   :  { %2535 = vmatprep.subr.mxu1 %v1867_v45  ;;  %3032 = vmatprep.subr.mxu0 %v1881_v4 }
 0x219   :  { %2536 = vmatpush1.msra.mxu1 %v1866_v46  ;;  %3033 = vmatpush1.msra.mxu0 %v1880_v48 }
 0x21a   :  { %2537 = vmatprep.subr.mxu1 %v1836_v49  ;;  %3034 = vmatprep.subr.mxu0 %v1850_v51 }
 0x21b   :  { %2538 = vmatpush1.msra.mxu1 %v1835_v17  ;;  %3035 = vmatpush1.msra.mxu0 %v1849_v52 }
 0x21c   :  { %2539 = vmatprep.subr.mxu1 %v1805_v53  ;;  %3036 = vmatprep.subr.mxu0 %v1819_v54 }
 0x21d   :  { %2540 = vmatpush1.msra.mxu1 %v1804_v55  ;;  %2573 = vmatprep.mubr.f32.mxu1 %v4116_v50 }
 0x21e   :  { %3037 = vmatpush1.msra.mxu0 %v1818_v57  ;;  %3070 = vmatprep.mubr.f32.mxu0 %v4116_v50 }
 0x21f   :  { %3477 = vmatmul.mubr.msk.f32.vlgmr.msra.gmra.mxu1 %vm1914_vm4, %v5762_v42  ;;  %3481 = vmatprep.subr.msk.mxu1 %vm1918_vm3, %v1902_v61 }
 0x220   :  { %3498 = vmatmul.mubr.msk.f32.vlgmr.msra.gmra.mxu0 %vm1914_vm4, %v5762_v42  ;;  %3482 = vmatpush1.msk.msra.mxu1 %vm1918_vm3, %v1901_v62 }
 0x221   :  { %2677 = vmatprep.subr.mxu1 %v1871_v1  ;;  %2715 = vmatprep.mubr.f32.mxu1 %v4116_v50 }
 0x222   :  { %2678 = vmatpush1.msra.mxu1 %v1870_v26 }
 0x223   :  { %2679 = vmatprep.subr.mxu1 %v1840_v2 }
 0x224   :  { %2680 = vmatpush1.msra.mxu1 %v1839_v3 }
 0x225   :  { %2681 = vmatprep.subr.mxu1 %v1809_v5 }
 0x226   :  { %2682 = vmatpush1.msra.mxu1 %v1808_v6 }
 0x227   :  { %3483 = vmatmul.mubr.msk.f32.vlgmr.msra.gmra.mxu1 %vm1914_vm4, %v5762_v42  ;;  %3487 = vmatprep.subr.msk.mxu1 %vm1918_vm3, %v1906_v7 }
 0x228   :  { %3488 = vmatpush1.msk.msra.mxu1 %vm1918_vm3, %v1905_v8  ;;  %2857 = vmatprep.mubr.f32.mxu1 %v4116_v50 }
 0x229   :  { %2819 = vmatprep.subr.mxu1 %v1875_v9 }
 0x22a   :  { %2820 = vmatpush1.msra.mxu1 %v1874_v10 }
 0x22b   :  { %2821 = vmatprep.subr.mxu1 %v1844_v12 }
 0x22c   :  { %2822 = vmatpush1.msra.mxu1 %v1843_v13 }
 0x22d   :  { %2823 = vmatprep.subr.mxu1 %v1813_v14 }
 0x22e   :  { %2824 = vmatpush1.msra.mxu1 %v1812_v16 }
 0x22f   :  { %3489 = vmatmul.mubr.msk.f32.vlgmr.msra.gmra.mxu1 %vm1914_vm4, %v5762_v42  ;;  %3493 = vmatprep.subr.msk.mxu1 %vm1918_vm3, %v1910_v18 }
 0x230   :  { %3494 = vmatpush1.msk.msra.mxu1 %vm1918_vm3, %v1909_v19  ;;  %2999 = vmatprep.mubr.f32.mxu1 %v4116_v50 }
 0x231   :  { %2961 = vmatprep.subr.mxu1 %v1879_v20 }
 0x232   :  { %2962 = vmatpush1.msra.mxu1 %v1878_v21 }
 0x233   :  { %2963 = vmatprep.subr.mxu1 %v1848_v22 }
 0x234   :  { %2964 = vmatpush1.msra.mxu1 %v1847_v11 }
 0x235   :  { %2965 = vmatprep.subr.mxu1 %v1817_v23 }
 0x236   :  { %2966 = vmatpush1.msra.mxu1 %v1816_v24 }
 0x237   :  { %3495 = vmatmul.mubr.msk.f32.vlgmr.msra.gmra.mxu1 %vm1914_vm4, %v5762_v42  ;;  %4038 = vmatprep.subr.mxu1 %v4116_v50 }
 0x238   :  { %4039 = vmatpush3.msk.msra.mxu1 %vm1918_vm3, %v1913_v25  ;;  %4046 = vmatprep.mubr.msk.f32.mxu1 %vm4117_vm2, %v4116_v50 }
 0x239   :  { %4040 = vmatprep.subr.mxu1 %v4116_v50 }
 0x23a   :  { %4041 = vmatpush3.msra.mxu1 %v1882_v27 }
 0x23b   :  { %4042 = vmatprep.subr.mxu1 %v4116_v50 }
 0x23c   :  { %4043 = vmatpush3.msra.mxu1 %v1851_v28 }
 0x23d   :  { %4044 = vmatprep.subr.mxu1 %v4116_v50 }
 0x23e   :  { %4045 = vmatpush3.msra.mxu1 %v1820_v29 }
 0x23f   :  { %4047 = vmatmul.mubr.msk.f32.vlgmr.msra.gmra.mxu1 %vm1914_vm4, %v5762_v42  ;;  %v4118_v42 = vmov 1966171168  }
 0x240   :  { %v3245_v37 = vunpack.c.l.s4 %v4118_v42 }
 0x242   :  { %v3246_v60 = vunpack.c.0.s8 %v3245_v37 }
 0x244   :  { %v6153_v53 = vsub.s32 %v3246_v60, %v4278_v47 }
 0x2ae   :  { %v2078_v59 = vpop.f32.mrf.mxu1  ;;  %v2362_v50 = vpop.f32.mrf.mxu0 }
 0x2b0   :  { %v2080_v30 = vpop.f32.mrf.mxu1  ;;  %v2364_v39 = vpop.f32.mrf.mxu0 }
 0x2b7   :  { %v2149_v31 = vpop.f32.mrf.mxu1 }
 0x2b8   :  { %v2504_v41 = vpop.f32.mrf.mxu0 }
 0x2b9   :  { %v2151_v32 = vpop.f32.mrf.mxu1 }
 0x2ba   :  { %4054 = vtanh.f32 %v2151_v32  ;;  %v2506_v51 = vpop.f32.mrf.mxu0 }
 0x2bb   :  { %4056 = vtanh.f32 %v2080_v30 }
 0x2bc   :  { %4058 = vtanh.f32 %v2149_v31 }
 0x2bd   :  { %4060 = vtanh.f32 %v2078_v59 }
 0x2c1   :  { %v2220_v15 = vpop.f32.mrf.mxu1 }
 0x2c2   :  { %v2646_v3 = vpop.f32.mrf.mxu0 }
 0x2c3   :  { %v2222_v33 = vpop.f32.mrf.mxu1 }
 0x2c4   :  { %4062 = vtanh.f32 %v2222_v33  ;;  %v2648_v10 = vpop.f32.mrf.mxu0 }
 0x2c5   :  { %4064 = vtanh.f32 %v2220_v15 }
 0x2c7   :  { %v4055_v35 = vpop.eup %4054 }
 0x2c8   :  { %v4057_v36 = vpop.eup %4056  ;;  %v3181_v63 = vmax.f32 %v4055_v35, 0.0 }
 0x2c9   :  { %v4059_v56 = vpop.eup %4058  ;;  %v3179_v0 = vmax.f32 %v4057_v36, 0.0 }
 0x2ca   :  { %v4061_v40 = vpop.eup %4060  ;;  %v3180_v45 = vmax.f32 %v4059_v56, 0.0 }
 0x2cb   :  { %v2291_v58 = vpop.f32.mrf.mxu1  ;;  %v3178_v48 = vmax.f32 %v4061_v40, 0.0 }
 0x2cc   :  { %4066 = vtanh.f32 %v2291_v58  ;;  %v3241_v49 = vcombine.low %v3180_v45, %v3181_v63  ;;  %v2788_v16 = vpop.f32.mrf.mxu0 }
 0x2cd   :  { %v2293_v34 = vpop.f32.mrf.mxu1  ;;  %v3240_v54 = vcombine.low %v3178_v48, %v3179_v0 }
 0x2ce   :  { %4068 = vtanh.f32 %v2293_v34  ;;  %v3257_v61 = vrot.slane %v3241_v49, %v6153_v53  ;;  %v2790_v24 = vpop.f32.mrf.mxu0 }
 0x2cf   :  { %4070 = vtanh.f32 %v2362_v50  ;;  %v3250_v2 = vrot.slane %v3240_v54, %v6153_v53 }
 0x2d1   :  { %v4063_v43 = vpop.eup %4062  ;;  %v3272_v7 = vcombine.low %v3250_v2, %v3257_v61 }
 0x2d2   :  { %v4065_v4 = vpop.eup %4064  ;;  %v3183_v17 = vmax.f32 %v4063_v43, 0.0 }
 0x2d3   :  { %v3182_v55 = vmax.f32 %v4065_v4, 0.0  ;;  %v3280_v14 = vrot.slane %v3272_v7, %v6153_v53 }
 0x2d5   :  { %v2433_v44 = vpop.f32.mrf.mxu1  ;;  %v3242_v62 = vcombine.low %v3182_v55, %v3183_v17 }
 0x2d6   :  { %v2930_v30 = vpop.f32.mrf.mxu0 }
 0x2d7   :  { %v2435_v46 = vpop.f32.mrf.mxu1  ;;  %v3264_v47 = vrot.slane %v3242_v62, %v6153_v53 }
 0x2d8   :  { %4072 = vtanh.f32 %v2435_v46  ;;  %v2932_v50 = vpop.f32.mrf.mxu0 }
 0x2d9   :  { %v4067_v52 = vpop.eup %4066  ;;  %4074 = vtanh.f32 %v2364_v39 }
 0x2da   :  { %4076 = vtanh.f32 %v2433_v44  ;;  %v3184_v1 = vmax.f32 %v4067_v52, 0.0 }
 0x2db   :  { %v4069_v57 = vpop.eup %4068  ;;  %4078 = vtanh.f32 %v2506_v51 }
 0x2dc   :  { %v3185_v26 = vmax.f32 %v4069_v57, 0.0  ;;  %4080 = vtanh.f32 %v2504_v41  ;;  %v4071_v13 = vpop.eup %4070 }
 0x2dd   :  { %v3186_v32 = vmax.f32 %v4071_v13, 0.0 }
 0x2de   :  { %v3243_v5 = vcombine.low %v3184_v1, %v3185_v26 }
 0x2df   :  { %v2575_v6 = vpop.f32.mrf.mxu1 }
 0x2e0   :  { %v3271_v8 = vrot.slane %v3243_v5, %v6153_v53  ;;  %4082 = vtanh.f32 %v2575_v6  ;;  %v3072_v56 = vpop.f32.mrf.mxu0 }
 0x2e1   :  { %v2577_v9 = vpop.f32.mrf.mxu1 }
 0x2e2   :  { %v3273_v12 = vcombine.low %v3264_v47, %v3271_v8  ;;  %4084 = vtanh.f32 %v2577_v9  ;;  %v3074_v45 = vpop.f32.mrf.mxu0 }
 0x2e3   :  { %4086 = vtanh.f32 %v2648_v10 }
 0x2e4   :  { %v3287_v18 = vrot.slane %v3273_v12, %v6153_v53 }
 0x2e5   :  { %v4073_v19 = vpop.eup %4072 }
 0x2e6   :  { %v4075_v20 = vpop.eup %4074  ;;  %v3288_v21 = vcombine.low %v3280_v14, %v3287_v18  ;;  %v3189_v25 = vmax.f32 %v4073_v19, 0.0 }
 0x2e7   :  { %v4077_v22 = vpop.eup %4076  ;;  %v2717_v11 = vpop.f32.mrf.mxu1  ;;  %v3187_v29 = vmax.f32 %v4075_v20, 0.0 }
 0x2e8   :  { %v4079_v23 = vpop.eup %4078  ;;  %3439 = vst [vmem:[%s6195_s3] sm:$0xff] %v3288_v21  ;;  %4088 = vtanh.f32 %v2717_v11  ;;  %v3188_v59 = vmax.f32 %v4077_v22, 0.0 }
 0x2e9   :  { %v2719_v27 = vpop.f32.mrf.mxu1  ;;  %v4081_v28 = vpop.eup %4080  ;;  %v3191_v31 = vmax.f32 %v4079_v23, 0.0  ;;  %v3289_v34 = vcombine.low %v3186_v32, %v3187_v29 }
 0x2ea   :  { %4090 = vtanh.f32 %v2719_v27  ;;  %v3290_v15 = vcombine.low %v3188_v59, %v3189_v25  ;;  %v3190_v58 = vmax.f32 %v4081_v28, 0.0 }
 0x2eb   :  { %4092 = vtanh.f32 %v2790_v24  ;;  %v3299_v63 = vrot.slane %v3289_v34, %v6153_v53 }
 0x2ec   :  { %4094 = vtanh.f32 %v2646_v3  ;;  %v3291_v36 = vcombine.low %v3190_v58, %v3191_v31  ;;  %v3306_v37 = vrot.slane %v3290_v15, %v6153_v53 }
 0x2ed   :  { %v4083_v33 = vpop.eup %4082  ;;  %4096 = vtanh.f32 %v2788_v16 }
 0x2ee   :  { %v3192_v39 = vmax.f32 %v4083_v33, 0.0  ;;  %v3313_v44 = vrot.slane %v3291_v36, %v6153_v53  ;;  %v3321_v60 = vcombine.low %v3299_v63, %v3306_v37 }
 0x2ef   :  { %v4085_v35 = vpop.eup %4084  ;;  %v2859_v42 = vpop.f32.mrf.mxu1 }
 0x2f0   :  { %v3193_v40 = vmax.f32 %v4085_v35, 0.0  ;;  %4098 = vtanh.f32 %v2859_v42  ;;  %v4087_v4 = vpop.eup %4086  ;;  %v3329_v52 = vrot.slane %v3321_v60, %v6153_v53 }
 0x2f1   :  { %v2861_v41 = vpop.f32.mrf.mxu1  ;;  %v3195_v1 = vmax.f32 %v4087_v4, 0.0 }
 0x2f2   :  { %v3292_v43 = vcombine.low %v3192_v39, %v3193_v40  ;;  %4100 = vtanh.f32 %v2861_v41 }
 0x2f3   :  { %4102 = vtanh.f32 %v2930_v30 }
 0x2f4   :  { %v3320_v0 = vrot.slane %v3292_v43, %v6153_v53  ;;  %4104 = vtanh.f32 %v2932_v50 }
 0x2f5   :  { %v4089_v46 = vpop.eup %4088  ;;  %4106 = vtanh.f32 %v3074_v45 }
 0x2f6   :  { %v3322_v48 = vcombine.low %v3313_v44, %v3320_v0  ;;  %v3196_v2 = vmax.f32 %v4089_v46, 0.0 }
 0x2f7   :  { %v4091_v49 = vpop.eup %4090  ;;  %v3001_v51 = vpop.f32.mrf.mxu1 }
 0x2f8   :  { %v4093_v17 = vpop.eup %4092  ;;  %v3336_v54 = vrot.slane %v3322_v48, %v6153_v53  ;;  %v3197_v55 = vmax.f32 %v4091_v49, 0.0  ;;  %4108 = vtanh.f32 %v3001_v51 }
 0x2f9   :  { %v4095_v57 = vpop.eup %4094  ;;  %4110 = vtanh.f32 %v3072_v56  ;;  %v3003_v61 = vpop.f32.mrf.mxu1  ;;  %v3199_v3 = vmax.f32 %v4093_v17, 0.0 }
 0x2fa   :  { %v4097_v62 = vpop.eup %4096  ;;  %v3337_v26 = vcombine.low %v3329_v52, %v3336_v54  ;;  %4112 = vtanh.f32 %v3003_v61  ;;  %v3194_v5 = vmax.f32 %v4095_v57, 0.0  ;;  %v3339_v6 = vcombine.low %v3196_v2, %v3197_v55 }
 0x2fb   :  { %v3198_v47 = vmax.f32 %v4097_v62, 0.0 }
 0x2fc   :  { %3440 = vst [vmem:[%s6195_s3 + $0x8] sm:$0xff] %v3337_v26  ;;  %v3338_v8 = vcombine.low %v3194_v5, %v3195_v1  ;;  %v3355_v13 = vrot.slane %v3339_v6, %v6153_v53 }
 0x2fd   :  { %v4099_v7 = vpop.eup %4098  ;;  %v3340_v10 = vcombine.low %v3198_v47, %v3199_v3 }
 0x2fe   :  { %v3200_v14 = vmax.f32 %v4099_v7, 0.0  ;;  %v3348_v20 = vrot.slane %v3338_v8, %v6153_v53 }
 0x2ff   :  { %v4101_v9 = vpop.eup %4100  ;;  %v3143_v12 = vpop.f32.mrf.mxu1  ;;  %v3362_v23 = vrot.slane %v3340_v10, %v6153_v53 }
 0x300   :  { %v3201_v16 = vmax.f32 %v4101_v9, 0.0  ;;  %4114 = vtanh.f32 %v3143_v12  ;;  %v4103_v19 = vpop.eup %4102  ;;  %v3370_v24 = vcombine.low %v3348_v20, %v3355_v13 }
 0x301   :  { %v4048_v18 = vpop.f32.mrf.mxu1  ;;  %v4105_v22 = vpop.eup %4104  ;;  %v3202_v31 = vmax.f32 %v4103_v19, 0.0 }
 0x302   :  { %v3341_v21 = vcombine.low %v3200_v14, %v3201_v16  ;;  %v4107_v11 = vpop.eup %4106  ;;  %v3203_v29 = vmax.f32 %v4105_v22, 0.0  ;;  %v3378_v15 = vrot.slane %v3370_v24, %v6153_v53 }
 0x303   :  { %v3207_v32 = vmax.f32 %v4107_v11, 0.0 }
 0x304   :  { %v3369_v25 = vrot.slane %v3341_v21, %v6153_v53  ;;  %v3387_v50 = vcombine.low %v3202_v31, %v3203_v29 }
 0x305   :  { %v4109_v27 = vpop.eup %4108 }
 0x306   :  { %v4111_v28 = vpop.eup %4110  ;;  %v3371_v59 = vcombine.low %v3362_v23, %v3369_v25  ;;  %v3204_v58 = vmax.f32 %v4109_v27, 0.0  ;;  %v3396_v40 = vrot.slane %v3387_v50, %v6153_v53 }
 0x307   :  { %v4113_v30 = vpop.eup %4112  ;;  %v3206_v35 = vmax.f32 %v4111_v28, 0.0 }
 0x308   :  { %v3385_v33 = vrot.slane %v3371_v59, %v6153_v53  ;;  %v3205_v34 = vmax.f32 %v4113_v30, 0.0 }
 0x309   :  { %v3389_v37 = vcombine.low %v3206_v35, %v3207_v32 }
 0x30a   :  { %v3386_v36 = vcombine.low %v3378_v15, %v3385_v33  ;;  %v3388_v42 = vcombine.low %v3204_v58, %v3205_v34 }
 0x30b   :  { %v3410_v63 = vrot.slane %v3389_v37, %v6153_v53 }
 0x30c   :  { %3441 = vst [vmem:[%s6195_s3 + $0x10] sm:$0xff] %v3386_v36  ;;  %v3403_v39 = vrot.slane %v3388_v42, %v6153_v53 }
 0x30d   :  { %v4115_v56 = vpop.eup %4114 }
 0x30e   :  { %v3208_v41 = vmax.f32 %v4115_v56, 0.0  ;;  %v3418_v43 = vcombine.low %v3396_v40, %v3403_v39 }
 0x310   :  { %v3417_v44 = vrot.slane %v3208_v41, %v6153_v53  ;;  %v3426_v0 = vrot.slane %v3418_v43, %v6153_v53 }
 0x312   :  { %v3419_v60 = vcombine.low %v3410_v63, %v3417_v44 }
 0x314   :  { %v3433_v45 = vrot.slane %v3419_v60, %v6153_v53 }
 0x316   :  { %v3434_v4 = vcombine.low %v3426_v0, %v3433_v45 }
 0x318   :  { %3446 = vst.msk [vmem:[%s6195_s3 + $0x18] sm:$0x7f] %vm3444_vm6, %v3434_v4 }

// kernel: domain_adaption_forward.3
= control target key start
LH: loop header
LB: loop body
LE: loop exit
PB: predicated region body
PF: predicated region fallthrough
CT: control target
= control target key end

     0   :  { %s8915_s0 = inlined_call_operand.vmem [shape: f32[8,310], index: 0, kind: input, shape index: {}]   ;;  %s8916_s1 = inlined_call_operand.vmem [shape: f32[310,310], index: 1, kind: input, shape index: {}]   ;;  %s8917_s2 = inlined_call_operand.vmem [shape: f32[8,310], index: 2, kind: input, shape index: {}]   ;;  %s8918_s3 = inlined_call_operand.vmem [shape: f32[15,3], index: 3, kind: input, shape index: {}]   ;;  %s8919_s4 = inlined_call_operand.vmem [shape: f32[3,15], index: 4, kind: input, shape index: {}]   ;;  %s8920_s5 = inlined_call_operand.vmem [shape: f32[7], index: 5, kind: input, shape index: {}]   ;;  %s8921_s6 = inlined_call_operand.vmem [shape: f32[15,930], index: 6, kind: input, shape index: {}]   ;;  %s8922_s7 = inlined_call_operand.vmem [shape: f32[62,930], index: 7, kind: input, shape index: {}]   ;;  %s8923_s8 = inlined_call_operand.vmem [shape: f32[930,64], index: 8, kind: input, shape index: {}]   ;;  %s8924_s9 = inlined_call_operand.vmem [shape: f32[1,64], index: 9, kind: input, shape index: {}]   ;;  %s8925_s10 = inlined_call_operand.vmem [shape: f32[64,64], index: 10, kind: input, shape index: {}]   ;;  %s8926_s11 = inlined_call_operand.vmem [shape: f32[1,64], index: 11, kind: input, shape index: {}]   ;;  %s8927_s12 = inlined_call_operand.vmem [shape: f32[64,3], index: 12, kind: input, shape index: {}]   ;;  %s8928_s13 = inlined_call_operand.vmem [shape: f32[1,3], index: 13, kind: input, shape index: {}]   ;;  %s8929_s14 = inlined_call_operand.vmem [shape: s32[4], index: 14, kind: input, shape index: {}]   ;;  %s8930_s15 = inlined_call_operand.vmem [shape: f32[64,64], index: 15, kind: input, shape index: {}, may-alias: {15,22}]   ;;  %s8931_s16 = inlined_call_operand.vmem [shape: f32[64,3], index: 16, kind: input, shape index: {}, may-alias: {16,23}]   ;;  %s8932_s17 = inlined_call_operand.vmem [shape: f32[8,64], index: 17, kind: output, shape index: {0}]   ;;  %s8933_s18 = inlined_call_operand.vmem [shape: f32[8,3], index: 18, kind: output, shape index: {1}]   ;;  %s8934_s19 = inlined_call_operand.vmem [shape: f32[8,15], index: 19, kind: output, shape index: {2}]   ;;  %s8935_s20 = inlined_call_operand.vmem [shape: f32[8,62], index: 20, kind: output, shape index: {3}]   ;;  %s8936_s21 = inlined_call_operand.hbm [shape: f32[4,3], index: 21, kind: output, shape index: {4}]   ;;  %s8937_s22 = inlined_call_operand.vmem [shape: f32[64,64], index: 22, kind: output, shape index: {5}, may-alias: {15,22}]   ;;  %s8938_s23 = inlined_call_operand.vmem [shape: f32[64,3], index: 23, kind: output, shape index: {6}, may-alias: {16,23}]  }
   0x1   :  { %9065 = sst [smem:[#allocation71_spill]] %s8915_s0 }
   0x2   :  { %9066 = sst [smem:[#allocation72_spill]] %s8916_s1 }
   0x3   :  { %9067 = sst [smem:[#allocation73_spill]] %s8917_s2 }
   0x4   :  { %9068 = sst [smem:[#allocation74_spill]] %s8918_s3 }
   0x5   :  { %9069 = sst [smem:[#allocation75_spill]] %s8919_s4 }
   0x6   :  { %9070 = sst [smem:[#allocation76_spill]] %s8920_s5 }
   0x7   :  { %9071 = sst [smem:[#allocation77_spill]] %s8921_s6 }
   0x8   :  { %9072 = sst [smem:[#allocation78_spill]] %s8922_s7 }
   0x9   :  { %29 = vsyncpa [#allocation4], 0 }
   0xa   :  { %30 = vsyncpa [#allocation6], 0 }
   0xb   :  { %31 = vsyncpa [#allocation3], 0  ;;  %s9073_s24 = sld [smem:[#allocation76_spill]]  ;;  %s74_s26 = sshll.u32 %s8929_s14, 4  ;;  %s75_s26 = int_to_ptr.vmem [resolvable:$true] %s74_s26 }
  0x11   :  { %s48_s25 = sshll.u32 %s9073_s24, 4  ;;  %s49_s25 = int_to_ptr.vmem [resolvable:$true] %s48_s25 }
  0x12   :  { %s5659_s2 = scalar_lea.vmem %s49_s25, 16  ;;  %p5664_p1 = scmp.lt.s32.totalorder %s49_s25, %s49_s25 }
  0x13   :  { %p5660_p0 = scmp.ne.s32.totalorder %s49_s25, %s5659_s2  ;;  %p5665_p2 = scmp.lt.s32.totalorder %s5659_s2, %s5659_s2 }
  0x15   :  { %p5666_p3 = por %p5665_p2, %p5664_p1 }
  0x17   :  { %p5667_p4 = pnand %p5666_p3, %p5660_p0 }
  0x19   :  { %5670 = shalt.err (!%p5667_p4)
}
  0x1a   :  { %s5709_s6 = smov [#allocation2]   ;;  %s5671_s27 = scalar_lea.vmem %s75_s26, 16 }
  0x1b   :  { %51 = dma.vmem_to_smem %s49_s25, 16, %s5709_s6, [#allocation4]  }
  0x1c   :  { %p5672_p5 = scmp.ne.s32.totalorder %s75_s26, %s5671_s27  ;;  %p5676_p6 = scmp.lt.s32.totalorder %s75_s26, %s75_s26 }
  0x1d   :  { %p5677_p7 = scmp.lt.s32.totalorder %s5671_s27, %s5671_s27 }
  0x1f   :  { %p5678_p8 = por %p5677_p7, %p5676_p6 }
  0x21   :  { %p5679_p9 = pnand %p5678_p8, %p5672_p5 }
  0x23   :  { %5682 = shalt.err (!%p5679_p9)
}
  0x24   :  { %s5710_s7 = smov [#allocation5]  }
  0x25   :  { %77 = dma.vmem_to_smem %s75_s26, 16, %s5710_s7, [#allocation6]  }
  0x26   :  { %5703 = dma.done.wait [#allocation4], 16  }
  0x27   :  { %5704 = vsyncadd [#allocation4], 4294967280 }
  0x28   :  { %5705 = dma.done.wait [#allocation6], 16  }
  0x29   :  { %5706 = vsyncadd [#allocation6], 4294967280 }
  0x2a   :  { %88 = sfence }
  0x2b   :  { %s9074_s29 = sld [smem:[#allocation71_spill]]  ;;  %s5711_s4 = smov 1   ;;  %vm228_vm0 = vcmask 449536   ;;  %vm221_vm1 = vcmask 7168   ;;  %vm344_vm2 = vcmask 1045504   ;;  %vm265_vm3 = vcmask 1039360  }
  0x2c   :  { %s9078_s1 = sld [smem:[#allocation72_spill]]  ;;  %s5712_s6 = smov 126   ;;  %vm295_vm4 = vcmask 1031168   ;;  %vm340_vm6 = vcmask 441344   ;;  %vm9052_vm9 = vmmov 0  }
  0x2d   :  { %s5713_s27 = smov 127   ;;  %s9126_s14 = sld [smem:[#allocation73_spill]] }
  0x2e   :  { %s9189_s25 = sld [smem:[#allocation77_spill]]  ;;  %s5717_s7 = smov 108  }
  0x2f   :  { %s9206_s3 = sld [smem:[#allocation74_spill]]  ;;  %s5734_s28 = smov 66  }
  0x30   :  { %s9207_s5 = sld [smem:[#allocation75_spill]]  ;;  %s5736_s0 = smov 8  }
  0x31   :  { %v5877_v0 = vld [vmem:[%s9074_s29 + $0x8] sm:$0xff]  ;;  %v5882_v1 = vld [vmem:[%s9074_s29] sm:$0xff]  ;;  %v5891_v2 = vld [vmem:[%s9074_s29 + $0x10] sm:$0xff]  ;;  %s5739_s30 = smov 78   ;;  %s5740_s24 = smov 16  }
  0x32   :  { %9075 = vst [vmem:[#allocation11_spill] sm:$0xff] %v5877_v0  ;;  %9076 = vst [vmem:[#allocation12_spill] sm:$0xff] %v5882_v1  ;;  %217 = vrot.lane.b32.xlu0 %v5877_v0, %s5711_s4  ;;  %215 = vrot.lane.b32.xlu1 %v5882_v1, %s5711_s4  ;;  %v5896_v3 = vld [vmem:[%s9078_s1 + $0x170] sm:$0xff]  ;;  %v5901_v4 = vld [vmem:[%s9078_s1 + $0x168] sm:$0xff]  ;;  %s5742_s26 = smov 82   ;;  %s5743_s2 = smov 86  }
  0x33   :  { %9077 = vst [vmem:[#allocation13_spill] sm:$0xff] %v5891_v2  ;;  %354 = vmatprep.subr.mxu0 %v5896_v3  ;;  %v5907_v5 = vld [vmem:[%s9078_s1 + $0x158] sm:$0xff]  ;;  %v5912_v6 = vld [vmem:[%s9078_s1 + $0x150] sm:$0xff]  ;;  %v5918_v7 = vld [vmem:[%s9078_s1 + $0x140] sm:$0xff] }
  0x34   :  { %355 = vmatpush1.msra.mxu0 %v5901_v4  ;;  %v5926_v8 = vld [vmem:[%s9078_s1 + $0x138] sm:$0xff]  ;;  %v5932_v9 = vld [vmem:[%s9078_s1 + $0x128] sm:$0xff]  ;;  %v5938_v10 = vld [vmem:[%s9078_s1 + $0x120] sm:$0xff] }
  0x35   :  { %356 = vmatprep.subr.mxu0 %v5907_v5  ;;  %v5944_v11 = vld [vmem:[%s9078_s1 + $0x110] sm:$0xff]  ;;  %v5950_v12 = vld [vmem:[%s9078_s1 + $0x108] sm:$0xff]  ;;  %v5956_v13 = vld [vmem:[%s9078_s1 + $0xf8] sm:$0xff] }
  0x36   :  { %219 = vrot.lane.b32.xlu0 %v5891_v2, %s5711_s4  ;;  %357 = vmatpush1.msra.mxu0 %v5912_v6  ;;  %v5962_v14 = vld [vmem:[%s9078_s1 + $0xf0] sm:$0xff]  ;;  %v5968_v15 = vld [vmem:[%s9078_s1 + $0xe0] sm:$0xff]  ;;  %v5974_v16 = vld [vmem:[%s9078_s1 + $0xd8] sm:$0xff] }
  0x37   :  { %358 = vmatprep.subr.mxu0 %v5918_v7  ;;  %v5980_v17 = vld [vmem:[%s9078_s1 + $0xc8] sm:$0xff]  ;;  %v5986_v18 = vld [vmem:[%s9078_s1 + $0xc0] sm:$0xff]  ;;  %v5992_v19 = vld [vmem:[%s9078_s1 + $0xb0] sm:$0xff] }
  0x38   :  { %359 = vmatpush1.msra.mxu0 %v5926_v8  ;;  %v5998_v20 = vld [vmem:[%s9078_s1 + $0xa8] sm:$0xff]  ;;  %v6004_v21 = vld [vmem:[%s9078_s1 + $0x98] sm:$0xff]  ;;  %v6010_v22 = vld [vmem:[%s9078_s1 + $0x90] sm:$0xff] }
  0x39   :  { %360 = vmatprep.subr.mxu0 %v5932_v9  ;;  %9079 = vst [vmem:[#allocation14_spill] sm:$0xff] %v6010_v22  ;;  %v6016_v23 = vld [vmem:[%s9078_s1 + $0x80] sm:$0xff]  ;;  %v6022_v24 = vld [vmem:[%s9078_s1 + $0x78] sm:$0xff]  ;;  %v6028_v25 = vld [vmem:[%s9078_s1 + $0x68] sm:$0xff] }
  0x3a   :  { %361 = vmatpush1.msra.mxu0 %v5938_v10  ;;  %9080 = vst [vmem:[#allocation15_spill] sm:$0xff] %v6016_v23  ;;  %9081 = vst [vmem:[#allocation16_spill] sm:$0xff] %v6022_v24  ;;  %v6034_v26 = vld [vmem:[%s9078_s1 + $0x60] sm:$0xff]  ;;  %v6040_v27 = vld [vmem:[%s9078_s1 + $0x50] sm:$0xff] }
  0x3b   :  { %362 = vmatprep.subr.mxu0 %v5944_v11  ;;  %9082 = vst [vmem:[#allocation17_spill] sm:$0xff] %v6028_v25  ;;  %9083 = vst [vmem:[#allocation18_spill] sm:$0xff] %v6034_v26  ;;  %v6046_v28 = vld [vmem:[%s9078_s1 + $0x48] sm:$0xff]  ;;  %v6052_v29 = vld [vmem:[%s9078_s1 + $0x38] sm:$0xff] }
  0x3c   :  { %363 = vmatpush1.msra.mxu0 %v5950_v12  ;;  %9084 = vst [vmem:[#allocation19_spill] sm:$0xff] %v6040_v27  ;;  %9085 = vst [vmem:[#allocation20_spill] sm:$0xff] %v6046_v28  ;;  %v6060_v30 = vld [vmem:[%s9078_s1 + $0x30] sm:$0xff]  ;;  %v6066_v31 = vld [vmem:[%s9078_s1 + $0x20] sm:$0xff] }
  0x3d   :  { %364 = vmatprep.subr.mxu0 %v5956_v13  ;;  %9086 = vst [vmem:[#allocation21_spill] sm:$0xff] %v6052_v29  ;;  %9087 = vst [vmem:[#allocation22_spill] sm:$0xff] %v6060_v30  ;;  %v6072_v32 = vld [vmem:[%s9078_s1 + $0x18] sm:$0xff]  ;;  %v6078_v33 = vld [vmem:[%s9078_s1 + $0x8] sm:$0xff] }
  0x3e   :  { %365 = vmatpush1.msra.mxu0 %v5962_v14  ;;  %9088 = vst [vmem:[#allocation23_spill] sm:$0xff] %v6066_v31  ;;  %9089 = vst [vmem:[#allocation24_spill] sm:$0xff] %v6072_v32  ;;  %v6084_v34 = vld [vmem:[%s9078_s1] sm:$0xff]  ;;  %v6090_v35 = vld [vmem:[%s9078_s1 + $0x2f0] sm:$0xff] }
  0x3f   :  { %366 = vmatprep.subr.mxu0 %v5968_v15  ;;  %9090 = vst [vmem:[#allocation25_spill] sm:$0xff] %v6078_v33  ;;  %9091 = vst [vmem:[#allocation26_spill] sm:$0xff] %v6084_v34  ;;  %v6096_v36 = vld [vmem:[%s9078_s1 + $0x2e8] sm:$0xff]  ;;  %v6102_v38 = vld [vmem:[%s9078_s1 + $0x2d8] sm:$0xff] }
  0x40   :  { %367 = vmatpush1.msra.mxu0 %v5974_v16  ;;  %9092 = vst [vmem:[#allocation27_spill] sm:$0xff] %v6090_v35  ;;  %9093 = vst [vmem:[#allocation28_spill] sm:$0xff] %v6096_v36  ;;  %v6108_v39 = vld [vmem:[%s9078_s1 + $0x2d0] sm:$0xff]  ;;  %v6114_v40 = vld [vmem:[%s9078_s1 + $0x2c0] sm:$0xff] }
  0x41   :  { %368 = vmatprep.subr.mxu0 %v5980_v17  ;;  %9094 = vst [vmem:[#allocation29_spill] sm:$0xff] %v6102_v38  ;;  %9095 = vst [vmem:[#allocation30_spill] sm:$0xff] %v6108_v39  ;;  %v6120_v41 = vld [vmem:[%s9078_s1 + $0x2b8] sm:$0xff]  ;;  %v6126_v43 = vld [vmem:[%s9078_s1 + $0x2a8] sm:$0xff] }
  0x42   :  { %369 = vmatpush1.msra.mxu0 %v5986_v18  ;;  %9096 = vst [vmem:[#allocation31_spill] sm:$0xff] %v6114_v40  ;;  %9097 = vst [vmem:[#allocation32_spill] sm:$0xff] %v6120_v41  ;;  %v6133_v45 = vld [vmem:[%s9078_s1 + $0x2a0] sm:$0xff]  ;;  %v6142_v47 = vld [vmem:[%s9078_s1 + $0x290] sm:$0xff] }
  0x43   :  { %370 = vmatprep.subr.mxu0 %v5992_v19  ;;  %9098 = vst [vmem:[#allocation33_spill] sm:$0xff] %v6126_v43  ;;  %9099 = vst [vmem:[#allocation34_spill] sm:$0xff] %v6133_v45  ;;  %v6151_v49 = vld [vmem:[%s9078_s1 + $0x288] sm:$0xff]  ;;  %v6156_v50 = vld [vmem:[%s9078_s1 + $0x398] sm:$0x3f] }
  0x44   :  { %371 = vmatpush1.msra.mxu0 %v5998_v20  ;;  %9100 = vst [vmem:[#allocation35_spill] sm:$0xff] %v6142_v47  ;;  %9101 = vst [vmem:[#allocation36_spill] sm:$0xff] %v6151_v49  ;;  %4894 = vmatprep.subr.msk.mxu1 %vm344_vm2, %v6156_v50  ;;  %v6167_v52 = vld [vmem:[%s9078_s1 + $0x278] sm:$0xff]  ;;  %v6172_v53 = vld [vmem:[%s9078_s1 + $0x390] sm:$0x3f] }
  0x45   :  { %372 = vmatprep.subr.mxu0 %v6004_v21  ;;  %9102 = vst [vmem:[#allocation37_spill] sm:$0xff] %v6167_v52  ;;  %4895 = vmatpush1.msk.msra.mxu1 %vm344_vm2, %v6172_v53  ;;  %v6180_v54 = vld [vmem:[%s9078_s1 + $0x270] sm:$0xff]  ;;  %v6185_v55 = vld [vmem:[%s9078_s1 + $0x380] sm:$0xff]  ;;  %v6200_v58 = vld [vmem:[%s9078_s1 + $0x378] sm:$0xff] }
  0x46   :  { %373 = vmatpush1.msra.mxu0 %v6010_v22  ;;  %9103 = vst [vmem:[#allocation38_spill] sm:$0xff] %v6180_v54  ;;  %445 = vmatprep.subr.mxu1 %v6185_v55  ;;  %v6195_v57 = vld [vmem:[%s9078_s1 + $0x260] sm:$0xff]  ;;  %v6209_v59 = vld [vmem:[%s9078_s1 + $0x258] sm:$0xff]  ;;  %v6214_v60 = vld [vmem:[%s9078_s1 + $0x368] sm:$0xff] }
  0x47   :  { %374 = vmatprep.subr.mxu0 %v6016_v23  ;;  %9104 = vst [vmem:[#allocation39_spill] sm:$0xff] %v6195_v57  ;;  %9105 = vst [vmem:[#allocation40_spill] sm:$0xff] %v6209_v59  ;;  %446 = vmatpush1.msra.mxu1 %v6200_v58  ;;  %v6221_v61 = vld [vmem:[%s9078_s1 + $0x360] sm:$0xff]  ;;  %v6228_v62 = vld [vmem:[%s9078_s1 + $0x248] sm:$0xff] }
  0x48   :  { %375 = vmatpush1.msra.mxu0 %v6022_v24  ;;  %447 = vmatprep.subr.mxu1 %v6214_v60  ;;  %9106 = vst [vmem:[#allocation41_spill] sm:$0xff] %v6228_v62  ;;  %v6233_v63 = vld [vmem:[%s9078_s1 + $0x350] sm:$0xff]  ;;  %v6266_v2 = vld [vmem:[%s9078_s1 + $0x228] sm:$0xff]  ;;  %v6278_v1 = vld [vmem:[%s9078_s1 + $0x218] sm:$0xff] }
  0x49   :  { %376 = vmatprep.subr.mxu0 %v6028_v25  ;;  %448 = vmatpush1.msra.mxu1 %v6221_v61  ;;  %9109 = vst [vmem:[#allocation44_spill] sm:$0xff] %v6266_v2  ;;  %v6271_v0 = vld [vmem:[%s9078_s1 + $0x330] sm:$0xff]  ;;  %9110 = vst [vmem:[#allocation45_spill] sm:$0xff] %v6278_v1 }
  0x4a   :  { %377 = vmatpush1.msra.mxu0 %v6034_v26  ;;  %449 = vmatprep.subr.mxu1 %v6233_v63 }
  0x4b   :  { %378 = vmatprep.subr.mxu0 %v6040_v27 }
  0x4c   :  { %379 = vmatpush1.msra.mxu0 %v6046_v28 }
  0x4d   :  { %380 = vmatprep.subr.mxu0 %v6052_v29 }
  0x4e   :  { %381 = vmatpush1.msra.mxu0 %v6060_v30 }
  0x4f   :  { %382 = vmatprep.subr.mxu0 %v6066_v31 }
  0x50   :  { %383 = vmatpush1.msra.mxu0 %v6072_v32 }
  0x51   :  { %384 = vmatprep.subr.mxu0 %v6078_v33 }
  0x52   :  { %385 = vmatpush1.msra.mxu0 %v6084_v34 }
  0x53   :  { %386 = vmatprep.subr.mxu0 %v6090_v35 }
  0x54   :  { %387 = vmatpush2.msra.mxu0 %v6096_v36 }
  0x55   :  { %388 = vmatprep.subr.mxu0 %v6102_v38  ;;  %v6428_v38 = vld [vmem:[%s9126_s14 + $0x8] sm:$0xff] }
  0x56   :  { %389 = vmatpush2.msra.mxu0 %v6108_v39  ;;  %v6423_v39 = vld [vmem:[%s9126_s14] sm:$0xff] }
  0x57   :  { %390 = vmatprep.subr.mxu0 %v6114_v40 }
  0x58   :  { %391 = vmatpush2.msra.mxu0 %v6120_v41 }
  0x59   :  { %392 = vmatprep.subr.mxu0 %v6126_v43 }
  0x5a   :  { %393 = vmatpush2.msra.mxu0 %v6133_v45  ;;  %v6405_v45 = vld [vmem:[%s9126_s14 + $0x10] sm:$0xff]  ;;  %s5733_s14 = smov 4  }
  0x5b   :  { %394 = vmatprep.subr.mxu0 %v6142_v47  ;;  %v6352_v47 = vld [vmem:[%s9078_s1 + $0x1c8] sm:$0xff] }
  0x5c   :  { %395 = vmatpush2.msra.mxu0 %v6151_v49  ;;  %v8962_v49 = vmov 0.0   ;;  %9117 = vst [vmem:[#allocation52_spill] sm:$0xff] %v6352_v47 }
  0x5d   :  { %396 = vmatprep.subr.mxu0 %v6167_v52  ;;  %v6333_v52 = vld [vmem:[%s9078_s1 + $0x1e0] sm:$0xff]  ;;  %489 = vmatprep.mubr.f32.mxu1 %v8962_v49  ;;  %v6365_v49 = vld [vmem:[%s9078_s1 + $0x1b0] sm:$0xff] }
  0x5e   :  { %397 = vmatpush2.msra.mxu0 %v6180_v54  ;;  %v6319_v54 = vld [vmem:[%s9078_s1 + $0x300] sm:$0xff]  ;;  %9115 = vst [vmem:[#allocation50_spill] sm:$0xff] %v6333_v52  ;;  %9119 = vst [vmem:[#allocation54_spill] sm:$0xff] %v6365_v49 }
  0x5f   :  { %398 = vmatprep.subr.mxu0 %v6195_v57  ;;  %v6307_v57 = vld [vmem:[%s9078_s1 + $0x308] sm:$0xff] }
  0x60   :  { %399 = vmatpush2.msra.mxu0 %v6209_v59  ;;  %v6295_v59 = vld [vmem:[%s9078_s1 + $0x318] sm:$0xff] }
  0x61   :  { %400 = vmatprep.subr.mxu0 %v6228_v62  ;;  %v6283_v62 = vld [vmem:[%s9078_s1 + $0x320] sm:$0xff] }
  0xa4   :  { %v218_v37 = vpop.permute.xlu0 %217  ;;  %v216_v48 = vpop.permute.xlu1 %215 }
  0xa5   :  { %v6159_v51 = vsel %vm221_vm1, 0.0, %v216_v48  ;;  %v6188_v56 = vsel %vm221_vm1, %v216_v48, %v218_v37  ;;  %v6259_v48 = vld [vmem:[%s9078_s1 + $0x338] sm:$0xff] }
  0xa8   :  { %v220_v42 = vpop.permute.xlu0 %219 }
  0xa9   :  { %v223_v44 = vsel %vm221_vm1, %v218_v37, %v220_v42  ;;  %v6240_v37 = vld [vmem:[%s9078_s1 + $0x240] sm:$0xff]  ;;  %v6245_v42 = vld [vmem:[%s9078_s1 + $0x348] sm:$0xff] }
  0xaa   :  { %v6136_v46 = vsel %vm228_vm0, %v223_v44, 0.0  ;;  %9107 = vst [vmem:[#allocation42_spill] sm:$0xff] %v6240_v37  ;;  %v6254_v44 = vld [vmem:[%s9078_s1 + $0x230] sm:$0xff]  ;;  %401 = vmatpush2.msra.mxu0 %v6240_v37  ;;  %450 = vmatpush1.msra.mxu1 %v6245_v42 }
  0xab   :  { %293 = vrot.lane.b32.xlu0 %v6136_v46, %s5712_s6  ;;  %263 = vrot.lane.b32.xlu1 %v6136_v46, %s5713_s27  ;;  %9108 = vst [vmem:[#allocation43_spill] sm:$0xff] %v6254_v44  ;;  %v6290_v37 = vld [vmem:[%s9078_s1 + $0x210] sm:$0xff] }
  0xac   :  { %402 = vmatprep.subr.mxu0 %v6254_v44  ;;  %451 = vmatprep.subr.mxu1 %v6259_v48  ;;  %9111 = vst [vmem:[#allocation46_spill] sm:$0xff] %v6290_v37  ;;  %v6302_v44 = vld [vmem:[%s9078_s1 + $0x200] sm:$0xff] }
  0xad   :  { %403 = vmatpush2.msra.mxu0 %v6266_v2  ;;  %452 = vmatpush1.msra.mxu1 %v6271_v0  ;;  %9112 = vst [vmem:[#allocation47_spill] sm:$0xff] %v6302_v44  ;;  %v6314_v2 = vld [vmem:[%s9078_s1 + $0x1f8] sm:$0xff] }
  0xae   :  { %404 = vmatprep.subr.mxu0 %v6278_v1  ;;  %453 = vmatprep.subr.mxu1 %v6283_v62  ;;  %9113 = vst [vmem:[#allocation48_spill] sm:$0xff] %v6314_v2  ;;  %v6326_v1 = vld [vmem:[%s9078_s1 + $0x1e8] sm:$0xff] }
  0xaf   :  { %259 = vrot.lane.b32.xlu0 %v6159_v51, %s5713_s27  ;;  %261 = vrot.lane.b32.xlu1 %v6188_v56, %s5713_s27  ;;  %9114 = vst [vmem:[#allocation49_spill] sm:$0xff] %v6326_v1 }
  0xb0   :  { %405 = vmatpush2.msra.mxu0 %v6290_v37  ;;  %454 = vmatpush1.msra.mxu1 %v6295_v59  ;;  %v6338_v37 = vld [vmem:[%s9078_s1 + $0x2f8] sm:$0xff] }
  0xb1   :  { %406 = vmatprep.subr.mxu0 %v6302_v44  ;;  %455 = vmatprep.subr.mxu1 %v6307_v57  ;;  %v6345_v44 = vld [vmem:[%s9078_s1 + $0x1d0] sm:$0xff] }
  0xb2   :  { %407 = vmatpush2.msra.mxu0 %v6314_v2  ;;  %456 = vmatpush1.msra.mxu1 %v6319_v54  ;;  %9116 = vst [vmem:[#allocation51_spill] sm:$0xff] %v6345_v44  ;;  %v6359_v2 = vld [vmem:[%s9078_s1 + $0x1b8] sm:$0xff] }
  0xb3   :  { %289 = vrot.lane.b32.xlu0 %v6159_v51, %s5712_s6  ;;  %291 = vrot.lane.b32.xlu1 %v6188_v56, %s5712_s6  ;;  %9118 = vst [vmem:[#allocation53_spill] sm:$0xff] %v6359_v2 }
  0xb4   :  { %408 = vmatprep.subr.mxu0 %v6326_v1  ;;  %4996 = vmatprep.subr.mxu1 %v6338_v37  ;;  %v6377_v1 = vld [vmem:[%s9078_s1 + $0x198] sm:$0xff] }
  0xb5   :  { %409 = vmatpush2.msra.mxu0 %v6333_v52  ;;  %v6371_v52 = vld [vmem:[%s9078_s1 + $0x1a0] sm:$0xff]  ;;  %9121 = vst [vmem:[#allocation56_spill] sm:$0xff] %v6377_v1 }
  0xb6   :  { %410 = vmatprep.subr.mxu0 %v6345_v44  ;;  %9120 = vst [vmem:[#allocation55_spill] sm:$0xff] %v6371_v52  ;;  %v6383_v44 = vld [vmem:[%s9078_s1 + $0x188] sm:$0xff] }
  0xb7   :  { %411 = vmatpush2.msra.mxu0 %v6352_v47  ;;  %9122 = vst [vmem:[#allocation57_spill] sm:$0xff] %v6383_v44  ;;  %v6389_v47 = vld [vmem:[%s9078_s1 + $0x180] sm:$0xff] }
  0xb8   :  { %412 = vmatprep.subr.mxu0 %v6359_v2  ;;  %9123 = vst [vmem:[#allocation58_spill] sm:$0xff] %v6389_v47 }
  0xb9   :  { %413 = vmatpush2.msra.mxu0 %v6365_v49  ;;  %v8974_v49 = vlaneseq }
  0xba   :  { %414 = vmatprep.subr.mxu0 %v6371_v52 }
  0xbb   :  { %415 = vmatpush2.msra.mxu0 %v6377_v1  ;;  %v6397_v2 = vshrl.u32 %v8974_v49, 7 }
  0xbc   :  { %416 = vmatprep.subr.mxu0 %v6383_v44 }
  0xbd   :  { %417 = vmatpush2.msra.mxu0 %v6389_v47  ;;  %9124 = vst [vmem:[#allocation59_spill] sm:$0xff] %v6397_v2  ;;  %v6400_v52 = vsub.s32 1, %v6397_v2  ;;  %v6408_v1 = vsub.s32 0, %v6397_v2  ;;  %v6411_v47 = vsub.s32 2, %v6397_v2 }
  0xbe   :  { %4905 = vmatprep.subr.msk.mxu0 %vm344_vm2, %v6156_v50 }
  0xbf   :  { %9125 = vst [vmem:[#allocation60_spill] sm:$0xff] %v6400_v52  ;;  %9127 = vst [vmem:[#allocation61_spill] sm:$0xff] %v6408_v1  ;;  %v241_v50 = vrot.slane %v6405_v45, %v6408_v1  ;;  %v256_v49 = vrot.slane %v6405_v45, %v6400_v52  ;;  %v288_v44 = vrot.slane %v6405_v45, %v6411_v47 }
  0xc0   :  { %9128 = vst [vmem:[#allocation62_spill] sm:$0xff] %v6411_v47  ;;  %v248_v35 = vrot.slane %v6423_v39, %v6400_v52  ;;  %v252_v34 = vrot.slane %v6428_v38, %v6400_v52  ;;  %v237_v32 = vrot.slane %v6428_v38, %v6408_v1  ;;  %v280_v27 = vrot.slane %v6423_v39, %v6411_v47 }
  0xc1   :  { %v244_v40 = vmul.f32 %v241_v50, %v6136_v46  ;;  %v233_v50 = vrot.slane %v6423_v39, %v6408_v1 }
  0xc2   :  { %v243_v1 = vmul.f32 %v237_v32, %v6188_v56  ;;  %v6449_v32 = vsub.s32 3, %v6397_v2 }
  0xc4   :  { %9129 = vst [vmem:[#allocation63_spill] sm:$0xff] %v6449_v32 }
 0x11d   :  { %v294_v43 = vpop.permute.xlu0 %293  ;;  %v264_v41 = vpop.permute.xlu1 %263 }
 0x11e   :  { %v273_v36 = vmul.f32 %v264_v41, %v256_v49  ;;  %v303_v33 = vmul.f32 %v294_v43, %v288_v44  ;;  %v242_v44 = vmul.f32 %v233_v50, %v6159_v51  ;;  %v6484_v50 = vld [vmem:[%s9078_s1 + $0x148] sm:$0xff] }
 0x120   :  { %v276_v46 = vadd.f32 %v273_v36, %v244_v40  ;;  %v284_v36 = vrot.slane %v6428_v38, %v6411_v47 }
 0x121   :  { %v260_v31 = vpop.permute.xlu0 %259  ;;  %v262_v30 = vpop.permute.xlu1 %261 }
 0x122   :  { %v306_v29 = vadd.f32 %v303_v33, %v276_v46  ;;  %v266_v49 = vsel %vm265_vm3, %v260_v31, %v262_v30  ;;  %v267_v28 = vsel %vm265_vm3, %v262_v30, %v264_v41 }
 0x123   :  { %v271_v52 = vmul.f32 %v266_v49, %v248_v35  ;;  %v272_v26 = vmul.f32 %v267_v28, %v252_v34 }
 0x124   :  { %v312_v40 = vmin.f32 %v306_v29, 0.0  ;;  %vm309_vm5 = vcmp.gt.f32.partialorder %v306_v29, 0.0 }
 0x125   :  { %v290_v25 = vpop.permute.xlu0 %289  ;;  %v292_v33 = vpop.permute.xlu1 %291  ;;  %v274_v41 = vadd.f32 %v271_v52, %v242_v44  ;;  %v275_v24 = vadd.f32 %v272_v26, %v243_v1  ;;  %v6492_v44 = vld [vmem:[%s9078_s1 + $0x2b0] sm:$0xff] }
 0x126   :  { %v317_v46 = vmul.f32 1.442695, %v312_v40  ;;  %v296_v31 = vsel %vm295_vm4, %v290_v25, %v292_v33  ;;  %v297_v30 = vsel %vm295_vm4, %v292_v33, %v294_v43  ;;  %v336_v25 = vrot.slane %v6405_v45, %v6449_v32 }
 0x127   :  { %v301_v35 = vmul.f32 %v296_v31, %v280_v27  ;;  %v302_v28 = vmul.f32 %v297_v30, %v284_v36  ;;  %v332_v36 = vrot.slane %v6428_v38, %v6449_v32 }
 0x128   :  { %5590 = vpow2.f32 %v317_v46  ;;  %v6498_v46 = vld [vmem:[%s9078_s1 + $0x130] sm:$0xff] }
 0x129   :  { %v304_v34 = vadd.f32 %v301_v35, %v274_v41  ;;  %v305_v49 = vadd.f32 %v302_v28, %v275_v24  ;;  %v6458_v24 = vld [vmem:[%s9078_s1 + $0x178] sm:$0xff] }
 0x12a   :  { %v6504_v41 = vld [vmem:[%s9078_s1 + $0x298] sm:$0xff] }
 0x12b   :  { %v310_v47 = vmin.f32 %v304_v34, 0.0  ;;  %v311_v23 = vmin.f32 %v305_v49, 0.0  ;;  %vm307_vm7 = vcmp.gt.f32.partialorder %v304_v34, 0.0  ;;  %vm308_vm8 = vcmp.gt.f32.partialorder %v305_v49, 0.0 }
 0x12d   :  { %v313_v22 = vmul.f32 1.442695, %v310_v47  ;;  %v315_v51 = vmul.f32 1.442695, %v311_v23  ;;  %v6470_v23 = vld [vmem:[%s9078_s1 + $0x160] sm:$0xff]  ;;  %v328_v47 = vrot.slane %v6423_v39, %v6449_v32 }
 0x12f   :  { %5592 = vpow2.f32 %v313_v22  ;;  %v6463_v22 = vld [vmem:[%s9078_s1 + $0x2e0] sm:$0xff] }
 0x130   :  { %5594 = vpow2.f32 %v315_v51  ;;  %v6513_v51 = vld [vmem:[%s9078_s1 + $0x118] sm:$0xff] }
 0x135   :  { %v5591_v56 = vpop.eup %5590 }
 0x136   :  { %v4893_v43 = vadd.f32 -1.0, %v5591_v56  ;;  %v6531_v56 = vld [vmem:[%s9078_s1 + $0x268] sm:$0xff] }
 0x138   :  { %v324_v1 = vsel %vm309_vm5, %v306_v29, %v4893_v43  ;;  %v6476_v29 = vld [vmem:[%s9078_s1 + $0x2c8] sm:$0xff]  ;;  %v6546_v43 = vld [vmem:[%s9078_s1 + $0x250] sm:$0xff]  ;;  %vm9014_vm5 = vcmask 506880  }
 0x139   :  { %v6453_v26 = vmul.f32 %v336_v25, %v324_v1  ;;  %v6539_v25 = vld [vmem:[%s9078_s1 + $0xe8] sm:$0xff]  ;;  %v9130_v1 = vmov 0.0  }
 0x13b   :  { %4896 = vmatmul.mubr.msk.f32.vlgmr.msra.gmra.mxu1 %vm340_vm6, %v6453_v26 }
 0x13c   :  { %v5593_v27 = vpop.eup %5592  ;;  %4997 = vmatpush3.msra.mxu1 %v6458_v24 }
 0x13d   :  { %v5595_v52 = vpop.eup %5594  ;;  %4998 = vmatprep.subr.mxu1 %v6463_v22  ;;  %v4891_v40 = vadd.f32 -1.0, %v5593_v27  ;;  %v6643_v27 = vld [vmem:[%s9078_s1 + $0x1a8] sm:$0xff] }
 0x13e   :  { %4999 = vmatpush3.msra.mxu1 %v6470_v23  ;;  %v4892_v33 = vadd.f32 -1.0, %v5595_v52  ;;  %v6661_v52 = vld [vmem:[%s9078_s1 + $0x10] sm:$0xff] }
 0x13f   :  { %5000 = vmatprep.subr.mxu1 %v6476_v29  ;;  %v322_v31 = vsel %vm307_vm7, %v304_v34, %v4891_v40  ;;  %v6519_v34 = vld [vmem:[%s9078_s1 + $0x280] sm:$0xff]  ;;  %v6676_v40 = vld [vmem:[%s9078_s1 + $0x388] sm:$0xff]  ;;  %vm1118_vm7 = vcmask 1048544  }
 0x140   :  { %5001 = vmatpush3.msra.mxu1 %v6484_v50  ;;  %v323_v30 = vsel %vm308_vm8, %v305_v49, %v4892_v33  ;;  %v6506_v35 = vmul.f32 %v328_v47, %v322_v31  ;;  %v6525_v49 = vld [vmem:[%s9078_s1 + $0x100] sm:$0xff]  ;;  %v6655_v47 = vld [vmem:[%s9078_s1 + $0x190] sm:$0xff]  ;;  %9132 = vst [vmem:[#allocation65_spill] sm:$0xff] %v6676_v40  ;;  %v6693_v31 = vld [vmem:[%s9078_s1 + $0x358] sm:$0xff]  ;;  %vm1120_vm8 = vcmask 474112  }
 0x141   :  { %5002 = vmatprep.subr.mxu1 %v6492_v44  ;;  %v338_v28 = vmul.f32 %v332_v36, %v323_v30  ;;  %v6668_v36 = vld [vmem:[%s9078_s1 + $0x3a0] sm:$0x3f]  ;;  %v6686_v33 = vld [vmem:[%s9078_s1 + $0x370] sm:$0xff]  ;;  %9134 = vst [vmem:[#allocation67_spill] sm:$0xff] %v6693_v31 }
 0x142   :  { %5003 = vmatpush3.msra.mxu1 %v6498_v46  ;;  %9131 = vst [vmem:[#allocation64_spill] sm:$0xff] %v6668_v36  ;;  %9133 = vst [vmem:[#allocation66_spill] sm:$0xff] %v6686_v33  ;;  %v6700_v30 = vld [vmem:[%s9078_s1 + $0x340] sm:$0xff] }
 0x143   :  { %418 = vmatprep.mubr.f32.mxu0 %v338_v28  ;;  %5004 = vmatprep.subr.mxu1 %v6504_v41  ;;  %9135 = vst [vmem:[#allocation68_spill] sm:$0xff] %v6700_v30 }
 0x144   :  { %560 = vmatprep.mubr.f32.mxu1 %v338_v28  ;;  %419 = vmatmul.mubr.f32.vlgmr.msra.gmra.mxu0 %v6506_v35  ;;  %v6714_v28 = vld [vmem:[%s9078_s1 + $0x310] sm:$0xff] }
 0x145   :  { %5005 = vmatpush3.msra.mxu1 %v6513_v51  ;;  %4906 = vmatpush1.msk.msra.mxu0 %vm344_vm2, %v6172_v53  ;;  %v6553_v53 = vld [vmem:[%s9078_s1 + $0xd0] sm:$0xff]  ;;  %9137 = vst [vmem:[#allocation70_spill] sm:$0xff] %v6714_v28 }
 0x146   :  { %5006 = vmatprep.subr.mxu1 %v6519_v34  ;;  %872 = vmatprep.subr.mxu0 %v6185_v55  ;;  %v6560_v55 = vld [vmem:[%s9078_s1 + $0x238] sm:$0xff] }
 0x147   :  { %5007 = vmatpush3.msra.mxu1 %v6525_v49  ;;  %873 = vmatpush1.msra.mxu0 %v6200_v58  ;;  %v6567_v58 = vld [vmem:[%s9078_s1 + $0xb8] sm:$0xff] }
 0x148   :  { %5008 = vmatprep.subr.mxu1 %v6531_v56  ;;  %874 = vmatprep.subr.mxu0 %v6214_v60  ;;  %v6574_v60 = vld [vmem:[%s9078_s1 + $0x220] sm:$0xff] }
 0x149   :  { %5009 = vmatpush3.msra.mxu1 %v6539_v25  ;;  %875 = vmatpush1.msra.mxu0 %v6221_v61  ;;  %v6581_v61 = vld [vmem:[%s9078_s1 + $0xa0] sm:$0xff] }
 0x14a   :  { %5010 = vmatprep.subr.mxu1 %v6546_v43  ;;  %876 = vmatprep.subr.mxu0 %v6233_v63  ;;  %v6588_v63 = vld [vmem:[%s9078_s1 + $0x208] sm:$0xff] }
 0x14b   :  { %5011 = vmatpush3.msra.mxu1 %v6553_v53  ;;  %877 = vmatpush1.msra.mxu0 %v6245_v42  ;;  %v6595_v42 = vld [vmem:[%s9078_s1 + $0x88] sm:$0xff] }
 0x14c   :  { %5012 = vmatprep.subr.mxu1 %v6560_v55  ;;  %878 = vmatprep.subr.mxu0 %v6259_v48  ;;  %v6602_v48 = vld [vmem:[%s9078_s1 + $0x1f0] sm:$0xff] }
 0x14d   :  { %5013 = vmatpush3.msra.mxu1 %v6567_v58  ;;  %879 = vmatpush1.msra.mxu0 %v6271_v0  ;;  %v6609_v0 = vld [vmem:[%s9078_s1 + $0x70] sm:$0xff] }
 0x14e   :  { %5014 = vmatprep.subr.mxu1 %v6574_v60  ;;  %880 = vmatprep.subr.mxu0 %v6283_v62  ;;  %v6616_v62 = vld [vmem:[%s9078_s1 + $0x1d8] sm:$0xff] }
 0x14f   :  { %5015 = vmatpush3.msra.mxu1 %v6581_v61  ;;  %881 = vmatpush1.msra.mxu0 %v6295_v59  ;;  %v6623_v59 = vld [vmem:[%s9078_s1 + $0x58] sm:$0xff] }
 0x150   :  { %5016 = vmatprep.subr.mxu1 %v6588_v63  ;;  %882 = vmatprep.subr.mxu0 %v6307_v57  ;;  %v6630_v57 = vld [vmem:[%s9078_s1 + $0x1c0] sm:$0xff] }
 0x151   :  { %5017 = vmatpush3.msra.mxu1 %v6595_v42  ;;  %883 = vmatpush1.msra.mxu0 %v6319_v54  ;;  %v6637_v54 = vld [vmem:[%s9078_s1 + $0x40] sm:$0xff] }
 0x152   :  { %5018 = vmatprep.subr.mxu1 %v6602_v48  ;;  %916 = vmatprep.mubr.f32.mxu0 %v9130_v1 }
 0x153   :  { %5019 = vmatpush3.msra.mxu1 %v6609_v0  ;;  %5039 = vmatprep.subr.mxu0 %v6338_v37  ;;  %v6649_v37 = vld [vmem:[%s9078_s1 + $0x28] sm:$0xff] }
 0x154   :  { %5020 = vmatprep.subr.mxu1 %v6616_v62 }
 0x155   :  { %5021 = vmatpush3.msra.mxu1 %v6623_v59 }
 0x156   :  { %5022 = vmatprep.subr.mxu1 %v6630_v57 }
 0x157   :  { %5023 = vmatpush3.msra.mxu1 %v6637_v54 }
 0x158   :  { %5024 = vmatprep.subr.mxu1 %v6643_v27 }
 0x159   :  { %5025 = vmatpush3.msra.mxu1 %v6649_v37 }
 0x15a   :  { %5026 = vmatprep.subr.mxu1 %v6655_v47 }
 0x15b   :  { %5027 = vmatpush3.msra.mxu1 %v6661_v52 }
 0x15c   :  { %561 = vmatmul.mubr.f32.vlgmr.msra.gmra.mxu1 %v6506_v35  ;;  %5287 = vmatprep.subr.mxu1 %v9130_v1  ;;  %v6707_v35 = vld [vmem:[%s9078_s1 + $0x328] sm:$0xff]  ;;  %s5716_s1 = smov 54  }
 0x15d   :  { %5288 = vmatpush3.msk.msra.mxu1 %vm344_vm2, %v6668_v36  ;;  %5301 = vmatprep.mubr.msk.f32.mxu1 %vm9052_vm9, %v9130_v1  ;;  %9136 = vst [vmem:[#allocation69_spill] sm:$0xff] %v6707_v35 }
 0x15e   :  { %5289 = vmatprep.subr.mxu1 %v9130_v1 }
 0x15f   :  { %5290 = vmatpush3.msra.mxu1 %v6676_v40 }
 0x160   :  { %5291 = vmatprep.subr.mxu1 %v9130_v1 }
 0x161   :  { %5292 = vmatpush3.msra.mxu1 %v6686_v33 }
 0x162   :  { %5293 = vmatprep.subr.mxu1 %v9130_v1 }
 0x163   :  { %5294 = vmatpush3.msra.mxu1 %v6693_v31 }
 0x164   :  { %5295 = vmatprep.subr.mxu1 %v9130_v1 }
 0x165   :  { %5296 = vmatpush3.msra.mxu1 %v6700_v30 }
 0x166   :  { %5297 = vmatprep.subr.mxu1 %v9130_v1 }
 0x167   :  { %5298 = vmatpush3.msra.mxu1 %v6707_v35 }
 0x168   :  { %5299 = vmatprep.subr.mxu1 %v9130_v1 }
 0x169   :  { %5300 = vmatpush3.msra.mxu1 %v6714_v28 }
 0x16a   :  { %5302 = vmatmul.mubr.msk.f32.vlgmr.msra.gmra.mxu1 %vm340_vm6, %v6453_v26  ;;  %781 = vmatprep.subr.mxu1 %v5896_v3  ;;  %v9138_v3 = vld [vmem:[#allocation14_spill] sm:$0xff]  ;;  %v9157_v26 = vld [vmem:[#allocation33_spill] sm:$0xff] }
 0x16b   :  { %782 = vmatpush1.msra.mxu1 %v5901_v4  ;;  %v9139_v4 = vld [vmem:[#allocation15_spill] sm:$0xff] }
 0x16c   :  { %783 = vmatprep.subr.mxu1 %v5907_v5  ;;  %v9140_v5 = vld [vmem:[#allocation16_spill] sm:$0xff] }
 0x16d   :  { %784 = vmatpush1.msra.mxu1 %v5912_v6  ;;  %v9141_v6 = vld [vmem:[#allocation17_spill] sm:$0xff] }
 0x16e   :  { %785 = vmatprep.subr.mxu1 %v5918_v7  ;;  %v9142_v7 = vld [vmem:[#allocation18_spill] sm:$0xff] }
 0x16f   :  { %786 = vmatpush1.msra.mxu1 %v5926_v8  ;;  %v9143_v8 = vld [vmem:[#allocation19_spill] sm:$0xff] }
 0x170   :  { %787 = vmatprep.subr.mxu1 %v5932_v9  ;;  %v9144_v9 = vld [vmem:[#allocation20_spill] sm:$0xff] }
 0x171   :  { %788 = vmatpush1.msra.mxu1 %v5938_v10  ;;  %v9145_v10 = vld [vmem:[#allocation21_spill] sm:$0xff] }
 0x172   :  { %789 = vmatprep.subr.mxu1 %v5944_v11  ;;  %v9146_v11 = vld [vmem:[#allocation22_spill] sm:$0xff] }
 0x173   :  { %790 = vmatpush1.msra.mxu1 %v5950_v12  ;;  %v9147_v12 = vld [vmem:[#allocation23_spill] sm:$0xff] }
 0x174   :  { %791 = vmatprep.subr.mxu1 %v5956_v13  ;;  %v9148_v13 = vld [vmem:[#allocation24_spill] sm:$0xff] }
 0x175   :  { %792 = vmatpush1.msra.mxu1 %v5962_v14  ;;  %v9149_v14 = vld [vmem:[#allocation25_spill] sm:$0xff] }
 0x176   :  { %793 = vmatprep.subr.mxu1 %v5968_v15  ;;  %v9150_v15 = vld [vmem:[#allocation26_spill] sm:$0xff] }
 0x177   :  { %794 = vmatpush1.msra.mxu1 %v5974_v16  ;;  %v9151_v16 = vld [vmem:[#allocation27_spill] sm:$0xff] }
 0x178   :  { %795 = vmatprep.subr.mxu1 %v5980_v17  ;;  %v9152_v17 = vld [vmem:[#allocation28_spill] sm:$0xff] }
 0x179   :  { %796 = vmatpush1.msra.mxu1 %v5986_v18  ;;  %v9153_v18 = vld [vmem:[#allocation29_spill] sm:$0xff] }
 0x17a   :  { %797 = vmatprep.subr.mxu1 %v5992_v19  ;;  %v9154_v19 = vld [vmem:[#allocation30_spill] sm:$0xff] }
 0x17b   :  { %798 = vmatpush1.msra.mxu1 %v5998_v20  ;;  %v9155_v20 = vld [vmem:[#allocation31_spill] sm:$0xff] }
 0x17c   :  { %799 = vmatprep.subr.mxu1 %v6004_v21  ;;  %v9156_v21 = vld [vmem:[#allocation32_spill] sm:$0xff] }
 0x17d   :  { %800 = vmatpush1.msra.mxu1 %v9138_v3  ;;  %v9158_v3 = vld [vmem:[#allocation34_spill] sm:$0xff] }
 0x17e   :  { %801 = vmatprep.subr.mxu1 %v9139_v4  ;;  %v9159_v4 = vld [vmem:[#allocation35_spill] sm:$0xff] }
 0x17f   :  { %802 = vmatpush1.msra.mxu1 %v9140_v5  ;;  %v9160_v5 = vld [vmem:[#allocation36_spill] sm:$0xff] }
 0x180   :  { %803 = vmatprep.subr.mxu1 %v9141_v6  ;;  %v9161_v6 = vld [vmem:[#allocation37_spill] sm:$0xff] }
 0x181   :  { %804 = vmatpush1.msra.mxu1 %v9142_v7  ;;  %v9162_v7 = vld [vmem:[#allocation38_spill] sm:$0xff] }
 0x182   :  { %805 = vmatprep.subr.mxu1 %v9143_v8  ;;  %v9163_v8 = vld [vmem:[#allocation39_spill] sm:$0xff] }
 0x183   :  { %806 = vmatpush1.msra.mxu1 %v9144_v9  ;;  %v9164_v9 = vld [vmem:[#allocation40_spill] sm:$0xff] }
 0x184   :  { %807 = vmatprep.subr.mxu1 %v9145_v10  ;;  %v9165_v10 = vld [vmem:[#allocation41_spill] sm:$0xff] }
 0x185   :  { %808 = vmatpush1.msra.mxu1 %v9146_v11  ;;  %v9166_v11 = vld [vmem:[#allocation42_spill] sm:$0xff] }
 0x186   :  { %809 = vmatprep.subr.mxu1 %v9147_v12  ;;  %v9167_v12 = vld [vmem:[#allocation43_spill] sm:$0xff] }
 0x187   :  { %810 = vmatpush1.msra.mxu1 %v9148_v13  ;;  %v9168_v13 = vld [vmem:[#allocation44_spill] sm:$0xff] }
 0x188   :  { %811 = vmatprep.subr.mxu1 %v9149_v14  ;;  %v9169_v14 = vld [vmem:[#allocation45_spill] sm:$0xff] }
 0x189   :  { %812 = vmatpush1.msra.mxu1 %v9150_v15  ;;  %v9170_v15 = vld [vmem:[#allocation46_spill] sm:$0xff] }
 0x18a   :  { %813 = vmatprep.subr.mxu1 %v9151_v16  ;;  %v9171_v16 = vld [vmem:[#allocation47_spill] sm:$0xff] }
 0x18b   :  { %814 = vmatpush2.msra.mxu1 %v9152_v17  ;;  %v9172_v17 = vld [vmem:[#allocation48_spill] sm:$0xff] }
 0x18c   :  { %815 = vmatprep.subr.mxu1 %v9153_v18  ;;  %v9173_v18 = vld [vmem:[#allocation49_spill] sm:$0xff] }
 0x18d   :  { %816 = vmatpush2.msra.mxu1 %v9154_v19  ;;  %v9174_v19 = vld [vmem:[#allocation50_spill] sm:$0xff] }
 0x18e   :  { %817 = vmatprep.subr.mxu1 %v9155_v20  ;;  %v9175_v20 = vld [vmem:[#allocation51_spill] sm:$0xff] }
 0x18f   :  { %818 = vmatpush2.msra.mxu1 %v9156_v21  ;;  %v9176_v21 = vld [vmem:[#allocation52_spill] sm:$0xff] }
 0x190   :  { %819 = vmatprep.subr.mxu1 %v9157_v26  ;;  %v9177_v26 = vld [vmem:[#allocation53_spill] sm:$0xff] }
 0x191   :  { %820 = vmatpush2.msra.mxu1 %v9158_v3  ;;  %v9178_v3 = vld [vmem:[#allocation54_spill] sm:$0xff] }
 0x192   :  { %821 = vmatprep.subr.mxu1 %v9159_v4  ;;  %v9179_v4 = vld [vmem:[#allocation55_spill] sm:$0xff] }
 0x193   :  { %822 = vmatpush2.msra.mxu1 %v9160_v5  ;;  %v9180_v5 = vld [vmem:[#allocation56_spill] sm:$0xff] }
 0x194   :  { %823 = vmatprep.subr.mxu1 %v9161_v6  ;;  %v9181_v6 = vld [vmem:[#allocation57_spill] sm:$0xff] }
 0x195   :  { %824 = vmatpush2.msra.mxu1 %v9162_v7  ;;  %v9182_v7 = vld [vmem:[#allocation58_spill] sm:$0xff] }
 0x196   :  { %825 = vmatprep.subr.mxu1 %v9163_v8 }
 0x197   :  { %826 = vmatpush2.msra.mxu1 %v9164_v9 }
 0x198   :  { %827 = vmatprep.subr.mxu1 %v9165_v10  ;;  %v9183_v10 = vld [vmem:[#allocation12_spill] sm:$0xff] }
 0x199   :  { %828 = vmatpush2.msra.mxu1 %v9166_v11 }
 0x19a   :  { %829 = vmatprep.subr.mxu1 %v9167_v12 }
 0x19b   :  { %830 = vmatpush2.msra.mxu1 %v9168_v13 }
 0x19c   :  { %831 = vmatprep.subr.mxu1 %v9169_v14  ;;  %v9184_v14 = vld [vmem:[#allocation11_spill] sm:$0xff] }
 0x19d   :  { %832 = vmatpush2.msra.mxu1 %v9170_v15 }
 0x19e   :  { %833 = vmatprep.subr.mxu1 %v9171_v16 }
 0x19f   :  { %834 = vmatpush2.msra.mxu1 %v9172_v17 }
 0x1a0   :  { %835 = vmatprep.subr.mxu1 %v9173_v18 }
 0x1a1   :  { %836 = vmatpush2.msra.mxu1 %v9174_v19 }
 0x1a2   :  { %837 = vmatprep.subr.mxu1 %v9175_v20 }
 0x1a3   :  { %838 = vmatpush2.msra.mxu1 %v9176_v21 }
 0x1a4   :  { %839 = vmatprep.subr.mxu1 %v9177_v26 }
 0x1a5   :  { %840 = vmatpush2.msra.mxu1 %v9178_v3 }
 0x1a6   :  { %841 = vmatprep.subr.mxu1 %v9179_v4 }
 0x1a7   :  { %842 = vmatpush2.msra.mxu1 %v9180_v5 }
 0x1a8   :  { %843 = vmatprep.subr.mxu1 %v9181_v6 }
 0x1a9   :  { %844 = vmatpush2.msra.mxu1 %v9182_v7 }
 0x1fb   :  { %v491_v8 = vpop.f32.mrf.mxu1 }
 0x1fd   :  { %v493_v16 = vpop.f32.mrf.mxu1 }
 0x204   :  { %v420_v9 = vpop.f32.mrf.mxu0 }
 0x205   :  { %v421_v11 = vadd.f32 %v420_v9, %v9183_v10 }
 0x206   :  { %v422_v12 = vpop.f32.mrf.mxu0 }
 0x207   :  { %v492_v13 = vadd.f32 %v491_v8, %v421_v11  ;;  %v423_v15 = vadd.f32 %v422_v12, %v9184_v14  ;;  %v9187_v11 = vld [vmem:[#allocation13_spill] sm:$0xff] }
 0x209   :  { %v639_v17 = vmin.f32 %v492_v13, 0.0  ;;  %v494_v18 = vadd.f32 %v493_v16, %v423_v15  ;;  %vm636_vm11 = vcmp.gt.f32.partialorder %v492_v13, 0.0 }
 0x20b   :  { %v642_v19 = vmul.f32 1.442695, %v639_v17  ;;  %v640_v20 = vmin.f32 %v494_v18, 0.0  ;;  %vm637_vm10 = vcmp.gt.f32.partialorder %v494_v18, 0.0 }
 0x20d   :  { %v644_v21 = vmul.f32 1.442695, %v640_v20  ;;  %5596 = vpow2.f32 %v642_v19 }
 0x20f   :  { %5598 = vpow2.f32 %v644_v21 }
 0x21a   :  { %v5597_v26 = vpop.eup %5596 }
 0x21b   :  { %v4899_v7 = vadd.f32 -1.0, %v5597_v26 }
 0x21c   :  { %v5599_v3 = vpop.eup %5598  ;;  %v5028_v5 = vpop.f32.mrf.mxu1 }
 0x21d   :  { %v4900_v4 = vadd.f32 -1.0, %v5599_v3  ;;  %v6791_v9 = vsel %vm636_vm11, %v492_v13, %v4899_v7  ;;  %vm1125_vm11 = vcmask 982480  }
 0x21e   :  { %v5029_v8 = vpop.f32.mrf.mxu1  ;;  %9186 = vst [vmem:[#allocation15_spill] sm:$0xff] %v6791_v9 }
 0x21f   :  { %v6787_v6 = vsel %vm637_vm10, %v494_v18, %v4900_v4  ;;  %v5030_v10 = vadd.f32 %v5029_v8, %v5028_v5 }
 0x220   :  { %9185 = vst [vmem:[#allocation14_spill] sm:$0xff] %v6787_v6  ;;  %659 = vrot.lane.b32.xlu1 %v6787_v6, %s5711_s4 }
 0x221   :  { %v563_v12 = vadd.f32 %v5030_v10, %v9187_v11  ;;  %v1228_v10 = vld [vmem:[%s9189_s25 + $0x58] sm:$0x7f]  ;;  %v687_v11 = vsub.s32 5, %v6397_v2 }
 0x222   :  { %1339 = vmatprep.subr.mxu1 %v1228_v10 }
 0x224   :  { %657 = vrot.lane.b32.xlu1 %v6791_v9, %s5711_s4 }
 0x22a   :  { %v632_v14 = vpop.f32.mrf.mxu1 }
 0x22b   :  { %v633_v15 = vadd.f32 %v632_v14, %v563_v12  ;;  %v672_v12 = vsub.s32 4, %v6397_v2  ;;  %v718_v14 = vsub.s32 6, %v6397_v2 }
 0x22c   :  { %v5303_v16 = vpop.f32.mrf.mxu1 }
 0x22d   :  { %v641_v17 = vmin.f32 %v633_v15, 0.0  ;;  %vm638_vm12 = vcmp.gt.f32.partialorder %v633_v15, 0.0  ;;  %v696_v16 = vrot.slane %v6405_v45, %v687_v11  ;;  %v673_v32 = vrot.slane %v6423_v39, %v672_v12 }
 0x22f   :  { %v646_v18 = vmul.f32 1.442695, %v641_v17  ;;  %v727_v17 = vrot.slane %v6405_v45, %v718_v14 }
 0x231   :  { %5600 = vpow2.f32 %v646_v18 }
 0x23e   :  { %v5601_v19 = vpop.eup %5600 }
 0x23f   :  { %v4901_v20 = vadd.f32 -1.0, %v5601_v19 }
 0x241   :  { %v6796_v21 = vsel %vm638_vm12, %v633_v15, %v4901_v20  ;;  %v681_v15 = vrot.slane %v6405_v45, %v672_v12  ;;  %vm1135_vm12 = vcmask 949680  }
 0x242   :  { %9188 = vst [vmem:[#allocation16_spill] sm:$0xff] %v6796_v21  ;;  %661 = vrot.lane.b32.xlu0 %v6796_v21, %s5711_s4 }
 0x292   :  { %v660_v13 = vpop.permute.xlu1 %659 }
 0x296   :  { %v658_v5 = vpop.permute.xlu1 %657 }
 0x297   :  { %v668_v7 = vsel %vm221_vm1, 0.0, %v658_v5  ;;  %v663_v8 = vsel %vm221_vm1, %v658_v5, %v660_v13 }
 0x2b4   :  { %v662_v26 = vpop.permute.xlu0 %661 }
 0x2b5   :  { %v664_v3 = vsel %vm221_vm1, %v660_v13, %v662_v26  ;;  %v692_v26 = vrot.slane %v6428_v38, %v687_v11 }
 0x2b6   :  { %v669_v4 = vsel %vm228_vm0, %v664_v3, 0.0  ;;  %v688_v3 = vrot.slane %v6423_v39, %v687_v11  ;;  %vm1185_vm0 = vcmask 277504  }
 0x2b7   :  { %703 = vrot.lane.b32.xlu0 %v669_v4, %s5713_s27  ;;  %732 = vrot.lane.b32.xlu1 %v669_v4, %s5712_s6  ;;  %v684_v20 = vmul.f32 %v681_v15, %v669_v4  ;;  %v723_v15 = vrot.slane %v6428_v38, %v718_v14 }
 0x2bb   :  { %699 = vrot.lane.b32.xlu1 %v668_v7, %s5713_s27  ;;  %701 = vrot.lane.b32.xlu0 %v663_v8, %s5713_s27 }
 0x2bf   :  { %728 = vrot.lane.b32.xlu1 %v668_v7, %s5712_s6  ;;  %730 = vrot.lane.b32.xlu0 %v663_v8, %s5712_s6 }
 0x2c3   :  { %1083 = vrot.lane.b32.xlu1 %v6787_v6, %s5716_s1  ;;  %1081 = vrot.lane.b32.xlu0 %v6791_v9, %s5716_s1 }
 0x2c7   :  { %1085 = vrot.lane.b32.xlu0 %v6796_v21, %s5716_s1  ;;  %v677_v21 = vrot.slane %v6428_v38, %v672_v12  ;;  %s9208_s1 = sld [smem:[#allocation78_spill]] }
 0x329   :  { %v704_v18 = vpop.permute.xlu0 %703  ;;  %v733_v19 = vpop.permute.xlu1 %732 }
 0x32a   :  { %v712_v13 = vmul.f32 %v704_v18, %v696_v16  ;;  %v741_v10 = vmul.f32 %v733_v19, %v727_v17  ;;  %v719_v16 = vrot.slane %v6423_v39, %v718_v14  ;;  %v683_v17 = vmul.f32 %v677_v21, %v663_v8 }
 0x32c   :  { %v715_v5 = vadd.f32 %v712_v13, %v684_v20  ;;  %v682_v20 = vmul.f32 %v673_v32, %v668_v7  ;;  %v765_v32 = vsub.s32 7, %v6397_v2  ;;  %v7517_v2 = vld [vmem:[%s9208_s1 + $0x68] sm:$0xff] }
 0x32d   :  { %v702_v6 = vpop.permute.xlu0 %701  ;;  %v700_v9 = vpop.permute.xlu1 %699  ;;  %9225 = vst [vmem:[#allocation39_spill] sm:$0xff] %v7517_v2 }
 0x32e   :  { %v744_v28 = vadd.f32 %v741_v10, %v715_v5  ;;  %v706_v35 = vsel %vm265_vm3, %v702_v6, %v704_v18  ;;  %v705_v30 = vsel %vm265_vm3, %v700_v9, %v702_v6  ;;  %v774_v7 = vrot.slane %v6405_v45, %v765_v32 }
 0x32f   :  { %v711_v31 = vmul.f32 %v706_v35, %v692_v26  ;;  %v710_v4 = vmul.f32 %v705_v30, %v688_v3 }
 0x330   :  { %v750_v11 = vmin.f32 %v744_v28, 0.0  ;;  %vm747_vm13 = vcmp.gt.f32.partialorder %v744_v28, 0.0 }
 0x331   :  { %v731_v13 = vpop.permute.xlu0 %730  ;;  %v729_v33 = vpop.permute.xlu1 %728  ;;  %v714_v10 = vadd.f32 %v711_v31, %v683_v17  ;;  %v713_v18 = vadd.f32 %v710_v4, %v682_v20 }
 0x332   :  { %v755_v40 = vmul.f32 1.442695, %v750_v11  ;;  %v735_v12 = vsel %vm295_vm4, %v731_v13, %v733_v19  ;;  %v734_v5 = vsel %vm295_vm4, %v729_v33, %v731_v13 }
 0x333   :  { %v740_v36 = vmul.f32 %v735_v12, %v723_v15  ;;  %v739_v6 = vmul.f32 %v734_v5, %v719_v16  ;;  %v766_v15 = vrot.slane %v6423_v39, %v765_v32  ;;  %v1227_v39 = vld [vmem:[%s9189_s25 + $0x50] sm:$0x7f] }
 0x334   :  { %5602 = vpow2.f32 %v755_v40  ;;  %v770_v40 = vrot.slane %v6428_v38, %v765_v32 }
 0x335   :  { %v743_v30 = vadd.f32 %v740_v36, %v714_v10  ;;  %v742_v35 = vadd.f32 %v739_v6, %v713_v18  ;;  %v1082_v11 = vpop.permute.xlu0 %1081  ;;  %v6960_v6 = vld [vmem:[%s9189_s25 + $0x28] sm:$0xff] }
 0x337   :  { %v749_v9 = vmin.f32 %v743_v30, 0.0  ;;  %v748_v26 = vmin.f32 %v742_v35, 0.0  ;;  %vm746_vm14 = vcmp.gt.f32.partialorder %v743_v30, 0.0  ;;  %vm745_vm15 = vcmp.gt.f32.partialorder %v742_v35, 0.0 }
 0x339   :  { %v753_v14 = vmul.f32 1.442695, %v749_v9  ;;  %v751_v3 = vmul.f32 1.442695, %v748_v26  ;;  %v1231_v9 = vld [vmem:[%s9189_s25 + $0x70] sm:$0x7f] }
 0x33a   :  { %v6979_v26 = vld [vmem:[%s9189_s25 + $0x38] sm:$0xff] }
 0x33b   :  { %5604 = vpow2.f32 %v753_v14 }
 0x33c   :  { %5606 = vpow2.f32 %v751_v3 }
 0x341   :  { %v5603_v21 = vpop.eup %5602 }
 0x342   :  { %v4904_v8 = vadd.f32 -1.0, %v5603_v21  ;;  %v6987_v21 = vld [vmem:[%s9189_s25 + $0x30] sm:$0xff] }
 0x344   :  { %v762_v33 = vsel %vm747_vm13, %v744_v28, %v4904_v8  ;;  %vm1146_vm13 = vcmask 916880  }
 0x345   :  { %v6834_v31 = vmul.f32 %v774_v7, %v762_v33 }
 0x347   :  { %4907 = vmatmul.mubr.msk.f32.vlgmr.msra.gmra.mxu0 %vm340_vm6, %v6834_v31 }
 0x348   :  { %v5605_v36 = vpop.eup %5604  ;;  %5040 = vmatpush3.msra.mxu0 %v6458_v24 }
 0x349   :  { %v5607_v19 = vpop.eup %5606  ;;  %5041 = vmatprep.subr.mxu0 %v6463_v22  ;;  %v4903_v4 = vadd.f32 -1.0, %v5605_v36  ;;  %v6846_v22 = vpop.permute.xlu1 %1083 }
 0x34a   :  { %5042 = vmatpush3.msra.mxu0 %v6470_v23  ;;  %v4902_v45 = vadd.f32 -1.0, %v5607_v19  ;;  %v6857_v23 = vld [vmem:[%s9189_s25 + $0x18] sm:$0xff]  ;;  %v9201_v19 = vld [vmem:[#allocation16_spill] sm:$0xff] }
 0x34b   :  { %5043 = vmatprep.subr.mxu0 %v6476_v29  ;;  %v761_v28 = vsel %vm746_vm14, %v743_v30, %v4903_v4  ;;  %v6861_v29 = vsel %vm340_vm6, %v1082_v11, %v6846_v22  ;;  %v6965_v30 = vld [vmem:[%s9189_s25 + $0x20] sm:$0xff]  ;;  %vm1114_vm14 = vcmask 1015280  }
 0x34c   :  { %5044 = vmatpush3.msra.mxu0 %v6484_v50  ;;  %v776_v16 = vmul.f32 %v770_v40, %v761_v28  ;;  %v760_v24 = vsel %vm745_vm15, %v742_v35, %v4902_v45  ;;  %9190 = vst [vmem:[#allocation17_spill] sm:$0xff] %v6861_v29  ;;  %v6869_v50 = vld [vmem:[%s9189_s25 + $0x10] sm:$0xff]  ;;  %v1232_v35 = vld [vmem:[%s9189_s25 + $0x78] sm:$0x7f]  ;;  %vm1129_vm15 = vcmask 1048512  }
 0x34d   :  { %5045 = vmatprep.subr.mxu0 %v6492_v44  ;;  %v775_v38 = vmul.f32 %v766_v15, %v760_v24  ;;  %v5654_v44 = vld [vmem:[%s9074_s29 + $0x10] sm:$0xff] }
 0x34e   :  { %5046 = vmatpush3.msra.mxu0 %v6498_v46  ;;  %845 = vmatprep.mubr.f32.mxu1 %v776_v16  ;;  %v6881_v46 = vsel %vm340_vm6, %v5654_v44, %v1082_v11 }
 0x34f   :  { %5047 = vmatprep.subr.mxu0 %v6504_v41  ;;  %987 = vmatprep.mubr.f32.mxu0 %v776_v16  ;;  %9191 = vst [vmem:[#allocation18_spill] sm:$0xff] %v6881_v46  ;;  %v9192_v41 = vld [vmem:[#allocation64_spill] sm:$0xff] }
 0x350   :  { %846 = vmatmul.mubr.f32.vlgmr.msra.gmra.mxu1 %v775_v38  ;;  %5048 = vmatpush3.msra.mxu0 %v6513_v51  ;;  %v9193_v51 = vld [vmem:[#allocation65_spill] sm:$0xff] }
 0x351   :  { %1340 = vmatpush1.xpose.msra.mxu1 %v1227_v39  ;;  %5049 = vmatprep.subr.mxu0 %v6519_v34  ;;  %v9194_v34 = vld [vmem:[#allocation66_spill] sm:$0xff] }
 0x352   :  { %1375 = vmatprep.mubr.f32.mxu1 %v6861_v29  ;;  %5050 = vmatpush3.msra.mxu0 %v6525_v49  ;;  %v9195_v49 = vld [vmem:[#allocation67_spill] sm:$0xff] }
 0x353   :  { %5051 = vmatprep.subr.mxu0 %v6531_v56  ;;  %1341 = vmatprep.subr.mxu1 %v6857_v23  ;;  %v9196_v56 = vld [vmem:[#allocation68_spill] sm:$0xff] }
 0x354   :  { %5052 = vmatpush3.msra.mxu0 %v6539_v25  ;;  %v9197_v25 = vld [vmem:[#allocation69_spill] sm:$0xff] }
 0x355   :  { %1342 = vmatpush1.xpose.msra.mxu1 %v6869_v50  ;;  %5053 = vmatprep.subr.mxu0 %v6546_v43  ;;  %v1226_v43 = vld [vmem:[%s9189_s25 + $0x48] sm:$0x7f] }
 0x356   :  { %5054 = vmatpush3.msra.mxu0 %v6553_v53  ;;  %v1225_v53 = vld [vmem:[%s9189_s25 + $0x40] sm:$0x7f]  ;;  %4913 = vmatprep.subr.msk.mxu1 %vm1185_vm0, %v1232_v35 }
 0x357   :  { %5055 = vmatprep.subr.mxu0 %v6560_v55  ;;  %v9198_v55 = vld [vmem:[#allocation70_spill] sm:$0xff] }
 0x358   :  { %1376 = vmatmul.mubr.f32.vlgmr.msra.gmra.mxu1 %v6881_v46  ;;  %5056 = vmatpush3.msra.mxu0 %v6567_v58  ;;  %v6926_v58 = vld [vmem:[%s9189_s25 + $0x8] sm:$0xff] }
 0x359   :  { %5057 = vmatprep.subr.mxu0 %v6574_v60  ;;  %v6933_v60 = vld [vmem:[%s9074_s29 + $0x8] sm:$0xff]  ;;  %1480 = vmatpush1.xpose.msra.mxu1 %v1231_v9 }
 0x35a   :  { %5058 = vmatpush3.msra.mxu0 %v6581_v61  ;;  %v6940_v61 = vld [vmem:[%s9189_s25] sm:$0xff]  ;;  %4914 = vmatprep.subr.msk.mxu1 %vm1185_vm0, %v6979_v26 }
 0x35b   :  { %5059 = vmatprep.subr.mxu0 %v6588_v63  ;;  %v6946_v63 = vld [vmem:[%s9074_s29] sm:$0xff] }
 0x35c   :  { %5060 = vmatpush3.msra.mxu0 %v6595_v42  ;;  %v1230_v42 = vld [vmem:[%s9189_s25 + $0x68] sm:$0x7f]  ;;  %v1111_v44 = vsel %vm9014_vm5, %v6946_v63, -inf  ;;  %vm1524_vm5 = vcmask 121856  }
 0x35d   :  { %5061 = vmatprep.subr.mxu0 %v6602_v48  ;;  %v1229_v48 = vld [vmem:[%s9189_s25 + $0x60] sm:$0x7f]  ;;  %1482 = vmatpush1.xpose.msra.mxu1 %v6987_v21 }
 0x35e   :  { %5062 = vmatpush3.msra.mxu0 %v6609_v0  ;;  %5321 = vmatprep.subr.mxu1 %v9130_v1 }
 0x35f   :  { %5063 = vmatprep.subr.mxu0 %v6616_v62 }
 0x360   :  { %5064 = vmatpush3.msra.mxu0 %v6623_v59  ;;  %v9199_v59 = vld [vmem:[#allocation15_spill] sm:$0xff] }
 0x361   :  { %5065 = vmatprep.subr.mxu0 %v6630_v57 }
 0x362   :  { %5066 = vmatpush3.msra.mxu0 %v6637_v54 }
 0x363   :  { %5067 = vmatprep.subr.mxu0 %v6643_v27 }
 0x364   :  { %5068 = vmatpush3.msra.mxu0 %v6649_v37  ;;  %v9200_v37 = vld [vmem:[#allocation14_spill] sm:$0xff] }
 0x365   :  { %5069 = vmatprep.subr.mxu0 %v6655_v47 }
 0x366   :  { %5070 = vmatpush3.msra.mxu0 %v6661_v52 }
 0x367   :  { %988 = vmatmul.mubr.f32.vlgmr.msra.gmra.mxu0 %v775_v38  ;;  %5304 = vmatprep.subr.mxu0 %v9130_v1 }
 0x368   :  { %5305 = vmatpush3.msk.msra.mxu0 %vm344_vm2, %v9192_v41  ;;  %5318 = vmatprep.mubr.msk.f32.mxu0 %vm9052_vm9, %v9130_v1  ;;  %v1119_v41 = vsel %vm1118_vm7, %v6946_v63, -inf  ;;  %vm1101_vm7 = vcmask 883712  }
 0x369   :  { %5306 = vmatprep.subr.mxu0 %v9130_v1 }
 0x36a   :  { %5307 = vmatpush3.msra.mxu0 %v9193_v51  ;;  %v1121_v51 = vsel %vm1120_vm8, %v6933_v60, -inf  ;;  %vm1157_vm8 = vcmask 884080  }
 0x36b   :  { %5308 = vmatprep.subr.mxu0 %v9130_v1 }
 0x36c   :  { %5309 = vmatpush3.msra.mxu0 %v9194_v34 }
 0x36d   :  { %5310 = vmatprep.subr.mxu0 %v9130_v1 }
 0x36e   :  { %5311 = vmatpush3.msra.mxu0 %v9195_v49 }
 0x36f   :  { %5312 = vmatprep.subr.mxu0 %v9130_v1 }
 0x370   :  { %5313 = vmatpush3.msra.mxu0 %v9196_v56  ;;  %v1122_v56 = vmax.f32 %v1119_v41, %v1121_v51 }
 0x371   :  { %5314 = vmatprep.subr.mxu0 %v9130_v1 }
 0x372   :  { %5315 = vmatpush3.msra.mxu0 %v9197_v25 }
 0x373   :  { %5316 = vmatprep.subr.mxu0 %v9130_v1 }
 0x374   :  { %5317 = vmatpush3.msra.mxu0 %v9198_v55  ;;  %v1147_v55 = vsel %vm1146_vm13, %v6861_v29, -inf  ;;  %vm1168_vm13 = vcmask 851280  }
 0x375   :  { %5319 = vmatmul.mubr.msk.f32.vlgmr.msra.gmra.mxu0 %vm340_vm6, %v6834_v31  ;;  %1269 = vmatprep.subr.mxu0 %v1226_v43  ;;  %v1126_v43 = vsel %vm1125_vm11, %v6933_v60, -inf  ;;  %vm1152_vm11 = vcmask 375808  }
 0x376   :  { %1270 = vmatpush1.xpose.msra.mxu0 %v1225_v53  ;;  %1305 = vmatprep.mubr.f32.mxu0 %v6933_v60  ;;  %v1136_v53 = vsel %vm1135_vm12, %v6881_v46, -inf  ;;  %vm1163_vm12 = vcmask 343040  }
 0x377   :  { %1271 = vmatprep.subr.mxu0 %v6926_v58 }
 0x37a   :  { %1272 = vmatpush1.xpose.msra.mxu0 %v6940_v61 }
 0x37b   :  { %1409 = vmatprep.subr.mxu0 %v1230_v42  ;;  %v1115_v42 = vsel %vm1114_vm14, %v6946_v63, -inf  ;;  %vm1161_vm14 = vcmask 1048416  }
 0x37d   :  { %1306 = vmatmul.mubr.f32.vlgmr.msra.gmra.mxu0 %v6946_v63 }
 0x37e   :  { %1410 = vmatpush1.xpose.msra.mxu0 %v1229_v48  ;;  %v1130_v48 = vsel %vm1129_vm15, %v6933_v60, -inf  ;;  %vm1172_vm15 = vcmask 1048384  }
 0x37f   :  { %1411 = vmatprep.subr.mxu0 %v6960_v6 }
 0x382   :  { %1412 = vmatpush1.xpose.msra.mxu0 %v6965_v30 }
 0x383   :  { %5335 = vmatprep.subr.mxu0 %v9130_v1 }
 0x407   :  { %v918_v0 = vpop.f32.mrf.mxu0 }
 0x409   :  { %v920_v52 = vpop.f32.mrf.mxu0 }
 0x410   :  { %v847_v62 = vpop.f32.mrf.mxu1 }
 0x411   :  { %v848_v57 = vadd.f32 %v847_v62, %v9199_v59 }
 0x412   :  { %v849_v54 = vpop.f32.mrf.mxu1 }
 0x413   :  { %v919_v27 = vadd.f32 %v918_v0, %v848_v57  ;;  %v850_v47 = vadd.f32 %v849_v54, %v9200_v37  ;;  %v1131_v0 = vsel %vm340_vm6, %v6881_v46, -inf }
 0x414   :  { %v1132_v62 = vmax.f32 %v1130_v48, %v1131_v0 }
 0x415   :  { %v1066_v20 = vmin.f32 %v919_v27, 0.0  ;;  %v921_v17 = vadd.f32 %v920_v52, %v850_v47  ;;  %vm1063_vm3 = vcmp.gt.f32.partialorder %v919_v27, 0.0 }
 0x417   :  { %v1069_v13 = vmul.f32 1.442695, %v1066_v20  ;;  %v1067_v12 = vmin.f32 %v921_v17, 0.0  ;;  %vm1064_vm4 = vcmp.gt.f32.partialorder %v921_v17, 0.0 }
 0x418   :  { %v1377_v5 = vpop.f32.mrf.mxu1 }
 0x419   :  { %5608 = vpow2.f32 %v1069_v13  ;;  %v1071_v10 = vmul.f32 1.442695, %v1067_v12 }
 0x41a   :  { %v1379_v18 = vpop.f32.mrf.mxu1 }
 0x41b   :  { %5610 = vpow2.f32 %v1071_v10 }
 0x426   :  { %v5609_v14 = vpop.eup %5608 }
 0x427   :  { %v4910_v3 = vadd.f32 -1.0, %v5609_v14  ;;  %v5071_v7 = vpop.f32.mrf.mxu0 }
 0x428   :  { %v5611_v32 = vpop.eup %5610 }
 0x429   :  { %v1078_v8 = vsel %vm1063_vm3, %v919_v27, %v4910_v3  ;;  %v4911_v33 = vadd.f32 -1.0, %v5611_v32  ;;  %v5072_v36 = vpop.f32.mrf.mxu0  ;;  %vm1139_vm3 = vcmask 1048480   ;;  %v1086_v27 = vpop.permute.xlu0 %1085 }
 0x42a   :  { %1095 = vrot.lane.b32.xlu1 %v1078_v8, %s5717_s7  ;;  %v5073_v40 = vadd.f32 %v5072_v36, %v5071_v7  ;;  %v1140_v59 = vsel %vm1139_vm3, %v6881_v46, -inf  ;;  %v1088_v37 = vsel %vm340_vm6, %v6846_v22, %v1086_v27  ;;  %vm1179_vm6 = vcmask 818480  }
 0x42b   :  { %v1079_v31 = vsel %vm1064_vm4, %v921_v17, %v4911_v33  ;;  %vm1141_vm4 = vcmask 408576   ;;  %vm1174_vm3 = vcmask 310272  }
 0x42c   :  { %1097 = vrot.lane.b32.xlu0 %v1079_v31, %s5717_s7  ;;  %v990_v4 = vadd.f32 %v5073_v40, %v9201_v19  ;;  %v1142_v57 = vsel %vm1141_vm4, %v6861_v29, -inf  ;;  %vm1183_vm4 = vcmask 1048352   ;;  %v1523_v19 = vld [vmem:[%s9206_s3 + $0x8] sm:$0x7f] }
 0x42d   :  { %v1143_v54 = vmax.f32 %v1140_v59, %v1142_v57 }
 0x435   :  { %v1059_v15 = vpop.f32.mrf.mxu0 }
 0x436   :  { %v1060_v45 = vadd.f32 %v1059_v15, %v990_v4  ;;  %v1522_v4 = vld [vmem:[%s9206_s3] sm:$0xff]  ;;  %s5735_s3 = smov 70  }
 0x437   :  { %v5320_v28 = vpop.f32.mrf.mxu0 }
 0x438   :  { %v1068_v16 = vmin.f32 %v1060_v45, 0.0  ;;  %vm1065_vm10 = vcmp.gt.f32.partialorder %v1060_v45, 0.0 }
 0x43a   :  { %v1073_v24 = vmul.f32 1.442695, %v1068_v16 }
 0x43c   :  { %5612 = vpow2.f32 %v1073_v24 }
 0x43d   :  { %v1307_v38 = vpop.f32.mrf.mxu0 }
 0x43e   :  { %v6994_v11 = vadd.f32 %v1377_v5, %v1307_v38 }
 0x43f   :  { %v1309_v39 = vpop.f32.mrf.mxu0 }
 0x449   :  { %v5613_v34 = vpop.eup %5612 }
 0x44a   :  { %v4912_v49 = vadd.f32 -1.0, %v5613_v34 }
 0x44b   :  { %1112 = vmax.xlane.f32.xlu0 %v1111_v44 }
 0x44c   :  { %v1080_v25 = vsel %vm1065_vm10, %v1060_v45, %v4912_v49  ;;  %vm1150_vm10 = vcmask 1048448  }
 0x44d   :  { %1099 = vrot.lane.b32.xlu1 %v1080_v25, %s5717_s7  ;;  %v1151_v13 = vsel %vm1150_vm10, %v6861_v29, -inf  ;;  %vm9054_vm10 = vcmask 23552   ;;  %s5744_s7 = smov 24  }
 0x44f   :  { %1123 = vmax.xlane.f32.xlu0 %v1122_v56 }
 0x453   :  { %1127 = vmax.xlane.f32.xlu0 %v1126_v43 }
 0x457   :  { %1137 = vmax.xlane.f32.xlu0 %v1136_v53 }
 0x45b   :  { %1148 = vmax.xlane.f32.xlu0 %v1147_v55 }
 0x471   :  { %1116 = vmax.xlane.f32.xlu1 %v1115_v42 }
 0x475   :  { %1133 = vmax.xlane.f32.xlu1 %v1132_v62 }
 0x479   :  { %1144 = vmax.xlane.f32.xlu1 %v1143_v54 }
 0x49c   :  { %v1096_v47 = vpop.permute.xlu1 %1095 }
 0x49d   :  { %v7013_v52 = vsel %vm1101_vm7, %v1088_v37, %v1096_v47 }
 0x49e   :  { %9202 = vst [vmem:[#allocation19_spill] sm:$0xff] %v7013_v52  ;;  %v1098_v20 = vpop.permute.xlu0 %1097  ;;  %v1158_v17 = vsel %vm1157_vm8, %v7013_v52, -inf  ;;  %v1153_v12 = vsel %vm1152_vm11, %v7013_v52, -inf  ;;  %v1162_v35 = vsel %vm1161_vm14, %v7013_v52, -inf  ;;  %vm1191_vm8 = vcmask 15360  }
 0x49f   :  { %v7019_v5 = vsel %vm1101_vm7, %v1096_v47, %v1098_v20  ;;  %1159 = vmax.xlane.f32.xlu0 %v1158_v17  ;;  %v1154_v10 = vmax.f32 %v1151_v13, %v1153_v12  ;;  %vm1195_vm11 = vcmask 31744   ;;  %vm1201_vm14 = vcmask 56320  }
 0x4a0   :  { %9203 = vst [vmem:[#allocation20_spill] sm:$0xff] %v7019_v5  ;;  %1445 = vmatprep.mubr.f32.mxu0 %v7019_v5  ;;  %v1164_v22 = vsel %vm1163_vm12, %v7019_v5, -inf  ;;  %v1169_v18 = vsel %vm1168_vm13, %v7019_v5, -inf  ;;  %v1173_v7 = vsel %vm1172_vm15, %v7019_v5, -inf  ;;  %vm1197_vm12 = vcmask 39936  }
 0x4a1   :  { %1446 = vmatmul.mubr.f32.vlgmr.msra.gmra.mxu0 %v7013_v52  ;;  %1155 = vmax.xlane.f32.xlu1 %v1154_v10  ;;  %v1165_v9 = vmax.f32 %v1162_v35, %v1164_v22  ;;  %vm1199_vm13 = vcmask 48128   ;;  %vm1205_vm15 = vcmask 72704  }
 0x4a2   :  { %5337 = vmatprep.mubr.msk.f32.mxu0 %vm9052_vm9, %v9130_v1 }
 0x4a3   :  { %1170 = vmax.xlane.f32.xlu0 %v1169_v18 }
 0x4a5   :  { %1166 = vmax.xlane.f32.xlu1 %v1165_v9 }
 0x4bf   :  { %v7028_v14 = vpop.permute.xlu1 %1099 }
 0x4c0   :  { %9204 = vst [vmem:[#allocation21_spill] sm:$0xff] %v7028_v14  ;;  %v7032_v3 = vsel %vm1101_vm7, %v1098_v20, %v7028_v14  ;;  %4915 = vmatprep.mubr.msk.f32.mxu1 %vm1185_vm0, %v7028_v14  ;;  %v1186_v36 = vsel %vm1185_vm0, %v7028_v14, -inf  ;;  %vm1528_vm7 = vcmask 1046528  }
 0x4c1   :  { %9205 = vst [vmem:[#allocation22_spill] sm:$0xff] %v7032_v3  ;;  %1516 = vmatmul.mubr.f32.vlgmr.msra.gmra.mxu1 %v7032_v3  ;;  %v1180_v32 = vsel %vm1179_vm6, %v7032_v3, -inf  ;;  %v1175_v8 = vsel %vm1174_vm3, %v7032_v3, -inf  ;;  %v1184_v31 = vsel %vm1183_vm4, %v7032_v3, -inf  ;;  %vm1203_vm6 = vcmask 64512  }
 0x4c2   :  { %1181 = vmax.xlane.f32.xlu0 %v1180_v32  ;;  %v1176_v33 = vmax.f32 %v1173_v7, %v1175_v8  ;;  %5325 = vmatprep.mubr.msk.f32.mxu1 %vm9052_vm9, %v9130_v1  ;;  %v1187_v40 = vmax.f32 %v1184_v31, %v1186_v36  ;;  %vm1207_vm3 = vcmask 80896   ;;  %vm1209_vm4 = vcmask 89088   ;;  %v1603_v32 = vld [vmem:[%s9207_s5] sm:$0x7]  ;;  %s5741_s5 = smov 20  }
 0x4c3   :  { %5322 = vmatpush3.msk.msra.mxu1 %vm1528_vm7, %v1523_v19 }
 0x4c4   :  { %1177 = vmax.xlane.f32.xlu1 %v1176_v33  ;;  %5323 = vmatprep.subr.mxu1 %v9130_v1 }
 0x4c5   :  { %5324 = vmatpush3.msra.mxu1 %v1522_v4 }
 0x4c6   :  { %5328 = vmatprep.subr.mxu1 %v9130_v1 }
 0x4c8   :  { %1188 = vmax.xlane.f32.xlu1 %v1187_v40  ;;  %v1844_v40 = vld [vmem:[%s9189_s25 + $0x48] sm:$0x7f] }
 0x4d4   :  { %v1113_v15 = vpop.xlane.xlu0 %1112 }
 0x4d8   :  { %v1124_v45 = vpop.xlane.xlu0 %1123 }
 0x4dc   :  { %v1128_v24 = vpop.xlane.xlu0 %1127 }
 0x4e0   :  { %v1138_v41 = vpop.xlane.xlu0 %1137 }
 0x4e4   :  { %v1149_v25 = vpop.xlane.xlu0 %1148 }
 0x4fa   :  { %v1117_v28 = vpop.xlane.xlu1 %1116 }
 0x4fb   :  { %v1190_v16 = vsel %vm221_vm1, %v1113_v15, %v1117_v28  ;;  %v1845_v15 = vld [vmem:[%s9189_s25 + $0x50] sm:$0x7f]  ;;  %v1850_v28 = vld [vmem:[%s9189_s25 + $0x78] sm:$0x7f] }
 0x4fc   :  { %v1192_v39 = vsel %vm1191_vm8, %v1190_v16, %v1124_v45  ;;  %vm1211_vm8 = vcmask 97280   ;;  %v1848_v45 = vld [vmem:[%s9189_s25 + $0x68] sm:$0x7f]  ;;  %v5718_v16 = vmov 2  }
 0x4fd   :  { %v1194_v44 = vsel %vm9054_vm10, %v1192_v39, %v1128_v24  ;;  %5575 = vset.pattern.permute.xlu1 %v5718_v16  ;;  %v5719_v24 = vmov 1   ;;  %v7300_v16 = vld [vmem:[%s9208_s1 + $0x50] sm:$0xff] }
 0x4fe   :  { %v1134_v38 = vpop.xlane.xlu1 %1133  ;;  %5574 = vset.pattern.permute.xlu0 %v5719_v24  ;;  %v7306_v24 = vld [vmem:[%s9208_s1 + $0x8] sm:$0xff] }
 0x4ff   :  { %v1196_v34 = vsel %vm1195_vm11, %v1194_v44, %v1134_v38 }
 0x500   :  { %v1198_v49 = vsel %vm1197_vm12, %v1196_v34, %v1138_v41  ;;  %vm1213_vm12 = vcmask 105472  }
 0x502   :  { %v1145_v51 = vpop.xlane.xlu1 %1144 }
 0x503   :  { %v1200_v43 = vsel %vm1199_vm13, %v1198_v49, %v1145_v51  ;;  %vm1215_vm13 = vcmask 113664  }
 0x504   :  { %v1202_v53 = vsel %vm1201_vm14, %v1200_v43, %v1149_v25  ;;  %vm1681_vm14 = vcmask 1042432   ;;  %v5720_v25 = vmov 3   ;;  %v5721_v43 = vmov 10  }
 0x505   :  { %5336 = vmatpush3.msk.msra.mxu0 %vm1681_vm14, %v1603_v32 }
 0x506   :  { %4924 = vmatprep.subr.msk.mxu0 %vm1528_vm7, %v1844_v40  ;;  %v7261_v40 = vld [vmem:[%s9208_s1 + $0x98] sm:$0xff] }
 0x528   :  { %v1160_v55 = vpop.xlane.xlu0 %1159 }
 0x52a   :  { %v1156_v56 = vpop.xlane.xlu1 %1155 }
 0x52b   :  { %v1204_v42 = vsel %vm1203_vm6, %v1202_v53, %v1156_v56  ;;  %v1849_v56 = vld [vmem:[%s9189_s25 + $0x70] sm:$0x7f]  ;;  %v5726_v53 = vmov 6  }
 0x52c   :  { %v1206_v0 = vsel %vm1205_vm15, %v1204_v42, %v1160_v55  ;;  %v1171_v59 = vpop.xlane.xlu0 %1170  ;;  %v5727_v55 = vmov 7   ;;  %v5728_v42 = vmov 8   ;;  %vm2731_vm15 = vcmask 515072  }
 0x52e   :  { %v1167_v48 = vpop.xlane.xlu1 %1166 }
 0x52f   :  { %v1208_v62 = vsel %vm1207_vm3, %v1206_v0, %v1167_v48  ;;  %v5729_v48 = vmov 9   ;;  %v2411_v0 = vld [vmem:[%s9208_s1 + $0x1c8] sm:$0x3f] }
 0x530   :  { %v1210_v54 = vsel %vm1209_vm4, %v1208_v62, %v1171_v59  ;;  %v2413_v62 = vld [vmem:[%s9208_s1 + $0x1d8] sm:$0x3f]  ;;  %v2410_v59 = vld [vmem:[%s9208_s1 + $0x1c0] sm:$0x3f] }
 0x54b   :  { %v1182_v37 = vpop.xlane.xlu0 %1181 }
 0x54d   :  { %v1178_v57 = vpop.xlane.xlu1 %1177 }
 0x54e   :  { %v1212_v27 = vsel %vm1211_vm8, %v1210_v54, %v1178_v57  ;;  %v2412_v57 = vld [vmem:[%s9208_s1 + $0x1d0] sm:$0x3f]  ;;  %v5730_v54 = vmov 11  }
 0x54f   :  { %v1214_v20 = vsel %vm1213_vm12, %v1212_v27, %v1182_v37  ;;  %v7160_v27 = vld [vmem:[%s9208_s1 + $0x188] sm:$0xff]  ;;  %v7165_v37 = vld [vmem:[%s9208_s1 + $0x198] sm:$0xff]  ;;  %vm9055_vm12 = vcmask 523264  }
 0x551   :  { %v1189_v47 = vpop.xlane.xlu1 %1188 }
 0x552   :  { %v1216_v17 = vsel %vm1215_vm13, %v1214_v20, %v1189_v47  ;;  %v7172_v47 = vld [vmem:[%s9208_s1 + $0x180] sm:$0xff]  ;;  %v7177_v20 = vld [vmem:[%s9208_s1 + $0x190] sm:$0xff]  ;;  %vm3797_vm13 = vcmask 523268  }
 0x553   :  { %5326 = vmatmul.mubr.msk.f32.vlgmr.msra.gmra.mxu1 %vm1524_vm5, %v1216_v17  ;;  %v5731_v17 = vmov 12  }
 0x554   :  { %5329 = vmatpush3.msk.msra.mxu1 %vm1528_vm7, %v1523_v19  ;;  %5332 = vmatprep.mubr.msk.f32.mxu1 %vm9052_vm9, %v9130_v1  ;;  %v1846_v19 = vld [vmem:[%s9189_s25 + $0x58] sm:$0x7f] }
 0x555   :  { %5330 = vmatprep.subr.mxu1 %v9130_v1 }
 0x556   :  { %5331 = vmatpush3.msra.mxu1 %v1522_v4  ;;  %v1843_v4 = vld [vmem:[%s9189_s25 + $0x40] sm:$0x7f] }
 0x557   :  { %5340 = vmatprep.subr.mxu1 %v9130_v1 }
 0x561   :  { %v1447_v13 = vpop.f32.mrf.mxu0 }
 0x562   :  { %v1448_v10 = vadd.f32 %v1447_v13, %v6994_v11  ;;  %v7184_v13 = vld [vmem:[%s9208_s1 + $0x148] sm:$0xff] }
 0x563   :  { %v1449_v12 = vpop.f32.mrf.mxu0 }
 0x564   :  { %v7189_v12 = vld [vmem:[%s9208_s1 + $0x158] sm:$0xff] }
 0x581   :  { %v1517_v22 = vpop.f32.mrf.mxu1 }
 0x582   :  { %v1518_v18 = vadd.f32 %v1517_v22, %v1448_v10  ;;  %v7196_v10 = vld [vmem:[%s9208_s1 + $0x140] sm:$0xff]  ;;  %v7201_v22 = vld [vmem:[%s9208_s1 + $0x150] sm:$0xff] }
 0x583   :  { %v1519_v35 = vpop.f32.mrf.mxu1 }
 0x584   :  { %v1521_v9 = vmul.f32 0.016129032, %v1518_v18  ;;  %v7209_v18 = vld [vmem:[%s9208_s1 + $0x108] sm:$0xff]  ;;  %v7214_v35 = vld [vmem:[%s9208_s1 + $0x118] sm:$0xff] }
 0x586   :  { %5333 = vmatmul.mubr.msk.f32.vlgmr.msra.gmra.mxu1 %vm1524_vm5, %v1521_v9  ;;  %v7220_v9 = vld [vmem:[%s9208_s1 + $0x100] sm:$0xff] }
 0x587   :  { %5342 = vmatprep.mubr.msk.f32.mxu1 %vm9052_vm9, %v9130_v1  ;;  %5341 = vmatpush3.msk.msra.mxu1 %vm1681_vm14, %v1603_v32  ;;  %v7225_v32 = vld [vmem:[%s9208_s1 + $0x110] sm:$0xff]  ;;  %vm9051_vm14 = vcmask 519168  }
 0x588   :  { %4927 = vmatprep.subr.msk.mxu1 %vm1528_vm7, %v1846_v19  ;;  %v7270_v19 = vld [vmem:[%s9208_s1 + $0x80] sm:$0xff] }
 0x613   :  { %v1598_v7 = vpop.f32.mrf.mxu1 }
 0x614   :  { %v1602_v8 = vmax.f32 %v1598_v7, 0.0  ;;  %v7234_v7 = vld [vmem:[%s9208_s1 + $0xc8] sm:$0xff] }
 0x615   :  { %v5327_v33 = vpop.f32.mrf.mxu1 }
 0x616   :  { %5343 = vmatmul.mubr.msk.f32.vlgmr.msra.gmra.mxu1 %vm9054_vm10, %v1602_v8  ;;  %v7239_v8 = vld [vmem:[%s9208_s1 + $0xd8] sm:$0xff]  ;;  %v7246_v33 = vld [vmem:[%s9208_s1 + $0xc0] sm:$0xff] }
 0x617   :  { %2013 = vmatprep.mubr.f32.mxu1 %v9130_v1  ;;  %4928 = vmatpush1.msk.msra.mxu1 %vm1528_vm7, %v1845_v15  ;;  %v7281_v15 = vld [vmem:[%s9208_s1 + $0x48] sm:$0xff] }
 0x618   :  { %1979 = vmatprep.subr.mxu1 %v6857_v23 }
 0x619   :  { %1980 = vmatpush1.msra.mxu1 %v6869_v50  ;;  %v1847_v50 = vld [vmem:[%s9189_s25 + $0x60] sm:$0x7f]  ;;  %s5738_s25 = smov 12  }
 0x61a   :  { %4933 = vmatprep.subr.msk.mxu1 %vm1528_vm7, %v1850_v28  ;;  %v7294_v28 = vld [vmem:[%s9208_s1 + $0x40] sm:$0xff] }
 0x646   :  { %v1673_v11 = vpop.f32.mrf.mxu1 }
 0x647   :  { %v1677_v31 = vmax.f32 %v1673_v11, 0.0  ;;  %v7251_v11 = vld [vmem:[%s9208_s1 + $0xd0] sm:$0xff] }
 0x648   :  { %v5334_v36 = vpop.f32.mrf.mxu1 }
 0x649   :  { %5338 = vmatmul.mubr.msk.f32.vlgmr.msra.gmra.mxu0 %vm9054_vm10, %v1677_v31  ;;  %v7256_v31 = vld [vmem:[%s9208_s1 + $0x88] sm:$0xff]  ;;  %v5732_v36 = vmov 0  }
 0x64a   :  { %1942 = vmatprep.mubr.f32.mxu0 %v9130_v1  ;;  %4925 = vmatpush1.msk.msra.mxu0 %vm1528_vm7, %v1843_v4  ;;  %v7276_v4 = vld [vmem:[%s9208_s1 + $0x90] sm:$0xff] }
 0x64b   :  { %1908 = vmatprep.subr.mxu0 %v6926_v58 }
 0x64c   :  { %1909 = vmatpush1.msra.mxu0 %v6940_v61 }
 0x64d   :  { %4930 = vmatprep.subr.msk.mxu0 %vm1528_vm7, %v1848_v45  ;;  %v7286_v45 = vld [vmem:[%s9208_s1 + $0x58] sm:$0xff] }
 0x6d6   :  { %v1824_v23 = vpop.f32.mrf.mxu1 }
 0x6d8   :  { %v5344_v58 = vpop.f32.mrf.mxu1 }
 0x6d9   :  { %v7319_v58 = vld [vmem:[%s9208_s1] sm:$0xff] }
 0x709   :  { %v1751_v38 = vpop.f32.mrf.mxu0 }
 0x70a   :  { %v1825_v39 = vadd.f32 %v1824_v23, %v1751_v38  ;;  %v7311_v23 = vld [vmem:[%s9208_s1 + $0x18] sm:$0xff]  ;;  %v7324_v38 = vld [vmem:[%s9208_s1 + $0x10] sm:$0xff] }
 0x70b   :  { %v5339_v44 = vpop.f32.mrf.mxu0 }
 0x70c   :  { %v1828_v41 = vsub.f32 0.0, %v1825_v39  ;;  %v2415_v39 = vld [vmem:[%s9208_s1 + $0x1e8] sm:$0x3f]  ;;  %v2417_v44 = vld [vmem:[%s9208_s1 + $0x1f8] sm:$0x3f] }
 0x70e   :  { %v1829_v51 = vmul.f32 1.442695, %v1828_v41 }
 0x710   :  { %5614 = vpow2.f32 %v1829_v51 }
 0x71d   :  { %v5615_v34 = vpop.eup %5614 }
 0x71e   :  { %v1831_v61 = vadd.f32 1.0, %v5615_v34 }
 0x720   :  { %5616 = vrcp.f32 %v1831_v61 }
 0x72d   :  { %v7104_v49 = vpop.eup %5616 }
 0x72e   :  { %1834 = vst.msk [vmem:[%s8934_s19] sm:$0xff] %vm1524_vm5, %v7104_v49  ;;  %2186 = vperm.xlu1 %5575, %v7104_v49   ;;  %2176 = vperm.xlu0 %5574, %v7104_v49   ;;  %s5737_s19 = smov 74  }
 0x72f   :  { %4926 = vmatmul.mubr.msk.f32.vlgmr.msra.gmra.mxu0 %vm1524_vm5, %v7104_v49  ;;  %4929 = vmatmul.mubr.msk.f32.vlgmr.msra.gmra.mxu1 %vm1524_vm5, %v7104_v49 }
 0x730   :  { %4931 = vmatpush1.msk.msra.mxu0 %vm1528_vm7, %v1847_v50  ;;  %4934 = vmatpush1.msk.msra.mxu1 %vm1528_vm7, %v1849_v56  ;;  %vm2298_vm7 = vcmask 162816  }
 0x731   :  { %2050 = vmatprep.subr.mxu0 %v6960_v6  ;;  %2121 = vmatprep.subr.mxu1 %v6979_v26  ;;  %v5722_v6 = vmov 4   ;;  %v5724_v26 = vmov 5  }
 0x732   :  { %2051 = vmatpush1.msra.mxu0 %v6965_v30  ;;  %2084 = vmatprep.mubr.f32.mxu0 %v9130_v1  ;;  %v5723_v30 = vmov 13  }
 0x733   :  { %2122 = vmatpush1.msra.mxu1 %v6987_v21  ;;  %2155 = vmatprep.mubr.f32.mxu1 %v9130_v1  ;;  %v5725_v21 = vmov 14  }
 0x734   :  { %5576 = vset.pattern.permute.xlu1 %v5720_v25  ;;  %5583 = vset.pattern.permute.xlu0 %v5721_v43 }
 0x735   :  { %4932 = vmatmul.mubr.msk.f32.vlgmr.msra.gmra.mxu0 %vm1524_vm5, %v7104_v49  ;;  %4935 = vmatmul.mubr.msk.f32.vlgmr.msra.gmra.mxu1 %vm1524_vm5, %v7104_v49  ;;  %vm2272_vm5 = vcmask 130048  }
 0x736   :  { %2201 = vperm.xlu1 %5576, %v7104_v49   ;;  %2287 = vperm.xlu0 %5583, %v7104_v49  }
 0x737   :  { %2461 = vmatprep.subr.mxu0 %v2411_v0  ;;  %2531 = vmatprep.subr.mxu1 %v2413_v62 }
 0x738   :  { %2462 = vmatpush1.xpose.msra.mxu0 %v2410_v59  ;;  %2532 = vmatpush1.xpose.msra.mxu1 %v2412_v57 }
 0x739   :  { %2463 = vmatprep.subr.mxu0 %v7160_v27  ;;  %2533 = vmatprep.subr.mxu1 %v7165_v37 }
 0x73a   :  { %5577 = vset.pattern.permute.xlu1 %v5722_v6  ;;  %5586 = vset.pattern.permute.xlu0 %v5723_v30 }
 0x73b   :  { %2211 = vperm.xlu1 %5577, %v7104_v49   ;;  %2329 = vperm.xlu0 %5586, %v7104_v49  }
 0x73c   :  { %2464 = vmatpush1.xpose.msra.mxu0 %v7172_v47  ;;  %2534 = vmatpush1.xpose.msra.mxu1 %v7177_v20 }
 0x73d   :  { %2465 = vmatprep.subr.mxu0 %v7184_v13  ;;  %2535 = vmatprep.subr.mxu1 %v7189_v12 }
 0x73f   :  { %5578 = vset.pattern.permute.xlu1 %v5724_v26  ;;  %5589 = vset.pattern.permute.xlu0 %v5725_v21 }
 0x740   :  { %2226 = vperm.xlu1 %5578, %v7104_v49   ;;  %2466 = vmatpush1.xpose.msra.mxu0 %v7196_v10 }
 0x741   :  { %2536 = vmatpush1.xpose.msra.mxu1 %v7201_v22  ;;  %2467 = vmatprep.subr.mxu0 %v7209_v18 }
 0x742   :  { %2537 = vmatprep.subr.mxu1 %v7214_v35 }
 0x744   :  { %5579 = vset.pattern.permute.xlu1 %v5726_v53  ;;  %2468 = vmatpush1.xpose.msra.mxu0 %v7220_v9 }
 0x745   :  { %2236 = vperm.xlu1 %5579, %v7104_v49   ;;  %2538 = vmatpush1.xpose.msra.mxu1 %v7225_v32 }
 0x746   :  { %2469 = vmatprep.subr.mxu0 %v7234_v7  ;;  %2539 = vmatprep.subr.mxu1 %v7239_v8 }
 0x748   :  { %2470 = vmatpush1.xpose.msra.mxu0 %v7246_v33 }
 0x749   :  { %5580 = vset.pattern.permute.xlu1 %v5727_v55  ;;  %2540 = vmatpush1.xpose.msra.mxu1 %v7251_v11 }
 0x74a   :  { %2251 = vperm.xlu1 %5580, %v7104_v49   ;;  %2471 = vmatprep.subr.mxu0 %v7256_v31 }
 0x74b   :  { %2541 = vmatprep.subr.mxu1 %v7261_v40 }
 0x74c   :  { %2472 = vmatpush1.xpose.msra.mxu0 %v7270_v19 }
 0x74d   :  { %2542 = vmatpush1.xpose.msra.mxu1 %v7276_v4  ;;  %2473 = vmatprep.subr.mxu0 %v7281_v15 }
 0x74e   :  { %5581 = vset.pattern.permute.xlu1 %v5728_v42  ;;  %2543 = vmatprep.subr.mxu1 %v7286_v45 }
 0x74f   :  { %2261 = vperm.xlu1 %5581, %v7104_v49  }
 0x750   :  { %2474 = vmatpush1.xpose.msra.mxu0 %v7294_v28 }
 0x751   :  { %2544 = vmatpush1.xpose.msra.mxu1 %v7300_v16  ;;  %2475 = vmatprep.subr.mxu0 %v7306_v24 }
 0x752   :  { %2545 = vmatprep.subr.mxu1 %v7311_v23 }
 0x753   :  { %5582 = vset.pattern.permute.xlu1 %v5729_v48 }
 0x754   :  { %2277 = vperm.xlu1 %5582, %v7104_v49   ;;  %2476 = vmatpush1.xpose.msra.mxu0 %v7319_v58 }
 0x755   :  { %2546 = vmatpush1.xpose.msra.mxu1 %v7324_v38  ;;  %2601 = vmatprep.subr.mxu0 %v2415_v39 }
 0x756   :  { %4936 = vmatprep.subr.msk.mxu1 %vm1185_vm0, %v2417_v44 }
 0x758   :  { %5584 = vset.pattern.permute.xlu1 %v5730_v54 }
 0x759   :  { %2303 = vperm.xlu1 %5584, %v7104_v49  }
 0x75d   :  { %5585 = vset.pattern.permute.xlu1 %v5731_v17 }
 0x75e   :  { %2313 = vperm.xlu1 %5585, %v7104_v49  }
 0x762   :  { %5587 = vset.pattern.permute.xlu1 %v5725_v21 }
 0x763   :  { %2339 = vperm.xlu1 %5587, %v7104_v49  }
 0x767   :  { %5588 = vset.pattern.permute.xlu1 %v5732_v36 }
 0x768   :  { %2171 = vperm.xlu1 %5588, %v7104_v49  }
 0x7a9   :  { %v2187_v41 = vpop.permute.xlu1 %2186  ;;  %v2177_v51 = vpop.permute.xlu0 %2176 }
 0x7aa   :  { %v2189_v34 = vmul.f32 %v6946_v63, %v2187_v41  ;;  %v2179_v61 = vmul.f32 %v6946_v63, %v2177_v51  ;;  %v2190_v49 = vmul.f32 %v6933_v60, %v2187_v41 }
 0x7ac   :  { %2193 = vrot.lane.b32.xlu1 %v2189_v34, %s5733_s14  ;;  %2181 = vrot.lane.b32.xlu0 %v2179_v61, %s5734_s28  ;;  %s5746_s28 = smov 28  }
 0x7b0   :  { %2195 = vrot.lane.b32.xlu0 %v2190_v49, %s5733_s14  ;;  %s5745_s14 = smov 90  }
 0x7b1   :  { %v2202_v50 = vpop.permute.xlu1 %2201  ;;  %v2288_v57 = vpop.permute.xlu0 %2287 }
 0x7b2   :  { %v2204_v56 = vmul.f32 %v6933_v60, %v2202_v50  ;;  %v2290_v54 = vmul.f32 %v2288_v57, %v7013_v52  ;;  %v2291_v39 = vmul.f32 %v2288_v57, %v7019_v5 }
 0x7b4   :  { %2206 = vrot.lane.b32.xlu1 %v2204_v56, %s5735_s3 }
 0x7b6   :  { %v2212_v25 = vpop.permute.xlu1 %2211  ;;  %v2330_v49 = vpop.permute.xlu0 %2329 }
 0x7b7   :  { %v2214_v43 = vmul.f32 %v6933_v60, %v2212_v25  ;;  %v2215_v6 = vmul.f32 %v2212_v25, %v6881_v46  ;;  %v2332_v50 = vmul.f32 %v2330_v49, %v7032_v3  ;;  %v7437_v49 = vld [vmem:[%s9208_s1 + $0x170] sm:$0xff] }
 0x7b9   :  { %2220 = vrot.lane.b32.xlu1 %v2215_v6, %s5736_s0  ;;  %2218 = vrot.lane.b32.xlu0 %v2214_v43, %s5736_s0 }
 0x7bb   :  { %v2227_v30 = vpop.permute.xlu1 %2226 }
 0x7bc   :  { %v2229_v26 = vmul.f32 %v2227_v30, %v6881_v46 }
 0x7be   :  { %2231 = vrot.lane.b32.xlu0 %v2229_v26, %s5737_s19  ;;  %s4945_s19 = sld [smem:[#allocation2 + $0x1]] }
 0x7c0   :  { %v2237_v21 = vpop.permute.xlu1 %2236 }
 0x7c1   :  { %v2239_v53 = vmul.f32 %v2237_v21, %v6881_v46  ;;  %v2240_v55 = vmul.f32 %v2237_v21, %v6861_v29 }
 0x7c3   :  { %2243 = vrot.lane.b32.xlu1 %v2239_v53, %s5738_s25  ;;  %2245 = vrot.lane.b32.xlu0 %v2240_v55, %s5738_s25  ;;  %s4946_s25 = sld [smem:[#allocation2 + $0x2]] }
 0x7c5   :  { %v2252_v42 = vpop.permute.xlu1 %2251 }
 0x7c6   :  { %v2254_v48 = vmul.f32 %v2252_v42, %v6861_v29 }
 0x7c8   :  { %2256 = vrot.lane.b32.xlu1 %v2254_v48, %s5739_s30  ;;  %s2739_s30 = sld [smem:[#allocation2]] }
 0x7ca   :  { %v2262_v0 = vpop.permute.xlu1 %2261 }
 0x7cb   :  { %v2264_v62 = vmul.f32 %v2262_v0, %v6861_v29  ;;  %v2265_v59 = vmul.f32 %v2262_v0, %v7013_v52  ;;  %v2414_v0 = vld [vmem:[%s9208_s1 + $0x1e0] sm:$0x3f] }
 0x7cd   :  { %2270 = vrot.lane.b32.xlu1 %v2265_v59, %s5740_s24  ;;  %2268 = vrot.lane.b32.xlu0 %v2264_v62, %s5740_s24  ;;  %v2416_v62 = vld [vmem:[%s9208_s1 + $0x1f0] sm:$0x3f]  ;;  %s4948_s24 = sld [smem:[#allocation2 + $0x4]] }
 0x7cf   :  { %v2278_v17 = vpop.permute.xlu1 %2277 }
 0x7d0   :  { %v2280_v36 = vmul.f32 %v2278_v17, %v7013_v52 }
 0x7d1   :  { %2294 = vrot.lane.b32.xlu1 %v2290_v54, %s5741_s5 }
 0x7d2   :  { %2282 = vrot.lane.b32.xlu0 %v2280_v36, %s5742_s26  ;;  %s4947_s26 = sld [smem:[#allocation2 + $0x3]] }
 0x7d4   :  { %v2304_v44 = vpop.permute.xlu1 %2303 }
 0x7d5   :  { %v2306_v41 = vmul.f32 %v2304_v44, %v7019_v5  ;;  %v7404_v44 = vld [vmem:[%s9208_s1 + $0x1a0] sm:$0xff] }
 0x7d6   :  { %2296 = vrot.lane.b32.xlu0 %v2291_v39, %s5741_s5  ;;  %s4949_s5 = sld [smem:[#allocation2 + $0x5]] }
 0x7d7   :  { %2308 = vrot.lane.b32.xlu1 %v2306_v41, %s5743_s2  ;;  %v7409_v41 = vld [vmem:[%s9208_s1 + $0x1b0] sm:$0xff] }
 0x7d9   :  { %v2314_v51 = vpop.permute.xlu1 %2313 }
 0x7da   :  { %v2316_v34 = vmul.f32 %v2314_v51, %v7019_v5  ;;  %v2317_v61 = vmul.f32 %v2314_v51, %v7032_v3  ;;  %v7414_v51 = vld [vmem:[%s9208_s1 + $0x168] sm:$0xff] }
 0x7dc   :  { %2320 = vrot.lane.b32.xlu0 %v2316_v34, %s5744_s7  ;;  %2322 = vrot.lane.b32.xlu1 %v2317_v61, %s5744_s7  ;;  %v7419_v34 = vld [vmem:[%s9208_s1 + $0x178] sm:$0xff]  ;;  %v7432_v61 = vld [vmem:[%s9208_s1 + $0x160] sm:$0xff] }
 0x7de   :  { %v2340_v56 = vpop.permute.xlu1 %2339 }
 0x7df   :  { %v2342_v25 = vmul.f32 %v2340_v56, %v7032_v3  ;;  %v2343_v43 = vmul.f32 %v2340_v56, %v7028_v14  ;;  %v7447_v56 = vld [vmem:[%s9208_s1 + $0x138] sm:$0xff] }
 0x7e0   :  { %2334 = vrot.lane.b32.xlu0 %v2332_v50, %s5745_s14  ;;  %v7442_v50 = vld [vmem:[%s9208_s1 + $0x128] sm:$0xff] }
 0x7e1   :  { %2346 = vrot.lane.b32.xlu1 %v2342_v25, %s5746_s28  ;;  %v7457_v25 = vld [vmem:[%s9208_s1 + $0x120] sm:$0xff] }
 0x7e2   :  { %9215 = vst [vmem:[#allocation29_spill] sm:$0xff] %v7457_v25 }
 0x7e4   :  { %2348 = vrot.lane.b32.xlu0 %v2343_v43, %s5746_s28  ;;  %v7462_v43 = vld [vmem:[%s9208_s1 + $0x130] sm:$0xff] }
 0x7e5   :  { %9216 = vst [vmem:[#allocation30_spill] sm:$0xff] %v7462_v43 }
 0x7ef   :  { %v1944_v6 = vpop.f32.mrf.mxu0  ;;  %v2015_v30 = vpop.f32.mrf.mxu1 }
 0x7f0   :  { %v7363_v42 = vmul.f32 %v6946_v63, %v1944_v6  ;;  %v7366_v48 = vmul.f32 %v2015_v30, %v6881_v46  ;;  %v7384_v63 = vld [vmem:[%s9208_s1 + $0x1b8] sm:$0xff]  ;;  %v7467_v6 = vld [vmem:[%s9208_s1 + $0xe8] sm:$0xff] }
 0x7f1   :  { %v1946_v26 = vpop.f32.mrf.mxu0  ;;  %v2017_v21 = vpop.f32.mrf.mxu1  ;;  %9217 = vst [vmem:[#allocation31_spill] sm:$0xff] %v7467_v6  ;;  %v7472_v30 = vld [vmem:[%s9208_s1 + $0xf8] sm:$0xff] }
 0x7f2   :  { %v7357_v53 = vmul.f32 %v6933_v60, %v1946_v26  ;;  %v7360_v55 = vmul.f32 %v2017_v21, %v6861_v29  ;;  %9211 = vst [vmem:[#allocation25_spill] sm:$0xff] %v7363_v42  ;;  %9212 = vst [vmem:[#allocation26_spill] sm:$0xff] %v7366_v48  ;;  %v7379_v60 = vld [vmem:[%s9208_s1 + $0x1a8] sm:$0xff]  ;;  %v7482_v26 = vld [vmem:[%s9208_s1 + $0xe0] sm:$0xff] }
 0x7f3   :  { %9218 = vst [vmem:[#allocation32_spill] sm:$0xff] %v7472_v30  ;;  %9219 = vst [vmem:[#allocation33_spill] sm:$0xff] %v7482_v26  ;;  %v7487_v21 = vld [vmem:[%s9208_s1 + $0xf0] sm:$0xff]  ;;  %v7547_v46 = vld [vmem:[%s9208_s1 + $0x38] sm:$0xff] }
 0x7f4   :  { %9209 = vst [vmem:[#allocation23_spill] sm:$0xff] %v7357_v53  ;;  %9210 = vst [vmem:[#allocation24_spill] sm:$0xff] %v7360_v55  ;;  %2509 = vmatprep.mubr.f32.mxu0 %v7357_v53  ;;  %2579 = vmatprep.mubr.f32.mxu1 %v7360_v55  ;;  %v7557_v29 = vld [vmem:[%s9208_s1 + $0x20] sm:$0xff]  ;;  %v7562_v55 = vld [vmem:[%s9208_s1 + $0x30] sm:$0xff] }
 0x7f5   :  { %v7386_v59 = vpop.f32.mrf.mxu0  ;;  %v7388_v57 = vpop.f32.mrf.mxu1  ;;  %2510 = vmatmul.mubr.f32.vlgmr.msra.gmra.mxu0 %v7363_v42  ;;  %2580 = vmatmul.mubr.f32.vlgmr.msra.gmra.mxu1 %v7366_v48  ;;  %9220 = vst [vmem:[#allocation34_spill] sm:$0xff] %v7487_v21  ;;  %9230 = vst [vmem:[#allocation44_spill] sm:$0xff] %v7547_v46 }
 0x7f6   :  { %2602 = vmatpush1.xpose.msra.mxu0 %v2414_v0  ;;  %2672 = vmatpush1.xpose.msra.mxu1 %v2416_v62  ;;  %v7492_v0 = vld [vmem:[%s9208_s1 + $0xa8] sm:$0xff]  ;;  %v7497_v62 = vld [vmem:[%s9208_s1 + $0xb8] sm:$0xff]  ;;  %9231 = vst [vmem:[#allocation45_spill] sm:$0xff] %v7557_v29  ;;  %9232 = vst [vmem:[#allocation46_spill] sm:$0xff] %v7562_v55  ;;  %v7568_v53 = vmul.f32 %v7386_v59, %v7013_v52  ;;  %v7572_v48 = vmul.f32 %v7388_v57, %v7032_v3  ;;  %v2172_v42 = vpop.permute.xlu1 %2171 }
 0x7f7   :  { %v2088_v54 = vpop.f32.mrf.mxu0  ;;  %v2159_v17 = vpop.f32.mrf.mxu1  ;;  %2603 = vmatprep.subr.mxu0 %v7379_v60  ;;  %4937 = vmatprep.subr.msk.mxu1 %vm1185_vm0, %v7384_v63  ;;  %9221 = vst [vmem:[#allocation35_spill] sm:$0xff] %v7492_v0  ;;  %9222 = vst [vmem:[#allocation36_spill] sm:$0xff] %v7497_v62  ;;  %v7581_v57 = vld [vmem:[%s9074_s29] sm:$0xff] }
 0x7f8   :  { %v7396_v36 = vmul.f32 %v2088_v54, %v7019_v5  ;;  %v7399_v39 = vmul.f32 %v2159_v17, %v7028_v14  ;;  %v7507_v54 = vld [vmem:[%s9208_s1 + $0xa0] sm:$0xff]  ;;  %v7512_v17 = vld [vmem:[%s9208_s1 + $0xb0] sm:$0xff]  ;;  %v7522_v14 = vld [vmem:[%s9208_s1 + $0x78] sm:$0xff]  ;;  %9233 = vst [vmem:[#allocation47_spill] sm:$0xff] %v7568_v53  ;;  %v2174_v3 = vmul.f32 %v7581_v57, %v2172_v42 }
 0x7f9   :  { %9223 = vst [vmem:[#allocation37_spill] sm:$0xff] %v7507_v54  ;;  %9224 = vst [vmem:[#allocation38_spill] sm:$0xff] %v7512_v17  ;;  %v7532_v5 = vld [vmem:[%s9208_s1 + $0x60] sm:$0xff] }
 0x7fa   :  { %9213 = vst [vmem:[#allocation27_spill] sm:$0xff] %v7396_v36  ;;  %9214 = vst [vmem:[#allocation28_spill] sm:$0xff] %v7399_v39  ;;  %2649 = vmatprep.mubr.f32.mxu0 %v7396_v36  ;;  %4944 = vmatprep.mubr.msk.f32.mxu1 %vm1185_vm0, %v7399_v39  ;;  %v7537_v39 = vld [vmem:[%s9208_s1 + $0x70] sm:$0xff]  ;;  %v7542_v36 = vld [vmem:[%s9208_s1 + $0x28] sm:$0xff] }
 0x7fb   :  { %2604 = vmatpush1.xpose.msra.mxu0 %v7404_v44  ;;  %2674 = vmatpush1.xpose.msra.mxu1 %v7409_v41  ;;  %9226 = vst [vmem:[#allocation40_spill] sm:$0xff] %v7522_v14  ;;  %9227 = vst [vmem:[#allocation41_spill] sm:$0xff] %v7532_v5 }
 0x7fc   :  { %2605 = vmatprep.subr.mxu0 %v7414_v51  ;;  %4938 = vmatprep.subr.msk.mxu1 %vm1185_vm0, %v7419_v34  ;;  %9228 = vst [vmem:[#allocation42_spill] sm:$0xff] %v7537_v39  ;;  %9229 = vst [vmem:[#allocation43_spill] sm:$0xff] %v7542_v36 }
 0x7fd   :  { %9234 = vst [vmem:[#allocation48_spill] sm:$0xff] %v7572_v48  ;;  %9235 = vst [vmem:[#allocation49_spill] sm:$0xff] %v7581_v57 }
 0x7ff   :  { %2606 = vmatpush1.xpose.msra.mxu0 %v7432_v61  ;;  %2676 = vmatpush1.xpose.msra.mxu1 %v7437_v49 }
 0x800   :  { %2607 = vmatprep.subr.mxu0 %v7442_v50  ;;  %4939 = vmatprep.subr.msk.mxu1 %vm1185_vm0, %v7447_v56 }
 0x803   :  { %2608 = vmatpush1.xpose.msra.mxu0 %v7457_v25  ;;  %2678 = vmatpush1.xpose.msra.mxu1 %v7462_v43 }
 0x804   :  { %2609 = vmatprep.subr.mxu0 %v7467_v6  ;;  %4940 = vmatprep.subr.msk.mxu1 %vm1185_vm0, %v7472_v30 }
 0x807   :  { %2610 = vmatpush1.xpose.msra.mxu0 %v7482_v26  ;;  %2680 = vmatpush1.xpose.msra.mxu1 %v7487_v21 }
 0x808   :  { %2611 = vmatprep.subr.mxu0 %v7492_v0  ;;  %4941 = vmatprep.subr.msk.mxu1 %vm1185_vm0, %v7497_v62 }
 0x80b   :  { %2612 = vmatpush1.xpose.msra.mxu0 %v7507_v54  ;;  %2682 = vmatpush1.xpose.msra.mxu1 %v7512_v17 }
 0x80c   :  { %2613 = vmatprep.subr.mxu0 %v7517_v2  ;;  %4942 = vmatprep.subr.msk.mxu1 %vm1185_vm0, %v7522_v14 }
 0x80f   :  { %2614 = vmatpush1.xpose.msra.mxu0 %v7532_v5  ;;  %2684 = vmatpush1.xpose.msra.mxu1 %v7537_v39 }
 0x810   :  { %2615 = vmatprep.subr.mxu0 %v7542_v36  ;;  %4943 = vmatprep.subr.msk.mxu1 %vm1185_vm0, %v7547_v46 }
 0x813   :  { %2616 = vmatpush1.xpose.msra.mxu0 %v7557_v29  ;;  %2686 = vmatpush1.xpose.msra.mxu1 %v7562_v55 }
 0x816   :  { %2650 = vmatmul.mubr.f32.vlgmr.msra.gmra.mxu0 %v7568_v53  ;;  %2720 = vmatmul.mubr.f32.vlgmr.msra.gmra.mxu1 %v7572_v48 }
 0x817   :  { %2943 = vmatprep.mubr.f32.mxu0 %v9130_v1  ;;  %3014 = vmatprep.mubr.f32.mxu1 %v9130_v1 }
 0x81e   :  { %v2194_v29 = vpop.permute.xlu1 %2193  ;;  %v2182_v46 = vpop.permute.xlu0 %2181 }
 0x81f   :  { %v2184_v53 = vmax.f32 %v2174_v3, %v2182_v46 }
 0x822   :  { %v2196_v55 = vpop.permute.xlu0 %2195 }
 0x823   :  { %v2197_v48 = vsel %vm1195_vm11, %v2194_v29, %v2196_v55  ;;  %vm2324_vm11 = vcmask 195584  }
 0x824   :  { %v2199_v1 = vmax.f32 %v2184_v53, %v2197_v48 }
 0x826   :  { %v2207_v36 = vpop.permute.xlu1 %2206 }
 0x827   :  { %v2209_v54 = vmax.f32 %v2199_v1, %v2207_v36 }
 0x82b   :  { %v2219_v39 = vpop.permute.xlu0 %2218  ;;  %v2221_v59 = vpop.permute.xlu1 %2220 }
 0x82c   :  { %v2222_v17 = vsel %vm1203_vm6, %v2219_v39, %v2221_v59  ;;  %vm2350_vm6 = vcmask 228352  }
 0x82d   :  { %v2224_v21 = vmax.f32 %v2209_v54, %v2222_v17 }
 0x830   :  { %v2232_v52 = vpop.permute.xlu0 %2231 }
 0x831   :  { %v2234_v30 = vmax.f32 %v2224_v21, %v2232_v52 }
 0x835   :  { %v2244_v5 = vpop.permute.xlu1 %2243  ;;  %v2246_v2 = vpop.permute.xlu0 %2245 }
 0x836   :  { %v2247_v26 = vsel %vm1211_vm8, %v2244_v5, %v2246_v2 }
 0x837   :  { %v2249_v6 = vmax.f32 %v2234_v30, %v2247_v26 }
 0x83a   :  { %v2257_v14 = vpop.permute.xlu1 %2256 }
 0x83b   :  { %v2259_v57 = vmax.f32 %v2249_v6, %v2257_v14 }
 0x83f   :  { %v2271_v62 = vpop.permute.xlu1 %2270  ;;  %v2269_v0 = vpop.permute.xlu0 %2268 }
 0x840   :  { %v2273_v25 = vsel %vm2272_vm5, %v2269_v0, %v2271_v62  ;;  %v2743_v62 = vstv %s4945_s19  ;;  %s4972_s19 = sld [smem:[#allocation5 + $0x3]] }
 0x841   :  { %v2275_v29 = vmax.f32 %v2259_v57, %v2273_v25 }
 0x843   :  { %v2295_v42 = vpop.permute.xlu1 %2294 }
 0x844   :  { %v2283_v43 = vpop.permute.xlu0 %2282 }
 0x845   :  { %v2285_v55 = vmax.f32 %v2275_v29, %v2283_v43 }
 0x848   :  { %v2297_v46 = vpop.permute.xlu0 %2296 }
 0x849   :  { %v2299_v3 = vsel %vm2298_vm7, %v2295_v42, %v2297_v46  ;;  %v2309_v53 = vpop.permute.xlu1 %2308 }
 0x84a   :  { %v2301_v48 = vmax.f32 %v2285_v55, %v2299_v3 }
 0x84c   :  { %v2311_v54 = vmax.f32 %v2301_v48, %v2309_v53 }
 0x84e   :  { %v2323_v1 = vpop.permute.xlu1 %2322  ;;  %v2321_v36 = vpop.permute.xlu0 %2320 }
 0x84f   :  { %v2325_v39 = vsel %vm2324_vm11, %v2321_v36, %v2323_v1 }
 0x850   :  { %v2327_v2 = vmax.f32 %v2311_v54, %v2325_v39  ;;  %v2751_v39 = vstv %s4946_s25 }
 0x852   :  { %v2335_v52 = vpop.permute.xlu0 %2334 }
 0x853   :  { %v2337_v5 = vmax.f32 %v2327_v2, %v2335_v52  ;;  %v2347_v30 = vpop.permute.xlu1 %2346  ;;  %v2740_v2 = vstv %s2739_s30 }
 0x856   :  { %v2349_v26 = vpop.permute.xlu0 %2348 }
 0x857   :  { %v2351_v21 = vsel %vm2350_vm6, %v2347_v30, %v2349_v26  ;;  %v2771_v30 = vstv %s4949_s5 }
 0x858   :  { %v2353_v14 = vmax.f32 %v2337_v5, %v2351_v21  ;;  %v2763_v5 = vstv %s4948_s24  ;;  %s4950_s24 = sld [smem:[#allocation2 + $0x6]] }
 0x85a   :  { %2727 = vrot.lane.b32.xlu1 %v2353_v14, %s5711_s4 }
 0x8b5   :  { %v2511_v25 = vpop.f32.mrf.mxu0  ;;  %v2581_v6 = vpop.f32.mrf.mxu1 }
 0x8b6   :  { %v2582_v29 = vadd.f32 %v2581_v6, %v2511_v25  ;;  %v2759_v25 = vstv %s4947_s26 }
 0x8b7   :  { %v2513_v0 = vpop.f32.mrf.mxu0  ;;  %v2583_v43 = vpop.f32.mrf.mxu1 }
 0x8cc   :  { %v2728_v17 = vpop.permute.xlu1 %2727 }
 0x8cd   :  { %v2730_v59 = vsel %vm221_vm1, 0.0, %v2728_v17 }
 0x8ce   :  { %v2732_v57 = vsel %vm2731_vm15, %v2730_v59, 0.0 }
 0x8cf   :  { %v2744_v42 = vmul.f32 %v2743_v62, %v2732_v57  ;;  %v2752_v54 = vmul.f32 %v2751_v39, %v2732_v57  ;;  %v2741_v21 = vmul.f32 %v2740_v2, %v2732_v57  ;;  %v2845_v57 = vld [vmem:[%s9208_s1 + $0x1c8] sm:$0x3f] }
 0x8d0   :  { %4951 = vmatprep.subr.msk.mxu0 %vm344_vm2, %v2845_v57  ;;  %v3208_v39 = vld [vmem:[%s8923_s8 + $0xe8] sm:$0xff] }
 0x8d1   :  { %2746 = vrot.lane.b32.xlu1 %v2744_v42, %s5713_s27  ;;  %v3192_v2 = vld [vmem:[%s8923_s8 + $0x68] sm:$0xff] }
 0x8d2   :  { %v3188_v57 = vld [vmem:[%s8923_s8 + $0x48] sm:$0xff] }
 0x8d6   :  { %v2651_v46 = vpop.f32.mrf.mxu0  ;;  %v2721_v3 = vpop.f32.mrf.mxu1 }
 0x8d7   :  { %v2652_v53 = vadd.f32 %v2651_v46, %v2582_v29  ;;  %v2847_v46 = vld [vmem:[%s9208_s1 + $0x1d8] sm:$0x3f] }
 0x8d8   :  { %v2653_v55 = vpop.f32.mrf.mxu0  ;;  %v2723_v48 = vpop.f32.mrf.mxu1  ;;  %4954 = vmatprep.subr.msk.mxu1 %vm344_vm2, %v2847_v46  ;;  %v3220_v46 = vld [vmem:[%s8923_s8 + $0x148] sm:$0xff] }
 0x8d9   :  { %v2722_v1 = vadd.f32 %v2721_v3, %v2652_v53  ;;  %v2844_v3 = vld [vmem:[%s9208_s1 + $0x1c0] sm:$0x3f]  ;;  %v2846_v53 = vld [vmem:[%s9208_s1 + $0x1d0] sm:$0x3f] }
 0x8da   :  { %4952 = vmatpush1.msk.msra.mxu0 %vm344_vm2, %v2844_v3  ;;  %4955 = vmatpush1.msk.msra.mxu1 %vm344_vm2, %v2846_v53  ;;  %v3209_v55 = vld [vmem:[%s8923_s8 + $0xf0] sm:$0xff]  ;;  %v3203_v3 = vld [vmem:[%s8923_s8 + $0xc0] sm:$0xff] }
 0x8db   :  { %v2725_v36 = vmul.f32 0.06666667, %v2722_v1  ;;  %2897 = vmatprep.subr.mxu0 %v7160_v27  ;;  %2968 = vmatprep.subr.mxu1 %v7165_v37  ;;  %v2849_v27 = vld [vmem:[%s9208_s1 + $0x1e8] sm:$0x3f]  ;;  %v2851_v37 = vld [vmem:[%s9208_s1 + $0x1f8] sm:$0x3f] }
 0x8dc   :  { %2898 = vmatpush1.msra.mxu0 %v7172_v47  ;;  %2969 = vmatpush1.msra.mxu1 %v7177_v20  ;;  %v3241_v48 = vld [vmem:[%s8923_s8 + $0x1f0] sm:$0xff]  ;;  %v3235_v53 = vld [vmem:[%s8923_s8 + $0x1c0] sm:$0xff] }
 0x8dd   :  { %2734 = vrot.lane.b32.xlu0 %v2725_v36, %s5711_s4  ;;  %2899 = vmatprep.subr.mxu0 %v7184_v13  ;;  %v2779_v13 = vstv %s4950_s24  ;;  %v3193_v1 = vld [vmem:[%s8923_s8 + $0x70] sm:$0xff] }
 0x8de   :  { %2970 = vmatprep.subr.mxu1 %v7189_v12  ;;  %2900 = vmatpush1.msra.mxu0 %v7196_v10  ;;  %v3225_v36 = vld [vmem:[%s8923_s8 + $0x170] sm:$0xff] }
 0x8df   :  { %2971 = vmatpush1.msra.mxu1 %v7201_v22  ;;  %2901 = vmatprep.subr.mxu0 %v7209_v18 }
 0x8e0   :  { %2972 = vmatprep.subr.mxu1 %v7214_v35  ;;  %2902 = vmatpush1.msra.mxu0 %v7220_v9 }
 0x8e1   :  { %2754 = vrot.lane.b32.xlu0 %v2752_v54, %s5712_s6  ;;  %2973 = vmatpush1.msra.mxu1 %v7225_v32  ;;  %v3240_v54 = vld [vmem:[%s8923_s8 + $0x1e8] sm:$0xff] }
 0x8e2   :  { %2903 = vmatprep.subr.mxu0 %v7234_v7  ;;  %2974 = vmatprep.subr.mxu1 %v7239_v8  ;;  %v2848_v7 = vld [vmem:[%s9208_s1 + $0x1e0] sm:$0x3f]  ;;  %v2850_v8 = vld [vmem:[%s9208_s1 + $0x1f0] sm:$0x3f] }
 0x8e3   :  { %2904 = vmatpush1.msra.mxu0 %v7246_v33  ;;  %2975 = vmatpush1.msra.mxu1 %v7251_v11  ;;  %v9239_v11 = vld [vmem:[#allocation29_spill] sm:$0xff] }
 0x8e4   :  { %2905 = vmatprep.subr.mxu0 %v7256_v31  ;;  %2976 = vmatprep.subr.mxu1 %v7261_v40  ;;  %v9240_v31 = vld [vmem:[#allocation30_spill] sm:$0xff]  ;;  %v9241_v40 = vld [vmem:[#allocation31_spill] sm:$0xff] }
 0x8e5   :  { %2906 = vmatpush1.msra.mxu0 %v7270_v19  ;;  %2977 = vmatpush1.msra.mxu1 %v7276_v4  ;;  %v9242_v19 = vld [vmem:[#allocation32_spill] sm:$0xff]  ;;  %v9243_v4 = vld [vmem:[#allocation33_spill] sm:$0xff] }
 0x8e6   :  { %2907 = vmatprep.subr.mxu0 %v7281_v15  ;;  %2978 = vmatprep.subr.mxu1 %v7286_v45  ;;  %v9244_v15 = vld [vmem:[#allocation34_spill] sm:$0xff]  ;;  %v9245_v45 = vld [vmem:[#allocation35_spill] sm:$0xff] }
 0x8e7   :  { %2908 = vmatpush1.msra.mxu0 %v7294_v28  ;;  %2979 = vmatpush1.msra.mxu1 %v7300_v16  ;;  %v9246_v28 = vld [vmem:[#allocation36_spill] sm:$0xff]  ;;  %v9247_v16 = vld [vmem:[#allocation37_spill] sm:$0xff] }
 0x8e8   :  { %2909 = vmatprep.subr.mxu0 %v7306_v24  ;;  %2980 = vmatprep.subr.mxu1 %v7311_v23  ;;  %v9248_v24 = vld [vmem:[#allocation38_spill] sm:$0xff]  ;;  %v9249_v23 = vld [vmem:[#allocation39_spill] sm:$0xff] }
 0x8e9   :  { %2910 = vmatpush1.msra.mxu0 %v7319_v58  ;;  %2981 = vmatpush1.msra.mxu1 %v7324_v38  ;;  %v9250_v58 = vld [vmem:[#allocation40_spill] sm:$0xff]  ;;  %v9251_v38 = vld [vmem:[#allocation41_spill] sm:$0xff] }
 0x8ea   :  { %4957 = vmatprep.subr.msk.mxu0 %vm344_vm2, %v2849_v27  ;;  %4960 = vmatprep.subr.msk.mxu1 %vm344_vm2, %v2851_v37  ;;  %v3187_v27 = vld [vmem:[%s8923_s8 + $0x40] sm:$0xff] }
 0x8eb   :  { %v3219_v37 = vld [vmem:[%s8923_s8 + $0x140] sm:$0xff] }
 0x943   :  { %v2747_v52 = vpop.permute.xlu1 %2746 }
 0x944   :  { %v2749_v0 = vadd.f32 %v2747_v52, %v2741_v21  ;;  %v3224_v52 = vld [vmem:[%s8923_s8 + $0x168] sm:$0xff]  ;;  %v3223_v21 = vld [vmem:[%s8923_s8 + $0x160] sm:$0xff] }
 0x94f   :  { %v2735_v26 = vpop.permute.xlu0 %2734 }
 0x950   :  { %v2737_v14 = vsel %vm221_vm1, 0.0, %v2735_v26  ;;  %vm9236_vm1 = vcmask 506880   ;;  %v3191_v26 = vld [vmem:[%s8923_s8 + $0x60] sm:$0xff] }
 0x951   :  { %v2738_v6 = vsel %vm2731_vm15, %v2737_v14, 0.0  ;;  %vm9237_vm3 = vmmov %vm9236_vm1  ;;  %v3206_v14 = vld [vmem:[%s8923_s8 + $0xd8] sm:$0xff] }
 0x952   :  { %v2764_v43 = vmul.f32 %v2763_v5, %v2738_v6  ;;  %v2772_v62 = vmul.f32 %v2771_v30, %v2738_v6  ;;  %v2760_v59 = vmul.f32 %v2759_v25, %v2738_v6  ;;  %vm9238_vm4 = vmmov %vm9236_vm1  ;;  %v3207_v5 = vld [vmem:[%s8923_s8 + $0xe0] sm:$0xff]  ;;  %v3238_v25 = vld [vmem:[%s8923_s8 + $0x1d8] sm:$0xff] }
 0x953   :  { %v2755_v17 = vpop.permute.xlu0 %2754  ;;  %vm9259_vm8 = vmmov %vm9236_vm1  ;;  %v3239_v30 = vld [vmem:[%s8923_s8 + $0x1e0] sm:$0xff]  ;;  %v3190_v6 = vld [vmem:[%s8923_s8 + $0x58] sm:$0xff] }
 0x954   :  { %v2757_v42 = vadd.f32 %v2755_v17, %v2749_v0  ;;  %2774 = vrot.lane.b32.xlu0 %v2772_v62, %s5712_s6  ;;  %2766 = vrot.lane.b32.xlu1 %v2764_v43, %s5713_s27  ;;  %v3222_v0 = vld [vmem:[%s8923_s8 + $0x158] sm:$0xff]  ;;  %v3205_v43 = vld [vmem:[%s8923_s8 + $0xd0] sm:$0xff] }
 0x955   :  { %v3237_v62 = vld [vmem:[%s8923_s8 + $0x1d0] sm:$0xff] }
 0x956   :  { %v2761_v29 = vadd.f32 %v2760_v59, %v2757_v42  ;;  %v3189_v17 = vld [vmem:[%s8923_s8 + $0x50] sm:$0xff]  ;;  %v3204_v42 = vld [vmem:[%s8923_s8 + $0xc8] sm:$0xff] }
 0x957   :  { %v3221_v59 = vld [vmem:[%s8923_s8 + $0x150] sm:$0xff] }
 0x9c6   :  { %v2767_v47 = vpop.permute.xlu1 %2766  ;;  %v2775_v12 = vpop.permute.xlu0 %2774 }
 0x9c7   :  { %v2769_v20 = vadd.f32 %v2767_v47, %v2761_v29  ;;  %v3236_v29 = vld [vmem:[%s8923_s8 + $0x1c8] sm:$0xff]  ;;  %v3202_v47 = vld [vmem:[%s8923_s8 + $0xb8] sm:$0xff] }
 0x9c9   :  { %v2777_v10 = vadd.f32 %v2775_v12, %v2769_v20  ;;  %v3234_v20 = vld [vmem:[%s8923_s8 + $0x1b8] sm:$0xff] }
 0x9ca   :  { %v3218_v12 = vld [vmem:[%s8923_s8 + $0x138] sm:$0xff] }
 0x9cb   :  { %v2780_v22 = vadd.f32 %v2779_v13, %v2777_v10  ;;  %v3186_v13 = vld [vmem:[%s8923_s8 + $0x38] sm:$0xff]  ;;  %v3201_v10 = vld [vmem:[%s8923_s8 + $0xb0] sm:$0xff] }
 0x9cd   :  { %v2781_v18 = vsub.f32 0.0, %v2780_v22  ;;  %v3233_v22 = vld [vmem:[%s8923_s8 + $0x1b0] sm:$0xff] }
 0x9cf   :  { %v2782_v35 = vmul.f32 1.442695, %v2781_v18  ;;  %v3185_v18 = vld [vmem:[%s8923_s8 + $0x30] sm:$0xff] }
 0x9d1   :  { %5618 = vpow2.f32 %v2782_v35  ;;  %v3217_v35 = vld [vmem:[%s8923_s8 + $0x130] sm:$0xff] }
 0x9de   :  { %v5619_v9 = vpop.eup %5618 }
 0x9df   :  { %v2784_v32 = vadd.f32 1.0, %v5619_v9  ;;  %v3200_v9 = vld [vmem:[%s8923_s8 + $0xa8] sm:$0xff] }
 0x9e1   :  { %5620 = vrcp.f32 %v2784_v32  ;;  %v3232_v32 = vld [vmem:[%s8923_s8 + $0x1a8] sm:$0xff] }
 0x9ee   :  { %v5621_v33 = vpop.eup %5620 }
 0x9ef   :  { %2787 = vst.msk [vmem:[%s8935_s20] sm:$0xff] %vm9236_vm1, %v5621_v33  ;;  %4953 = vmatmul.mubr.msk.f32.vlgmr.msra.gmra.mxu0 %vm9237_vm3, %v5621_v33  ;;  %4956 = vmatmul.mubr.msk.f32.vlgmr.msra.gmra.mxu1 %vm9238_vm4, %v5621_v33 }
 0x9f0   :  { %4958 = vmatpush1.msk.msra.mxu0 %vm344_vm2, %v2848_v7  ;;  %4961 = vmatpush1.msk.msra.mxu1 %vm344_vm2, %v2850_v8  ;;  %vm9258_vm2 = vmmov %vm9236_vm1  ;;  %v3184_v7 = vld [vmem:[%s8923_s8 + $0x28] sm:$0xff] }
 0x9f1   :  { %3039 = vmatprep.subr.mxu0 %v7379_v60  ;;  %3110 = vmatprep.subr.mxu1 %v7384_v63  ;;  %v9252_v60 = vld [vmem:[#allocation42_spill] sm:$0xff]  ;;  %v9253_v63 = vld [vmem:[#allocation43_spill] sm:$0xff] }
 0x9f2   :  { %3040 = vmatpush1.msra.mxu0 %v7404_v44  ;;  %3111 = vmatpush1.msra.mxu1 %v7409_v41  ;;  %v9254_v44 = vld [vmem:[#allocation44_spill] sm:$0xff]  ;;  %v9255_v41 = vld [vmem:[#allocation45_spill] sm:$0xff] }
 0x9f3   :  { %3041 = vmatprep.subr.mxu0 %v7414_v51  ;;  %3112 = vmatprep.subr.mxu1 %v7419_v34  ;;  %v9256_v51 = vmov 0.0   ;;  %v3210_v34 = vld [vmem:[%s8923_s8 + $0xf8] sm:$0xff]  ;;  %v3216_v8 = vld [vmem:[%s8923_s8 + $0x128] sm:$0xff] }
 0x9f4   :  { %3042 = vmatpush1.msra.mxu0 %v7432_v61  ;;  %3113 = vmatpush1.msra.mxu1 %v7437_v49  ;;  %v3242_v61 = vld [vmem:[%s8923_s8 + $0x1f8] sm:$0xff] }
 0x9f5   :  { %3043 = vmatprep.subr.mxu0 %v7442_v50  ;;  %3114 = vmatprep.subr.mxu1 %v7447_v56  ;;  %v9257_v49 = vld [vmem:[#allocation46_spill] sm:$0xff] }
 0x9f6   :  { %3044 = vmatpush1.msra.mxu0 %v9239_v11  ;;  %3115 = vmatpush1.msra.mxu1 %v9240_v31  ;;  %v3194_v50 = vld [vmem:[%s8923_s8 + $0x78] sm:$0xff]  ;;  %v3231_v11 = vld [vmem:[%s8923_s8 + $0x1a0] sm:$0xff] }
 0x9f7   :  { %3045 = vmatprep.subr.mxu0 %v9241_v40  ;;  %3116 = vmatprep.subr.mxu1 %v9242_v19  ;;  %v3226_v56 = vld [vmem:[%s8923_s8 + $0x178] sm:$0xff]  ;;  %v3183_v31 = vld [vmem:[%s8923_s8 + $0x20] sm:$0xff] }
 0x9f8   :  { %3046 = vmatpush1.msra.mxu0 %v9243_v4  ;;  %3117 = vmatpush1.msra.mxu1 %v9244_v15  ;;  %v3215_v40 = vld [vmem:[%s8923_s8 + $0x120] sm:$0xff]  ;;  %v3198_v19 = vld [vmem:[%s8923_s8 + $0x98] sm:$0xff] }
 0x9f9   :  { %3047 = vmatprep.subr.mxu0 %v9245_v45  ;;  %3118 = vmatprep.subr.mxu1 %v9246_v28  ;;  %v3230_v4 = vld [vmem:[%s8923_s8 + $0x198] sm:$0xff]  ;;  %v3197_v28 = vld [vmem:[%s8923_s8 + $0x90] sm:$0xff] }
 0x9fa   :  { %3048 = vmatpush1.msra.mxu0 %v9247_v16  ;;  %3119 = vmatpush1.msra.mxu1 %v9248_v24  ;;  %v3182_v15 = vld [vmem:[%s8923_s8 + $0x18] sm:$0xff]  ;;  %v3229_v16 = vld [vmem:[%s8923_s8 + $0x190] sm:$0xff] }
 0x9fb   :  { %3049 = vmatprep.subr.mxu0 %v9249_v23  ;;  %3120 = vmatprep.subr.mxu1 %v9250_v58  ;;  %v3214_v45 = vld [vmem:[%s8923_s8 + $0x118] sm:$0xff]  ;;  %v3181_v24 = vld [vmem:[%s8923_s8 + $0x10] sm:$0xff]  ;;  %v3196_v58 = vld [vmem:[%s8923_s8 + $0x88] sm:$0xff] }
 0x9fc   :  { %3050 = vmatpush1.msra.mxu0 %v9251_v38  ;;  %3121 = vmatpush1.msra.mxu1 %v9252_v60  ;;  %v3213_v23 = vld [vmem:[%s8923_s8 + $0x110] sm:$0xff]  ;;  %v3228_v38 = vld [vmem:[%s8923_s8 + $0x188] sm:$0xff] }
 0x9fd   :  { %3051 = vmatprep.subr.mxu0 %v9253_v63  ;;  %3122 = vmatprep.subr.mxu1 %v9254_v44  ;;  %v3180_v60 = vld [vmem:[%s8923_s8 + $0x8] sm:$0xff]  ;;  %v3195_v44 = vld [vmem:[%s8923_s8 + $0x80] sm:$0xff] }
 0x9fe   :  { %3052 = vmatpush1.msra.mxu0 %v9255_v41  ;;  %3085 = vmatprep.mubr.f32.mxu0 %v9256_v51  ;;  %v3212_v63 = vld [vmem:[%s8923_s8 + $0x108] sm:$0xff]  ;;  %v3227_v41 = vld [vmem:[%s8923_s8 + $0x180] sm:$0xff] }
 0x9ff   :  { %3123 = vmatpush1.msra.mxu1 %v9257_v49  ;;  %3156 = vmatprep.mubr.f32.mxu1 %v9256_v51  ;;  %v3274_v49 = vld [vmem:[%s8923_s8 + $0x2f8] sm:$0xff] }
 0xa00   :  { %4959 = vmatmul.mubr.msk.f32.vlgmr.msra.gmra.mxu0 %vm9258_vm2, %v5621_v33  ;;  %4962 = vmatmul.mubr.msk.f32.vlgmr.msra.gmra.mxu1 %vm9259_vm8, %v5621_v33  ;;  %v3199_v33 = vld [vmem:[%s8923_s8 + $0xa0] sm:$0xff] }
 0xa01   :  { %5092 = vmatprep.subr.mxu0 %v3210_v34  ;;  %5127 = vmatprep.subr.mxu1 %v3242_v61  ;;  %v3179_v34 = vld [vmem:[%s8923_s8] sm:$0xff] }
 0xa02   :  { %5093 = vmatpush3.msra.mxu0 %v3194_v50  ;;  %5128 = vmatpush3.msra.mxu1 %v3226_v56  ;;  %v3211_v61 = vld [vmem:[%s8923_s8 + $0x100] sm:$0xff] }
 0xa03   :  { %5094 = vmatprep.subr.mxu0 %v3209_v55  ;;  %5129 = vmatprep.subr.mxu1 %v3241_v48  ;;  %v9260_v55 = vld [vmem:[#allocation25_spill] sm:$0xff] }
 0xa04   :  { %5095 = vmatpush3.msra.mxu0 %v3193_v1  ;;  %5130 = vmatpush3.msra.mxu1 %v3225_v36  ;;  %v9261_v1 = vld [vmem:[#allocation26_spill] sm:$0xff] }
 0xa05   :  { %5096 = vmatprep.subr.mxu0 %v3208_v39  ;;  %5131 = vmatprep.subr.mxu1 %v3240_v54 }
 0xa06   :  { %5097 = vmatpush3.msra.mxu0 %v3192_v2  ;;  %5132 = vmatpush3.msra.mxu1 %v3224_v52  ;;  %v9262_v2 = vld [vmem:[#allocation23_spill] sm:$0xff] }
 0xa07   :  { %5098 = vmatprep.subr.mxu0 %v3207_v5  ;;  %5133 = vmatprep.subr.mxu1 %v3239_v30  ;;  %v9263_v5 = vld [vmem:[#allocation24_spill] sm:$0xff] }
 0xa08   :  { %5099 = vmatpush3.msra.mxu0 %v3191_v26  ;;  %5134 = vmatpush3.msra.mxu1 %v3223_v21  ;;  %v5658_v26 = vld [vmem:[%s9074_s29 + $0x8] sm:$0xff] }
 0xa09   :  { %5100 = vmatprep.subr.mxu0 %v3206_v14  ;;  %5135 = vmatprep.subr.mxu1 %v3238_v25  ;;  %v9264_v14 = vld [vmem:[#allocation17_spill] sm:$0xff] }
 0xa0a   :  { %5101 = vmatpush3.msra.mxu0 %v3190_v6  ;;  %5136 = vmatpush3.msra.mxu1 %v3222_v0  ;;  %v9265_v6 = vld [vmem:[#allocation49_spill] sm:$0xff] }
 0xa0b   :  { %5102 = vmatprep.subr.mxu0 %v3205_v43  ;;  %5137 = vmatprep.subr.mxu1 %v3237_v62  ;;  %v9266_v43 = vld [vmem:[#allocation18_spill] sm:$0xff] }
 0xa0c   :  { %5103 = vmatpush3.msra.mxu0 %v3189_v17  ;;  %5138 = vmatpush3.msra.mxu1 %v3221_v59  ;;  %v3258_v17 = vld [vmem:[%s8923_s8 + $0x278] sm:$0xff] }
 0xa0d   :  { %5104 = vmatprep.subr.mxu0 %v3204_v42  ;;  %5139 = vmatprep.subr.mxu1 %v3236_v29  ;;  %v3290_v59 = vld [vmem:[%s8923_s8 + $0x378] sm:$0xff]  ;;  %v3273_v42 = vld [vmem:[%s8923_s8 + $0x2f0] sm:$0xff] }
 0xa0e   :  { %5105 = vmatpush3.msra.mxu0 %v3188_v57  ;;  %5140 = vmatpush3.msra.mxu1 %v3220_v46  ;;  %v3257_v29 = vld [vmem:[%s8923_s8 + $0x270] sm:$0xff]  ;;  %v3272_v46 = vld [vmem:[%s8923_s8 + $0x2e8] sm:$0xff] }
 0xa0f   :  { %5106 = vmatprep.subr.mxu0 %v3203_v3  ;;  %5141 = vmatprep.subr.mxu1 %v3235_v53  ;;  %v3289_v57 = vld [vmem:[%s8923_s8 + $0x370] sm:$0xff]  ;;  %v3256_v3 = vld [vmem:[%s8923_s8 + $0x268] sm:$0xff] }
 0xa10   :  { %5107 = vmatpush3.msra.mxu0 %v3187_v27  ;;  %5142 = vmatpush3.msra.mxu1 %v3219_v37  ;;  %v3288_v53 = vld [vmem:[%s8923_s8 + $0x368] sm:$0xff]  ;;  %v3271_v27 = vld [vmem:[%s8923_s8 + $0x2e0] sm:$0xff] }
 0xa11   :  { %5108 = vmatprep.subr.mxu0 %v3202_v47  ;;  %5143 = vmatprep.subr.mxu1 %v3234_v20  ;;  %v3255_v37 = vld [vmem:[%s8923_s8 + $0x260] sm:$0xff]  ;;  %v3270_v20 = vld [vmem:[%s8923_s8 + $0x2d8] sm:$0xff] }
 0xa12   :  { %5109 = vmatpush3.msra.mxu0 %v3186_v13  ;;  %5144 = vmatpush3.msra.mxu1 %v3218_v12  ;;  %v3287_v47 = vld [vmem:[%s8923_s8 + $0x360] sm:$0xff]  ;;  %v3254_v13 = vld [vmem:[%s8923_s8 + $0x258] sm:$0xff] }
 0xa13   :  { %5110 = vmatprep.subr.mxu0 %v3201_v10  ;;  %5145 = vmatprep.subr.mxu1 %v3233_v22  ;;  %v3286_v12 = vld [vmem:[%s8923_s8 + $0x358] sm:$0xff]  ;;  %v3269_v10 = vld [vmem:[%s8923_s8 + $0x2d0] sm:$0xff] }
 0xa14   :  { %5111 = vmatpush3.msra.mxu0 %v3185_v18  ;;  %5146 = vmatpush3.msra.mxu1 %v3217_v35  ;;  %v3253_v22 = vld [vmem:[%s8923_s8 + $0x250] sm:$0xff] }
 0xa15   :  { %5112 = vmatprep.subr.mxu0 %v3200_v9  ;;  %5147 = vmatprep.subr.mxu1 %v3232_v32  ;;  %v3285_v18 = vld [vmem:[%s8923_s8 + $0x350] sm:$0xff]  ;;  %v3268_v32 = vld [vmem:[%s8923_s8 + $0x2c8] sm:$0xff] }
 0xa16   :  { %5113 = vmatpush3.msra.mxu0 %v3184_v7  ;;  %5148 = vmatpush3.msra.mxu1 %v3216_v8  ;;  %v3252_v7 = vld [vmem:[%s8923_s8 + $0x248] sm:$0xff] }
 0xa17   :  { %5114 = vmatprep.subr.mxu0 %v3199_v33  ;;  %5149 = vmatprep.subr.mxu1 %v3231_v11  ;;  %v3284_v11 = vld [vmem:[%s8923_s8 + $0x348] sm:$0xff] }
 0xa18   :  { %5115 = vmatpush3.msra.mxu0 %v3183_v31  ;;  %5150 = vmatpush3.msra.mxu1 %v3215_v40  ;;  %v3267_v31 = vld [vmem:[%s8923_s8 + $0x2c0] sm:$0xff] }
 0xa19   :  { %5116 = vmatprep.subr.mxu0 %v3198_v19  ;;  %5151 = vmatprep.subr.mxu1 %v3230_v4  ;;  %v9267_v40 = vld [vmem:[#allocation27_spill] sm:$0xff]  ;;  %v9268_v4 = vld [vmem:[#allocation28_spill] sm:$0xff] }
 0xa1a   :  { %5117 = vmatpush3.msra.mxu0 %v3182_v15  ;;  %5152 = vmatpush3.msra.mxu1 %v3214_v45  ;;  %v3251_v45 = vld [vmem:[%s8923_s8 + $0x240] sm:$0xff] }
 0xa1b   :  { %5118 = vmatprep.subr.mxu0 %v3197_v28  ;;  %5153 = vmatprep.subr.mxu1 %v3229_v16  ;;  %v3283_v28 = vld [vmem:[%s8923_s8 + $0x340] sm:$0xff]  ;;  %v9269_v16 = vld [vmem:[#allocation20_spill] sm:$0xff] }
 0xa1c   :  { %5119 = vmatpush3.msra.mxu0 %v3181_v24  ;;  %5154 = vmatpush3.msra.mxu1 %v3213_v23  ;;  %v9270_v23 = vld [vmem:[#allocation21_spill] sm:$0xff] }
 0xa1d   :  { %5120 = vmatprep.subr.mxu0 %v3196_v58  ;;  %5155 = vmatprep.subr.mxu1 %v3228_v38  ;;  %v3266_v38 = vld [vmem:[%s8923_s8 + $0x2b8] sm:$0xff] }
 0xa1e   :  { %5121 = vmatpush3.msra.mxu0 %v3180_v60  ;;  %5156 = vmatpush3.msra.mxu1 %v3212_v63  ;;  %v3250_v60 = vld [vmem:[%s8923_s8 + $0x238] sm:$0xff] }
 0xa1f   :  { %5122 = vmatprep.subr.mxu0 %v3195_v44  ;;  %5157 = vmatprep.subr.mxu1 %v3227_v41  ;;  %v3282_v63 = vld [vmem:[%s8923_s8 + $0x338] sm:$0xff]  ;;  %v3265_v44 = vld [vmem:[%s8923_s8 + $0x2b0] sm:$0xff] }
 0xa20   :  { %5123 = vmatpush3.msra.mxu0 %v3179_v34  ;;  %5158 = vmatpush3.msra.mxu1 %v3211_v61  ;;  %v3249_v41 = vld [vmem:[%s8923_s8 + $0x230] sm:$0xff]  ;;  %v3264_v61 = vld [vmem:[%s8923_s8 + $0x2a8] sm:$0xff] }
 0xa21   :  { %5162 = vmatprep.subr.mxu0 %v3274_v49  ;;  %3520 = vmatprep.subr.mxu1 %v9256_v51  ;;  %v3281_v34 = vld [vmem:[%s8923_s8 + $0x330] sm:$0xff]  ;;  %v3248_v49 = vld [vmem:[%s8923_s8 + $0x228] sm:$0xff] }
 0xaaf   :  { %v2945_v50 = vpop.f32.mrf.mxu0  ;;  %v3016_v56 = vpop.f32.mrf.mxu1 }
 0xab0   :  { %v3163_v48 = vmul.f32 %v2945_v50, %v9260_v55  ;;  %v3165_v36 = vmul.f32 %v3016_v56, %v9261_v1  ;;  %v3280_v50 = vld [vmem:[%s8923_s8 + $0x328] sm:$0xff]  ;;  %v3263_v56 = vld [vmem:[%s8923_s8 + $0x2a0] sm:$0xff]  ;;  %v3262_v1 = vld [vmem:[%s8923_s8 + $0x298] sm:$0xff] }
 0xab1   :  { %v2947_v39 = vpop.f32.mrf.mxu0  ;;  %v3018_v54 = vpop.f32.mrf.mxu1  ;;  %v3247_v55 = vld [vmem:[%s8923_s8 + $0x220] sm:$0xff] }
 0xab2   :  { %v3164_v52 = vmul.f32 %v2947_v39, %v9262_v2  ;;  %v3166_v30 = vmul.f32 %v3018_v54, %v9263_v5  ;;  %v3171_v0 = vadd.f32 %v9265_v6, %v3163_v48  ;;  %v3173_v62 = vadd.f32 %v3165_v36, %v9266_v43  ;;  %v3279_v48 = vld [vmem:[%s8923_s8 + $0x320] sm:$0xff]  ;;  %v3246_v36 = vld [vmem:[%s8923_s8 + $0x218] sm:$0xff]  ;;  %v3261_v54 = vld [vmem:[%s8923_s8 + $0x290] sm:$0xff] }
 0xab3   :  { %v3278_v39 = vld [vmem:[%s8923_s8 + $0x318] sm:$0xff]  ;;  %v3245_v2 = vld [vmem:[%s8923_s8 + $0x210] sm:$0xff]  ;;  %v3260_v5 = vld [vmem:[%s8923_s8 + $0x288] sm:$0xff] }
 0xab4   :  { %v3172_v21 = vadd.f32 %v5658_v26, %v3164_v52  ;;  %v3174_v25 = vadd.f32 %v3166_v30, %v9264_v14  ;;  %v3277_v52 = vld [vmem:[%s8923_s8 + $0x310] sm:$0xff]  ;;  %v9271_v30 = vld [vmem:[#allocation47_spill] sm:$0xff] }
 0xab5   :  { %v3276_v14 = vld [vmem:[%s8923_s8 + $0x308] sm:$0xff]  ;;  %v3243_v6 = vld [vmem:[%s8923_s8 + $0x200] sm:$0xff] }
 0xab6   :  { %3374 = vmatprep.mubr.f32.mxu0 %v3172_v21  ;;  %3444 = vmatprep.mubr.f32.mxu1 %v3174_v25  ;;  %v3244_v21 = vld [vmem:[%s8923_s8 + $0x208] sm:$0xff]  ;;  %v3259_v25 = vld [vmem:[%s8923_s8 + $0x280] sm:$0xff] }
 0xab7   :  { %3375 = vmatmul.mubr.f32.vlgmr.msra.gmra.mxu0 %v3171_v0  ;;  %3445 = vmatmul.mubr.f32.vlgmr.msra.gmra.mxu1 %v3173_v62  ;;  %v3275_v0 = vld [vmem:[%s8923_s8 + $0x300] sm:$0xff] }
 0xab8   :  { %5163 = vmatpush3.msra.mxu0 %v3258_v17  ;;  %3521 = vmatpush1.msra.mxu1 %v3290_v59  ;;  %v9272_v43 = vld [vmem:[#allocation19_spill] sm:$0xff]  ;;  %v3295_v17 = vld [vmem:[%s8923_s8 + $0x3a0] sm:$0x3]  ;;  %v3294_v59 = vld [vmem:[%s8923_s8 + $0x398] sm:$0xff] }
 0xab9   :  { %5164 = vmatprep.subr.mxu0 %v3273_v42  ;;  %3522 = vmatprep.subr.mxu1 %v9256_v51  ;;  %v3293_v42 = vld [vmem:[%s8923_s8 + $0x390] sm:$0xff] }
 0xaba   :  { %5165 = vmatpush3.msra.mxu0 %v3257_v29  ;;  %3523 = vmatpush1.msra.mxu1 %v3289_v57  ;;  %v9273_v29 = vld [vmem:[#allocation48_spill] sm:$0xff] }
 0xabb   :  { %5166 = vmatprep.subr.mxu0 %v3272_v46  ;;  %3524 = vmatprep.subr.mxu1 %v9256_v51  ;;  %v3292_v46 = vld [vmem:[%s8923_s8 + $0x388] sm:$0xff] }
 0xabc   :  { %5167 = vmatpush3.msra.mxu0 %v3256_v3  ;;  %3525 = vmatpush1.msra.mxu1 %v3288_v53  ;;  %v3291_v3 = vld [vmem:[%s8923_s8 + $0x380] sm:$0xff] }
 0xabd   :  { %5168 = vmatprep.subr.mxu0 %v3271_v27  ;;  %3526 = vmatprep.subr.mxu1 %v9256_v51  ;;  %v9274_v53 = vld [vmem:[#allocation22_spill] sm:$0xff] }
 0xabe   :  { %5169 = vmatpush3.msra.mxu0 %v3255_v37  ;;  %3527 = vmatpush1.msra.mxu1 %v3287_v47  ;;  %v3598_v37 = vld [vmem:[%s8925_s10 + $0x38] sm:$0xff]  ;;  %v3597_v47 = vld [vmem:[%s8925_s10 + $0x30] sm:$0xff] }
 0xabf   :  { %5170 = vmatprep.subr.mxu0 %v3270_v20  ;;  %3528 = vmatprep.subr.mxu1 %v9256_v51  ;;  %v3596_v20 = vld [vmem:[%s8925_s10 + $0x28] sm:$0xff] }
 0xac0   :  { %v7956_v35 = vpop.f32.mrf.mxu0  ;;  %v7958_v9 = vpop.f32.mrf.mxu1  ;;  %5171 = vmatpush3.msra.mxu0 %v3254_v13  ;;  %3529 = vmatpush1.msra.mxu1 %v3286_v12  ;;  %v3595_v13 = vld [vmem:[%s8925_s10 + $0x20] sm:$0xff]  ;;  %v3594_v12 = vld [vmem:[%s8925_s10 + $0x18] sm:$0xff] }
 0xac1   :  { %5172 = vmatprep.subr.mxu0 %v3269_v10  ;;  %3530 = vmatprep.subr.mxu1 %v9256_v51  ;;  %v3167_v26 = vmul.f32 %v7956_v35, %v9271_v30  ;;  %v3169_v57 = vmul.f32 %v7958_v9, %v9273_v29  ;;  %v3593_v10 = vld [vmem:[%s8925_s10 + $0x10] sm:$0xff]  ;;  %v3689_v35 = vld [vmem:[%s8927_s12 + $0x38] sm:$0xff] }
 0xac2   :  { %v3089_v8 = vpop.f32.mrf.mxu0  ;;  %v3160_v33 = vpop.f32.mrf.mxu1  ;;  %5173 = vmatpush3.msra.mxu0 %v3253_v22  ;;  %3531 = vmatpush1.msra.mxu1 %v3285_v18  ;;  %v3592_v22 = vld [vmem:[%s8925_s10 + $0x8] sm:$0xff]  ;;  %v3591_v18 = vld [vmem:[%s8925_s10] sm:$0xff]  ;;  %v3688_v9 = vld [vmem:[%s8927_s12 + $0x30] sm:$0xff] }
 0xac3   :  { %v3168_v19 = vmul.f32 %v3089_v8, %v9267_v40  ;;  %v3170_v15 = vmul.f32 %v3160_v33, %v9268_v4  ;;  %5174 = vmatprep.subr.mxu0 %v3268_v32  ;;  %3532 = vmatprep.subr.mxu1 %v9256_v51  ;;  %v3175_v62 = vadd.f32 %v3167_v26, %v9272_v43  ;;  %v3687_v32 = vld [vmem:[%s8927_s12 + $0x28] sm:$0xff]  ;;  %v3685_v8 = vld [vmem:[%s8927_s12 + $0x18] sm:$0xff]  ;;  %v4963_v4 = vld [vmem:[%s8924_s9] ss:$0 sm:$0xff] }
 0xac4   :  { %5175 = vmatpush3.msra.mxu0 %v3252_v7  ;;  %3533 = vmatpush1.msra.mxu1 %v3284_v11  ;;  %v3177_v27 = vadd.f32 %v3169_v57, %v9274_v53  ;;  %v3686_v7 = vld [vmem:[%s8927_s12 + $0x20] sm:$0xff]  ;;  %v8208_v57 = vstv %s4972_s19 }
 0xac5   :  { %v3176_v24 = vadd.f32 %v3168_v19, %v9269_v16  ;;  %v3178_v58 = vadd.f32 %v3170_v15, %v9270_v23  ;;  %5176 = vmatprep.subr.mxu0 %v3267_v31  ;;  %3534 = vmatprep.subr.mxu1 %v9256_v51 }
 0xac6   :  { %5177 = vmatpush3.msra.mxu0 %v3251_v45  ;;  %3535 = vmatpush1.msra.mxu1 %v3283_v28 }
 0xac7   :  { %3514 = vmatprep.mubr.f32.mxu0 %v3176_v24  ;;  %4965 = vmatprep.mubr.msk.f32.mxu1 %vm1185_vm0, %v3178_v58  ;;  %vm3306_vm0 = vcmask 1041408  }
 0xac8   :  { %5178 = vmatprep.subr.mxu0 %v3266_v38  ;;  %3536 = vmatprep.subr.mxu1 %v9256_v51 }
 0xac9   :  { %5179 = vmatpush3.msra.mxu0 %v3250_v60  ;;  %3537 = vmatpush1.msra.mxu1 %v3282_v63 }
 0xaca   :  { %5180 = vmatprep.subr.mxu0 %v3265_v44  ;;  %3538 = vmatprep.subr.mxu1 %v9256_v51 }
 0xacb   :  { %5181 = vmatpush3.msra.mxu0 %v3249_v41  ;;  %3539 = vmatpush1.msra.mxu1 %v3281_v34  ;;  %v3684_v41 = vld [vmem:[%s8927_s12 + $0x10] sm:$0xff]  ;;  %v3683_v34 = vld [vmem:[%s8927_s12 + $0x8] sm:$0xff] }
 0xacc   :  { %5182 = vmatprep.subr.mxu0 %v3264_v61  ;;  %3540 = vmatprep.subr.mxu1 %v9256_v51  ;;  %v3682_v61 = vld [vmem:[%s8927_s12] sm:$0xff]  ;;  %s4970_s12 = sld [smem:[#allocation5 + $0x1]] }
 0xacd   :  { %5183 = vmatpush3.msra.mxu0 %v3248_v49  ;;  %3541 = vmatpush1.msra.mxu1 %v3280_v50  ;;  %v4966_v49 = vld [vmem:[%s8926_s11] ss:$0 sm:$0xff]  ;;  %s3836_s11 = sld [smem:[#allocation5]] }
 0xace   :  { %5184 = vmatprep.subr.mxu0 %v3263_v56  ;;  %3542 = vmatprep.subr.mxu1 %v9256_v51 }
 0xacf   :  { %5185 = vmatpush3.msra.mxu0 %v3247_v55  ;;  %3543 = vmatpush1.msra.mxu1 %v3279_v48 }
 0xad0   :  { %5186 = vmatprep.subr.mxu0 %v3262_v1  ;;  %3544 = vmatprep.subr.mxu1 %v9256_v51 }
 0xad1   :  { %5187 = vmatpush3.msra.mxu0 %v3246_v36  ;;  %3545 = vmatpush1.msra.mxu1 %v3278_v39 }
 0xad2   :  { %5188 = vmatprep.subr.mxu0 %v3261_v54  ;;  %3546 = vmatprep.subr.mxu1 %v9256_v51 }
 0xad3   :  { %5189 = vmatpush3.msra.mxu0 %v3245_v2  ;;  %3547 = vmatpush1.msra.mxu1 %v3277_v52  ;;  %v8194_v43 = vstv %s3836_s11 }
 0xad4   :  { %5190 = vmatprep.subr.mxu0 %v3260_v5  ;;  %3548 = vmatprep.subr.mxu1 %v9256_v51 }
 0xad5   :  { %5191 = vmatpush3.msra.mxu0 %v3244_v21  ;;  %3549 = vmatpush1.msra.mxu1 %v3276_v14 }
 0xad6   :  { %5192 = vmatprep.subr.mxu0 %v3259_v25  ;;  %3550 = vmatprep.subr.mxu1 %v9256_v51  ;;  %v9275_v25 = vld [vmem:[#allocation59_spill] sm:$0xff] }
 0xad7   :  { %5193 = vmatpush3.msra.mxu0 %v3243_v6  ;;  %3551 = vmatpush1.msra.mxu1 %v3275_v0  ;;  %v8189_v6 = vadd.s32 56, %v9275_v25  ;;  %v8192_v0 = vadd.s32 48, %v9275_v25 }
 0xad8   :  { %3515 = vmatmul.mubr.f32.vlgmr.msra.gmra.mxu0 %v3175_v62  ;;  %3574 = vmatprep.subr.mxu1 %v9256_v51  ;;  %v8197_v62 = vadd.s32 40, %v9275_v25 }
 0xad9   :  { %5345 = vmatprep.subr.mxu0 %v9256_v51  ;;  %4964 = vmatpush2.msk.msra.mxu1 %vm3306_vm0, %v3295_v17  ;;  %v8199_v17 = vstv %s4970_s12  ;;  %vm3845_vm11 = vcmp.eq.s32.totalorder %v8189_v6, %v8194_v43  ;;  %vm3844_vm6 = vcmp.eq.s32.totalorder %v8192_v0, %v8194_v43 }
 0xada   :  { %5361 = vmatprep.mubr.msk.f32.mxu0 %vm9052_vm9, %v9256_v51  ;;  %3576 = vmatprep.subr.mxu1 %v9256_v51  ;;  %vm9059_vm15 = vcmp.eq.s32.totalorder %v8189_v6, %v8199_v17  ;;  %vm9058_vm1 = vcmp.eq.s32.totalorder %v8192_v0, %v8199_v17  ;;  %vm3843_vm3 = vcmp.eq.s32.totalorder %v8197_v62, %v8194_v43 }
 0xadb   :  { %3577 = vmatpush2.msra.mxu1 %v3294_v59  ;;  %5346 = vmatpush3.msra.mxu0 %v3598_v37  ;;  %vm9057_vm4 = vcmp.eq.s32.totalorder %v8197_v62, %v8199_v17 }
 0xadc   :  { %3578 = vmatprep.subr.mxu1 %v9256_v51  ;;  %5347 = vmatprep.subr.mxu0 %v9256_v51 }
 0xadd   :  { %3579 = vmatpush2.msra.mxu1 %v3293_v42  ;;  %5348 = vmatpush3.msra.mxu0 %v3597_v47  ;;  %v8204_v42 = vadd.s32 32, %v9275_v25 }
 0xade   :  { %3580 = vmatprep.subr.mxu1 %v9256_v51  ;;  %5349 = vmatprep.subr.mxu0 %v9256_v51 }
 0xadf   :  { %3581 = vmatpush2.msra.mxu1 %v3292_v46  ;;  %5350 = vmatpush3.msra.mxu0 %v3596_v20  ;;  %v8213_v46 = vadd.s32 24, %v9275_v25 }
 0xae0   :  { %3582 = vmatprep.subr.mxu1 %v9256_v51  ;;  %5351 = vmatprep.subr.mxu0 %v9256_v51 }
 0xae1   :  { %3583 = vmatpush2.msra.mxu1 %v3291_v3  ;;  %5352 = vmatpush3.msra.mxu0 %v3595_v13  ;;  %v8230_v3 = vadd.s32 16, %v9275_v25  ;;  %v3818_v13 = vld [vmem:[%s8930_s15 + $0x38] sm:$0xff] }
 0xae2   :  { %3585 = vmatmul.mubr.f32.vlgmr.msra.gmra.mxu1 %v3177_v27  ;;  %5364 = vmatprep.subr.mxu1 %v9256_v51  ;;  %v8248_v27 = vadd.s32 8, %v9275_v25 }
 0xae3   :  { %5380 = vmatprep.mubr.msk.f32.mxu1 %vm9052_vm9, %v9256_v51  ;;  %5353 = vmatprep.subr.mxu0 %v9256_v51  ;;  %vm3840_vm8 = vcmp.eq.s32.totalorder %v8230_v3, %v8194_v43 }
 0xae4   :  { %5354 = vmatpush3.msra.mxu0 %v3594_v12  ;;  %5365 = vmatpush3.msra.mxu1 %v3689_v35  ;;  %v9276_v35 = vld [vmem:[#allocation61_spill] sm:$0xff]  ;;  %vm3989_vm0 = vcmp.eq.s32.totalorder %v8248_v27, %v8208_v57 }
 0xae5   :  { %5355 = vmatprep.subr.mxu0 %v9256_v51  ;;  %5366 = vmatprep.subr.mxu1 %v9256_v51 }
 0xae6   :  { %5356 = vmatpush3.msra.mxu0 %v3593_v10  ;;  %5367 = vmatpush3.msra.mxu1 %v3688_v9  ;;  %v3817_v10 = vld [vmem:[%s8930_s15 + $0x30] sm:$0xff] }
 0xae7   :  { %5357 = vmatprep.subr.mxu0 %v9256_v51  ;;  %5368 = vmatprep.subr.mxu1 %v9256_v51 }
 0xae8   :  { %5358 = vmatpush3.msra.mxu0 %v3592_v22  ;;  %5369 = vmatpush3.msra.mxu1 %v3687_v32  ;;  %v3816_v22 = vld [vmem:[%s8930_s15 + $0x28] sm:$0xff] }
 0xae9   :  { %5359 = vmatprep.subr.mxu0 %v9256_v51  ;;  %5370 = vmatprep.subr.mxu1 %v9256_v51  ;;  %v9277_v32 = vld [vmem:[#allocation60_spill] sm:$0xff] }
 0xaea   :  { %5360 = vmatpush3.msra.mxu0 %v3591_v18  ;;  %5371 = vmatpush3.msra.mxu1 %v3686_v7  ;;  %v3815_v18 = vld [vmem:[%s8930_s15 + $0x20] sm:$0xff] }
 0xaeb   :  { %5383 = vmatprep.subr.mxu0 %v9256_v51  ;;  %5372 = vmatprep.subr.mxu1 %v9256_v51 }
 0xaec   :  { %5373 = vmatpush3.msra.mxu1 %v3685_v8 }
 0xaed   :  { %5374 = vmatprep.subr.mxu1 %v9256_v51 }
 0xaee   :  { %5375 = vmatpush3.msra.mxu1 %v3684_v41 }
 0xaef   :  { %5376 = vmatprep.subr.mxu1 %v9256_v51 }
 0xaf0   :  { %5377 = vmatpush3.msra.mxu1 %v3683_v34 }
 0xaf1   :  { %5378 = vmatprep.subr.mxu1 %v9256_v51 }
 0xaf2   :  { %5379 = vmatpush3.msra.mxu1 %v3682_v61 }
 0xaf3   :  { %5402 = vmatprep.subr.mxu1 %v9256_v51 }
 0xb77   :  { %v5124_v33 = vpop.f32.mrf.mxu0  ;;  %v5159_v31 = vpop.f32.mrf.mxu1 }
 0xb79   :  { %v5125_v11 = vpop.f32.mrf.mxu0  ;;  %v5160_v15 = vpop.f32.mrf.mxu1 }
 0xb7a   :  { %v5126_v40 = vadd.f32 %v5125_v11, %v5124_v33  ;;  %v5161_v16 = vadd.f32 %v5160_v15, %v5159_v31  ;;  %v9278_v33 = vld [vmem:[#allocation62_spill] sm:$0xff]  ;;  %v9279_v31 = vld [vmem:[#allocation63_spill] sm:$0xff] }
 0xb7c   :  { %v3377_v28 = vadd.f32 %v5126_v40, %v4963_v4 }
 0xb7e   :  { %v3447_v23 = vadd.f32 %v5161_v16, %v3377_v28  ;;  %v3814_v28 = vld [vmem:[%s8930_s15 + $0x18] sm:$0xff] }
 0xb98   :  { %v5194_v19 = vpop.f32.mrf.mxu0 }
 0xb9a   :  { %v5195_v45 = vpop.f32.mrf.mxu0 }
 0xb9b   :  { %v5196_v24 = vadd.f32 %v5195_v45, %v5194_v19 }
 0xb9d   :  { %v3517_v58 = vadd.f32 %v5196_v24, %v3447_v23 }
 0xba2   :  { %v3586_v38 = vpop.f32.mrf.mxu1 }
 0xba3   :  { %v3587_v60 = vadd.f32 %v3586_v38, %v3517_v58  ;;  %v3813_v38 = vld [vmem:[%s8930_s15 + $0x10] sm:$0xff] }
 0xba4   :  { %v3588_v63 = vpop.f32.mrf.mxu1 }
 0xba5   :  { %v3590_v44 = vmax.f32 %v3587_v60, 0.0  ;;  %v3812_v60 = vld [vmem:[%s8930_s15 + $0x8] sm:$0xff]  ;;  %v3811_v63 = vld [vmem:[%s8930_s15] sm:$0xff] }
 0xba7   :  { %5362 = vmatmul.mubr.msk.f32.vlgmr.msra.gmra.mxu0 %vm9055_vm12, %v3590_v44 }
 0xba8   :  { %5399 = vmatprep.mubr.msk.f32.mxu0 %vm9052_vm9, %v9256_v51 }
 0xc67   :  { %v3676_v50 = vpop.f32.mrf.mxu0 }
 0xc68   :  { %v3677_v56 = vadd.f32 %v4966_v49, %v3676_v50 }
 0xc69   :  { %v5363_v55 = vpop.f32.mrf.mxu0 }
 0xc6a   :  { %v8171_v48 = vmax.f32 %v3677_v56, 0.0 }
 0xc6c   :  { %3681 = vst.msk [vmem:[%s8932_s17] sm:$0xff] %vm9055_vm12, %v8171_v48  ;;  %5381 = vmatmul.mubr.msk.f32.vlgmr.msra.gmra.mxu1 %vm9055_vm12, %v8171_v48  ;;  %v3782_v1 = vmul.f32 %v8171_v48, %v8171_v48  ;;  %s4971_s17 = sld [smem:[#allocation5 + $0x2]] }
 0xc6d   :  { %5418 = vmatprep.mubr.msk.f32.mxu1 %vm9052_vm9, %v9256_v51  ;;  %vm9056_vm9 = vcmp.eq.s32.totalorder %v8204_v42, %v8199_v17 }
 0xc6e   :  { %v3798_v36 = vsel %vm3797_vm13, %v3782_v1, 0.0  ;;  %v3784_v39 = vsel %vm9051_vm14, %v3782_v1, 0.0  ;;  %vm3842_vm14 = vcmp.eq.s32.totalorder %v8204_v42, %v8194_v43  ;;  %vm3838_vm13 = vcmp.eq.s32.totalorder %v9275_v25, %v8194_v43 }
 0xc6f   :  { %3799 = vadd.xlane.f32.xlu0 %v3798_v36  ;;  %3785 = vadd.xlane.f32.xlu1 %v3784_v39 }
 0xc72   :  { %v8201_v59 = vstv %s4971_s17 }
 0xc73   :  { %vm9060_vm2 = vcmp.eq.s32.totalorder %v8189_v6, %v8201_v59  ;;  %vm3939_vm12 = vcmp.eq.s32.totalorder %v8248_v27, %v8201_v59 }
 0xcf8   :  { %v3786_v54 = vpop.xlane.xlu1 %3785  ;;  %v8185_v2 = vpop.xlane.xlu0 %3799 }
 0xcf9   :  { %5622 = vrsqrt.f32 %v3786_v54  ;;  %vm3789_vm5 = vcmp.eq.f32.partialorder %v3786_v54, inf  ;;  %v3792_v30 = vand.u32 2147483648, %v3786_v54  ;;  %vm3791_vm7 = vcmp.eq.f32.partialorder %v3786_v54, 0.0 }
 0xcfa   :  { %5624 = vrsqrt.f32 %v8185_v2  ;;  %vm3803_vm10 = vcmp.eq.f32.partialorder %v8185_v2, inf  ;;  %v3806_v12 = vand.u32 2147483648, %v8185_v2 }
 0xd06   :  { %v5623_v52 = vpop.eup %5622 }
 0xd07   :  { %v3788_v5 = vmul.f32 %v5623_v52, %v3786_v54  ;;  %v5625_v29 = vpop.eup %5624 }
 0xd08   :  { %v3802_v53 = vmul.f32 %v5625_v29, %v8185_v2 }
 0xd09   :  { %v3790_v26 = vsel %vm3789_vm5, %v3786_v54, %v3788_v5  ;;  %vm9064_vm5 = vcmp.eq.s32.totalorder %v9275_v25, %v8208_v57 }
 0xd0a   :  { %v3793_v21 = vsel %vm3791_vm7, %v3792_v30, %v3790_v26  ;;  %v3804_v47 = vsel %vm3803_vm10, %v8185_v2, %v3802_v53  ;;  %vm3839_vm10 = vcmp.eq.s32.totalorder %v8248_v27, %v8194_v43  ;;  %vm3805_vm7 = vcmp.eq.f32.partialorder %v8185_v2, 0.0 }
 0xd0b   :  { %v3794_v14 = vmax.f32 %v3793_v21, 1e-12  ;;  %v3807_v8 = vsel %vm3805_vm7, %v3806_v12, %v3804_v47  ;;  %vm9280_vm7 = vcmp.eq.s32.totalorder %v8192_v0, %v8201_v59  ;;  %v4968_v12 = vld [vmem:[%s8928_s13] ss:$0 sm:$0xff] }
 0xd0d   :  { %5626 = vrcp.f32 %v3794_v14 }
 0xd1a   :  { %v5627_v37 = vpop.eup %5626 }
 0xd1b   :  { %v3796_v20 = vmul.f32 %v5627_v37, %v8171_v48 }
 0xd1d   :  { %v3865_v9 = vrot.slane %v3796_v20, %v9276_v35  ;;  %v3915_v7 = vrot.slane %v3796_v20, %v9277_v32  ;;  %v3965_v11 = vrot.slane %v3796_v20, %v9278_v33  ;;  %v4015_v40 = vrot.slane %v3796_v20, %v9279_v31 }
 0xd1f   :  { %v3873_v19 = vsel %vm3845_vm11, %v3865_v9, %v3818_v13  ;;  %v3872_v4 = vsel %vm3844_vm6, %v3865_v9, %v3817_v10  ;;  %v3871_v15 = vsel %vm3843_vm3, %v3865_v9, %v3816_v22  ;;  %v3870_v45 = vsel %vm3842_vm14, %v3865_v9, %v3815_v18 }
 0xd20   :  { %v3923_v16 = vsel %vm9059_vm15, %v3915_v7, %v3873_v19  ;;  %v3922_v24 = vsel %vm9058_vm1, %v3915_v7, %v3872_v4  ;;  %v3921_v23 = vsel %vm9057_vm4, %v3915_v7, %v3871_v15  ;;  %v3920_v58 = vsel %vm9056_vm9, %v3915_v7, %v3870_v45 }
 0xd21   :  { %v3973_v44 = vsel %vm9060_vm2, %v3965_v11, %v3923_v16  ;;  %v3972_v41 = vsel %vm9280_vm7, %v3965_v11, %v3922_v24  ;;  %vm9281_vm9 = vcmp.eq.s32.totalorder %v8197_v62, %v8201_v59  ;;  %vm9282_vm4 = vcmp.eq.s32.totalorder %v8204_v42, %v8201_v59 }
 0xd22   :  { %v3971_v34 = vsel %vm9281_vm9, %v3965_v11, %v3921_v23  ;;  %v3970_v61 = vsel %vm9282_vm4, %v3965_v11, %v3920_v58  ;;  %vm9283_vm1 = vcmp.eq.s32.totalorder %v8189_v6, %v8208_v57  ;;  %vm9284_vm15 = vcmp.eq.s32.totalorder %v8192_v0, %v8208_v57 }
 0xd23   :  { %v4023_v49 = vsel %vm9283_vm1, %v4015_v40, %v3973_v44  ;;  %v4022_v50 = vsel %vm9284_vm15, %v4015_v40, %v3972_v41  ;;  %vm9285_vm2 = vcmp.eq.s32.totalorder %v8197_v62, %v8208_v57  ;;  %vm9286_vm7 = vcmp.eq.s32.totalorder %v8204_v42, %v8208_v57 }
 0xd24   :  { %v4021_v56 = vsel %vm9285_vm2, %v4015_v40, %v3971_v34  ;;  %v4020_v55 = vsel %vm9286_vm7, %v4015_v40, %v3970_v61  ;;  %vm9287_vm9 = vcmask 523264   ;;  %vm9292_vm7 = vcmp.eq.s32.totalorder %v8213_v46, %v8194_v43 }
 0xd25   :  { %4043 = vst.msk [vmem:[%s8937_s22 + $0x38] sm:$0xff] %vm9287_vm9, %v4023_v49  ;;  %vm9288_vm4 = vmmov %vm9287_vm9  ;;  %v3869_v1 = vsel %vm9292_vm7, %v3865_v9, %v3814_v28  ;;  %v3868_v36 = vsel %vm3840_vm8, %v3865_v9, %v3813_v38  ;;  %v3867_v39 = vsel %vm3839_vm10, %v3865_v9, %v3812_v60  ;;  %v3866_v54 = vsel %vm3838_vm13, %v3865_v9, %v3811_v63 }
 0xd26   :  { %5384 = vmatpush3.xpose.msk.msra.mxu0 %vm9288_vm4, %v4023_v49  ;;  %vm9289_vm1 = vmmov %vm9288_vm4  ;;  %vm9293_vm9 = vcmp.eq.s32.totalorder %v8213_v46, %v8199_v17  ;;  %vm9294_vm4 = vcmp.eq.s32.totalorder %v8230_v3, %v8199_v17  ;;  %vm9298_vm7 = vcmp.eq.s32.totalorder %v8230_v3, %v8201_v59  ;;  %v3808_v13 = vmax.f32 %v3807_v8, 1e-12 }
 0xd27   :  { %4042 = vst.msk [vmem:[%s8937_s22 + $0x30] sm:$0xff] %vm9289_vm1, %v4022_v50  ;;  %vm9290_vm15 = vmmov %vm9289_vm1  ;;  %5385 = vmatprep.subr.mxu0 %v9256_v51  ;;  %v3919_v2 = vsel %vm9293_vm9, %v3915_v7, %v3869_v1  ;;  %v3918_v52 = vsel %vm9294_vm4, %v3915_v7, %v3868_v36  ;;  %vm9299_vm9 = vcmp.eq.s32.totalorder %v9275_v25, %v8201_v59  ;;  %v9316_v4 = vlaneseq }
 0xd28   :  { %4041 = vst.msk [vmem:[%s8937_s22 + $0x28] sm:$0xff] %vm9290_vm15, %v4021_v56  ;;  %vm9291_vm2 = vmmov %vm9289_vm1  ;;  %vm9295_vm1 = vcmp.eq.s32.totalorder %v8248_v27, %v8199_v17  ;;  %vm9296_vm15 = vcmp.eq.s32.totalorder %v9275_v25, %v8199_v17  ;;  %v3968_v21 = vsel %vm9298_vm7, %v3965_v11, %v3918_v52  ;;  %vm9300_vm4 = vcmp.eq.s32.totalorder %v8213_v46, %v8208_v57 }
 0xd29   :  { %4040 = vst.msk [vmem:[%s8937_s22 + $0x20] sm:$0xff] %vm9291_vm2, %v4020_v55  ;;  %v3917_v5 = vsel %vm9295_vm1, %v3915_v7, %v3867_v39  ;;  %v3916_v30 = vsel %vm9296_vm15, %v3915_v7, %v3866_v54  ;;  %vm9297_vm2 = vcmp.eq.s32.totalorder %v8213_v46, %v8201_v59  ;;  %vm9301_vm1 = vcmp.eq.s32.totalorder %v8230_v3, %v8208_v57 }
 0xd2a   :  { %v3969_v26 = vsel %vm9297_vm2, %v3965_v11, %v3919_v2  ;;  %v3967_v14 = vsel %vm3939_vm12, %v3965_v11, %v3917_v5  ;;  %v3966_v29 = vsel %vm9299_vm9, %v3965_v11, %v3916_v30  ;;  %v4018_v37 = vsel %vm9301_vm1, %v4015_v40, %v3968_v21 }
 0xd2b   :  { %v4019_v53 = vsel %vm9300_vm4, %v4015_v40, %v3969_v26  ;;  %v4017_v47 = vsel %vm3989_vm0, %v4015_v40, %v3967_v14  ;;  %v4016_v20 = vsel %vm9064_vm5, %v4015_v40, %v3966_v29  ;;  %vm9302_vm15 = vcmask 523264  }
 0xd2c   :  { %5386 = vmatpush3.xpose.msk.msra.mxu0 %vm9302_vm15, %v4022_v50  ;;  %vm9303_vm2 = vmmov %vm9302_vm15  ;;  %v3766_v10 = vpop.f32.mrf.mxu1  ;;  %5628 = vrcp.f32 %v3808_v13  ;;  %vm9308_vm15 = vcmask 23552   ;;  %v4151_v15 = vand.u32 127, %v9316_v4  ;;  %v3824_v4 = vld [vmem:[%s8931_s16 + $0x28] sm:$0xff] }
 0xd2d   :  { %4039 = vst.msk [vmem:[%s8937_s22 + $0x18] sm:$0xff] %vm9303_vm2, %v4019_v53  ;;  %vm9304_vm7 = vmmov %vm9303_vm2  ;;  %5387 = vmatprep.subr.mxu0 %v9256_v51  ;;  %v8451_v22 = vadd.f32 %v4968_v12, %v3766_v10 }
 0xd2e   :  { %4038 = vst.msk [vmem:[%s8937_s22 + $0x10] sm:$0xff] %vm9304_vm7, %v4018_v37  ;;  %vm9305_vm9 = vmmov %vm9303_vm2  ;;  %v5382_v18 = vpop.f32.mrf.mxu1  ;;  %v8475_v45 = vcvt.s32.f32 %v4151_v15  ;;  %v3823_v15 = vld [vmem:[%s8931_s16 + $0x20] sm:$0xff] }
 0xd2f   :  { %4037 = vst.msk [vmem:[%s8937_s22 + $0x8] sm:$0xff] %vm9305_vm9, %v4017_v47  ;;  %vm9306_vm4 = vmmov %vm9303_vm2 }
 0xd30   :  { %4036 = vst.msk [vmem:[%s8937_s22] sm:$0xff] %vm9306_vm4, %v4016_v20  ;;  %vm9307_vm1 = vmmov %vm9303_vm2 }
 0xd31   :  { %5388 = vmatpush3.xpose.msk.msra.mxu0 %vm9307_vm1, %v4021_v56  ;;  %3770 = vst.msk [vmem:[%s8933_s18] sm:$0xff] %vm9308_vm15, %v8451_v22  ;;  %vm9309_vm2 = vmmov %vm9307_vm1 }
 0xd32   :  { %5389 = vmatprep.subr.mxu0 %v9256_v51  ;;  %vm9310_vm7 = vmmov %vm9307_vm1 }
 0xd33   :  { %vm9311_vm9 = vmmov %vm9307_vm1 }
 0xd34   :  { %vm9312_vm4 = vmmov %vm9307_vm1 }
 0xd35   :  { %5390 = vmatpush3.xpose.msk.msra.mxu0 %vm9309_vm2, %v4020_v55  ;;  %vm9313_vm15 = vmmov %vm9307_vm1  ;;  %vm9314_vm2 = vmmov 0  }
 0xd36   :  { %5391 = vmatprep.subr.mxu0 %v9256_v51 }
 0xd39   :  { %5392 = vmatpush3.xpose.msk.msra.mxu0 %vm9310_vm7, %v4019_v53  ;;  %v5629_v9 = vpop.eup %5628  ;;  %vm9315_vm7 = vcmask 519168  }
 0xd3a   :  { %5393 = vmatprep.subr.mxu0 %v9256_v51  ;;  %v3810_v7 = vmul.f32 %v5629_v9, %v8171_v48 }
 0xd3c   :  { %v4053_v8 = vrot.slane %v3810_v7, 4 }
 0xd3d   :  { %5394 = vmatpush3.xpose.msk.msra.mxu0 %vm9311_vm9, %v4018_v37 }
 0xd3e   :  { %5395 = vmatprep.subr.mxu0 %v9256_v51 }
 0xd41   :  { %5396 = vmatpush3.xpose.msk.msra.mxu0 %vm9312_vm4, %v4017_v47  ;;  %vm9317_vm4 = vmmov %vm9315_vm7 }
 0xd42   :  { %5397 = vmatprep.subr.mxu0 %v9256_v51 }
 0xd45   :  { %5398 = vmatpush3.xpose.msk.msra.mxu0 %vm9307_vm1, %v4016_v20 }
 0xd46   :  { %5440 = vmatprep.subr.mxu0 %v9256_v51 }
 0xd48   :  { %5400 = vmatmul.mubr.msk.f32.vlgmr.msra.gmra.mxu0 %vm9313_vm15, %v4053_v8  ;;  %vm9318_vm15 = vmmov %vm9317_vm4 }
 0xd49   :  { %5456 = vmatprep.mubr.msk.f32.mxu0 %vm9314_vm2, %v9256_v51 }
 0xe08   :  { %v4146_v11 = vpop.f32.mrf.mxu0 }
 0xe09   :  { %v4153_v40 = vsel %vm9315_vm7, %v4146_v11, -inf }
 0xe0a   :  { %4154 = vmax.xlane.f32.xlu0 %v4153_v40  ;;  %v5401_v19 = vpop.f32.mrf.mxu0 }
 0xe0b   :  { %v3825_v19 = vld [vmem:[%s8931_s16 + $0x30] sm:$0xff] }
 0xe93   :  { %v4155_v48 = vpop.xlane.xlu0 %4154 }
 0xe94   :  { %vm4156_vm9 = vcmp.ge.f32.partialorder %v4146_v11, %v4155_v48 }
 0xe95   :  { %v4157_v28 = vsel %vm4156_vm9, %v8475_v45, 64.0  ;;  %vm9319_vm9 = vmmov %vm9317_vm4 }
 0xe96   :  { %v4158_v16 = vsel %vm9317_vm4, %v4157_v28, inf }
 0xe97   :  { %4159 = vmin.xlane.f32.xlu1 %v4158_v16 }
 0xf20   :  { %v8479_v24 = vpop.xlane.xlu1 %4159 }
 0xf21   :  { %vm9061_vm1 = vcmp.eq.f32.partialorder %v8475_v45, %v8479_v24 }
 0xf22   :  { %v4247_v23 = vsel %vm9061_vm1, -1e+30, %v4146_v11  ;;  %vm9320_vm1 = vmmov %vm9319_vm9 }
 0xf23   :  { %v4248_v58 = vsel %vm9318_vm15, %v4247_v23, -inf }
 0xf24   :  { %4249 = vmax.xlane.f32.xlu0 %v4248_v58 }
 0xfad   :  { %v4250_v38 = vpop.xlane.xlu0 %4249 }
 0xfae   :  { %vm4251_vm7 = vcmp.ge.f32.partialorder %v4247_v23, %v4250_v38 }
 0xfaf   :  { %v4252_v60 = vsel %vm4251_vm7, %v8475_v45, 64.0  ;;  %vm9321_vm7 = vmmov %vm9320_vm1 }
 0xfb0   :  { %v4253_v63 = vsel %vm9319_vm9, %v4252_v60, inf }
 0xfb1   :  { %4254 = vmin.xlane.f32.xlu1 %v4253_v63 }
0x103a   :  { %v8489_v44 = vpop.xlane.xlu1 %4254 }
0x103b   :  { %vm9062_vm4 = vcmp.eq.f32.partialorder %v8475_v45, %v8489_v44 }
0x103c   :  { %v4341_v41 = vsel %vm9062_vm4, -1e+30, %v4247_v23  ;;  %vm9322_vm4 = vmmov %vm9320_vm1 }
0x103d   :  { %v4342_v34 = vsel %vm9320_vm1, %v4341_v41, -inf }
0x103e   :  { %4343 = vmax.xlane.f32.xlu0 %v4342_v34  ;;  %v3821_v34 = vld [vmem:[%s8931_s16 + $0x10] sm:$0xff] }
0x10c7   :  { %v4344_v61 = vpop.xlane.xlu0 %4343 }
0x10c8   :  { %vm4345_vm15 = vcmp.ge.f32.partialorder %v4341_v41, %v4344_v61  ;;  %v3820_v61 = vld [vmem:[%s8931_s16 + $0x8] sm:$0xff] }
0x10c9   :  { %v4346_v49 = vsel %vm4345_vm15, %v8475_v45, 64.0  ;;  %vm9323_vm15 = vmmov %vm9322_vm4 }
0x10ca   :  { %v4347_v50 = vsel %vm9321_vm7, %v4346_v49, inf }
0x10cb   :  { %4348 = vmin.xlane.f32.xlu1 %v4347_v50 }
0x1154   :  { %v8499_v56 = vpop.xlane.xlu1 %4348 }
0x1155   :  { %vm9063_vm9 = vcmp.eq.f32.partialorder %v8475_v45, %v8499_v56 }
0x1156   :  { %v4435_v55 = vsel %vm9063_vm9, -1e+30, %v4341_v41  ;;  %vm9324_vm9 = vmmov %vm9322_vm4  ;;  %v3822_v41 = vld [vmem:[%s8931_s16 + $0x18] sm:$0xff] }
0x1157   :  { %v4436_v1 = vsel %vm9322_vm4, %v4435_v55, -inf }
0x1158   :  { %4437 = vmax.xlane.f32.xlu0 %v4436_v1 }
0x11e1   :  { %v4438_v36 = vpop.xlane.xlu0 %4437 }
0x11e2   :  { %vm4439_vm1 = vcmp.ge.f32.partialorder %v4435_v55, %v4438_v36 }
0x11e3   :  { %v4440_v39 = vsel %vm4439_vm1, %v8475_v45, 64.0  ;;  %vm9325_vm1 = vmmov %vm9324_vm9 }
0x11e4   :  { %v4441_v54 = vsel %vm9323_vm15, %v4440_v39, inf  ;;  %vm9326_vm15 = vcmask 23552  }
0x11e5   :  { %4442 = vmin.xlane.f32.xlu1 %v4441_v54  ;;  %v3771_v14 = vsel %vm9326_vm15, %v8451_v22, -inf }
0x126e   :  { %v8509_v2 = vpop.xlane.xlu1 %4442 }
0x126f   :  { %vm4444_vm7 = vcmp.eq.f32.partialorder %v8475_v45, %v8509_v2 }
0x1270   :  { %v4529_v52 = vsel %vm4444_vm7, -1e+30, %v4435_v55 }
0x1271   :  { %v4530_v5 = vsel %vm9324_vm9, %v4529_v52, -inf  ;;  %vm9327_vm9 = vmmov %vm9325_vm1 }
0x1272   :  { %4531 = vmax.xlane.f32.xlu0 %v4530_v5 }
0x12fb   :  { %v4532_v30 = vpop.xlane.xlu0 %4531 }
0x12fc   :  { %vm4533_vm4 = vcmp.ge.f32.partialorder %v4529_v52, %v4532_v30 }
0x12fd   :  { %v4534_v26 = vsel %vm4533_vm4, %v8475_v45, 64.0  ;;  %vm9328_vm4 = vmmov %vm9326_vm15 }
0x12fe   :  { %v4535_v21 = vsel %vm9325_vm1, %v4534_v26, inf  ;;  %vm9329_vm15 = vmmov %vm9327_vm9 }
0x12ff   :  { %4536 = vmin.xlane.f32.xlu1 %v4535_v21 }
0x1303   :  { %3772 = vmax.xlane.f32.xlu1 %v3771_v14 }
0x1388   :  { %v8521_v29 = vpop.xlane.xlu1 %4536 }
0x1389   :  { %vm4538_vm5 = vcmp.eq.f32.partialorder %v8475_v45, %v8521_v29 }
0x138a   :  { %v8528_v53 = vsel %vm4538_vm5, -1e+30, %v4529_v52 }
0x138b   :  { %v4624_v37 = vsel %vm9327_vm9, %v8528_v53, -inf  ;;  %vm9330_vm9 = vcmp.eq.s32.totalorder %v8189_v6, %v8199_v17 }
0x138c   :  { %4625 = vmax.xlane.f32.xlu0 %v4624_v37  ;;  %v3773_v47 = vpop.xlane.xlu1 %3772 }
0x138d   :  { %v3774_v20 = vsub.f32 %v8451_v22, %v3773_v47  ;;  %v3826_v22 = vld [vmem:[%s8931_s16 + $0x38] sm:$0xff] }
0x138f   :  { %v3775_v13 = vmul.f32 1.442695, %v3774_v20 }
0x1391   :  { %5630 = vpow2.f32 %v3775_v13 }
0x139e   :  { %v5631_v12 = vpop.eup %5630 }
0x139f   :  { %v3777_v10 = vsel %vm9328_vm4, %v5631_v12, 0.0  ;;  %vm9331_vm4 = vcmp.eq.s32.totalorder %v8192_v0, %v8199_v17 }
0x13a0   :  { %3778 = vadd.xlane.f32.xlu1 %v3777_v10 }
0x1415   :  { %v4626_v18 = vpop.xlane.xlu0 %4625 }
0x1416   :  { %vm4627_vm1 = vcmp.ge.f32.partialorder %v8528_v53, %v4626_v18 }
0x1417   :  { %v4628_v9 = vsel %vm4627_vm1, %v8475_v45, 64.0  ;;  %vm9336_vm1 = vcmp.eq.s32.totalorder %v8197_v62, %v8201_v59 }
0x1418   :  { %v4629_v7 = vsel %vm9329_vm15, %v4628_v9, inf  ;;  %vm9337_vm15 = vcmp.eq.s32.totalorder %v8204_v42, %v8201_v59 }
0x1419   :  { %4630 = vmin.xlane.f32.xlu0 %v4629_v7 }
0x1429   :  { %v3779_v8 = vpop.xlane.xlu1 %3778 }
0x142a   :  { %5632 = vrcp.f32 %v3779_v8 }
0x1437   :  { %v5633_v11 = vpop.eup %5632 }
0x1438   :  { %v3781_v40 = vmul.f32 %v5633_v11, %v5631_v12 }
0x143a   :  { %v3877_v48 = vrot.slane %v3781_v40, %v9276_v35  ;;  %v3927_v28 = vrot.slane %v3781_v40, %v9277_v32  ;;  %v3977_v16 = vrot.slane %v3781_v40, %v9278_v33  ;;  %v4027_v23 = vrot.slane %v3781_v40, %v9279_v31 }
0x143c   :  { %v3885_v58 = vsel %vm3845_vm11, %v3877_v48, %v3826_v22  ;;  %v3884_v38 = vsel %vm3844_vm6, %v3877_v48, %v3825_v19  ;;  %v3883_v60 = vsel %vm3843_vm3, %v3877_v48, %v3824_v4  ;;  %v3882_v35 = vsel %vm3842_vm14, %v3877_v48, %v3823_v15 }
0x143d   :  { %v3935_v32 = vsel %vm9330_vm9, %v3927_v28, %v3885_v58  ;;  %v3934_v33 = vsel %vm9331_vm4, %v3927_v28, %v3884_v38  ;;  %vm9332_vm11 = vcmp.eq.s32.totalorder %v8197_v62, %v8199_v17  ;;  %vm9333_vm6 = vcmp.eq.s32.totalorder %v8204_v42, %v8199_v17 }
0x143e   :  { %v3933_v31 = vsel %vm9332_vm11, %v3927_v28, %v3883_v60  ;;  %v3932_v63 = vsel %vm9333_vm6, %v3927_v28, %v3882_v35  ;;  %vm9334_vm14 = vcmp.eq.s32.totalorder %v8189_v6, %v8201_v59  ;;  %vm9335_vm3 = vcmp.eq.s32.totalorder %v8192_v0, %v8201_v59 }
0x143f   :  { %v3985_v49 = vsel %vm9334_vm14, %v3977_v16, %v3935_v32  ;;  %v3984_v50 = vsel %vm9335_vm3, %v3977_v16, %v3934_v33  ;;  %v3983_v55 = vsel %vm9336_vm1, %v3977_v16, %v3933_v31  ;;  %v3982_v1 = vsel %vm9337_vm15, %v3977_v16, %v3932_v63 }
0x1440   :  { %vm9338_vm9 = vcmp.eq.s32.totalorder %v8189_v6, %v8208_v57  ;;  %vm9339_vm4 = vcmp.eq.s32.totalorder %v8192_v0, %v8208_v57  ;;  %vm9340_vm11 = vcmp.eq.s32.totalorder %v8197_v62, %v8208_v57  ;;  %vm9341_vm6 = vcmp.eq.s32.totalorder %v8204_v42, %v8208_v57 }
0x1441   :  { %v8601_v36 = vsel %vm9338_vm9, %v4027_v23, %v3985_v49  ;;  %v8606_v39 = vsel %vm9339_vm4, %v4027_v23, %v3984_v50  ;;  %v8611_v54 = vsel %vm9340_vm11, %v4027_v23, %v3983_v55  ;;  %v8616_v52 = vsel %vm9341_vm6, %v4027_v23, %v3982_v1 }
0x1442   :  { %vm9342_vm14 = vcmask 23552   ;;  %5403 = vmatpush3.msra.mxu1 %v8601_v36  ;;  %5441 = vmatpush3.msra.mxu0 %v8601_v36  ;;  %vm9346_vm9 = vcmp.eq.s32.totalorder %v8213_v46, %v8194_v43  ;;  %v3880_v0 = vsel %vm3840_vm8, %v3877_v48, %v3821_v34  ;;  %v3879_v62 = vsel %vm3839_vm10, %v3877_v48, %v3820_v61 }
0x1443   :  { %4051 = vst.msk [vmem:[%s8938_s23 + $0x38] sm:$0xff] %vm9342_vm14, %v8601_v36  ;;  %vm9343_vm3 = vmmov %vm9342_vm14  ;;  %v3881_v6 = vsel %vm9346_vm9, %v3877_v48, %v3822_v41  ;;  %5404 = vmatprep.subr.mxu1 %v9256_v51  ;;  %5442 = vmatprep.subr.mxu0 %v9256_v51  ;;  %vm9347_vm4 = vcmp.eq.s32.totalorder %v8213_v46, %v8199_v17 }
0x1444   :  { %4050 = vst.msk [vmem:[%s8938_s23 + $0x30] sm:$0xff] %vm9343_vm3, %v8606_v39  ;;  %vm9344_vm1 = vmmov %vm9343_vm3  ;;  %v3931_v42 = vsel %vm9347_vm4, %v3927_v28, %v3881_v6  ;;  %vm9348_vm11 = vcmp.eq.s32.totalorder %v8230_v3, %v8199_v17  ;;  %vm9349_vm6 = vcmp.eq.s32.totalorder %v8248_v27, %v8199_v17  ;;  %5405 = vmatpush3.msra.mxu1 %v8606_v39 }
0x1445   :  { %4049 = vst.msk [vmem:[%s8938_s23 + $0x28] sm:$0xff] %vm9344_vm1, %v8611_v54  ;;  %vm9345_vm15 = vmmov %vm9344_vm1  ;;  %v3930_v5 = vsel %vm9348_vm11, %v3927_v28, %v3880_v0  ;;  %v3929_v30 = vsel %vm9349_vm6, %v3927_v28, %v3879_v62  ;;  %5443 = vmatpush3.msra.mxu0 %v8606_v39  ;;  %vm9350_vm8 = vcmp.eq.s32.totalorder %v8213_v46, %v8201_v59 }
0x1446   :  { %4048 = vst.msk [vmem:[%s8938_s23 + $0x20] sm:$0xff] %vm9345_vm15, %v8616_v52  ;;  %v3981_v21 = vsel %vm9350_vm8, %v3977_v16, %v3931_v42  ;;  %vm9351_vm10 = vcmp.eq.s32.totalorder %v8230_v3, %v8201_v59  ;;  %v3979_v37 = vsel %vm3939_vm12, %v3977_v16, %v3929_v30  ;;  %5406 = vmatprep.subr.mxu1 %v9256_v51  ;;  %vm9354_vm12 = vmmov %vm9344_vm1  ;;  %vm9362_vm8 = vcmask 523264  }
0x1447   :  { %v3980_v14 = vsel %vm9351_vm10, %v3977_v16, %v3930_v5  ;;  %5444 = vmatprep.subr.mxu0 %v9256_v51  ;;  %vm9352_vm14 = vcmp.eq.s32.totalorder %v8213_v46, %v8208_v57  ;;  %vm9353_vm3 = vcmp.eq.s32.totalorder %v8230_v3, %v8208_v57  ;;  %v8689_v13 = vsel %vm3989_vm0, %v4027_v23, %v3979_v37  ;;  %vm9355_vm15 = vmmov %vm9344_vm1 }
0x1448   :  { %v8679_v47 = vsel %vm9352_vm14, %v4027_v23, %v3981_v21  ;;  %v8684_v20 = vsel %vm9353_vm3, %v4027_v23, %v3980_v14  ;;  %5407 = vmatpush3.msra.mxu1 %v8611_v54  ;;  %5445 = vmatpush3.msra.mxu0 %v8611_v54  ;;  %vm9356_vm0 = vcmp.eq.s32.totalorder %v9275_v25, %v8199_v17  ;;  %vm9359_vm4 = vmmov %vm9344_vm1 }
0x1449   :  { %5408 = vmatprep.subr.mxu1 %v9256_v51  ;;  %5446 = vmatprep.subr.mxu0 %v9256_v51  ;;  %vm9357_vm9 = vcmp.eq.s32.totalorder %v9275_v25, %v8201_v59  ;;  %vm9360_vm11 = vcmp.eq.f32.partialorder %v8475_v45, %v8479_v24  ;;  %vm9361_vm6 = vcmp.eq.f32.partialorder %v8475_v45, %v8499_v56  ;;  %vm9363_vm10 = vmmov %vm9362_vm8  ;;  %v4988_v24 = vsel %vm4444_vm7, 1.0, %v9256_v51 }
0x144a   :  { %5409 = vmatpush3.msra.mxu1 %v8616_v52  ;;  %5447 = vmatpush3.msra.mxu0 %v8616_v52  ;;  %v4986_v17 = vsel %vm9361_vm6, 1.0, %v9256_v51  ;;  %vm9364_vm14 = vcmp.eq.f32.partialorder %v8475_v45, %v8489_v44  ;;  %vm9365_vm3 = vmmov %vm9362_vm8 }
0x144b   :  { %5410 = vmatprep.subr.mxu1 %v9256_v51  ;;  %5448 = vmatprep.subr.mxu0 %v9256_v51  ;;  %v4984_v59 = vsel %vm9364_vm14, 1.0, %v9256_v51  ;;  %vm9368_vm7 = vmmov %vm9365_vm3 }
0x144c   :  { %5411 = vmatpush3.msra.mxu1 %v8679_v47  ;;  %5449 = vmatpush3.msra.mxu0 %v8679_v47 }
0x144d   :  { %v3819_v26 = vld [vmem:[%s8931_s16] sm:$0xff]  ;;  %5412 = vmatprep.subr.mxu1 %v9256_v51  ;;  %5450 = vmatprep.subr.mxu0 %v9256_v51 }
0x144e   :  { %4047 = vst.msk [vmem:[%s8938_s23 + $0x18] sm:$0xff] %vm9354_vm12, %v8679_v47  ;;  %v3878_v46 = vsel %vm3838_vm13, %v3877_v48, %v3819_v26  ;;  %vm9358_vm13 = vcmp.eq.s32.totalorder %v9275_v25, %v8208_v57  ;;  %5413 = vmatpush3.msra.mxu1 %v8684_v20  ;;  %5451 = vmatpush3.msra.mxu0 %v8684_v20  ;;  %v4982_v25 = vsel %vm9360_vm11, 1.0, %v9256_v51  ;;  %v4990_v57 = vsel %vm4538_vm5, 1.0, %v9256_v51  ;;  %vm9366_vm12 = vmmov %vm9365_vm3 }
0x144f   :  { %4046 = vst.msk [vmem:[%s8938_s23 + $0x10] sm:$0xff] %vm9344_vm1, %v8684_v20  ;;  %v3928_v3 = vsel %vm9356_vm0, %v3927_v28, %v3878_v46  ;;  %5414 = vmatprep.subr.mxu1 %v9256_v51  ;;  %5452 = vmatprep.subr.mxu0 %v9256_v51  ;;  %vm9367_vm5 = vmmov %vm9365_vm3  ;;  %vm9369_vm1 = vcmask 519168  }
0x1450   :  { %4045 = vst.msk [vmem:[%s8938_s23 + $0x8] sm:$0xff] %vm9355_vm15, %v8689_v13  ;;  %v3978_v27 = vsel %vm9357_vm9, %v3977_v16, %v3928_v3  ;;  %5415 = vmatpush3.msra.mxu1 %v8689_v13  ;;  %5453 = vmatpush3.msra.mxu0 %v8689_v13  ;;  %vm4241_vm15 = vcmask 19456   ;;  %vm9370_vm9 = vmmov %vm9369_vm1 }
0x1451   :  { %v8726_v43 = vsel %vm9358_vm13, %v4027_v23, %v3978_v27  ;;  %5416 = vmatprep.subr.mxu1 %v9256_v51  ;;  %5454 = vmatprep.subr.mxu0 %v9256_v51 }
0x1452   :  { %4044 = vst.msk [vmem:[%s8938_s23] sm:$0xff] %vm9359_vm4, %v8726_v43  ;;  %5417 = vmatpush3.msra.mxu1 %v8726_v43  ;;  %5455 = vmatpush3.msra.mxu0 %v8726_v43  ;;  %vm9371_vm4 = vmmov %vm9365_vm3  ;;  %s5747_s23 = smov [#allocation7]  }
0x1453   :  { %5419 = vmatmul.mubr.msk.f32.vlgmr.msra.gmra.mxu1 %vm9362_vm8, %v4982_v25  ;;  %5421 = vmatprep.subr.mxu1 %v9256_v51  ;;  %s4865_s20 = sshll.u32 %s5747_s23, 4  ;;  %s4866_s20 = int_to_ptr.vmem [resolvable:$true] %s4865_s20 }
0x1454   :  { %5457 = vmatmul.mubr.msk.f32.vlgmr.msra.gmra.mxu0 %vm9363_vm10, %v4986_v17  ;;  %5478 = vmatprep.subr.mxu0 %v9256_v51  ;;  %s5683_s9 = scalar_lea.vmem %s4866_s20, 64  ;;  %p5688_p11 = scmp.lt.s32.totalorder %s4866_s20, %s4866_s20 }
0x1455   :  { %5422 = vmatpush3.msra.mxu1 %v8601_v36  ;;  %5479 = vmatpush3.msra.mxu0 %v8601_v36  ;;  %p5684_p10 = scmp.ne.s32.totalorder %s4866_s20, %s5683_s9  ;;  %p5689_p12 = scmp.lt.s32.totalorder %s5683_s9, %s5683_s9 }
0x1456   :  { %5423 = vmatprep.subr.mxu1 %v9256_v51  ;;  %5480 = vmatprep.subr.mxu0 %v9256_v51 }
0x1457   :  { %5424 = vmatpush3.msra.mxu1 %v8606_v39  ;;  %5481 = vmatpush3.msra.mxu0 %v8606_v39  ;;  %p5690_p13 = por %p5689_p12, %p5688_p11 }
0x1458   :  { %5425 = vmatprep.subr.mxu1 %v9256_v51  ;;  %5482 = vmatprep.subr.mxu0 %v9256_v51 }
0x1459   :  { %5426 = vmatpush3.msra.mxu1 %v8611_v54  ;;  %5483 = vmatpush3.msra.mxu0 %v8611_v54  ;;  %p5691_p0 = pnand %p5690_p13, %p5684_p10 }
0x145a   :  { %5427 = vmatprep.subr.mxu1 %v9256_v51  ;;  %5484 = vmatprep.subr.mxu0 %v9256_v51 }
0x145b   :  { %5428 = vmatpush3.msra.mxu1 %v8616_v52  ;;  %5485 = vmatpush3.msra.mxu0 %v8616_v52 }
0x145c   :  { %5429 = vmatprep.subr.mxu1 %v9256_v51  ;;  %5486 = vmatprep.subr.mxu0 %v9256_v51 }
0x145d   :  { %5430 = vmatpush3.msra.mxu1 %v8679_v47  ;;  %5487 = vmatpush3.msra.mxu0 %v8679_v47 }
0x145e   :  { %5431 = vmatprep.subr.mxu1 %v9256_v51  ;;  %5488 = vmatprep.subr.mxu0 %v9256_v51 }
0x145f   :  { %5432 = vmatpush3.msra.mxu1 %v8684_v20  ;;  %5489 = vmatpush3.msra.mxu0 %v8684_v20 }
0x1460   :  { %5433 = vmatprep.subr.mxu1 %v9256_v51  ;;  %5490 = vmatprep.subr.mxu0 %v9256_v51 }
0x1461   :  { %5434 = vmatpush3.msra.mxu1 %v8689_v13  ;;  %5491 = vmatpush3.msra.mxu0 %v8689_v13 }
0x1462   :  { %5435 = vmatprep.subr.mxu1 %v9256_v51  ;;  %5492 = vmatprep.subr.mxu0 %v9256_v51 }
0x1463   :  { %5436 = vmatpush3.msra.mxu1 %v8726_v43  ;;  %5437 = vmatprep.mubr.msk.f32.mxu1 %vm9314_vm2, %v9256_v51 }
0x1464   :  { %5493 = vmatpush3.msra.mxu0 %v8726_v43  ;;  %5494 = vmatprep.mubr.msk.f32.mxu0 %vm9314_vm2, %v9256_v51 }
0x1465   :  { %5438 = vmatmul.mubr.msk.f32.vlgmr.msra.gmra.mxu1 %vm9365_vm3, %v4984_v59  ;;  %5459 = vmatprep.subr.mxu1 %v9256_v51 }
0x1466   :  { %5495 = vmatmul.mubr.msk.f32.vlgmr.msra.gmra.mxu0 %vm9366_vm12, %v4990_v57  ;;  %5516 = vmatprep.subr.mxu0 %v9256_v51 }
0x1467   :  { %5460 = vmatpush3.msra.mxu1 %v8601_v36  ;;  %5517 = vmatpush3.msra.mxu0 %v8601_v36 }
0x1468   :  { %5461 = vmatprep.subr.mxu1 %v9256_v51  ;;  %5518 = vmatprep.subr.mxu0 %v9256_v51 }
0x1469   :  { %5462 = vmatpush3.msra.mxu1 %v8606_v39  ;;  %5519 = vmatpush3.msra.mxu0 %v8606_v39 }
0x146a   :  { %5463 = vmatprep.subr.mxu1 %v9256_v51  ;;  %5520 = vmatprep.subr.mxu0 %v9256_v51 }
0x146b   :  { %5464 = vmatpush3.msra.mxu1 %v8611_v54  ;;  %5521 = vmatpush3.msra.mxu0 %v8611_v54 }
0x146c   :  { %5465 = vmatprep.subr.mxu1 %v9256_v51  ;;  %5522 = vmatprep.subr.mxu0 %v9256_v51 }
0x146d   :  { %5466 = vmatpush3.msra.mxu1 %v8616_v52  ;;  %5523 = vmatpush3.msra.mxu0 %v8616_v52 }
0x146e   :  { %5467 = vmatprep.subr.mxu1 %v9256_v51  ;;  %5524 = vmatprep.subr.mxu0 %v9256_v51 }
0x146f   :  { %5468 = vmatpush3.msra.mxu1 %v8679_v47  ;;  %5525 = vmatpush3.msra.mxu0 %v8679_v47 }
0x1470   :  { %5469 = vmatprep.subr.mxu1 %v9256_v51  ;;  %5526 = vmatprep.subr.mxu0 %v9256_v51 }
0x1471   :  { %5470 = vmatpush3.msra.mxu1 %v8684_v20  ;;  %5527 = vmatpush3.msra.mxu0 %v8684_v20 }
0x1472   :  { %5471 = vmatprep.subr.mxu1 %v9256_v51  ;;  %5528 = vmatprep.subr.mxu0 %v9256_v51 }
0x1473   :  { %5472 = vmatpush3.msra.mxu1 %v8689_v13  ;;  %5529 = vmatpush3.msra.mxu0 %v8689_v13 }
0x1474   :  { %5473 = vmatprep.subr.mxu1 %v9256_v51  ;;  %5530 = vmatprep.subr.mxu0 %v9256_v51 }
0x1475   :  { %5474 = vmatpush3.msra.mxu1 %v8726_v43  ;;  %5475 = vmatprep.mubr.msk.f32.mxu1 %vm9314_vm2, %v9256_v51 }
0x1476   :  { %5531 = vmatpush3.msra.mxu0 %v8726_v43  ;;  %5476 = vmatmul.mubr.msk.f32.vlgmr.msra.gmra.mxu1 %vm9367_vm5, %v4988_v24 }
0x1477   :  { %5497 = vmatprep.subr.mxu1 %v9256_v51  ;;  %5513 = vmatprep.mubr.msk.f32.mxu1 %vm9314_vm2, %v9256_v51 }
0x1478   :  { %5498 = vmatpush3.msra.mxu1 %v8601_v36  ;;  %5532 = vmatprep.mubr.msk.f32.mxu0 %vm9314_vm2, %v9256_v51 }
0x1479   :  { %5499 = vmatprep.subr.mxu1 %v9256_v51 }
0x147a   :  { %5500 = vmatpush3.msra.mxu1 %v8606_v39 }
0x147b   :  { %5501 = vmatprep.subr.mxu1 %v9256_v51 }
0x147c   :  { %5502 = vmatpush3.msra.mxu1 %v8611_v54 }
0x147d   :  { %5503 = vmatprep.subr.mxu1 %v9256_v51 }
0x147e   :  { %5504 = vmatpush3.msra.mxu1 %v8616_v52 }
0x147f   :  { %5505 = vmatprep.subr.mxu1 %v9256_v51 }
0x1480   :  { %5506 = vmatpush3.msra.mxu1 %v8679_v47 }
0x1481   :  { %5507 = vmatprep.subr.mxu1 %v9256_v51 }
0x1482   :  { %5508 = vmatpush3.msra.mxu1 %v8684_v20 }
0x1483   :  { %5509 = vmatprep.subr.mxu1 %v9256_v51 }
0x1484   :  { %5510 = vmatpush3.msra.mxu1 %v8689_v13 }
0x1485   :  { %5511 = vmatprep.subr.mxu1 %v9256_v51 }
0x1486   :  { %5512 = vmatpush3.msra.mxu1 %v8726_v43 }
0x14a2   :  { %v4631_v44 = vpop.xlane.xlu0 %4630 }
0x14a3   :  { %vm4632_vm2 = vcmp.eq.f32.partialorder %v8475_v45, %v4631_v44 }
0x14a4   :  { %v4992_v56 = vsel %vm4632_vm2, 1.0, %v9256_v51  ;;  %v4717_v2 = vsel %vm4632_vm2, -1e+30, %v8528_v53 }
0x14a5   :  { %5514 = vmatmul.mubr.msk.f32.vlgmr.msra.gmra.mxu1 %vm9368_vm7, %v4992_v56  ;;  %v4718_v29 = vsel %vm9369_vm1, %v4717_v2, -inf }
0x14a6   :  { %4719 = vmax.xlane.f32.xlu0 %v4718_v29 }
0x1513   :  { %v8867_v12 = vpop.f32.mrf.mxu1 }
0x1514   :  { %v4237_v10 = vadd.f32 1e-05, %v8867_v12  ;;  %v8870_v18 = vpop.f32.mrf.mxu0 }
0x1515   :  { %v4426_v9 = vadd.f32 1e-05, %v8870_v18  ;;  %v5420_v7 = vpop.f32.mrf.mxu1 }
0x1516   :  { %5634 = vlog2.f32 %v4237_v10  ;;  %v5458_v8 = vpop.f32.mrf.mxu0 }
0x1517   :  { %5636 = vlog2.f32 %v4426_v9 }
0x1523   :  { %v5635_v11 = vpop.eup %5634 }
0x1524   :  { %v5637_v40 = vpop.eup %5636  ;;  %v4239_v53 = vmul.f32 0.6931472, %v5635_v11 }
0x1525   :  { %v8873_v22 = vpop.f32.mrf.mxu1  ;;  %v4428_v19 = vmul.f32 0.6931472, %v5637_v40 }
0x1526   :  { %v4332_v4 = vadd.f32 1e-05, %v8873_v22  ;;  %v8876_v15 = vpop.f32.mrf.mxu0  ;;  %v4240_v48 = vmul.f32 %v4239_v53, %v8867_v12 }
0x1527   :  { %v4614_v28 = vadd.f32 1e-05, %v8876_v15  ;;  %v5439_v16 = vpop.f32.mrf.mxu1  ;;  %v4429_v38 = vmul.f32 %v4428_v19, %v8870_v18 }
0x1528   :  { %5638 = vlog2.f32 %v4332_v4  ;;  %v5496_v23 = vpop.f32.mrf.mxu0  ;;  %v4242_v58 = vsel %vm4241_vm15, %v4240_v48, 0.0 }
0x1529   :  { %5640 = vlog2.f32 %v4614_v28  ;;  %4243 = vadd.xlane.f32.xlu0 %v4242_v58  ;;  %v4430_v60 = vsel %vm4241_vm15, %v4429_v38, 0.0 }
0x152d   :  { %4431 = vadd.xlane.f32.xlu0 %v4430_v60 }
0x152f   :  { %v4720_v35 = vpop.xlane.xlu0 %4719 }
0x1530   :  { %vm4721_vm0 = vcmp.ge.f32.partialorder %v4717_v2, %v4720_v35 }
0x1531   :  { %v4722_v33 = vsel %vm4721_vm0, %v8475_v45, 64.0 }
0x1532   :  { %v4723_v34 = vsel %vm9370_vm9, %v4722_v33, inf }
0x1533   :  { %4724 = vmin.xlane.f32.xlu1 %v4723_v34 }
0x1535   :  { %v5639_v32 = vpop.eup %5638 }
0x1536   :  { %v5641_v31 = vpop.eup %5640  ;;  %v4334_v63 = vmul.f32 0.6931472, %v5639_v32  ;;  %v8884_v41 = vpop.f32.mrf.mxu1 }
0x1537   :  { %v4520_v61 = vadd.f32 1e-05, %v8884_v41  ;;  %v4616_v49 = vmul.f32 0.6931472, %v5641_v31 }
0x1538   :  { %v4335_v50 = vmul.f32 %v4334_v63, %v8873_v22  ;;  %v5477_v55 = vpop.f32.mrf.mxu1 }
0x1539   :  { %5642 = vlog2.f32 %v4520_v61  ;;  %v4617_v1 = vmul.f32 %v4616_v49, %v8876_v15 }
0x153a   :  { %v4336_v36 = vsel %vm4241_vm15, %v4335_v50, 0.0 }
0x153b   :  { %v4618_v39 = vsel %vm4241_vm15, %v4617_v1, 0.0  ;;  %4337 = vadd.xlane.f32.xlu1 %v4336_v36 }
0x153c   :  { %4619 = vadd.xlane.f32.xlu0 %v4618_v39 }
0x1546   :  { %v5643_v54 = vpop.eup %5642 }
0x1547   :  { %v4522_v52 = vmul.f32 0.6931472, %v5643_v54 }
0x1549   :  { %v4523_v6 = vmul.f32 %v4522_v52, %v8884_v41 }
0x154b   :  { %v4524_v0 = vsel %vm4241_vm15, %v4523_v6, 0.0 }
0x154c   :  { %4525 = vadd.xlane.f32.xlu1 %v4524_v0 }
0x1565   :  { %v8894_v62 = vpop.f32.mrf.mxu1 }
0x1566   :  { %v4708_v42 = vadd.f32 1e-05, %v8894_v62 }
0x1567   :  { %v5515_v5 = vpop.f32.mrf.mxu1 }
0x1568   :  { %5644 = vlog2.f32 %v4708_v42 }
0x1575   :  { %v5645_v30 = vpop.eup %5644 }
0x1576   :  { %v4710_v26 = vmul.f32 0.6931472, %v5645_v30 }
0x1578   :  { %v4711_v21 = vmul.f32 %v4710_v26, %v8894_v62 }
0x157a   :  { %v4712_v14 = vsel %vm4241_vm15, %v4711_v21, 0.0 }
0x157b   :  { %4713 = vadd.xlane.f32.xlu1 %v4712_v14 }
0x15b2   :  { %v4244_v17 = vpop.xlane.xlu0 %4243 }
0x15b3   :  { %v4245_v24 = vmul.f32 -0.14285715, %v4244_v17 }
0x15b6   :  { %v4432_v44 = vpop.xlane.xlu0 %4431 }
0x15b7   :  { %v4433_v2 = vmul.f32 -0.14285715, %v4432_v44 }
0x15b9   :  { %v4434_v8 = vsub.f32 1.0, %v4433_v2 }
0x15bc   :  { %v4725_v37 = vpop.xlane.xlu1 %4724 }
0x15bd   :  { %vm4726_vm13 = vcmp.eq.f32.partialorder %v8475_v45, %v4725_v37 }
0x15be   :  { %v4994_v47 = vsel %vm4726_vm13, 1.0, %v9256_v51  ;;  %v4246_v51 = vsub.f32 1.0, %v4245_v24 }
0x15bf   :  { %5533 = vmatmul.mubr.msk.f32.vlgmr.msra.gmra.mxu0 %vm9371_vm4, %v4994_v47 }
0x15c4   :  { %v4338_v59 = vpop.xlane.xlu1 %4337 }
0x15c5   :  { %v4339_v57 = vmul.f32 -0.14285715, %v4338_v59  ;;  %v4620_v9 = vpop.xlane.xlu0 %4619 }
0x15c6   :  { %v4621_v40 = vmul.f32 -0.14285715, %v4620_v9 }
0x15c7   :  { %v4340_v56 = vsub.f32 1.0, %v4339_v57 }
0x15c8   :  { %v4622_v48 = vsub.f32 1.0, %v4621_v40 }
0x15c9   :  { %v4811_v10 = vadd.f32 %v4340_v56, %v4246_v51 }
0x15cb   :  { %v4812_v53 = vadd.f32 %v4811_v10, %v4434_v8 }
0x15d5   :  { %v4526_v45 = vpop.xlane.xlu1 %4525 }
0x15d6   :  { %v4527_v29 = vmul.f32 -0.14285715, %v4526_v45 }
0x15d8   :  { %v4528_v11 = vsub.f32 1.0, %v4527_v29 }
0x15da   :  { %v4813_v4 = vadd.f32 %v4812_v53, %v4528_v11 }
0x15dc   :  { %v4814_v23 = vadd.f32 %v4813_v4, %v4622_v48 }
0x1604   :  { %v4714_v7 = vpop.xlane.xlu1 %4713 }
0x1605   :  { %v4715_v19 = vmul.f32 -0.14285715, %v4714_v7 }
0x1607   :  { %v4716_v28 = vsub.f32 1.0, %v4715_v19 }
0x1609   :  { %v4815_v38 = vadd.f32 %v4814_v23, %v4716_v28 }
0x167f   :  { %v4798_v20 = vpop.f32.mrf.mxu0 }
0x1680   :  { %v4802_v13 = vadd.f32 1e-05, %v4798_v20 }
0x1681   :  { %v5534_v46 = vpop.f32.mrf.mxu0 }
0x1682   :  { %5646 = vlog2.f32 %v4802_v13 }
0x168f   :  { %v5647_v3 = vpop.eup %5646 }
0x1690   :  { %v4804_v27 = vmul.f32 0.6931472, %v5647_v3 }
0x1692   :  { %v4805_v43 = vmul.f32 %v4804_v27, %v4798_v20 }
0x1694   :  { %v4806_v25 = vsel %vm4241_vm15, %v4805_v43, 0.0 }
0x1695   :  { %4807 = vadd.xlane.f32.xlu0 %v4806_v25 }
0x171e   :  { %v4808_v16 = vpop.xlane.xlu0 %4807 }
0x171f   :  { %v4809_v58 = vmul.f32 -0.14285715, %v4808_v16 }
0x1721   :  { %v4810_v60 = vsub.f32 1.0, %v4809_v58 }
0x1723   :  { %v4816_v35 = vadd.f32 %v4815_v38, %v4810_v60 }
0x1725   :  { %5648 = vrcp.f32 %v4816_v35 }
0x1732   :  { %v5649_v32 = vpop.eup %5648 }
0x1733   :  { %v4818_v33 = vmul.f32 %v5649_v32, %v4246_v51  ;;  %v4821_v31 = vmul.f32 %v5649_v32, %v4340_v56  ;;  %v4824_v63 = vmul.f32 %v5649_v32, %v4434_v8  ;;  %v4827_v49 = vmul.f32 %v5649_v32, %v4528_v11 }
0x1734   :  { %v4830_v1 = vmul.f32 %v5649_v32, %v4622_v48  ;;  %v4833_v54 = vmul.f32 %v5649_v32, %v4716_v28  ;;  %v4836_v52 = vmul.f32 %v5649_v32, %v4810_v60 }
0x1735   :  { %v4819_v34 = vmul.f32 %v4818_v33, %v8867_v12  ;;  %v4822_v61 = vmul.f32 %v4821_v31, %v8873_v22  ;;  %v4825_v55 = vmul.f32 %v4824_v63, %v8870_v18  ;;  %v4828_v39 = vmul.f32 %v4827_v49, %v8884_v41 }
0x1736   :  { %v4831_v0 = vmul.f32 %v4830_v1, %v8876_v15  ;;  %v4834_v5 = vmul.f32 %v4833_v54, %v8894_v62  ;;  %v4837_v30 = vmul.f32 %v4836_v52, %v4798_v20 }
0x1737   :  { %v4823_v50 = vadd.f32 %v4822_v61, %v4819_v34 }
0x1739   :  { %v4826_v36 = vadd.f32 %v4825_v55, %v4823_v50 }
0x173b   :  { %v4829_v6 = vadd.f32 %v4828_v39, %v4826_v36 }
0x173d   :  { %v4832_v42 = vadd.f32 %v4831_v0, %v4829_v6 }
0x173f   :  { %v4835_v12 = vadd.f32 %v4834_v5, %v4832_v42 }
0x1741   :  { %v4838_v26 = vadd.f32 %v4837_v30, %v4835_v12 }
0x1743   :  { %v4839_v22 = vsel %vm4241_vm15, %v4838_v26, -inf }
0x1744   :  { %4840 = vmax.xlane.f32.xlu1 %v4839_v22 }
0x17cd   :  { %v4841_v21 = vpop.xlane.xlu1 %4840 }
0x17ce   :  { %v4842_v18 = vsub.f32 %v4838_v26, %v4841_v21 }
0x17d0   :  { %v4843_v14 = vmul.f32 1.442695, %v4842_v18 }
0x17d2   :  { %5650 = vpow2.f32 %v4843_v14 }
0x17df   :  { %v5651_v37 = vpop.eup %5650 }
0x17e0   :  { %v4845_v41 = vsel %vm4241_vm15, %v5651_v37, 0.0 }
0x17e1   :  { %4846 = vadd.xlane.f32.xlu0 %v4845_v41 }
0x186a   :  { %v4847_v47 = vpop.xlane.xlu0 %4846 }
0x186b   :  { %5652 = vrcp.f32 %v4847_v47 }
0x1878   :  { %v5653_v15 = vpop.eup %5652 }
0x1879   :  { %v4849_v62 = vmul.f32 %v5653_v15, %v5651_v37 }
0x187b   :  { %4850 = vst.msk [vmem:[#allocation7] sm:$0xf] %vm4241_vm15, %v4849_v62 }
0x187c   :  { %5694 = shalt.err (!%p5691_p0)
}
0x187d   :  { %4868 = dma.vmem_to_hbm [thread:$0]  %s4866_s20, 64, %s8936_s21, [#allocation3]  }
0x187e   :  { %5707 = dma.done.wait [#allocation3], 64  }
0x187f   :  { %5708 = vsyncadd [#allocation3], 4294967232 }
0x1880   :  { %4888 = vsyncpa [#allocation3], 1 }
0x1881   :  { %4889 = vsyncpa [#allocation4], 1 }
0x1882   :  { %4890 = vsyncpa [#allocation6], 1 }

</bundles_post_ra>
